<compile_context>
chip_gen: v7x
topology: tpu7x:2x2x1
jax: 0.10.0
libtpu: 0.0.40
codegen_flags: <defaults>
</compile_context>

<pallas_src>
import math

import numpy as np

import jax
import jax.numpy as jnp
from jax.experimental import pallas as pl
from jax.experimental.pallas import tpu as pltpu


# ---------------------------------------------------------------------------
# Wrapper-side constant construction (pure layout / tiny tensors)
# ---------------------------------------------------------------------------
def _banded_matrices(w, wp_in, pad_out, wp_out, out_w, lband):
    """(cout, cin, K, K) conv weight -> (K, lband, lband) banded matrices.

    M[kh, ci*wp_in + q, co*wp_out + pad_out + j] = w[co, ci, kh, q - j]
    for 0 <= j < out_w and 0 <= q - j < K; zero elsewhere.  With the input
    plane laid out as P[row, ci*wp_in + q] = xpad[ci, row, q], the conv is
        y[:, co-stripe] = sum_kh P[kh : kh+rows, :] @ M[kh].
    """
    cout, cin, K, _ = w.shape
    l = np.arange(lband)[:, None]          # input lane
    m = np.arange(lband)[None, :]          # output lane
    ci = l // wp_in
    q = l % wp_in
    co = m // wp_out
    j = m % wp_out - pad_out
    kw = q - j
    valid = ((l < cin * wp_in) & (m < cout * wp_out)
             & (j >= 0) & (j < out_w) & (kw >= 0) & (kw < K))
    ci_c = np.where(valid, ci, 0)
    co_c = np.where(valid, co, 0)
    kw_c = np.where(valid, kw, 0)
    vmask = jnp.asarray(valid, jnp.float32)
    mats = [w[co_c, ci_c, kh, kw_c].astype(jnp.float32) * vmask for kh in range(K)]
    return jnp.stack(mats, axis=0)


def _stripe_bias(b, wp_out, pad_out, out_w, lband):
    """(cout,) bias -> (1, lband) lane vector matching the stripe layout."""
    cout = b.shape[0]
    m = np.arange(lband)
    co = m // wp_out
    j = m % wp_out - pad_out
    valid = (m < cout * wp_out) & (j >= 0) & (j < out_w)
    co_c = np.where(valid, co, 0)
    vec = b[co_c].astype(jnp.float32) * jnp.asarray(valid, jnp.float32)
    return vec[None, :]


def _w3_matrix(w3, out_w, lband):
    """1x1 conv (C->1) as a (lband, out_w) matrix over the dense c*W layout."""
    cnum = w3.shape[0]
    rows = np.arange(lband)[:, None]
    cols = np.arange(out_w)[None, :]
    co = rows // out_w
    j = rows % out_w
    valid = (rows < cnum * out_w) & (j == cols)
    co_c = np.where(rows < cnum * out_w, co, 0)[:, 0]
    return w3[co_c].astype(jnp.float32)[:, None] * jnp.asarray(valid, jnp.float32)


def _pick_b_tile(batch):
    """Sublane-stack up to 4 images per grid step, but keep >=2 grid steps
    whenever possible so both v7x TensorCores stay busy."""
    for t in (4, 3, 2):
        if batch % t == 0 and batch // t >= 2:
            return t
    return 1


# ---------------------------------------------------------------------------
# Kernel
# ---------------------------------------------------------------------------
def make_kernel(b_tile, hp_pad, H, W, K, pad_lo, lband):
    # Rows of the stacked accumulator plane.  Rows b*hp_pad + i (i < H) are
    # the real outputs for image b; in-between rows are harmless garbage
    # (each matmul output row depends only on its own input row).
    nr = b_tile * hp_pad - (hp_pad - H)
    hi = jax.lax.Precision.HIGHEST

    def kernel(x_ref, m1_ref, b1_ref, m2_ref, b2_ref, w3_ref, b3_ref,
               o_ref, xb2):
        # ---- conv1: K banded MXU matmuls over the whole stacked plane ----
        acc1 = jnp.zeros((nr, lband), jnp.float32)
        for kh in range(K):                                   # static, unrolled
            acc1 = acc1 + jnp.dot(x_ref[pl.ds(kh, nr), :], m1_ref[kh],
                                  preferred_element_type=jnp.float32,
                                  precision=hi)

        # ---- bias + ReLU, written straight into conv2's zero-padded plane.
        # Padding lanes of the stored block are relu(0+0)=0, so only the
        # vertical padding bands need the zero fill.
        xb2[...] = jnp.zeros_like(xb2)
        b1v = b1_ref[...]                                     # (1, lband)
        for b in range(b_tile):
            blk = jnp.maximum(acc1[b * hp_pad:b * hp_pad + H, :] + b1v, 0.0)
            xb2[pl.ds(b * hp_pad + pad_lo, H), :] = blk

        # ---- conv2: same banded-matmul structure ----
        acc2 = jnp.zeros((nr, lband), jnp.float32)
        for kh in range(K):
            acc2 = acc2 + jnp.dot(xb2[pl.ds(kh, nr), :], m2_ref[kh],
                                  preferred_element_type=jnp.float32,
                                  precision=hi)
        h2 = jnp.maximum(acc2 + b2_ref[...], 0.0)

        # ---- conv3 (1x1, C->1): one skinny matmul over all rows + bias ----
        out = jnp.dot(h2, w3_ref[...], preferred_element_type=jnp.float32,
                      precision=hi) + b3_ref[0]
        for b in range(b_tile):
            o_ref[b, :, :] = out[b * hp_pad:b * hp_pad + H, :].astype(o_ref.dtype)

    return kernel


# ---------------------------------------------------------------------------
# Forward wrapper (mirrors WT3Net.forward)
# ---------------------------------------------------------------------------
def wt3net_forward(x, params, deploy_flag=False, deploy_temperature=-1.0):
    orig_3d = x.ndim == 3
    if orig_3d:
        x = x[None]
    x = x.astype(jnp.float32)

    B, cin, H, W = x.shape
    c, cin_w, K, _ = params["w1"].shape
    assert cin_w == cin
    pad_lo = (K - 1) // 2            # torch padding='same' for even K: 4 / 5
    pad_hi = (K - 1) - pad_lo
    wp = W + K - 1                   # 25-lane padded stripe width
    hp = H + K - 1                   # 25 padded rows
    hp_pad = ((hp + 7) // 8) * 8     # 32: sublane-aligned per-image block
    lband = ((max(cin, c) * wp + 127) // 128) * 128   # 128 lanes

    # Pre-pad + channel-stripe the input into a lane-dense plane:
    #   plane[b*hp_pad + r, ci*wp + q] = xpad[b, ci, r, q]
    xpad = jnp.pad(x, ((0, 0), (0, 0), (pad_lo, pad_hi), (pad_lo, pad_hi)))
    plane = jnp.transpose(xpad, (0, 2, 1, 3)).reshape(B, hp, cin * wp)
    plane = jnp.pad(plane, ((0, 0), (0, hp_pad - hp), (0, lband - cin * wp)))
    plane = plane.reshape(B * hp_pad, lband)

    # Banded weight matrices (built once; grid-invariant inputs).
    m1 = _banded_matrices(params["w1"].astype(jnp.float32), wp, pad_lo, wp, W, lband)
    m2 = _banded_matrices(params["w2"].astype(jnp.float32), wp, 0, W, W, lband)
    b1v = _stripe_bias(params["b1"].astype(jnp.float32), wp, pad_lo, W, lband)
    b2v = _stripe_bias(params["b2"].astype(jnp.float32), W, 0, W, lband)
    w3m = _w3_matrix(params["w3"].reshape(-1).astype(jnp.float32), W, lband)
    b3 = params["b3"].reshape(1).astype(jnp.float32)

    b_tile = _pick_b_tile(B)
    grid = (B // b_tile,)
    kernel = make_kernel(b_tile, hp_pad, H, W, K, pad_lo, lband)

    out = pl.pallas_call(
        kernel,
        out_shape=jax.ShapeDtypeStruct((B, H, W), jnp.float32),
        grid=grid,
        in_specs=[
            pl.BlockSpec((b_tile * hp_pad, lband), lambda g: (g, 0)),
            pl.BlockSpec((K, lband, lband), lambda g: (0, 0, 0)),
            pl.BlockSpec((1, lband), lambda g: (0, 0)),
            pl.BlockSpec((K, lband, lband), lambda g: (0, 0, 0)),
            pl.BlockSpec((1, lband), lambda g: (0, 0)),
            pl.BlockSpec((lband, W), lambda g: (0, 0)),
            pl.BlockSpec(memory_space=pltpu.MemorySpace.SMEM),   # b3 scalar
        ],
        out_specs=pl.BlockSpec((b_tile, H, W), lambda g: (g, 0, 0)),
        scratch_shapes=[
            pltpu.VMEM((b_tile * hp_pad, lband), jnp.float32),   # conv2 input plane
        ],
        compiler_params=pltpu.CompilerParams(
            dimension_semantics=("parallel",),   # one grid step per TC on v7x
        ),
    )(plane, m1, b1v, m2, b2v, w3m, b3)

    if deploy_flag and deploy_temperature > 0:
        # torch: F.softmax(x3 / T, dim=1) on (B, H, W)  ->  axis=1 (H).
        out = jax.nn.softmax(out / deploy_temperature, axis=1)
    if orig_3d:
        out = jnp.squeeze(out, axis=0)
    return out


# ---------------------------------------------------------------------------
# Init + pure-JAX reference (for the correctness check)
# ---------------------------------------------------------------------------
def init_params(key, num_channels, filter_size):
    """Deterministic init, PyTorch-Conv2d-style uniform(-1/sqrt(fan_in), ...)."""
    def conv_init(kw, kb, cout, cin, k):
        bound = 1.0 / math.sqrt(cin * k * k)
        w = jax.random.uniform(kw, (cout, cin, k, k), jnp.float32, -bound, bound)
        b = jax.random.uniform(kb, (cout,), jnp.float32, -bound, bound)
        return w, b

    k = jax.random.split(key, 6)
    w1, b1 = conv_init(k[0], k[1], num_channels, 3, filter_size)
    w2, b2 = conv_init(k[2], k[3], num_channels, num_channels, filter_size)
    w3, b3 = conv_init(k[4], k[5], 1, num_channels, 1)
    return {"w1": w1, "b1": b1, "w2": w2, "b2": b2, "w3": w3, "b3": b3}


def reference_forward(x, params, K):
    """Pure-JAX reference (lax conv, highest precision)."""
    pad_lo = (K - 1) // 2
    pad_hi = (K - 1) - pad_lo

    def conv(x, w, b, pad):
        out = jax.lax.conv_general_dilated(
            x, w, (1, 1), pad, dimension_numbers=("NCHW", "OIHW", "NCHW"),
            precision=jax.lax.Precision.HIGHEST)
        return out + b[None, :, None, None]

    same = [(pad_lo, pad_hi), (pad_lo, pad_hi)]
    x1 = jax.nn.relu(conv(x, params["w1"], params["b1"], same))
    h2 = jax.nn.relu(conv(x1, params["w2"], params["b2"], same))
    x2 = conv(h2, params["w3"], params["b3"], [(0, 0), (0, 0)])
    return jnp.squeeze(x2, axis=1)


if __name__ == "__main__":
    num_channels = 4
    filter_size = 10
    B, H, W = 2, 16, 16

    key = jax.random.PRNGKey(0)
    kx, kp = jax.random.split(key)
    x = jax.random.normal(kx, (B, 3, H, W), dtype=jnp.float32)
    params = init_params(kp, num_channels, filter_size)

    out = jax.block_until_ready(wt3net_forward(x, params))
    assert out.shape == (B, H, W), out.shape

    ref = jax.block_until_ready(reference_forward(x, params, filter_size))
    max_err = float(jnp.max(jnp.abs(out - ref)))
    # MXU accumulation order differs from the lax reference; 5e-3 covers it.
    assert jnp.allclose(out, ref, rtol=5e-3, atol=5e-3), max_err

    print("KERNEL_OK")
</pallas_src>

<mosaic_0001>
module attributes {stable_mosaic.version = 11 : i64} {
  func.func @kernel(%arg0: i32, %arg1: memref<32x128xf32, #tpu.memory_space<vmem>>, %arg2: memref<10x128x128xf32, #tpu.memory_space<vmem>>, %arg3: memref<1x128xf32, #tpu.memory_space<vmem>>, %arg4: memref<10x128x128xf32, #tpu.memory_space<vmem>>, %arg5: memref<1x128xf32, #tpu.memory_space<vmem>>, %arg6: memref<128x16xf32, #tpu.memory_space<vmem>>, %arg7: memref<1xf32, #tpu.memory_space<smem>>, %arg8: memref<1x16x16xf32, #tpu.memory_space<vmem>>, %arg9: memref<32x128xf32, #tpu.memory_space<vmem>>) attributes {dimension_semantics = [#tpu.dimension_semantics<parallel>], iteration_bounds = array<i64: 2>, scalar_prefetch = 0 : i64, scratch_operands = 1 : i64, tpu.core_type = #tpu.core_type<tc>, window_params = [{transform_indices = @transform_0, window_bounds = array<i64: 32, 128>}, {pipeline_mode = #tpu.pipeline_mode<synchronous>, transform_indices = @transform_1, window_bounds = array<i64: 10, 128, 128>}, {pipeline_mode = #tpu.pipeline_mode<synchronous>, transform_indices = @transform_2, window_bounds = array<i64: 1, 128>}, {pipeline_mode = #tpu.pipeline_mode<synchronous>, transform_indices = @transform_3, window_bounds = array<i64: 10, 128, 128>}, {pipeline_mode = #tpu.pipeline_mode<synchronous>, transform_indices = @transform_4, window_bounds = array<i64: 1, 128>}, {pipeline_mode = #tpu.pipeline_mode<synchronous>, transform_indices = @transform_5, window_bounds = array<i64: 128, 16>}, {transform_indices = @transform_6, window_bounds = array<i64: 1>}, {transform_indices = @transform_7, window_bounds = array<i64: 1, 16, 16>}]} {
    %cst = arith.constant 0.000000e+00 : f32
    %0 = vector.broadcast %cst : f32 to vector<16x128xf32>
    %c0 = arith.constant 0 : index
    %c0_0 = arith.constant 0 : index
    %1 = vector.load %arg1[%c0, %c0_0] : memref<32x128xf32, #tpu.memory_space<vmem>>, vector<16x128xf32>
    %c0_1 = arith.constant 0 : index
    %c0_2 = arith.constant 0 : index
    %c0_3 = arith.constant 0 : index
    %2 = vector.load %arg2[%c0_1, %c0_2, %c0_3] : memref<10x128x128xf32, #tpu.memory_space<vmem>>, vector<1x128x128xf32>
    %3 = vector.shape_cast %2 : vector<1x128x128xf32> to vector<128x128xf32>
    %cst_4 = arith.constant dense<0.000000e+00> : vector<16x128xf32>
    %4 = tpu.matmul %1, %3, %cst_4 {dimension_numbers = #tpu.dot_dimension_numbers<[1], [0], [0], [1], [0, 0, 1, 1], [], []>, precision = #tpu.contract_precision<fp32>} : vector<16x128xf32>, vector<128x128xf32>, vector<16x128xf32> -> vector<16x128xf32>
    %5 = arith.addf %0, %4 : vector<16x128xf32>
    %c1 = arith.constant 1 : index
    %c0_5 = arith.constant 0 : index
    %6 = vector.load %arg1[%c1, %c0_5] : memref<32x128xf32, #tpu.memory_space<vmem>>, vector<16x128xf32>
    %c1_6 = arith.constant 1 : index
    %c0_7 = arith.constant 0 : index
    %c0_8 = arith.constant 0 : index
    %7 = vector.load %arg2[%c1_6, %c0_7, %c0_8] : memref<10x128x128xf32, #tpu.memory_space<vmem>>, vector<1x128x128xf32>
    %8 = vector.shape_cast %7 : vector<1x128x128xf32> to vector<128x128xf32>
    %cst_9 = arith.constant dense<0.000000e+00> : vector<16x128xf32>
    %9 = tpu.matmul %6, %8, %cst_9 {dimension_numbers = #tpu.dot_dimension_numbers<[1], [0], [0], [1], [0, 0, 1, 1], [], []>, precision = #tpu.contract_precision<fp32>} : vector<16x128xf32>, vector<128x128xf32>, vector<16x128xf32> -> vector<16x128xf32>
    %10 = arith.addf %5, %9 : vector<16x128xf32>
    %c2 = arith.constant 2 : index
    %c0_10 = arith.constant 0 : index
    %11 = vector.load %arg1[%c2, %c0_10] : memref<32x128xf32, #tpu.memory_space<vmem>>, vector<16x128xf32>
    %c2_11 = arith.constant 2 : index
    %c0_12 = arith.constant 0 : index
    %c0_13 = arith.constant 0 : index
    %12 = vector.load %arg2[%c2_11, %c0_12, %c0_13] : memref<10x128x128xf32, #tpu.memory_space<vmem>>, vector<1x128x128xf32>
    %13 = vector.shape_cast %12 : vector<1x128x128xf32> to vector<128x128xf32>
    %cst_14 = arith.constant dense<0.000000e+00> : vector<16x128xf32>
    %14 = tpu.matmul %11, %13, %cst_14 {dimension_numbers = #tpu.dot_dimension_numbers<[1], [0], [0], [1], [0, 0, 1, 1], [], []>, precision = #tpu.contract_precision<fp32>} : vector<16x128xf32>, vector<128x128xf32>, vector<16x128xf32> -> vector<16x128xf32>
    %15 = arith.addf %10, %14 : vector<16x128xf32>
    %c3 = arith.constant 3 : index
    %c0_15 = arith.constant 0 : index
    %16 = vector.load %arg1[%c3, %c0_15] : memref<32x128xf32, #tpu.memory_space<vmem>>, vector<16x128xf32>
    %c3_16 = arith.constant 3 : index
    %c0_17 = arith.constant 0 : index
    %c0_18 = arith.constant 0 : index
    %17 = vector.load %arg2[%c3_16, %c0_17, %c0_18] : memref<10x128x128xf32, #tpu.memory_space<vmem>>, vector<1x128x128xf32>
    %18 = vector.shape_cast %17 : vector<1x128x128xf32> to vector<128x128xf32>
    %cst_19 = arith.constant dense<0.000000e+00> : vector<16x128xf32>
    %19 = tpu.matmul %16, %18, %cst_19 {dimension_numbers = #tpu.dot_dimension_numbers<[1], [0], [0], [1], [0, 0, 1, 1], [], []>, precision = #tpu.contract_precision<fp32>} : vector<16x128xf32>, vector<128x128xf32>, vector<16x128xf32> -> vector<16x128xf32>
    %20 = arith.addf %15, %19 : vector<16x128xf32>
    %c4 = arith.constant 4 : index
    %c0_20 = arith.constant 0 : index
    %21 = vector.load %arg1[%c4, %c0_20] : memref<32x128xf32, #tpu.memory_space<vmem>>, vector<16x128xf32>
    %c4_21 = arith.constant 4 : index
    %c0_22 = arith.constant 0 : index
    %c0_23 = arith.constant 0 : index
    %22 = vector.load %arg2[%c4_21, %c0_22, %c0_23] : memref<10x128x128xf32, #tpu.memory_space<vmem>>, vector<1x128x128xf32>
    %23 = vector.shape_cast %22 : vector<1x128x128xf32> to vector<128x128xf32>
    %cst_24 = arith.constant dense<0.000000e+00> : vector<16x128xf32>
    %24 = tpu.matmul %21, %23, %cst_24 {dimension_numbers = #tpu.dot_dimension_numbers<[1], [0], [0], [1], [0, 0, 1, 1], [], []>, precision = #tpu.contract_precision<fp32>} : vector<16x128xf32>, vector<128x128xf32>, vector<16x128xf32> -> vector<16x128xf32>
    %25 = arith.addf %20, %24 : vector<16x128xf32>
    %c5 = arith.constant 5 : index
    %c0_25 = arith.constant 0 : index
    %26 = vector.load %arg1[%c5, %c0_25] : memref<32x128xf32, #tpu.memory_space<vmem>>, vector<16x128xf32>
    %c5_26 = arith.constant 5 : index
    %c0_27 = arith.constant 0 : index
    %c0_28 = arith.constant 0 : index
    %27 = vector.load %arg2[%c5_26, %c0_27, %c0_28] : memref<10x128x128xf32, #tpu.memory_space<vmem>>, vector<1x128x128xf32>
    %28 = vector.shape_cast %27 : vector<1x128x128xf32> to vector<128x128xf32>
    %cst_29 = arith.constant dense<0.000000e+00> : vector<16x128xf32>
    %29 = tpu.matmul %26, %28, %cst_29 {dimension_numbers = #tpu.dot_dimension_numbers<[1], [0], [0], [1], [0, 0, 1, 1], [], []>, precision = #tpu.contract_precision<fp32>} : vector<16x128xf32>, vector<128x128xf32>, vector<16x128xf32> -> vector<16x128xf32>
    %30 = arith.addf %25, %29 : vector<16x128xf32>
    %c6 = arith.constant 6 : index
    %c0_30 = arith.constant 0 : index
    %31 = vector.load %arg1[%c6, %c0_30] : memref<32x128xf32, #tpu.memory_space<vmem>>, vector<16x128xf32>
    %c6_31 = arith.constant 6 : index
    %c0_32 = arith.constant 0 : index
    %c0_33 = arith.constant 0 : index
    %32 = vector.load %arg2[%c6_31, %c0_32, %c0_33] : memref<10x128x128xf32, #tpu.memory_space<vmem>>, vector<1x128x128xf32>
    %33 = vector.shape_cast %32 : vector<1x128x128xf32> to vector<128x128xf32>
    %cst_34 = arith.constant dense<0.000000e+00> : vector<16x128xf32>
    %34 = tpu.matmul %31, %33, %cst_34 {dimension_numbers = #tpu.dot_dimension_numbers<[1], [0], [0], [1], [0, 0, 1, 1], [], []>, precision = #tpu.contract_precision<fp32>} : vector<16x128xf32>, vector<128x128xf32>, vector<16x128xf32> -> vector<16x128xf32>
    %35 = arith.addf %30, %34 : vector<16x128xf32>
    %c7 = arith.constant 7 : index
    %c0_35 = arith.constant 0 : index
    %36 = vector.load %arg1[%c7, %c0_35] : memref<32x128xf32, #tpu.memory_space<vmem>>, vector<16x128xf32>
    %c7_36 = arith.constant 7 : index
    %c0_37 = arith.constant 0 : index
    %c0_38 = arith.constant 0 : index
    %37 = vector.load %arg2[%c7_36, %c0_37, %c0_38] : memref<10x128x128xf32, #tpu.memory_space<vmem>>, vector<1x128x128xf32>
    %38 = vector.shape_cast %37 : vector<1x128x128xf32> to vector<128x128xf32>
    %cst_39 = arith.constant dense<0.000000e+00> : vector<16x128xf32>
    %39 = tpu.matmul %36, %38, %cst_39 {dimension_numbers = #tpu.dot_dimension_numbers<[1], [0], [0], [1], [0, 0, 1, 1], [], []>, precision = #tpu.contract_precision<fp32>} : vector<16x128xf32>, vector<128x128xf32>, vector<16x128xf32> -> vector<16x128xf32>
    %40 = arith.addf %35, %39 : vector<16x128xf32>
    %c8 = arith.constant 8 : index
    %c0_40 = arith.constant 0 : index
    %41 = vector.load %arg1[%c8, %c0_40] : memref<32x128xf32, #tpu.memory_space<vmem>>, vector<16x128xf32>
    %c8_41 = arith.constant 8 : index
    %c0_42 = arith.constant 0 : index
    %c0_43 = arith.constant 0 : index
    %42 = vector.load %arg2[%c8_41, %c0_42, %c0_43] : memref<10x128x128xf32, #tpu.memory_space<vmem>>, vector<1x128x128xf32>
    %43 = vector.shape_cast %42 : vector<1x128x128xf32> to vector<128x128xf32>
    %cst_44 = arith.constant dense<0.000000e+00> : vector<16x128xf32>
    %44 = tpu.matmul %41, %43, %cst_44 {dimension_numbers = #tpu.dot_dimension_numbers<[1], [0], [0], [1], [0, 0, 1, 1], [], []>, precision = #tpu.contract_precision<fp32>} : vector<16x128xf32>, vector<128x128xf32>, vector<16x128xf32> -> vector<16x128xf32>
    %45 = arith.addf %40, %44 : vector<16x128xf32>
    %c9 = arith.constant 9 : index
    %c0_45 = arith.constant 0 : index
    %46 = vector.load %arg1[%c9, %c0_45] : memref<32x128xf32, #tpu.memory_space<vmem>>, vector<16x128xf32>
    %c9_46 = arith.constant 9 : index
    %c0_47 = arith.constant 0 : index
    %c0_48 = arith.constant 0 : index
    %47 = vector.load %arg2[%c9_46, %c0_47, %c0_48] : memref<10x128x128xf32, #tpu.memory_space<vmem>>, vector<1x128x128xf32>
    %48 = vector.shape_cast %47 : vector<1x128x128xf32> to vector<128x128xf32>
    %cst_49 = arith.constant dense<0.000000e+00> : vector<16x128xf32>
    %49 = tpu.matmul %46, %48, %cst_49 {dimension_numbers = #tpu.dot_dimension_numbers<[1], [0], [0], [1], [0, 0, 1, 1], [], []>, precision = #tpu.contract_precision<fp32>} : vector<16x128xf32>, vector<128x128xf32>, vector<16x128xf32> -> vector<16x128xf32>
    %50 = arith.addf %45, %49 : vector<16x128xf32>
    %cst_50 = arith.constant 0.000000e+00 : f32
    %51 = vector.broadcast %cst_50 : f32 to vector<32x128xf32>
    %c0_51 = arith.constant 0 : index
    %c0_52 = arith.constant 0 : index
    %52 = vector.load %arg9[%c0_51, %c0_52] : memref<32x128xf32, #tpu.memory_space<vmem>>, vector<32x128xf32>
    tpu.vector_store %arg9[%c0_51, %c0_52], %51 {strides = array<i32>} : memref<32x128xf32, #tpu.memory_space<vmem>>, vector<32x128xf32>,
    %c0_53 = arith.constant 0 : index
    %c0_54 = arith.constant 0 : index
    %53 = vector.load %arg3[%c0_53, %c0_54] : memref<1x128xf32, #tpu.memory_space<vmem>>, vector<1x128xf32>
    %54 = vector.broadcast %53 : vector<1x128xf32> to vector<16x128xf32>
    %55 = arith.addf %50, %54 : vector<16x128xf32>
    %cst_55 = arith.constant 0.000000e+00 : f32
    %56 = vector.broadcast %cst_55 : f32 to vector<16x128xf32>
    %57 = arith.maximumf %55, %56 : vector<16x128xf32>
    %c4_56 = arith.constant 4 : index
    %c0_57 = arith.constant 0 : index
    %58 = vector.load %arg9[%c4_56, %c0_57] : memref<32x128xf32, #tpu.memory_space<vmem>>, vector<16x128xf32>
    tpu.vector_store %arg9[%c4_56, %c0_57], %57 {strides = array<i32>} : memref<32x128xf32, #tpu.memory_space<vmem>>, vector<16x128xf32>,
    %cst_58 = arith.constant 0.000000e+00 : f32
    %59 = vector.broadcast %cst_58 : f32 to vector<16x128xf32>
    %c0_59 = arith.constant 0 : index
    %c0_60 = arith.constant 0 : index
    %60 = vector.load %arg9[%c0_59, %c0_60] : memref<32x128xf32, #tpu.memory_space<vmem>>, vector<16x128xf32>
    %c0_61 = arith.constant 0 : index
    %c0_62 = arith.constant 0 : index
    %c0_63 = arith.constant 0 : index
    %61 = vector.load %arg4[%c0_61, %c0_62, %c0_63] : memref<10x128x128xf32, #tpu.memory_space<vmem>>, vector<1x128x128xf32>
    %62 = vector.shape_cast %61 : vector<1x128x128xf32> to vector<128x128xf32>
    %cst_64 = arith.constant dense<0.000000e+00> : vector<16x128xf32>
    %63 = tpu.matmul %60, %62, %cst_64 {dimension_numbers = #tpu.dot_dimension_numbers<[1], [0], [0], [1], [0, 0, 1, 1], [], []>, precision = #tpu.contract_precision<fp32>} : vector<16x128xf32>, vector<128x128xf32>, vector<16x128xf32> -> vector<16x128xf32>
    %64 = arith.addf %59, %63 : vector<16x128xf32>
    %c1_65 = arith.constant 1 : index
    %c0_66 = arith.constant 0 : index
    %65 = vector.load %arg9[%c1_65, %c0_66] : memref<32x128xf32, #tpu.memory_space<vmem>>, vector<16x128xf32>
    %c1_67 = arith.constant 1 : index
    %c0_68 = arith.constant 0 : index
    %c0_69 = arith.constant 0 : index
    %66 = vector.load %arg4[%c1_67, %c0_68, %c0_69] : memref<10x128x128xf32, #tpu.memory_space<vmem>>, vector<1x128x128xf32>
    %67 = vector.shape_cast %66 : vector<1x128x128xf32> to vector<128x128xf32>
    %cst_70 = arith.constant dense<0.000000e+00> : vector<16x128xf32>
    %68 = tpu.matmul %65, %67, %cst_70 {dimension_numbers = #tpu.dot_dimension_numbers<[1], [0], [0], [1], [0, 0, 1, 1], [], []>, precision = #tpu.contract_precision<fp32>} : vector<16x128xf32>, vector<128x128xf32>, vector<16x128xf32> -> vector<16x128xf32>
    %69 = arith.addf %64, %68 : vector<16x128xf32>
    %c2_71 = arith.constant 2 : index
    %c0_72 = arith.constant 0 : index
    %70 = vector.load %arg9[%c2_71, %c0_72] : memref<32x128xf32, #tpu.memory_space<vmem>>, vector<16x128xf32>
    %c2_73 = arith.constant 2 : index
    %c0_74 = arith.constant 0 : index
    %c0_75 = arith.constant 0 : index
    %71 = vector.load %arg4[%c2_73, %c0_74, %c0_75] : memref<10x128x128xf32, #tpu.memory_space<vmem>>, vector<1x128x128xf32>
    %72 = vector.shape_cast %71 : vector<1x128x128xf32> to vector<128x128xf32>
    %cst_76 = arith.constant dense<0.000000e+00> : vector<16x128xf32>
    %73 = tpu.matmul %70, %72, %cst_76 {dimension_numbers = #tpu.dot_dimension_numbers<[1], [0], [0], [1], [0, 0, 1, 1], [], []>, precision = #tpu.contract_precision<fp32>} : vector<16x128xf32>, vector<128x128xf32>, vector<16x128xf32> -> vector<16x128xf32>
    %74 = arith.addf %69, %73 : vector<16x128xf32>
    %c3_77 = arith.constant 3 : index
    %c0_78 = arith.constant 0 : index
    %75 = vector.load %arg9[%c3_77, %c0_78] : memref<32x128xf32, #tpu.memory_space<vmem>>, vector<16x128xf32>
    %c3_79 = arith.constant 3 : index
    %c0_80 = arith.constant 0 : index
    %c0_81 = arith.constant 0 : index
    %76 = vector.load %arg4[%c3_79, %c0_80, %c0_81] : memref<10x128x128xf32, #tpu.memory_space<vmem>>, vector<1x128x128xf32>
    %77 = vector.shape_cast %76 : vector<1x128x128xf32> to vector<128x128xf32>
    %cst_82 = arith.constant dense<0.000000e+00> : vector<16x128xf32>
    %78 = tpu.matmul %75, %77, %cst_82 {dimension_numbers = #tpu.dot_dimension_numbers<[1], [0], [0], [1], [0, 0, 1, 1], [], []>, precision = #tpu.contract_precision<fp32>} : vector<16x128xf32>, vector<128x128xf32>, vector<16x128xf32> -> vector<16x128xf32>
    %79 = arith.addf %74, %78 : vector<16x128xf32>
    %c4_83 = arith.constant 4 : index
    %c0_84 = arith.constant 0 : index
    %80 = vector.load %arg9[%c4_83, %c0_84] : memref<32x128xf32, #tpu.memory_space<vmem>>, vector<16x128xf32>
    %c4_85 = arith.constant 4 : index
    %c0_86 = arith.constant 0 : index
    %c0_87 = arith.constant 0 : index
    %81 = vector.load %arg4[%c4_85, %c0_86, %c0_87] : memref<10x128x128xf32, #tpu.memory_space<vmem>>, vector<1x128x128xf32>
    %82 = vector.shape_cast %81 : vector<1x128x128xf32> to vector<128x128xf32>
    %cst_88 = arith.constant dense<0.000000e+00> : vector<16x128xf32>
    %83 = tpu.matmul %80, %82, %cst_88 {dimension_numbers = #tpu.dot_dimension_numbers<[1], [0], [0], [1], [0, 0, 1, 1], [], []>, precision = #tpu.contract_precision<fp32>} : vector<16x128xf32>, vector<128x128xf32>, vector<16x128xf32> -> vector<16x128xf32>
    %84 = arith.addf %79, %83 : vector<16x128xf32>
    %c5_89 = arith.constant 5 : index
    %c0_90 = arith.constant 0 : index
    %85 = vector.load %arg9[%c5_89, %c0_90] : memref<32x128xf32, #tpu.memory_space<vmem>>, vector<16x128xf32>
    %c5_91 = arith.constant 5 : index
    %c0_92 = arith.constant 0 : index
    %c0_93 = arith.constant 0 : index
    %86 = vector.load %arg4[%c5_91, %c0_92, %c0_93] : memref<10x128x128xf32, #tpu.memory_space<vmem>>, vector<1x128x128xf32>
    %87 = vector.shape_cast %86 : vector<1x128x128xf32> to vector<128x128xf32>
    %cst_94 = arith.constant dense<0.000000e+00> : vector<16x128xf32>
    %88 = tpu.matmul %85, %87, %cst_94 {dimension_numbers = #tpu.dot_dimension_numbers<[1], [0], [0], [1], [0, 0, 1, 1], [], []>, precision = #tpu.contract_precision<fp32>} : vector<16x128xf32>, vector<128x128xf32>, vector<16x128xf32> -> vector<16x128xf32>
    %89 = arith.addf %84, %88 : vector<16x128xf32>
    %c6_95 = arith.constant 6 : index
    %c0_96 = arith.constant 0 : index
    %90 = vector.load %arg9[%c6_95, %c0_96] : memref<32x128xf32, #tpu.memory_space<vmem>>, vector<16x128xf32>
    %c6_97 = arith.constant 6 : index
    %c0_98 = arith.constant 0 : index
    %c0_99 = arith.constant 0 : index
    %91 = vector.load %arg4[%c6_97, %c0_98, %c0_99] : memref<10x128x128xf32, #tpu.memory_space<vmem>>, vector<1x128x128xf32>
    %92 = vector.shape_cast %91 : vector<1x128x128xf32> to vector<128x128xf32>
    %cst_100 = arith.constant dense<0.000000e+00> : vector<16x128xf32>
    %93 = tpu.matmul %90, %92, %cst_100 {dimension_numbers = #tpu.dot_dimension_numbers<[1], [0], [0], [1], [0, 0, 1, 1], [], []>, precision = #tpu.contract_precision<fp32>} : vector<16x128xf32>, vector<128x128xf32>, vector<16x128xf32> -> vector<16x128xf32>
    %94 = arith.addf %89, %93 : vector<16x128xf32>
    %c7_101 = arith.constant 7 : index
    %c0_102 = arith.constant 0 : index
    %95 = vector.load %arg9[%c7_101, %c0_102] : memref<32x128xf32, #tpu.memory_space<vmem>>, vector<16x128xf32>
    %c7_103 = arith.constant 7 : index
    %c0_104 = arith.constant 0 : index
    %c0_105 = arith.constant 0 : index
    %96 = vector.load %arg4[%c7_103, %c0_104, %c0_105] : memref<10x128x128xf32, #tpu.memory_space<vmem>>, vector<1x128x128xf32>
    %97 = vector.shape_cast %96 : vector<1x128x128xf32> to vector<128x128xf32>
    %cst_106 = arith.constant dense<0.000000e+00> : vector<16x128xf32>
    %98 = tpu.matmul %95, %97, %cst_106 {dimension_numbers = #tpu.dot_dimension_numbers<[1], [0], [0], [1], [0, 0, 1, 1], [], []>, precision = #tpu.contract_precision<fp32>} : vector<16x128xf32>, vector<128x128xf32>, vector<16x128xf32> -> vector<16x128xf32>
    %99 = arith.addf %94, %98 : vector<16x128xf32>
    %c8_107 = arith.constant 8 : index
    %c0_108 = arith.constant 0 : index
    %100 = vector.load %arg9[%c8_107, %c0_108] : memref<32x128xf32, #tpu.memory_space<vmem>>, vector<16x128xf32>
    %c8_109 = arith.constant 8 : index
    %c0_110 = arith.constant 0 : index
    %c0_111 = arith.constant 0 : index
    %101 = vector.load %arg4[%c8_109, %c0_110, %c0_111] : memref<10x128x128xf32, #tpu.memory_space<vmem>>, vector<1x128x128xf32>
    %102 = vector.shape_cast %101 : vector<1x128x128xf32> to vector<128x128xf32>
    %cst_112 = arith.constant dense<0.000000e+00> : vector<16x128xf32>
    %103 = tpu.matmul %100, %102, %cst_112 {dimension_numbers = #tpu.dot_dimension_numbers<[1], [0], [0], [1], [0, 0, 1, 1], [], []>, precision = #tpu.contract_precision<fp32>} : vector<16x128xf32>, vector<128x128xf32>, vector<16x128xf32> -> vector<16x128xf32>
    %104 = arith.addf %99, %103 : vector<16x128xf32>
    %c9_113 = arith.constant 9 : index
    %c0_114 = arith.constant 0 : index
    %105 = vector.load %arg9[%c9_113, %c0_114] : memref<32x128xf32, #tpu.memory_space<vmem>>, vector<16x128xf32>
    %c9_115 = arith.constant 9 : index
    %c0_116 = arith.constant 0 : index
    %c0_117 = arith.constant 0 : index
    %106 = vector.load %arg4[%c9_115, %c0_116, %c0_117] : memref<10x128x128xf32, #tpu.memory_space<vmem>>, vector<1x128x128xf32>
    %107 = vector.shape_cast %106 : vector<1x128x128xf32> to vector<128x128xf32>
    %cst_118 = arith.constant dense<0.000000e+00> : vector<16x128xf32>
    %108 = tpu.matmul %105, %107, %cst_118 {dimension_numbers = #tpu.dot_dimension_numbers<[1], [0], [0], [1], [0, 0, 1, 1], [], []>, precision = #tpu.contract_precision<fp32>} : vector<16x128xf32>, vector<128x128xf32>, vector<16x128xf32> -> vector<16x128xf32>
    %109 = arith.addf %104, %108 : vector<16x128xf32>
    %c0_119 = arith.constant 0 : index
    %c0_120 = arith.constant 0 : index
    %110 = vector.load %arg5[%c0_119, %c0_120] : memref<1x128xf32, #tpu.memory_space<vmem>>, vector<1x128xf32>
    %111 = vector.broadcast %110 : vector<1x128xf32> to vector<16x128xf32>
    %112 = arith.addf %109, %111 : vector<16x128xf32>
    %cst_121 = arith.constant 0.000000e+00 : f32
    %113 = vector.broadcast %cst_121 : f32 to vector<16x128xf32>
    %114 = arith.maximumf %112, %113 : vector<16x128xf32>
    %c0_122 = arith.constant 0 : index
    %c0_123 = arith.constant 0 : index
    %115 = vector.load %arg6[%c0_122, %c0_123] : memref<128x16xf32, #tpu.memory_space<vmem>>, vector<128x16xf32>
    %cst_124 = arith.constant dense<0.000000e+00> : vector<16x16xf32>
    %116 = tpu.matmul %114, %115, %cst_124 {dimension_numbers = #tpu.dot_dimension_numbers<[1], [0], [0], [1], [0, 0, 1, 1], [], []>, precision = #tpu.contract_precision<fp32>} : vector<16x128xf32>, vector<128x16xf32>, vector<16x16xf32> -> vector<16x16xf32>
    %c0_125 = arith.constant 0 : index
    %117 = memref.load %arg7[%c0_125] : memref<1xf32, #tpu.memory_space<smem>>
    %118 = vector.broadcast %117 : f32 to vector<16x16xf32>
    %119 = arith.addf %116, %118 : vector<16x16xf32>
    %c0_126 = arith.constant 0 : index
    %c0_127 = arith.constant 0 : index
    %c0_128 = arith.constant 0 : index
    %120 = vector.load %arg8[%c0_126, %c0_127, %c0_128] : memref<1x16x16xf32, #tpu.memory_space<vmem>>, vector<1x16x16xf32>
    %121 = vector.shape_cast %120 : vector<1x16x16xf32> to vector<16x16xf32>
    %122 = vector.shape_cast %119 : vector<16x16xf32> to vector<1x16x16xf32>
    tpu.vector_store %arg8[%c0_126, %c0_127, %c0_128], %122 {strides = array<i32>} : memref<1x16x16xf32, #tpu.memory_space<vmem>>, vector<1x16x16xf32>,
    return
  }
  func.func @transform_0(%arg0: i32) -> (i32, i32) {
    %c0_i32 = arith.constant 0 : i32
    %c0_i32_0 = arith.constant 0 : i32
    return %arg0, %c0_i32 : i32, i32
  }
  func.func @transform_1(%arg0: i32) -> (i32, i32, i32) {
    %c0_i32 = arith.constant 0 : i32
    %c0_i32_0 = arith.constant 0 : i32
    %c0_i32_1 = arith.constant 0 : i32
    %c0_i32_2 = arith.constant 0 : i32
    return %c0_i32, %c0_i32_0, %c0_i32_1 : i32, i32, i32
  }
  func.func @transform_2(%arg0: i32) -> (i32, i32) {
    %c0_i32 = arith.constant 0 : i32
    %c0_i32_0 = arith.constant 0 : i32
    %c0_i32_1 = arith.constant 0 : i32
    return %c0_i32, %c0_i32_0 : i32, i32
  }
  func.func @transform_3(%arg0: i32) -> (i32, i32, i32) {
    %c0_i32 = arith.constant 0 : i32
    %c0_i32_0 = arith.constant 0 : i32
    %c0_i32_1 = arith.constant 0 : i32
    %c0_i32_2 = arith.constant 0 : i32
    return %c0_i32, %c0_i32_0, %c0_i32_1 : i32, i32, i32
  }
  func.func @transform_4(%arg0: i32) -> (i32, i32) {
    %c0_i32 = arith.constant 0 : i32
    %c0_i32_0 = arith.constant 0 : i32
    %c0_i32_1 = arith.constant 0 : i32
    return %c0_i32, %c0_i32_0 : i32, i32
  }
  func.func @transform_5(%arg0: i32) -> (i32, i32) {
    %c0_i32 = arith.constant 0 : i32
    %c0_i32_0 = arith.constant 0 : i32
    %c0_i32_1 = arith.constant 0 : i32
    return %c0_i32, %c0_i32_0 : i32, i32
  }
  func.func @transform_6(%arg0: i32) -> i32 {
    %c0_i32 = arith.constant 0 : i32
    %c0_i32_0 = arith.constant 0 : i32
    return %c0_i32 : i32
  }
  func.func @transform_7(%arg0: i32) -> (i32, i32, i32) {
    %c0_i32 = arith.constant 0 : i32
    %c0_i32_0 = arith.constant 0 : i32
    %c0_i32_1 = arith.constant 0 : i32
    return %arg0, %c0_i32, %c0_i32_0 : i32, i32, i32
  }
}

</mosaic_0001>

<bundles_post_ra>
// kernel: tpu_custom_call.1
= control target key start
LH: loop header
LB: loop body
LE: loop exit
PB: predicated region body
PF: predicated region fallthrough
CT: control target
= control target key end

     0   :  { %s32725_s0 = inlined_call_operand.vmem [shape: f32[64,128], index: 0, kind: input, shape index: {}]   ;;  %s32726_s1 = inlined_call_operand.hbm [shape: f32[10,128,128], index: 1, kind: input, shape index: {}]   ;;  %s32727_s2 = inlined_call_operand.vmem [shape: f32[1,128], index: 2, kind: input, shape index: {}]   ;;  %s32728_s3 = inlined_call_operand.hbm [shape: f32[10,128,128], index: 3, kind: input, shape index: {}]   ;;  %s32729_s4 = inlined_call_operand.vmem [shape: f32[1,128], index: 4, kind: input, shape index: {}]   ;;  %s32730_s5 = inlined_call_operand.vmem [shape: f32[128,16], index: 5, kind: input, shape index: {}]   ;;  %s32731_s6 = inlined_call_operand.<no memory space> [shape: f32[1], index: 6, kind: input, shape index: {}]   ;;  %s32732_s7 = inlined_call_operand.hbm [shape: f32[2,16,16], index: 7, kind: output, shape index: {}]  }
   0x1   :  { %12 = sst [smem:[#allocation3]] %s32731_s6 }
   0x2   :  { %13 = vsyncpa [#allocation5], 0 }
   0x3   :  { %14 = vsyncpa [#allocation8], 0 }
   0x4   :  { %15 = vsyncpa [#allocation6], 0 }
   0x5   :  { %17 = vsyncpa [#allocation6 + $0x1], 0  ;;  %s26452_s26 = smov 0   ;;  %s26454_s27 = smov 0  }
   0x6   :  { %s26456_s28 = smov 0   ;;  %s26458_s29 = smov 0  }
   0x7 LB: > { %s26473_s6 = sadd.s32 4294967295, %s26399_s29   ;;  %s15231_s30 = sadd.s32 4294967294, %s26399_s29   ;;  %s26399_s29 = sphi %s26458_s29, %s33025_s29   ;;  %s26395_s28 = sphi %s26456_s28, %s33024_s28   ;;  %s26391_s27 = sphi %s26454_s27, %s33023_s27   ;;  %s26387_s26 = sphi %s26452_s26, %s33022_s26  }
   0x8   : > { %s26477_s8 = sadd.s32 1, %s26399_s29   ;;  %s182_s9 = sadd.s32 1, %s26395_s28 }
   0x9   : > { %s179_s10 = ssub.s32 %s26399_s29, %s26477_s8  ;;  %p192_p0 = scmp.ne.s32.totalorder %s26395_s28, %s26391_s27 }
   0xa   : > { %p180_p1 = scmp.eq.s32.totalorder %s179_s10, 0  ;;  %p193_p2 = scmp.eq.s32.totalorder %s26473_s6, 1 }
   0xb   : > { %p198_p3 = scmp.ne.s32.totalorder %s26391_s27, %s26387_s26  ;;  %p199_p4 = scmp.eq.s32.totalorder %s15231_s30, 1 }
   0xc   : > { %s26488_s11 = scalar_select %p180_p1, %s26395_s28, %s182_s9  }
   0xd   : > { %p26490_p5 = por %p193_p2, %p192_p0  ;;  %p26494_p6 = por %p199_p4, %p198_p3 }
   0xe   : > { %p15232_p7 = scmp.ge.s32.totalorder %s26399_s29, 1  ;;  %p206_p8 = scmp.lt.s32.totalorder %s26399_s29, 3 }
   0xf   : > { %s32866_s12 = scalar_select %p26490_p5, 1, 0 }
  0x10   : > { %s32867_s13 = scalar_select %p26494_p6, 1, 0 }
  0x11   : > { %p32733_p9 = scmp.eq.s32.totalorder %s26473_s6, 0  ;;  %p26501_p10 = pnand %p15232_p7, %p206_p8 }
  0x12   : > { %s26401_s15 = smov [#allocation4]   ;;  %s26402_s18 = smov [#allocation7]  }
  0x13   : > { %s32868_s14 = scalar_select %p26501_p10, 1, 0 }
  0x14   : > { %s218_s16 = sshll.u32 %s26401_s15, 4  ;;  %p26218_p11 = pneg %p26501_p10  ;;  %s219_s16 = int_to_ptr.vmem [resolvable:$true] %s218_s16 }
  0x15   : > { %s234_s19 = sshll.u32 %s26402_s18, 4  ;;  %s26273_s22 = scalar_lea.hbm %s32726_s1, 20480  ;;  %s26513_s19 = int_to_ptr.vmem [resolvable:$true] %s234_s19 }
  0x16   : > { %p26509_p12 = pnand %p32733_p9, %p26218_p11  ;;  %p26274_p13 = scmp.ne.s32.totalorder %s32726_s1, %s26273_s22 }
  0x17   : > { %p26280_p3 = scmp.lt.u32.totalorder %s26273_s22, %s32726_s1 }
  0x18   : > { %p26275_p0 = pneg %p26509_p12 }
  0x1a   : > { %p26276_p1 = pnand %p26275_p0, %p26274_p13 }
  0x1c   : > { %p26277_p2 = pneg %p26276_p1 }
  0x1e   : > { %p26282_p4 = pnand %p26280_p3, %p26277_p2 }
  0x20   : > { %26285 = shalt.err (!%p26282_p4)
}
  0x21   : > { %s26286_s9 = scalar_lea.vmem %s219_s16, 20480  ;;  %p26294_p9 = scmp.lt.s32.totalorder %s219_s16, %s219_s16 }
  0x22   : > { %p26287_p7 = scmp.ne.s32.totalorder %s219_s16, %s26286_s9  ;;  %p26295_p6 = scmp.lt.s32.totalorder %s26286_s9, %s26286_s9 }
  0x24   : > { %p26289_p8 = pnand %p26287_p7, %p26275_p0  ;;  %p26296_p5 = por %p26295_p6, %p26294_p9 }
  0x26   : > { %p26290_p11 = pneg %p26289_p8 }
  0x28   : > { %p26297_p10 = pnand %p26296_p5, %p26290_p11 }
  0x2a   : > { %26300 = shalt.err (!%p26297_p10)
}
  0x2b   : > { %s26403_s10 = smov 128   ;;  %s26404_s15 = smov 8  }
  0x2c   : > { %26221 = dma.hbm_to_vmem [thread:$0]  (!%p26509_p12), %s32726_s1, 20480, %s219_s16, [#allocation5], %s26403_s10, %s26403_s10, %s26404_s15  }
  0x2d   : > { %s26301_s23 = scalar_lea.hbm %s32728_s3, 20480 }
  0x2e   : > { %p26302_p13 = scmp.ne.s32.totalorder %s32728_s3, %s26301_s23  ;;  %p26308_p9 = scmp.lt.u32.totalorder %s26301_s23, %s32728_s3 }
  0x30   : > { %p26304_p5 = pnand %p26302_p13, %p26275_p0 }
  0x32   : > { %p26305_p6 = pneg %p26304_p5 }
  0x34   : > { %p26310_p10 = pnand %p26308_p9, %p26305_p6 }
  0x36   : > { %26313 = shalt.err (!%p26310_p10)
}
  0x37   : > { %s26314_s16 = scalar_lea.vmem %s26513_s19, 20480  ;;  %p26322_p4 = scmp.lt.s32.totalorder %s26513_s19, %s26513_s19 }
  0x38   : > { %p26315_p1 = scmp.ne.s32.totalorder %s26513_s19, %s26314_s16  ;;  %p26323_p7 = scmp.lt.s32.totalorder %s26314_s16, %s26314_s16 }
  0x3a   : > { %p26317_p2 = pnand %p26315_p1, %p26275_p0  ;;  %p26324_p8 = por %p26323_p7, %p26322_p4 }
  0x3c   : > { %p26318_p3 = pneg %p26317_p2 }
  0x3e   : > { %p26325_p11 = pnand %p26324_p8, %p26318_p3 }
  0x40   : > { %26328 = shalt.err (!%p26325_p11)
}
  0x41   : > { %26224 = dma.hbm_to_vmem [thread:$0]  (!%p26509_p12), %s32728_s3, 20480, %s26513_s19, [#allocation8], %s26403_s10, %s26403_s10, %s26404_s15  }
  0x42   : > { %p32870_p13 = scmp.ne.s32.totalorder %s32868_s14, 0 }
  0x44   : > { %268 = sbr.rel (%p32870_p13) target bundleno = 4655 (0x122f), region = 48 }
  0x4b   : > { %p32871_p5 = scmp.eq.s32.totalorder %s26473_s6, 0 }
  0x4d   : > { %26374 = dma.done.wait (%p32871_p5), [#allocation5], 20480   ;;  %p32872_p0 = pmov %p32871_p5 }
  0x4f   : > { %26376 = vsyncadd (%p32872_p0), [#allocation5], 4294946816  ;;  %p32873_p6 = pmov %p32872_p0 }
  0x50   : > { %p32874_p9 = pmov %p32872_p0 }
  0x51   : > { %26378 = dma.done.wait (%p32873_p6), [#allocation8], 20480  }
  0x52   : > { %26380 = vsyncadd (%p32874_p9), [#allocation8], 4294946816  ;;  %s15240_s17 = sshll.u32 %s26473_s6, 2  ;;  %v26573_v0 = vld [vmem:[#allocation4 + $0x80] sm:$0xff]  ;;  %v26575_v1 = vld [vmem:[#allocation4 + $0x88] sm:$0xff]  ;;  %s301_s9 = sand.u32 1, %s26391_s27  }
  0x53   : > { %p305_p10 = scmp.lt.s32.totalorder %s15240_s17, 7  ;;  %v26577_v2 = vld [vmem:[#allocation4 + $0x90] sm:$0xff]  ;;  %v348_v3 = vand.u32 4294901760, %v26573_v0  ;;  %v351_v4 = vand.u32 4294901760, %v26575_v1  ;;  %v26581_v5 = vld [vmem:[#allocation4 + $0x98] sm:$0xff]  ;;  %v26584_v7 = vld [vmem:[#allocation4 + $0xa0] sm:$0xff] }
  0x54   : > { %v354_v6 = vand.u32 4294901760, %v26577_v2  ;;  %v26586_v8 = vld [vmem:[#allocation4 + $0xa8] sm:$0xff]  ;;  %v357_v9 = vand.u32 4294901760, %v26581_v5  ;;  %v360_v11 = vand.u32 4294901760, %v26584_v7  ;;  %v26608_v14 = vld [vmem:[#allocation4 + $0xb0] sm:$0xff]  ;;  %v26610_v15 = vld [vmem:[#allocation4 + $0xb8] sm:$0xff] }
  0x55   : > { %s33027_s17 = smov (!%p305_p10, %s15240_s17), 7  ;;  %v26598_v10 = vpack.c.bf16 %v351_v4, %v348_v3  ;;  %v363_v12 = vand.u32 4294901760, %v26586_v8  ;;  %v366_v19 = vand.u32 4294901760, %v26608_v14  ;;  %v369_v20 = vand.u32 4294901760, %v26610_v15  ;;  %v26628_v21 = vld [vmem:[#allocation4 + $0xc0] sm:$0xff]  ;;  %v26630_v22 = vld [vmem:[#allocation4 + $0xc8] sm:$0xff] }
  0x56   : > { %s15241_s19 = sshll.u32 %s33027_s17, 3  ;;  %v26606_v13 = vpack.c.bf16 %v357_v9, %v354_v6  ;;  %v372_v26 = vand.u32 4294901760, %v26628_v21  ;;  %v375_v27 = vand.u32 4294901760, %v26630_v22  ;;  %v26649_v28 = vld [vmem:[#allocation4 + $0xd0] sm:$0xff]  ;;  %v26651_v29 = vld [vmem:[#allocation4 + $0xd8] sm:$0xff]  ;;  %v26667_v33 = vld [vmem:[#allocation4 + $0xe0] sm:$0xff]  ;;  %v26702_v44 = vsub.f32 %v26573_v0, %v348_v3 }
  0x57   : > { %s26592_s15 = scalar_lea.vmem %s32725_s0, %s15241_s19  ;;  %22025 = vmatprep.subr.bf16.mxu0 %v26598_v10  ;;  %21929 = vmatprep.subr.bf16.mxu1 %v26598_v10  ;;  %v26624_v18 = vpack.c.bf16 %v363_v12, %v360_v11  ;;  %v26644_v25 = vpack.c.bf16 %v369_v20, %v366_v19  ;;  %v378_v31 = vand.u32 4294901760, %v26649_v28  ;;  %v381_v32 = vand.u32 4294901760, %v26651_v29  ;;  %v26669_v34 = vld [vmem:[#allocation4 + $0xe8] sm:$0xff]  ;;  %v26682_v38 = vld [vmem:[#allocation4 + $0xf0] sm:$0xff]  ;;  %v26684_v39 = vld [vmem:[#allocation4 + $0xf8] sm:$0xff]  ;;  %s14444_s16 = sld [smem:[#allocation3]] }
  0x58   : > { %v328_v16 = vld [vmem:[%s26592_s15 + $0x1] sm:$0xff]  ;;  %22027 = vmatpush3.bf16.msra.mxu0 %v26598_v10  ;;  %21931 = vmatpush3.bf16.msra.mxu1 %v26598_v10  ;;  %v26662_v30 = vpack.c.bf16 %v375_v27, %v372_v26  ;;  %v384_v36 = vand.u32 4294901760, %v26667_v33  ;;  %v387_v37 = vand.u32 4294901760, %v26669_v34  ;;  %v390_v40 = vand.u32 4294901760, %v26682_v38  ;;  %v329_v42 = vld [vmem:[%s26592_s15 + $0x9] sm:$0xff]  ;;  %s15239_s18 = sshll.u32 %s301_s9, 4 }
  0x59   : > { %v26616_v17 = vand.u32 4294901760, %v328_v16  ;;  %22029 = vmatprep.subr.bf16.mxu0 %v26606_v13  ;;  %21933 = vmatprep.subr.bf16.mxu1 %v26606_v13  ;;  %v26678_v35 = vpack.c.bf16 %v381_v32, %v378_v31  ;;  %v393_v41 = vand.u32 4294901760, %v26684_v39  ;;  %v26707_v45 = vsub.f32 %v26575_v1, %v351_v4  ;;  %s303_s20 = scalar_lea.vmem [#allocation9], %s15239_s18  ;;  %s15249_s19 = sshll.u32 %s26473_s6, 8 }
  0x5a   : > { %v26697_v43 = vpack.c.bf16 %v387_v37, %v384_v36  ;;  %v26710_v46 = vand.u32 4294901760, %v329_v42  ;;  %v32753_v48 = vand.u32 4294901760, %v26702_v44  ;;  %v26724_v50 = vsub.f32 %v26577_v2, %v354_v6  ;;  %s15147_s17 = sshll.u32 %s303_s20, 4  ;;  %s32684_s21 = scalar_lea.sflag [#allocation6], %s301_s9  ;;  %s32677_s17 = int_to_ptr.vmem [resolvable:$true] %s15147_s17 }
  0x5b   : > { %v26633_v23 = vsub.f32 %v328_v16, %v26616_v17  ;;  %v26715_v47 = vpack.c.bf16 %v393_v41, %v390_v40  ;;  %v32752_v49 = vand.u32 4294901760, %v26707_v45  ;;  %v26729_v51 = vsub.f32 %v26581_v5, %v357_v9  ;;  %s26329_s6 = scalar_lea.vmem %s32677_s17, 256  ;;  %p33020_p1 = scmp.ne.s32.totalorder %s32866_s12, 0 }
  0x5c   : > { %22031 = vmatpush3.bf16.msra.mxu0 %v26606_v13  ;;  %21935 = vmatpush3.bf16.msra.mxu1 %v26606_v13  ;;  %32875 = vst [vmem:[#allocation13_spill] sm:$0xff] %v26710_v46  ;;  %v26733_v52 = vsub.f32 %v329_v42, %v26710_v46  ;;  %v26739_v53 = vsub.f32 %v26584_v7, %v360_v11  ;;  %v32749_v55 = vand.u32 4294901760, %v26724_v50  ;;  %v317_v42 = vld [vmem:[#allocation4 + $0x28] sm:$0xff]  ;;  %vm15130_vm0 = vcmask 130048   ;;  %p26330_p12 = scmp.ne.s32.totalorder %s32677_s17, %s26329_s6  ;;  %s26406_s22 = smov [#allocation9]  }
  0x5d   : > { %v32751_v24 = vand.u32 4294901760, %v26633_v23  ;;  %22033 = vmatprep.subr.bf16.mxu0 %v26624_v18  ;;  %21937 = vmatprep.subr.bf16.mxu1 %v26624_v18  ;;  %v22056_v54 = vpack.c.bf16 %v32752_v49, %v32753_v48  ;;  %v32748_v56 = vand.u32 4294901760, %v26729_v51  ;;  %v26752_v57 = vsub.f32 %v26586_v8, %v363_v12  ;;  %s26333_s23 = sshll.u32 %s26406_s22, 4  ;;  %s26334_s23 = int_to_ptr.vmem [resolvable:$false] %s26333_s23 }
  0x5e   : > { %v32750_v58 = vand.u32 4294901760, %v26733_v52  ;;  %v32747_v59 = vand.u32 4294901760, %v26739_v53  ;;  %v26767_v62 = vsub.f32 %v26608_v14, %v366_v19  ;;  %v26772_v63 = vsub.f32 %v26610_v15, %v369_v20  ;;  %p26331_p2 = pnand %p26330_p12, %p33020_p1  ;;  %s26335_s24 = scalar_lea.vmem %s26334_s23, 512 }
  0x5f   : > { %17655 = vmatprep.mubr.f32.mxu0 %v32751_v24  ;;  %v22060_v60 = vpack.c.bf16 %v32748_v56, %v32749_v55  ;;  %v32746_v61 = vand.u32 4294901760, %v26752_v57  ;;  %v26779_v0 = vsub.f32 %v26628_v21, %v372_v26  ;;  %v26791_v4 = vsub.f32 %v26630_v22, %v375_v27  ;;  %v26917_v55 = vld [vmem:[#allocation4 + $0x70] sm:$0xff]  ;;  %p26336_p4 = scmp.lt.s32.totalorder %s32677_s17, %s26334_s23  ;;  %p26337_p7 = scmp.lt.s32.totalorder %s26335_s24, %s26329_s6 }
  0x60   : > { %22035 = vmatpush3.bf16.msra.mxu0 %v26624_v18  ;;  %21939 = vmatpush3.bf16.msra.mxu1 %v26624_v18  ;;  %v32745_v2 = vand.u32 4294901760, %v26767_v62  ;;  %v32744_v3 = vand.u32 4294901760, %v26772_v63  ;;  %v26796_v5 = vsub.f32 %v26649_v28, %v378_v31  ;;  %v26807_v9 = vsub.f32 %v26651_v29, %v381_v32  ;;  %v310_v32 = vld [vmem:[%s26592_s15] sm:$0xff]  ;;  %p26332_p3 = pneg %p26331_p2 }
  0x61   : > { %22037 = vmatprep.subr.bf16.mxu0 %v26644_v25  ;;  %21941 = vmatprep.subr.bf16.mxu1 %v26644_v25  ;;  %v22064_v1 = vpack.c.bf16 %v32746_v61, %v32747_v59  ;;  %v32743_v7 = vand.u32 4294901760, %v26779_v0  ;;  %v32742_v8 = vand.u32 4294901760, %v26791_v4  ;;  %v26818_v15 = vsub.f32 %v26667_v33, %v384_v36  ;;  %v26911_v61 = vld [vmem:[#allocation4 + $0x68] sm:$0xff]  ;;  %p26338_p8 = por %p26337_p7, %p26336_p4 }
  0x62   : > { %32876 = vst [vmem:[#allocation14_spill] sm:$0xff] %v26796_v5  ;;  %v22068_v6 = vpack.c.bf16 %v32744_v3, %v32745_v2  ;;  %32877 = vst [vmem:[#allocation15_spill] sm:$0xff] %v26807_v9  ;;  %v32741_v11 = vand.u32 4294901760, %v26796_v5  ;;  %v32740_v14 = vand.u32 4294901760, %v26807_v9  ;;  %v26823_v16 = vsub.f32 %v26669_v34, %v387_v37  ;;  %v313_v34 = vld [vmem:[#allocation4 + $0x8] sm:$0xff]  ;;  %v314_v37 = vld [vmem:[#allocation4 + $0x10] sm:$0xff] }
  0x63   : > { %v22072_v12 = vpack.c.bf16 %v32742_v8, %v32743_v7  ;;  %32878 = vst [vmem:[#allocation16_spill] sm:$0xff] %v26818_v15  ;;  %v26826_v19 = vsub.f32 %v26682_v38, %v390_v40  ;;  %v32739_v21 = vand.u32 4294901760, %v26818_v15  ;;  %v26837_v26 = vsub.f32 %v26684_v39, %v393_v41  ;;  %v315_v38 = vld [vmem:[#allocation4 + $0x18] sm:$0xff]  ;;  %v316_v41 = vld [vmem:[#allocation4 + $0x20] sm:$0xff]  ;;  %p26339_p11 = pnand %p26338_p8, %p26332_p3 }
  0x64   : > { %22039 = vmatpush3.bf16.msra.mxu0 %v26644_v25  ;;  %21943 = vmatpush3.bf16.msra.mxu1 %v26644_v25  ;;  %32879 = vst [vmem:[#allocation17_spill] sm:$0xff] %v26823_v16  ;;  %v22076_v20 = vpack.c.bf16 %v32740_v14, %v32741_v11  ;;  %v32738_v22 = vand.u32 4294901760, %v26823_v16  ;;  %v26860_v33 = vand.u32 4294901760, %v310_v32  ;;  %v1035_v36 = vand.u32 4294901760, %v313_v34  ;;  %v311_v14 = vld [vmem:[%s26592_s15 + $0x8] sm:$0xff]  ;;  %v26905_v7 = vld [vmem:[#allocation4 + $0x60] sm:$0xff] }
  0x65   : > { %22041 = vmatprep.subr.bf16.mxu0 %v26662_v30  ;;  %21945 = vmatprep.subr.bf16.mxu1 %v26662_v30  ;;  %32880 = vst [vmem:[#allocation18_spill] sm:$0xff] %v26826_v19  ;;  %32881 = vst [vmem:[#allocation19_spill] sm:$0xff] %v26837_v26  ;;  %v32737_v28 = vand.u32 4294901760, %v26826_v19  ;;  %v32736_v29 = vand.u32 4294901760, %v26837_v26  ;;  %v1038_v40 = vand.u32 4294901760, %v314_v37  ;;  %v26913_v59 = vand.u32 4294901760, %v311_v14 }
  0x66   : > { %v22080_v27 = vpack.c.bf16 %v32738_v22, %v32739_v21  ;;  %v26896_v22 = vld [vmem:[#allocation4 + $0x58] sm:$0xff]  ;;  %v26909_v2 = vsub.f32 %v313_v34, %v1035_v36  ;;  %v1068_v56 = vand.u32 4294901760, %v26905_v7  ;;  %v1071_v34 = vand.u32 4294901760, %v26911_v61 }
  0x67   : > { %v22084_v31 = vpack.c.bf16 %v32736_v29, %v32737_v28  ;;  %v1065_v8 = vand.u32 4294901760, %v26896_v22  ;;  %v32765_v48 = vand.u32 4294901760, %v26917_v55 }
  0x68   : > { %22043 = vmatpush3.bf16.msra.mxu0 %v26662_v30  ;;  %21947 = vmatpush3.bf16.msra.mxu1 %v26662_v30  ;;  %v26944_v49 = vpack.c.bf16 %v1071_v34, %v1068_v56 }
  0x69   : > { %22045 = vmatprep.subr.bf16.mxu0 %v26678_v35  ;;  %21949 = vmatprep.subr.bf16.mxu1 %v26678_v35 }
  0x6c   : > { %22047 = vmatpush3.bf16.msra.mxu0 %v26678_v35  ;;  %21951 = vmatpush3.bf16.msra.mxu1 %v26678_v35 }
  0x6d   : > { %22049 = vmatprep.subr.bf16.mxu0 %v26697_v43  ;;  %21953 = vmatprep.subr.bf16.mxu1 %v26697_v43 }
  0x70   : > { %22051 = vmatpush3.bf16.msra.mxu0 %v26697_v43  ;;  %21955 = vmatpush3.bf16.msra.mxu1 %v26697_v43 }
  0x71   : > { %22053 = vmatprep.subr.bf16.mxu0 %v26715_v47  ;;  %21957 = vmatprep.subr.bf16.mxu1 %v26715_v47 }
  0x74   : > { %22055 = vmatpush3.bf16.msra.mxu0 %v26715_v47  ;;  %21959 = vmatpush3.bf16.msra.mxu1 %v26715_v47 }
  0x75   : > { %22057 = vmatprep.subr.bf16.mxu0 %v22056_v54 }
  0x77   : > { %17656 = vmatmul.mubr.f32.vlgmr.msra.gmra.mrb[0].mxu0 %v32750_v58  ;;  %v26919_v58 = vsub.f32 %v314_v37, %v1038_v40 }
  0x78   : > { %22059 = vmatpush3.bf16.msra.mxu0 %v22056_v54  ;;  %17690 = vmatprep.mubr.f32.mxu0 %v26616_v17 }
  0x79   : > { %22061 = vmatprep.subr.bf16.mxu0 %v22060_v60 }
  0x7c   : > { %22063 = vmatpush3.bf16.msra.mxu0 %v22060_v60 }
  0x7d   : > { %22065 = vmatprep.subr.bf16.mxu0 %v22064_v1 }
  0x80   : > { %22067 = vmatpush3.bf16.msra.mxu0 %v22064_v1  ;;  %v1047_v1 = vand.u32 4294901760, %v317_v42 }
  0x81   : > { %22069 = vmatprep.subr.bf16.mxu0 %v22068_v6 }
  0x84   : > { %22071 = vmatpush3.bf16.msra.mxu0 %v22068_v6  ;;  %v318_v6 = vld [vmem:[#allocation4 + $0x30] sm:$0xff] }
  0x85   : > { %22073 = vmatprep.subr.bf16.mxu0 %v22072_v12 }
  0x88   : > { %22075 = vmatpush3.bf16.msra.mxu0 %v22072_v12  ;;  %v319_v12 = vld [vmem:[#allocation4 + $0x38] sm:$0xff] }
  0x89   : > { %22077 = vmatprep.subr.bf16.mxu0 %v22076_v20 }
  0x8c   : > { %22079 = vmatpush3.bf16.msra.mxu0 %v22076_v20 }
  0x8d   : > { %22081 = vmatprep.subr.bf16.mxu0 %v22080_v27 }
  0x90   : > { %22083 = vmatpush3.bf16.msra.mxu0 %v22080_v27  ;;  %v1053_v27 = vand.u32 4294901760, %v319_v12 }
  0x91   : > { %22085 = vmatprep.subr.bf16.mxu0 %v22084_v31 }
  0x92   : > { %v26971_v15 = vsub.f32 %v319_v12, %v1053_v27 }
  0x94   : > { %22087 = vmatpush3.bf16.msra.mxu0 %v22084_v31  ;;  %v320_v31 = vld [vmem:[#allocation4 + $0x40] sm:$0xff] }
  0x95   : > { %22089 = vmatprep.subr.bf16.mxu0 %v26598_v10  ;;  %v1056_v29 = vand.u32 4294901760, %v320_v31 }
  0x97   : > { %17691 = vmatmul.mubr.f32.vlgmr.msra.gmra.mrb[0].mxu0 %v26710_v46 }
  0x98   : > { %22091 = vmatpush3.bf16.msra.mxu0 %v26598_v10  ;;  %17725 = vmatprep.mubr.f32.mxu0 %v26616_v17  ;;  %v26865_v10 = vsub.f32 %v310_v32, %v26860_v33  ;;  %v26887_v32 = vld [vmem:[#allocation4 + $0x48] sm:$0xff] }
  0x99   : > { %22093 = vmatprep.subr.bf16.mxu0 %v26606_v13  ;;  %v1059_v28 = vand.u32 4294901760, %v26887_v32 }
  0x9b   : > { %v26902_v11 = vpack.c.bf16 %v1059_v28, %v1056_v29 }
  0x9c   : > { %22095 = vmatpush3.bf16.msra.mxu0 %v26606_v13  ;;  %v312_v13 = vld [vmem:[#allocation4] sm:$0xff] }
  0x9d   : > { %22097 = vmatprep.subr.bf16.mxu0 %v26624_v18 }
  0xa0   : > { %22099 = vmatpush3.bf16.msra.mxu0 %v26624_v18  ;;  %v32754_v18 = vand.u32 4294901760, %v26865_v10 }
  0xa1   : > { %22101 = vmatprep.subr.bf16.mxu0 %v26644_v25 }
  0xa4   : > { %22103 = vmatpush3.bf16.msra.mxu0 %v26644_v25  ;;  %v1032_v25 = vand.u32 4294901760, %v312_v13 }
  0xa5   : > { %22105 = vmatprep.subr.bf16.mxu0 %v26662_v30 }
  0xa6   : > { %v26876_v39 = vpack.c.bf16 %v1035_v36, %v1032_v25  ;;  %v26907_v3 = vsub.f32 %v312_v13, %v1032_v25  ;;  %v26927_v25 = vld [vmem:[#allocation4 + $0x78] sm:$0xff] }
  0xa8   : > { %22107 = vmatpush3.bf16.msra.mxu0 %v26662_v30  ;;  %v1115_v30 = vsub.f32 %v26865_v10, %v32754_v18  ;;  %v32756_v36 = vand.u32 4294901760, %v26907_v3  ;;  %v26933_v18 = vsub.f32 %v311_v14, %v26913_v59 }
  0xa9   : > { %22109 = vmatprep.subr.bf16.mxu0 %v26678_v35 }
  0xaa   : > { %v1116_v54 = vand.u32 4294901760, %v1115_v30  ;;  %v1136_v14 = vsub.f32 %v26907_v3, %v32756_v36 }
  0xac   : > { %22111 = vmatpush3.bf16.msra.mxu0 %v26678_v35  ;;  %v1041_v35 = vand.u32 4294901760, %v315_v38 }
  0xad   : > { %22113 = vmatprep.subr.bf16.mxu0 %v26697_v43 }
  0xae   : > { %v26880_v60 = vpack.c.bf16 %v1041_v35, %v1038_v40  ;;  %v26921_v24 = vsub.f32 %v315_v38, %v1041_v35  ;;  %v32884_v35 = vand.u32 4294901760, %v26919_v58  ;;  %v1137_v40 = vand.u32 4294901760, %v1136_v14 }
  0xb0   : > { %22115 = vmatpush3.bf16.msra.mxu0 %v26697_v43  ;;  %v1044_v43 = vand.u32 4294901760, %v316_v41  ;;  %v1150_v36 = vsub.f32 %v26919_v58, %v32884_v35  ;;  %v32885_v26 = vand.u32 4294901760, %v26921_v24 }
  0xb1   : > { %22117 = vmatprep.subr.bf16.mxu0 %v26715_v47 }
  0xb2   : > { %v26885_v20 = vpack.c.bf16 %v1047_v1, %v1044_v43  ;;  %v26935_v37 = vsub.f32 %v316_v41, %v1044_v43  ;;  %v32882_v41 = vand.u32 4294901760, %v26909_v2 }
  0xb4   : > { %22119 = vmatpush3.bf16.msra.mxu0 %v26715_v47  ;;  %v1050_v47 = vand.u32 4294901760, %v318_v6  ;;  %v1143_v43 = vsub.f32 %v26909_v2, %v32882_v41  ;;  %v1157_v41 = vsub.f32 %v26921_v24, %v32885_v26  ;;  %v32887_v35 = vand.u32 4294901760, %v26935_v37 }
  0xb5   : > { %22121 = vmatprep.subr.bf16.mxu0 %v26876_v39  ;;  %v1151_v26 = vand.u32 4294901760, %v1150_v36 }
  0xb6   : > { %v26891_v30 = vpack.c.bf16 %v1053_v27, %v1050_v47  ;;  %v1144_v19 = vand.u32 4294901760, %v1143_v43  ;;  %v26969_v16 = vsub.f32 %v318_v6, %v1050_v47  ;;  %v1164_v9 = vsub.f32 %v26935_v37, %v32887_v35 }
  0xb7   : > { %17726 = vmatmul.mubr.f32.vlgmr.msra.gmra.mrb[0].mxu0 %v26710_v46  ;;  %v26941_v46 = vsub.f32 %v317_v42, %v1047_v1  ;;  %v32883_v42 = vand.u32 4294901760, %v26927_v25  ;;  %v1158_v38 = vand.u32 4294901760, %v1157_v41  ;;  %v26983_v6 = vsub.f32 %v320_v31, %v1056_v29 }
  0xb8   : > { %22123 = vmatpush3.bf16.msra.mxu0 %v26876_v39  ;;  %17760 = vmatprep.mubr.f32.mxu0 %v1116_v54  ;;  %v26894_v54 = vld [vmem:[#allocation4 + $0x50] sm:$0xff]  ;;  %v22152_v12 = vpack.c.bf16 %v1144_v19, %v1137_v40  ;;  %v1177_v47 = vand.u32 4294901760, %v26969_v16  ;;  %v1184_v27 = vand.u32 4294901760, %v26971_v15  ;;  %v26989_v43 = vsub.f32 %v26887_v32, %v1059_v28 }
  0xb9   : > { %22125 = vmatprep.subr.bf16.mxu0 %v26880_v60  ;;  %v1062_v21 = vand.u32 4294901760, %v26894_v54  ;;  %v26959_v1 = vpack.c.bf16 %v32883_v42, %v32765_v48  ;;  %v32886_v42 = vand.u32 4294901760, %v26933_v18  ;;  %v32888_v5 = vand.u32 4294901760, %v26941_v46 }
  0xba   : > { %v1165_v35 = vand.u32 4294901760, %v1164_v9  ;;  %v22156_v36 = vpack.c.bf16 %v1158_v38, %v1151_v26  ;;  %v1191_v41 = vand.u32 4294901760, %v26983_v6  ;;  %v26997_v29 = vsub.f32 %v26896_v22, %v1065_v8 }
  0xbb   : > { %v26924_v13 = vpack.c.bf16 %v1065_v8, %v1062_v21  ;;  %v1125_v48 = vsub.f32 %v26933_v18, %v32886_v42  ;;  %v1171_v14 = vsub.f32 %v26941_v46, %v32888_v5  ;;  %v26994_v5 = vsub.f32 %v26894_v54, %v1062_v21 }
  0xbc   : > { %22127 = vmatpush3.bf16.msra.mxu0 %v26880_v60  ;;  %v1178_v28 = vsub.f32 %v26969_v16, %v1177_v47  ;;  %v1198_v9 = vand.u32 4294901760, %v26989_v43  ;;  %v27007_v31 = vsub.f32 %v26905_v7, %v1068_v56  ;;  %v1192_v8 = vsub.f32 %v26983_v6, %v1191_v41 }
  0xbd   : > { %22129 = vmatprep.subr.bf16.mxu0 %v26885_v20  ;;  %v1126_v42 = vand.u32 4294901760, %v1125_v48  ;;  %v1172_v19 = vand.u32 4294901760, %v1171_v14  ;;  %v1185_v48 = vsub.f32 %v26971_v15, %v1184_v27  ;;  %v1205_v21 = vand.u32 4294901760, %v26994_v5 }
  0xbe   : > { %v32770_v22 = vand.u32 4294901760, %v26997_v29  ;;  %v27015_v32 = vsub.f32 %v26911_v61, %v1071_v34  ;;  %v1179_v38 = vand.u32 4294901760, %v1178_v28  ;;  %v1199_v56 = vsub.f32 %v26989_v43, %v1198_v9 }
  0xbf   : > { %v22160_v54 = vpack.c.bf16 %v1172_v19, %v1165_v35  ;;  %v1186_v40 = vand.u32 4294901760, %v1185_v48  ;;  %v1219_v7 = vand.u32 4294901760, %v27007_v31  ;;  %v1193_v26 = vand.u32 4294901760, %v1192_v8 }
  0xc0   : > { %22131 = vmatpush3.bf16.msra.mxu0 %v26885_v20  ;;  %v1206_v14 = vsub.f32 %v26994_v5, %v1205_v21  ;;  %v1213_v61 = vsub.f32 %v26997_v29, %v32770_v22  ;;  %v1226_v34 = vand.u32 4294901760, %v27015_v32  ;;  %v32889_v35 = vand.u32 4294901760, %v26917_v55 }
  0xc1   : > { %22133 = vmatprep.subr.bf16.mxu0 %v26891_v30  ;;  %v1220_v22 = vsub.f32 %v27007_v31, %v1219_v7 }
  0xc2   : > { %v27032_v19 = vsub.f32 %v26917_v55, %v32889_v35  ;;  %v1207_v48 = vand.u32 4294901760, %v1206_v14  ;;  %v1214_v8 = vand.u32 4294901760, %v1213_v61 }
  0xc4   : > { %22135 = vmatpush3.bf16.msra.mxu0 %v26891_v30  ;;  %v1233_v55 = vand.u32 4294901760, %v27032_v19 }
  0xc5   : > { %22137 = vmatprep.subr.bf16.mxu0 %v26902_v11 }
  0xc6   : > { %v1234_v61 = vsub.f32 %v27032_v19, %v1233_v55 }
  0xc8   : > { %22139 = vmatpush3.bf16.msra.mxu0 %v26902_v11  ;;  %v1235_v35 = vand.u32 4294901760, %v1234_v61  ;;  %v32891_v61 = vand.u32 4294901760, %v26865_v10 }
  0xc9   : > { %22141 = vmatprep.subr.bf16.mxu0 %v26924_v13 }
  0xcc   : > { %22143 = vmatpush3.bf16.msra.mxu0 %v26924_v13 }
  0xcd   : > { %22145 = vmatprep.subr.bf16.mxu0 %v26944_v49 }
  0xd0   : > { %22147 = vmatpush3.bf16.msra.mxu0 %v26944_v49 }
  0xd1   : > { %22149 = vmatprep.subr.bf16.mxu0 %v26959_v1 }
  0xd4   : > { %22151 = vmatpush3.bf16.msra.mxu0 %v26959_v1 }
  0xd5   : > { %22153 = vmatprep.subr.bf16.mxu0 %v22152_v12 }
  0xd7   : > { %17761 = vmatmul.mubr.f32.vlgmr.msra.gmra.mrb[0].mxu0 %v1126_v42  ;;  %v1200_v42 = vand.u32 4294901760, %v1199_v56 }
  0xd8   : > { %22155 = vmatpush3.bf16.msra.mxu0 %v22152_v12  ;;  %17795 = vmatprep.mubr.f32.mxu0 %v26860_v33  ;;  %v22164_v12 = vpack.c.bf16 %v1186_v40, %v1179_v38  ;;  %v1227_v40 = vsub.f32 %v27015_v32, %v1226_v34 }
  0xd9   : > { %22157 = vmatprep.subr.bf16.mxu0 %v22156_v36  ;;  %v22168_v38 = vpack.c.bf16 %v1200_v42, %v1193_v26 }
  0xda   : > { %v1228_v14 = vand.u32 4294901760, %v1227_v40  ;;  %v22200_v40 = vpack.c.bf16 %v26989_v43, %v26983_v6  ;;  %v1721_v43 = vld [vmem:[#allocation4 + $0x118] sm:$0xff] }
  0xdc   : > { %22159 = vmatpush3.bf16.msra.mxu0 %v22156_v36  ;;  %v32890_v36 = vand.u32 4294901760, %v26927_v25 }
  0xdd   : > { %22161 = vmatprep.subr.bf16.mxu0 %v22160_v54 }
  0xde   : > { %v27037_v28 = vsub.f32 %v26927_v25, %v32890_v36  ;;  %v1221_v25 = vand.u32 4294901760, %v1220_v22  ;;  %v22184_v22 = vpack.c.bf16 %v26909_v2, %v26907_v3 }
  0xe0   : > { %22163 = vmatpush3.bf16.msra.mxu0 %v22160_v54  ;;  %v1240_v56 = vand.u32 4294901760, %v27037_v28  ;;  %v22172_v54 = vpack.c.bf16 %v1214_v8, %v1207_v48  ;;  %v22176_v42 = vpack.c.bf16 %v1228_v14, %v1221_v25  ;;  %v22188_v48 = vpack.c.bf16 %v26921_v24, %v26919_v58 }
  0xe1   : > { %22165 = vmatprep.subr.bf16.mxu0 %v22164_v12  ;;  %v22192_v8 = vpack.c.bf16 %v26941_v46, %v26935_v37  ;;  %v22204_v25 = vpack.c.bf16 %v26997_v29, %v26994_v5  ;;  %v22212_v14 = vpack.c.bf16 %v27037_v28, %v27032_v19 }
  0xe2   : > { %v1241_v26 = vsub.f32 %v27037_v28, %v1240_v56 }
  0xe4   : > { %22167 = vmatpush3.bf16.msra.mxu0 %v22164_v12  ;;  %v1242_v36 = vand.u32 4294901760, %v1241_v26  ;;  %v32893_v26 = vand.u32 4294901760, %v26909_v2  ;;  %v32898_v2 = vand.u32 4294901760, %v26941_v46  ;;  %v32899_v46 = vand.u32 4294901760, %v26997_v29  ;;  %v1722_v29 = vld [vmem:[#allocation4 + $0x120] sm:$0xff] }
  0xe5   : > { %22169 = vmatprep.subr.bf16.mxu0 %v22168_v38 }
  0xe6   : > { %v22180_v12 = vpack.c.bf16 %v1242_v36, %v1235_v35  ;;  %v32894_v35 = vand.u32 4294901760, %v26919_v58  ;;  %v32895_v36 = vand.u32 4294901760, %v26921_v24  ;;  %v22260_v24 = vpack.c.bf16 %v1184_v27, %v1177_v47  ;;  %v1720_v27 = vld [vmem:[#allocation4 + $0x110] sm:$0xff] }
  0xe7   : > { %v22264_v58 = vpack.c.bf16 %v1198_v9, %v1191_v41  ;;  %v1741_v5 = vand.u32 4294901760, %v1720_v27  ;;  %v1723_v9 = vld [vmem:[#allocation4 + $0x128] sm:$0xff] }
  0xe8   : > { %22171 = vmatpush3.bf16.msra.mxu0 %v22168_v38  ;;  %v22196_v38 = vpack.c.bf16 %v26971_v15, %v26969_v16  ;;  %v22272_v15 = vpack.c.bf16 %v1226_v34, %v1219_v7  ;;  %v22276_v16 = vpack.c.bf16 %v1240_v56, %v1233_v55  ;;  %v1724_v7 = vld [vmem:[#allocation4 + $0x130] sm:$0xff]  ;;  %v1725_v34 = vld [vmem:[#allocation4 + $0x138] sm:$0xff]  ;;  %v1726_v55 = vld [vmem:[#allocation4 + $0x140] sm:$0xff] }
  0xe9   : > { %22173 = vmatprep.subr.bf16.mxu0 %v22172_v54  ;;  %v1753_v28 = vand.u32 4294901760, %v1724_v7  ;;  %v1727_v56 = vld [vmem:[#allocation4 + $0x148] sm:$0xff] }
  0xec   : > { %22175 = vmatpush3.bf16.msra.mxu0 %v22172_v54  ;;  %v22208_v54 = vpack.c.bf16 %v27015_v32, %v27007_v31  ;;  %v1750_v32 = vand.u32 4294901760, %v1723_v9 }
  0xed   : > { %22177 = vmatprep.subr.bf16.mxu0 %v22176_v42 }
  0xf0   : > { %22179 = vmatpush3.bf16.msra.mxu0 %v22176_v42 }
  0xf1   : > { %22181 = vmatprep.subr.bf16.mxu0 %v22180_v12 }
  0xf4   : > { %22183 = vmatpush3.bf16.msra.mxu0 %v22180_v12  ;;  %v22252_v12 = vpack.c.bf16 %v32895_v36, %v32894_v35 }
  0xf5   : > { %22185 = vmatprep.subr.bf16.mxu0 %v22184_v22 }
  0xf7   : > { %17796 = vmatmul.mubr.f32.vlgmr.msra.gmra.mrb[0].mxu0 %v26913_v59 }
  0xf8   : > { %22187 = vmatpush3.bf16.msra.mxu0 %v22184_v22  ;;  %17830 = vmatprep.mubr.f32.mxu0 %v26865_v10  ;;  %v32892_v10 = vand.u32 4294901760, %v26907_v3  ;;  %v32896_v22 = vand.u32 4294901760, %v26933_v18  ;;  %v32897_v3 = vand.u32 4294901760, %v26935_v37  ;;  %v1715_v37 = vld [vmem:[%s26592_s15 + $0x2] sm:$0xff] }
  0xf9   : > { %22189 = vmatprep.subr.bf16.mxu0 %v22188_v48  ;;  %v27136_v6 = vand.u32 4294901760, %v1715_v37 }
  0xfa   : > { %v22248_v42 = vpack.c.bf16 %v32893_v26, %v32892_v10  ;;  %v1716_v26 = vld [vmem:[%s26592_s15 + $0xa] sm:$0xff] }
  0xfc   : > { %22191 = vmatpush3.bf16.msra.mxu0 %v22188_v48  ;;  %v22256_v48 = vpack.c.bf16 %v32898_v2, %v32897_v3  ;;  %v27188_v3 = vand.u32 4294901760, %v1716_v26 }
  0xfd   : > { %22193 = vmatprep.subr.bf16.mxu0 %v22192_v8 }
 0x100   : > { %22195 = vmatpush3.bf16.msra.mxu0 %v22192_v8 }
 0x101   : > { %22197 = vmatprep.subr.bf16.mxu0 %v22196_v38 }
 0x104   : > { %22199 = vmatpush3.bf16.msra.mxu0 %v22196_v38  ;;  %v1759_v38 = vand.u32 4294901760, %v1726_v55 }
 0x105   : > { %22201 = vmatprep.subr.bf16.mxu0 %v22200_v40 }
 0x108   : > { %22203 = vmatpush3.bf16.msra.mxu0 %v22200_v40  ;;  %v27167_v40 = vld [vmem:[#allocation4 + $0x150] sm:$0xff] }
 0x109   : > { %22205 = vmatprep.subr.bf16.mxu0 %v22204_v25  ;;  %v1765_v35 = vand.u32 4294901760, %v27167_v40 }
 0x10c   : > { %22207 = vmatpush3.bf16.msra.mxu0 %v22204_v25  ;;  %v27169_v25 = vld [vmem:[#allocation4 + $0x158] sm:$0xff] }
 0x10d   : > { %22209 = vmatprep.subr.bf16.mxu0 %v22208_v54  ;;  %v1768_v36 = vand.u32 4294901760, %v27169_v25 }
 0x110   : > { %22211 = vmatpush3.bf16.msra.mxu0 %v22208_v54  ;;  %v27172_v54 = vld [vmem:[#allocation4 + $0x160] sm:$0xff] }
 0x111   : > { %22213 = vmatprep.subr.bf16.mxu0 %v22212_v14 }
 0x114   : > { %22215 = vmatpush3.bf16.msra.mxu0 %v22212_v14  ;;  %v27174_v14 = vld [vmem:[#allocation4 + $0x168] sm:$0xff] }
 0x115   : > { %22217 = vmatprep.subr.bf16.mxu0 %v26876_v39 }
 0x117   : > { %17831 = vmatmul.mubr.f32.vlgmr.msra.gmra.mrb[0].mxu0 %v26933_v18  ;;  %v22268_v18 = vpack.c.bf16 %v32899_v46, %v1205_v21  ;;  %v27198_v46 = vld [vmem:[#allocation4 + $0x178] sm:$0xff] }
 0x118   : > { %22219 = vmatpush3.bf16.msra.mxu0 %v26876_v39  ;;  %17865 = vmatprep.mubr.f32.mxu0 %v32891_v61 }
 0x119   : > { %22221 = vmatprep.subr.bf16.mxu0 %v26880_v60 }
 0x11c   : > { %22223 = vmatpush3.bf16.msra.mxu0 %v26880_v60 }
 0x11d   : > { %22225 = vmatprep.subr.bf16.mxu0 %v26885_v20 }
 0x120   : > { %22227 = vmatpush3.bf16.msra.mxu0 %v26885_v20 }
 0x121   : > { %22229 = vmatprep.subr.bf16.mxu0 %v26891_v30 }
 0x124   : > { %22231 = vmatpush3.bf16.msra.mxu0 %v26891_v30 }
 0x125   : > { %22233 = vmatprep.subr.bf16.mxu0 %v26902_v11 }
 0x128   : > { %22235 = vmatpush3.bf16.msra.mxu0 %v26902_v11 }
 0x129   : > { %22237 = vmatprep.subr.bf16.mxu0 %v26924_v13 }
 0x12c   : > { %22239 = vmatpush3.bf16.msra.mxu0 %v26924_v13 }
 0x12d   : > { %22241 = vmatprep.subr.bf16.mxu0 %v26944_v49 }
 0x130   : > { %22243 = vmatpush3.bf16.msra.mxu0 %v26944_v49 }
 0x131   : > { %22245 = vmatprep.subr.bf16.mxu0 %v26959_v1 }
 0x134   : > { %22247 = vmatpush3.bf16.msra.mxu0 %v26959_v1 }
 0x135   : > { %22249 = vmatprep.subr.bf16.mxu0 %v22248_v42 }
 0x137   : > { %17866 = vmatmul.mubr.f32.vlgmr.msra.gmra.mrb[0].mxu0 %v32896_v22  ;;  %v1774_v22 = vand.u32 4294901760, %v27174_v14 }
 0x138   : > { %22251 = vmatpush3.bf16.msra.mxu0 %v22248_v42  ;;  %17900 = vmatprep.mubr.f32.mxu0 %v26860_v33 }
 0x139   : > { %22253 = vmatprep.subr.bf16.mxu0 %v22252_v12 }
 0x13c   : > { %22255 = vmatpush3.bf16.msra.mxu0 %v22252_v12  ;;  %v1771_v12 = vand.u32 4294901760, %v27172_v54 }
 0x13d   : > { %22257 = vmatprep.subr.bf16.mxu0 %v22256_v48 }
 0x140   : > { %22259 = vmatpush3.bf16.msra.mxu0 %v22256_v48 }
 0x141   : > { %22261 = vmatprep.subr.bf16.mxu0 %v22260_v24 }
 0x144   : > { %22263 = vmatpush3.bf16.msra.mxu0 %v22260_v24  ;;  %v27194_v24 = vpack.c.bf16 %v1768_v36, %v1765_v35 }
 0x145   : > { %22265 = vmatprep.subr.bf16.mxu0 %v22264_v58 }
 0x148   : > { %22267 = vmatpush3.bf16.msra.mxu0 %v22264_v58  ;;  %v27196_v58 = vld [vmem:[#allocation4 + $0x170] sm:$0xff] }
 0x149   : > { %22269 = vmatprep.subr.bf16.mxu0 %v22268_v18 }
 0x14c   : > { %22271 = vmatpush3.bf16.msra.mxu0 %v22268_v18  ;;  %v27200_v18 = vsub.f32 %v1720_v27, %v1741_v5 }
 0x14d   : > { %22273 = vmatprep.subr.bf16.mxu0 %v22272_v15 }
 0x14e   : > { %v32775_v27 = vand.u32 4294901760, %v27200_v18 }
 0x150   : > { %22275 = vmatpush3.bf16.msra.mxu0 %v22272_v15 }
 0x151   : > { %22277 = vmatprep.subr.bf16.mxu0 %v22276_v16 }
 0x154   : > { %22279 = vmatpush3.bf16.msra.mxu0 %v22276_v16  ;;  %v27208_v16 = vpack.c.bf16 %v1774_v22, %v1771_v12 }
 0x155   : > { %22281 = vmatprep.subr.bf16.mxu0 %v26876_v39 }
 0x157   : > { %17901 = vmatmul.mubr.f32.vlgmr.msra.gmra.mrb[0].mxu0 %v26913_v59 }
 0x158   : > { %22283 = vmatpush3.bf16.msra.mxu0 %v26876_v39  ;;  %17935 = vmatprep.mubr.f32.mxu0 %v26860_v33  ;;  %v27141_v33 = vsub.f32 %v1715_v37, %v27136_v6  ;;  %v1718_v39 = vld [vmem:[#allocation4 + $0x100] sm:$0xff]  ;;  %v27211_v37 = vsub.f32 %v1716_v26, %v27188_v3 }
 0x159   : > { %22285 = vmatprep.subr.bf16.mxu0 %v26880_v60 }
 0x15c   : > { %22287 = vmatpush3.bf16.msra.mxu0 %v26880_v60  ;;  %v1719_v60 = vld [vmem:[#allocation4 + $0x108] sm:$0xff] }
 0x15d   : > { %22289 = vmatprep.subr.bf16.mxu0 %v26885_v20  ;;  %v1738_v47 = vand.u32 4294901760, %v1719_v60 }
 0x15f   : > { %v27178_v10 = vsub.f32 %v1719_v60, %v1738_v47  ;;  %v32776_v60 = vand.u32 4294901760, %v27198_v46 }
 0x160   : > { %22291 = vmatpush3.bf16.msra.mxu0 %v26885_v20  ;;  %v32773_v20 = vand.u32 4294901760, %v27141_v33 }
 0x161   : > { %22293 = vmatprep.subr.bf16.mxu0 %v26891_v30  ;;  %v32771_v48 = vand.u32 4294901760, %v27178_v10 }
 0x164   : > { %22295 = vmatpush3.bf16.msra.mxu0 %v26891_v30  ;;  %v1735_v30 = vand.u32 4294901760, %v1718_v39 }
 0x165   : > { %22297 = vmatprep.subr.bf16.mxu0 %v26902_v11 }
 0x166   : > { %v27152_v41 = vpack.c.bf16 %v1738_v47, %v1735_v30  ;;  %v27176_v61 = vsub.f32 %v1718_v39, %v1735_v30  ;;  %v32778_v39 = vand.u32 4294901760, %v27196_v58  ;;  %v1846_v47 = vsub.f32 %v27178_v10, %v32771_v48 }
 0x168   : > { %22299 = vmatpush3.bf16.msra.mxu0 %v26902_v11  ;;  %v1818_v11 = vsub.f32 %v27141_v33, %v32773_v20  ;;  %v32772_v2 = vand.u32 4294901760, %v27176_v61  ;;  %v27239_v48 = vpack.c.bf16 %v32776_v60, %v32778_v39  ;;  %v1847_v20 = vand.u32 4294901760, %v1846_v47 }
 0x169   : > { %22301 = vmatprep.subr.bf16.mxu0 %v26924_v13 }
 0x16a   : > { %v1819_v31 = vand.u32 4294901760, %v1818_v11  ;;  %v1839_v30 = vsub.f32 %v27176_v61, %v32772_v2 }
 0x16c   : > { %22303 = vmatpush3.bf16.msra.mxu0 %v26924_v13  ;;  %v1744_v13 = vand.u32 4294901760, %v1721_v43  ;;  %v1840_v2 = vand.u32 4294901760, %v1839_v30  ;;  %v27256_v30 = vsub.f32 %v1726_v55, %v1759_v38 }
 0x16d   : > { %22305 = vmatprep.subr.bf16.mxu0 %v26944_v49 }
 0x16e   : > { %v27156_v21 = vpack.c.bf16 %v1744_v13, %v1741_v5  ;;  %v27202_v15 = vsub.f32 %v1721_v43, %v1744_v13  ;;  %v27227_v5 = vsub.f32 %v1723_v9, %v1750_v32  ;;  %v32777_v13 = vand.u32 4294901760, %v27211_v37 }
 0x170   : > { %22307 = vmatpush3.bf16.msra.mxu0 %v26944_v49  ;;  %v1747_v49 = vand.u32 4294901760, %v1722_v29  ;;  %v32774_v43 = vand.u32 4294901760, %v27202_v15 }
 0x171   : > { %22309 = vmatprep.subr.bf16.mxu0 %v26959_v1 }
 0x172   : > { %v27161_v19 = vpack.c.bf16 %v1750_v32, %v1747_v49  ;;  %v27225_v11 = vsub.f32 %v1722_v29, %v1747_v49  ;;  %v1853_v29 = vsub.f32 %v27200_v18, %v32775_v27  ;;  %v1860_v9 = vsub.f32 %v27202_v15, %v32774_v43 }
 0x173   : > { %v32780_v32 = vand.u32 4294901760, %v27227_v5 }
 0x174   : > { %22311 = vmatpush3.bf16.msra.mxu0 %v26959_v1  ;;  %v1756_v1 = vand.u32 4294901760, %v1725_v34  ;;  %v1866_v49 = vand.u32 4294901760, %v27225_v11  ;;  %v1854_v43 = vand.u32 4294901760, %v1853_v29  ;;  %v1861_v27 = vand.u32 4294901760, %v1860_v9 }
 0x175   : > { %22313 = vmatprep.subr.bf16.mxu0 %v27152_v41 }
 0x176   : > { %v27165_v8 = vpack.c.bf16 %v1756_v1, %v1753_v28  ;;  %v27232_v26 = vsub.f32 %v1725_v34, %v1756_v1  ;;  %v22344_v1 = vpack.c.bf16 %v1847_v20, %v1840_v2  ;;  %v1867_v60 = vsub.f32 %v27225_v11, %v1866_v49 }
 0x177   : > { %17936 = vmatmul.mubr.f32.vlgmr.msra.gmra.mrb[0].mxu0 %v26913_v59  ;;  %v1762_v59 = vand.u32 4294901760, %v1727_v56  ;;  %v27280_v2 = vsub.f32 %v27169_v25, %v1768_v36  ;;  %v22348_v29 = vpack.c.bf16 %v1861_v27, %v1854_v43 }
 0x178   : > { %22315 = vmatpush3.bf16.msra.mxu0 %v27152_v41  ;;  %17970 = vmatprep.mubr.f32.mxu0 %v1819_v31  ;;  %v27230_v31 = vsub.f32 %v1724_v7, %v1753_v28  ;;  %v1828_v7 = vsub.f32 %v27211_v37, %v32777_v13  ;;  %v32781_v28 = vand.u32 4294901760, %v27232_v26  ;;  %v1874_v13 = vsub.f32 %v27227_v5, %v32780_v32 }
 0x179   : > { %22317 = vmatprep.subr.bf16.mxu0 %v27156_v21  ;;  %v27182_v42 = vpack.c.bf16 %v1762_v59, %v1759_v38  ;;  %v27258_v47 = vsub.f32 %v1727_v56, %v1762_v59  ;;  %v1894_v56 = vand.u32 4294901760, %v27256_v30  ;;  %v27277_v59 = vsub.f32 %v27167_v40, %v1765_v35 }
 0x17a   : > { %v32779_v34 = vand.u32 4294901760, %v27230_v31  ;;  %v1829_v39 = vand.u32 4294901760, %v1828_v7  ;;  %v1888_v55 = vsub.f32 %v27232_v26, %v32781_v28  ;;  %v1868_v9 = vand.u32 4294901760, %v1867_v60 }
 0x17b   : > { %v1901_v38 = vand.u32 4294901760, %v27258_v47  ;;  %v1875_v7 = vand.u32 4294901760, %v1874_v13  ;;  %v1895_v28 = vsub.f32 %v27256_v30, %v1894_v56  ;;  %v1908_v35 = vand.u32 4294901760, %v27277_v59 }
 0x17c   : > { %22319 = vmatpush3.bf16.msra.mxu0 %v27156_v21  ;;  %v1881_v20 = vsub.f32 %v27230_v31, %v32779_v34  ;;  %v1889_v32 = vand.u32 4294901760, %v1888_v55  ;;  %v1915_v25 = vand.u32 4294901760, %v27280_v2  ;;  %v27299_v60 = vsub.f32 %v27174_v14, %v1774_v22 }
 0x17d   : > { %22321 = vmatprep.subr.bf16.mxu0 %v27161_v19  ;;  %v1902_v40 = vsub.f32 %v27258_v47, %v1901_v38  ;;  %v22352_v36 = vpack.c.bf16 %v1875_v7, %v1868_v9  ;;  %v1896_v43 = vand.u32 4294901760, %v1895_v28  ;;  %v32900_v14 = vand.u32 4294901760, %v27196_v58 }
 0x17e   : > { %v1882_v34 = vand.u32 4294901760, %v1881_v20  ;;  %v1916_v20 = vsub.f32 %v27280_v2, %v1915_v25 }
 0x17f   : > { %v1903_v13 = vand.u32 4294901760, %v1902_v40  ;;  %v27312_v22 = vsub.f32 %v27196_v58, %v32900_v14 }
 0x180   : > { %22323 = vmatpush3.bf16.msra.mxu0 %v27161_v19  ;;  %v22356_v27 = vpack.c.bf16 %v1889_v32, %v1882_v34  ;;  %v32901_v32 = vand.u32 4294901760, %v27198_v46 }
 0x181   : > { %22325 = vmatprep.subr.bf16.mxu0 %v27165_v8  ;;  %v22360_v28 = vpack.c.bf16 %v1903_v13, %v1896_v43  ;;  %v1936_v58 = vand.u32 4294901760, %v27312_v22 }
 0x182   : > { %v27317_v34 = vsub.f32 %v27198_v46, %v32901_v32 }
 0x183   : > { %v1937_v13 = vsub.f32 %v27312_v22, %v1936_v58 }
 0x184   : > { %22327 = vmatpush3.bf16.msra.mxu0 %v27165_v8  ;;  %v1943_v40 = vand.u32 4294901760, %v27317_v34 }
 0x185   : > { %22329 = vmatprep.subr.bf16.mxu0 %v27182_v42  ;;  %v1938_v14 = vand.u32 4294901760, %v1937_v13  ;;  %v32902_v13 = vand.u32 4294901760, %v27141_v33 }
 0x188   : > { %22331 = vmatpush3.bf16.msra.mxu0 %v27182_v42 }
 0x189   : > { %22333 = vmatprep.subr.bf16.mxu0 %v27194_v24 }
 0x18c   : > { %22335 = vmatpush3.bf16.msra.mxu0 %v27194_v24 }
 0x18d   : > { %22337 = vmatprep.subr.bf16.mxu0 %v27208_v16 }
 0x190   : > { %22339 = vmatpush3.bf16.msra.mxu0 %v27208_v16 }
 0x191   : > { %22341 = vmatprep.subr.bf16.mxu0 %v27239_v48 }
 0x194   : > { %22343 = vmatpush3.bf16.msra.mxu0 %v27239_v48 }
 0x195   : > { %22345 = vmatprep.subr.bf16.mxu0 %v22344_v1 }
 0x197   : > { %17971 = vmatmul.mubr.f32.vlgmr.msra.gmra.mrb[0].mxu0 %v1829_v39  ;;  %v27294_v39 = vsub.f32 %v27172_v54, %v1771_v12  ;;  %v1929_v12 = vand.u32 4294901760, %v27299_v60 }
 0x198   : > { %22347 = vmatpush3.bf16.msra.mxu0 %v22344_v1  ;;  %18005 = vmatprep.mubr.f32.mxu0 %v27136_v6  ;;  %v1909_v1 = vsub.f32 %v27277_v59, %v1908_v35 }
 0x199   : > { %22349 = vmatprep.subr.bf16.mxu0 %v22348_v29  ;;  %v1922_v54 = vand.u32 4294901760, %v27294_v39  ;;  %v1930_v7 = vsub.f32 %v27299_v60, %v1929_v12 }
 0x19a   : > { %v1910_v55 = vand.u32 4294901760, %v1909_v1  ;;  %v1944_v1 = vsub.f32 %v27317_v34, %v1943_v40 }
 0x19b   : > { %v1923_v9 = vsub.f32 %v27294_v39, %v1922_v54  ;;  %v1931_v43 = vand.u32 4294901760, %v1930_v7  ;;  %v22392_v7 = vpack.c.bf16 %v27258_v47, %v27256_v30  ;;  %v2425_v47 = vld [vmem:[#allocation4 + $0x190] sm:$0xff] }
 0x19c   : > { %22351 = vmatpush3.bf16.msra.mxu0 %v22348_v29  ;;  %v1917_v29 = vand.u32 4294901760, %v1916_v20  ;;  %v1945_v32 = vand.u32 4294901760, %v1944_v1  ;;  %v32904_v1 = vand.u32 4294901760, %v27178_v10 }
 0x19d   : > { %22353 = vmatprep.subr.bf16.mxu0 %v22352_v36 }
 0x19e   : > { %v22364_v46 = vpack.c.bf16 %v1917_v29, %v1910_v55  ;;  %v22376_v55 = vpack.c.bf16 %v27178_v10, %v27176_v61  ;;  %v22380_v29 = vpack.c.bf16 %v27202_v15, %v27200_v18 }
 0x1a0   : > { %22355 = vmatpush3.bf16.msra.mxu0 %v22352_v36  ;;  %v1924_v36 = vand.u32 4294901760, %v1923_v9  ;;  %v22388_v9 = vpack.c.bf16 %v27232_v26, %v27230_v31 }
 0x1a1   : > { %22357 = vmatprep.subr.bf16.mxu0 %v22356_v27 }
 0x1a2   : > { %v22368_v20 = vpack.c.bf16 %v1931_v43, %v1924_v36  ;;  %v22400_v36 = vpack.c.bf16 %v27299_v60, %v27294_v39  ;;  %v22404_v43 = vpack.c.bf16 %v27317_v34, %v27312_v22 }
 0x1a4   : > { %22359 = vmatpush3.bf16.msra.mxu0 %v22356_v27  ;;  %v22372_v27 = vpack.c.bf16 %v1945_v32, %v1938_v14  ;;  %v32905_v14 = vand.u32 4294901760, %v27200_v18  ;;  %v32906_v32 = vand.u32 4294901760, %v27202_v15  ;;  %v32910_v18 = vand.u32 4294901760, %v27232_v26  ;;  %v2420_v26 = vld [vmem:[%s26592_s15 + $0x3] sm:$0xff] }
 0x1a5   : > { %22361 = vmatprep.subr.bf16.mxu0 %v22360_v28 }
 0x1a8   : > { %22363 = vmatpush3.bf16.msra.mxu0 %v22360_v28  ;;  %v22384_v28 = vpack.c.bf16 %v27227_v5, %v27225_v11  ;;  %v22460_v11 = vpack.c.bf16 %v1915_v25, %v1908_v35  ;;  %v2428_v35 = vld [vmem:[#allocation4 + $0x1a8] sm:$0xff] }
 0x1a9   : > { %22365 = vmatprep.subr.bf16.mxu0 %v22364_v46  ;;  %v2455_v60 = vand.u32 4294901760, %v2428_v35 }
 0x1ac   : > { %22367 = vmatpush3.bf16.msra.mxu0 %v22364_v46  ;;  %v22396_v46 = vpack.c.bf16 %v27280_v2, %v27277_v59  ;;  %v2446_v59 = vand.u32 4294901760, %v2425_v47  ;;  %v2427_v2 = vld [vmem:[#allocation4 + $0x1a0] sm:$0xff] }
 0x1ad   : > { %22369 = vmatprep.subr.bf16.mxu0 %v22368_v20 }
 0x1b0   : > { %22371 = vmatpush3.bf16.msra.mxu0 %v22368_v20 }
 0x1b1   : > { %22373 = vmatprep.subr.bf16.mxu0 %v22372_v27 }
 0x1b4   : > { %22375 = vmatpush3.bf16.msra.mxu0 %v22372_v27  ;;  %v22444_v27 = vpack.c.bf16 %v32906_v32, %v32905_v14 }
 0x1b5   : > { %22377 = vmatprep.subr.bf16.mxu0 %v22376_v55 }
 0x1b7   : > { %18006 = vmatmul.mubr.f32.vlgmr.msra.gmra.mrb[0].mxu0 %v27188_v3 }
 0x1b8   : > { %22379 = vmatpush3.bf16.msra.mxu0 %v22376_v55  ;;  %18040 = vmatprep.mubr.f32.mxu0 %v27141_v33  ;;  %v32903_v33 = vand.u32 4294901760, %v27176_v61  ;;  %v32907_v55 = vand.u32 4294901760, %v27211_v37  ;;  %v32908_v61 = vand.u32 4294901760, %v27227_v5  ;;  %v22464_v5 = vpack.c.bf16 %v1929_v12, %v1922_v54  ;;  %v2429_v54 = vld [vmem:[#allocation4 + $0x1b0] sm:$0xff]  ;;  %v2430_v12 = vld [vmem:[#allocation4 + $0x1b8] sm:$0xff] }
 0x1b9   : > { %22381 = vmatprep.subr.bf16.mxu0 %v22380_v29  ;;  %v2458_v34 = vand.u32 4294901760, %v2429_v54 }
 0x1ba   : > { %v22440_v20 = vpack.c.bf16 %v32904_v1, %v32903_v33  ;;  %v22448_v10 = vpack.c.bf16 %v32908_v61, %v1866_v49  ;;  %v27416_v49 = vand.u32 4294901760, %v2420_v26  ;;  %v2421_v1 = vld [vmem:[%s26592_s15 + $0xb] sm:$0xff] }
 0x1bb   : > { %v27468_v61 = vand.u32 4294901760, %v2421_v1 }
 0x1bc   : > { %22383 = vmatpush3.bf16.msra.mxu0 %v22380_v29  ;;  %v32909_v29 = vand.u32 4294901760, %v27230_v31  ;;  %v22468_v31 = vpack.c.bf16 %v1943_v40, %v1936_v58  ;;  %v2431_v58 = vld [vmem:[#allocation4 + $0x1c0] sm:$0xff]  ;;  %v2432_v40 = vld [vmem:[#allocation4 + $0x1c8] sm:$0xff] }
 0x1bd   : > { %22385 = vmatprep.subr.bf16.mxu0 %v22384_v28 }
 0x1be   : > { %v22452_v15 = vpack.c.bf16 %v32910_v18, %v32909_v29 }
 0x1c0   : > { %22387 = vmatpush3.bf16.msra.mxu0 %v22384_v28 }
 0x1c1   : > { %22389 = vmatprep.subr.bf16.mxu0 %v22388_v9 }
 0x1c4   : > { %22391 = vmatpush3.bf16.msra.mxu0 %v22388_v9  ;;  %v2464_v9 = vand.u32 4294901760, %v2431_v58 }
 0x1c5   : > { %22393 = vmatprep.subr.bf16.mxu0 %v22392_v7 }
 0x1c8   : > { %22395 = vmatpush3.bf16.msra.mxu0 %v22392_v7  ;;  %v27447_v7 = vld [vmem:[#allocation4 + $0x1d0] sm:$0xff] }
 0x1c9   : > { %22397 = vmatprep.subr.bf16.mxu0 %v22396_v46  ;;  %v2470_v14 = vand.u32 4294901760, %v27447_v7 }
 0x1cc   : > { %22399 = vmatpush3.bf16.msra.mxu0 %v22396_v46  ;;  %v27449_v46 = vld [vmem:[#allocation4 + $0x1d8] sm:$0xff] }
 0x1cd   : > { %22401 = vmatprep.subr.bf16.mxu0 %v22400_v36  ;;  %v2473_v32 = vand.u32 4294901760, %v27449_v46 }
 0x1cf   : > { %v27474_v18 = vpack.c.bf16 %v2473_v32, %v2470_v14 }
 0x1d0   : > { %22403 = vmatpush3.bf16.msra.mxu0 %v22400_v36  ;;  %v27452_v36 = vld [vmem:[#allocation4 + $0x1e0] sm:$0xff] }
 0x1d1   : > { %22405 = vmatprep.subr.bf16.mxu0 %v22404_v43 }
 0x1d4   : > { %22407 = vmatpush3.bf16.msra.mxu0 %v22404_v43  ;;  %v27454_v43 = vld [vmem:[#allocation4 + $0x1e8] sm:$0xff] }
 0x1d5   : > { %22409 = vmatprep.subr.bf16.mxu0 %v27152_v41 }
 0x1d7   : > { %18041 = vmatmul.mubr.f32.vlgmr.msra.gmra.mrb[0].mxu0 %v27211_v37  ;;  %v22456_v37 = vpack.c.bf16 %v1901_v38, %v1894_v56  ;;  %v2426_v56 = vld [vmem:[#allocation4 + $0x198] sm:$0xff] }
 0x1d8   : > { %22411 = vmatpush3.bf16.msra.mxu0 %v27152_v41  ;;  %18075 = vmatprep.mubr.f32.mxu0 %v32902_v13 }
 0x1d9   : > { %22413 = vmatprep.subr.bf16.mxu0 %v27156_v21 }
 0x1dc   : > { %22415 = vmatpush3.bf16.msra.mxu0 %v27156_v21 }
 0x1dd   : > { %22417 = vmatprep.subr.bf16.mxu0 %v27161_v19 }
 0x1e0   : > { %22419 = vmatpush3.bf16.msra.mxu0 %v27161_v19 }
 0x1e1   : > { %22421 = vmatprep.subr.bf16.mxu0 %v27165_v8 }
 0x1e4   : > { %22423 = vmatpush3.bf16.msra.mxu0 %v27165_v8 }
 0x1e5   : > { %22425 = vmatprep.subr.bf16.mxu0 %v27182_v42 }
 0x1e8   : > { %22427 = vmatpush3.bf16.msra.mxu0 %v27182_v42 }
 0x1e9   : > { %22429 = vmatprep.subr.bf16.mxu0 %v27194_v24 }
 0x1ec   : > { %22431 = vmatpush3.bf16.msra.mxu0 %v27194_v24 }
 0x1ed   : > { %22433 = vmatprep.subr.bf16.mxu0 %v27208_v16 }
 0x1f0   : > { %22435 = vmatpush3.bf16.msra.mxu0 %v27208_v16 }
 0x1f1   : > { %22437 = vmatprep.subr.bf16.mxu0 %v27239_v48 }
 0x1f4   : > { %22439 = vmatpush3.bf16.msra.mxu0 %v27239_v48 }
 0x1f5   : > { %22441 = vmatprep.subr.bf16.mxu0 %v22440_v20 }
 0x1f7   : > { %18076 = vmatmul.mubr.f32.vlgmr.msra.gmra.mrb[0].mxu0 %v32907_v55  ;;  %v2479_v55 = vand.u32 4294901760, %v27454_v43 }
 0x1f8   : > { %22443 = vmatpush3.bf16.msra.mxu0 %v22440_v20  ;;  %18110 = vmatprep.mubr.f32.mxu0 %v27136_v6 }
 0x1f9   : > { %22445 = vmatprep.subr.bf16.mxu0 %v22444_v27 }
 0x1fc   : > { %22447 = vmatpush3.bf16.msra.mxu0 %v22444_v27  ;;  %v2476_v27 = vand.u32 4294901760, %v27452_v36 }
 0x1fd   : > { %22449 = vmatprep.subr.bf16.mxu0 %v22448_v10 }
 0x200   : > { %22451 = vmatpush3.bf16.msra.mxu0 %v22448_v10 }
 0x201   : > { %22453 = vmatprep.subr.bf16.mxu0 %v22452_v15 }
 0x204   : > { %22455 = vmatpush3.bf16.msra.mxu0 %v22452_v15  ;;  %v27476_v15 = vld [vmem:[#allocation4 + $0x1f0] sm:$0xff] }
 0x205   : > { %22457 = vmatprep.subr.bf16.mxu0 %v22456_v37 }
 0x208   : > { %22459 = vmatpush3.bf16.msra.mxu0 %v22456_v37  ;;  %v27478_v37 = vld [vmem:[#allocation4 + $0x1f8] sm:$0xff] }
 0x209   : > { %22461 = vmatprep.subr.bf16.mxu0 %v22460_v11 }
 0x20c   : > { %22463 = vmatpush3.bf16.msra.mxu0 %v22460_v11  ;;  %v27480_v11 = vsub.f32 %v2425_v47, %v2446_v59 }
 0x20d   : > { %22465 = vmatprep.subr.bf16.mxu0 %v22464_v5 }
 0x20e   : > { %v32786_v47 = vand.u32 4294901760, %v27480_v11 }
 0x210   : > { %22467 = vmatpush3.bf16.msra.mxu0 %v22464_v5 }
 0x211   : > { %22469 = vmatprep.subr.bf16.mxu0 %v22468_v31 }
 0x214   : > { %22471 = vmatpush3.bf16.msra.mxu0 %v22468_v31  ;;  %v27488_v31 = vpack.c.bf16 %v2479_v55, %v2476_v27 }
 0x215   : > { %22473 = vmatprep.subr.bf16.mxu0 %v27152_v41 }
 0x217   : > { %18111 = vmatmul.mubr.f32.vlgmr.msra.gmra.mrb[0].mxu0 %v27188_v3 }
 0x218   : > { %22475 = vmatpush3.bf16.msra.mxu0 %v27152_v41  ;;  %18145 = vmatprep.mubr.f32.mxu0 %v27136_v6  ;;  %v27421_v6 = vsub.f32 %v2420_v26, %v27416_v49  ;;  %v2423_v41 = vld [vmem:[#allocation4 + $0x180] sm:$0xff]  ;;  %v27491_v26 = vsub.f32 %v2421_v1, %v27468_v61 }
 0x219   : > { %22477 = vmatprep.subr.bf16.mxu0 %v27156_v21 }
 0x21c   : > { %22479 = vmatpush3.bf16.msra.mxu0 %v27156_v21  ;;  %v2424_v21 = vld [vmem:[#allocation4 + $0x188] sm:$0xff] }
 0x21d   : > { %22481 = vmatprep.subr.bf16.mxu0 %v27161_v19  ;;  %v2443_v30 = vand.u32 4294901760, %v2424_v21 }
 0x21f   : > { %v27458_v33 = vsub.f32 %v2424_v21, %v2443_v30  ;;  %v32787_v21 = vand.u32 4294901760, %v27478_v37 }
 0x220   : > { %22483 = vmatpush3.bf16.msra.mxu0 %v27161_v19  ;;  %v32784_v19 = vand.u32 4294901760, %v27421_v6 }
 0x221   : > { %22485 = vmatprep.subr.bf16.mxu0 %v27165_v8  ;;  %v32782_v29 = vand.u32 4294901760, %v27458_v33 }
 0x224   : > { %22487 = vmatpush3.bf16.msra.mxu0 %v27165_v8  ;;  %v2440_v8 = vand.u32 4294901760, %v2423_v41 }
 0x225   : > { %22489 = vmatprep.subr.bf16.mxu0 %v27182_v42 }
 0x226   : > { %v27432_v38 = vpack.c.bf16 %v2443_v30, %v2440_v8  ;;  %v27456_v13 = vsub.f32 %v2423_v41, %v2440_v8  ;;  %v32789_v41 = vand.u32 4294901760, %v27476_v15  ;;  %v2551_v30 = vsub.f32 %v27458_v33, %v32782_v29 }
 0x228   : > { %22491 = vmatpush3.bf16.msra.mxu0 %v27182_v42  ;;  %v2523_v42 = vsub.f32 %v27421_v6, %v32784_v19  ;;  %v32783_v10 = vand.u32 4294901760, %v27456_v13  ;;  %v27519_v29 = vpack.c.bf16 %v32787_v21, %v32789_v41  ;;  %v2552_v19 = vand.u32 4294901760, %v2551_v30 }
 0x229   : > { %22493 = vmatprep.subr.bf16.mxu0 %v27194_v24 }
 0x22a   : > { %v2524_v25 = vand.u32 4294901760, %v2523_v42  ;;  %v2544_v8 = vsub.f32 %v27456_v13, %v32783_v10 }
 0x22c   : > { %22495 = vmatpush3.bf16.msra.mxu0 %v27194_v24  ;;  %v2449_v24 = vand.u32 4294901760, %v2426_v56  ;;  %v2545_v10 = vand.u32 4294901760, %v2544_v8  ;;  %v27536_v8 = vsub.f32 %v2431_v58, %v2464_v9 }
 0x22d   : > { %22497 = vmatprep.subr.bf16.mxu0 %v27208_v16 }
 0x22e   : > { %v27436_v39 = vpack.c.bf16 %v2449_v24, %v2446_v59  ;;  %v27482_v5 = vsub.f32 %v2426_v56, %v2449_v24  ;;  %v27507_v59 = vsub.f32 %v2428_v35, %v2455_v60  ;;  %v32788_v24 = vand.u32 4294901760, %v27491_v26 }
 0x230   : > { %22499 = vmatpush3.bf16.msra.mxu0 %v27208_v16  ;;  %v2452_v16 = vand.u32 4294901760, %v2427_v2  ;;  %v32785_v56 = vand.u32 4294901760, %v27482_v5 }
 0x231   : > { %22501 = vmatprep.subr.bf16.mxu0 %v27239_v48 }
 0x232   : > { %v27441_v22 = vpack.c.bf16 %v2455_v60, %v2452_v16  ;;  %v27505_v42 = vsub.f32 %v2427_v2, %v2452_v16  ;;  %v2558_v2 = vsub.f32 %v27480_v11, %v32786_v47  ;;  %v2565_v35 = vsub.f32 %v27482_v5, %v32785_v56 }
 0x233   : > { %v32791_v60 = vand.u32 4294901760, %v27507_v59 }
 0x234   : > { %22503 = vmatpush3.bf16.msra.mxu0 %v27239_v48  ;;  %v2461_v48 = vand.u32 4294901760, %v2430_v12  ;;  %v2571_v16 = vand.u32 4294901760, %v27505_v42  ;;  %v2559_v56 = vand.u32 4294901760, %v2558_v2  ;;  %v2566_v47 = vand.u32 4294901760, %v2565_v35 }
 0x235   : > { %22505 = vmatprep.subr.bf16.mxu0 %v27432_v38 }
 0x236   : > { %v27445_v28 = vpack.c.bf16 %v2461_v48, %v2458_v34  ;;  %v27512_v1 = vsub.f32 %v2430_v12, %v2461_v48  ;;  %v22536_v48 = vpack.c.bf16 %v2552_v19, %v2545_v10  ;;  %v2572_v21 = vsub.f32 %v27505_v42, %v2571_v16 }
 0x237   : > { %18146 = vmatmul.mubr.f32.vlgmr.msra.gmra.mrb[0].mxu0 %v27188_v3  ;;  %v2467_v3 = vand.u32 4294901760, %v2432_v40  ;;  %v27560_v10 = vsub.f32 %v27449_v46, %v2473_v32  ;;  %v22540_v2 = vpack.c.bf16 %v2566_v47, %v2559_v56 }
 0x238   : > { %22507 = vmatpush3.bf16.msra.mxu0 %v27432_v38  ;;  %18180 = vmatprep.mubr.f32.mxu0 %v2524_v25  ;;  %v27510_v25 = vsub.f32 %v2429_v54, %v2458_v34  ;;  %v2533_v54 = vsub.f32 %v27491_v26, %v32788_v24  ;;  %v32792_v34 = vand.u32 4294901760, %v27512_v1  ;;  %v2579_v24 = vsub.f32 %v27507_v59, %v32791_v60 }
 0x239   : > { %22509 = vmatprep.subr.bf16.mxu0 %v27436_v39  ;;  %v27462_v20 = vpack.c.bf16 %v2467_v3, %v2464_v9  ;;  %v27538_v30 = vsub.f32 %v2432_v40, %v2467_v3  ;;  %v2599_v40 = vand.u32 4294901760, %v27536_v8  ;;  %v27557_v3 = vsub.f32 %v27447_v7, %v2470_v14 }
 0x23a   : > { %v32790_v12 = vand.u32 4294901760, %v27510_v25  ;;  %v2534_v41 = vand.u32 4294901760, %v2533_v54  ;;  %v2593_v58 = vsub.f32 %v27512_v1, %v32792_v34  ;;  %v2573_v35 = vand.u32 4294901760, %v2572_v21 }
 0x23b   : > { %v2606_v9 = vand.u32 4294901760, %v27538_v30  ;;  %v2580_v54 = vand.u32 4294901760, %v2579_v24  ;;  %v2600_v34 = vsub.f32 %v27536_v8, %v2599_v40  ;;  %v2613_v14 = vand.u32 4294901760, %v27557_v3 }
 0x23c   : > { %22511 = vmatpush3.bf16.msra.mxu0 %v27436_v39  ;;  %v2586_v19 = vsub.f32 %v27510_v25, %v32790_v12  ;;  %v2594_v60 = vand.u32 4294901760, %v2593_v58  ;;  %v2620_v46 = vand.u32 4294901760, %v27560_v10  ;;  %v27579_v21 = vsub.f32 %v27454_v43, %v2479_v55 }
 0x23d   : > { %22513 = vmatprep.subr.bf16.mxu0 %v27441_v22  ;;  %v2607_v7 = vsub.f32 %v27538_v30, %v2606_v9  ;;  %v22544_v32 = vpack.c.bf16 %v2580_v54, %v2573_v35  ;;  %v2601_v56 = vand.u32 4294901760, %v2600_v34  ;;  %v32911_v43 = vand.u32 4294901760, %v27476_v15 }
 0x23e   : > { %v2587_v12 = vand.u32 4294901760, %v2586_v19  ;;  %v2621_v19 = vsub.f32 %v27560_v10, %v2620_v46 }
 0x23f   : > { %v2608_v24 = vand.u32 4294901760, %v2607_v7  ;;  %v27592_v55 = vsub.f32 %v27476_v15, %v32911_v43 }
 0x240   : > { %22515 = vmatpush3.bf16.msra.mxu0 %v27441_v22  ;;  %v22548_v47 = vpack.c.bf16 %v2594_v60, %v2587_v12  ;;  %v32912_v60 = vand.u32 4294901760, %v27478_v37 }
 0x241   : > { %22517 = vmatprep.subr.bf16.mxu0 %v27445_v28  ;;  %v22552_v34 = vpack.c.bf16 %v2608_v24, %v2601_v56  ;;  %v2641_v15 = vand.u32 4294901760, %v27592_v55 }
 0x242   : > { %v27597_v12 = vsub.f32 %v27478_v37, %v32912_v60 }
 0x243   : > { %v2642_v24 = vsub.f32 %v27592_v55, %v2641_v15 }
 0x244   : > { %22519 = vmatpush3.bf16.msra.mxu0 %v27445_v28  ;;  %v2648_v7 = vand.u32 4294901760, %v27597_v12 }
 0x245   : > { %22521 = vmatprep.subr.bf16.mxu0 %v27462_v20  ;;  %v2643_v43 = vand.u32 4294901760, %v2642_v24  ;;  %v32913_v24 = vand.u32 4294901760, %v27421_v6 }
 0x248   : > { %22523 = vmatpush3.bf16.msra.mxu0 %v27462_v20 }
 0x249   : > { %22525 = vmatprep.subr.bf16.mxu0 %v27474_v18 }
 0x24c   : > { %22527 = vmatpush3.bf16.msra.mxu0 %v27474_v18 }
 0x24d   : > { %22529 = vmatprep.subr.bf16.mxu0 %v27488_v31 }
 0x250   : > { %22531 = vmatpush3.bf16.msra.mxu0 %v27488_v31 }
 0x251   : > { %22533 = vmatprep.subr.bf16.mxu0 %v27519_v29 }
 0x254   : > { %22535 = vmatpush3.bf16.msra.mxu0 %v27519_v29 }
 0x255   : > { %22537 = vmatprep.subr.bf16.mxu0 %v22536_v48 }
 0x257   : > { %18181 = vmatmul.mubr.f32.vlgmr.msra.gmra.mrb[0].mxu0 %v2534_v41  ;;  %v27574_v41 = vsub.f32 %v27452_v36, %v2476_v27  ;;  %v2634_v27 = vand.u32 4294901760, %v27579_v21 }
 0x258   : > { %22539 = vmatpush3.bf16.msra.mxu0 %v22536_v48  ;;  %18215 = vmatprep.mubr.f32.mxu0 %v27416_v49  ;;  %v2614_v48 = vsub.f32 %v27557_v3, %v2613_v14 }
 0x259   : > { %22541 = vmatprep.subr.bf16.mxu0 %v22540_v2  ;;  %v2627_v36 = vand.u32 4294901760, %v27574_v41  ;;  %v2635_v54 = vsub.f32 %v27579_v21, %v2634_v27 }
 0x25a   : > { %v2615_v58 = vand.u32 4294901760, %v2614_v48  ;;  %v2649_v48 = vsub.f32 %v27597_v12, %v2648_v7 }
 0x25b   : > { %v2628_v35 = vsub.f32 %v27574_v41, %v2627_v36  ;;  %v2636_v56 = vand.u32 4294901760, %v2635_v54  ;;  %v22584_v54 = vpack.c.bf16 %v27538_v30, %v27536_v8  ;;  %v3130_v30 = vld [vmem:[#allocation4 + $0x210] sm:$0xff] }
 0x25c   : > { %22543 = vmatpush3.bf16.msra.mxu0 %v22540_v2  ;;  %v2622_v2 = vand.u32 4294901760, %v2621_v19  ;;  %v2650_v60 = vand.u32 4294901760, %v2649_v48  ;;  %v32915_v48 = vand.u32 4294901760, %v27458_v33 }
 0x25d   : > { %22545 = vmatprep.subr.bf16.mxu0 %v22544_v32 }
 0x25e   : > { %v22556_v37 = vpack.c.bf16 %v2622_v2, %v2615_v58  ;;  %v22568_v58 = vpack.c.bf16 %v27458_v33, %v27456_v13  ;;  %v22572_v2 = vpack.c.bf16 %v27482_v5, %v27480_v11 }
 0x260   : > { %22547 = vmatpush3.bf16.msra.mxu0 %v22544_v32  ;;  %v2629_v32 = vand.u32 4294901760, %v2628_v35  ;;  %v22580_v35 = vpack.c.bf16 %v27512_v1, %v27510_v25 }
 0x261   : > { %22549 = vmatprep.subr.bf16.mxu0 %v22548_v47 }
 0x262   : > { %v22560_v19 = vpack.c.bf16 %v2636_v56, %v2629_v32  ;;  %v22592_v32 = vpack.c.bf16 %v27579_v21, %v27574_v41  ;;  %v22596_v56 = vpack.c.bf16 %v27597_v12, %v27592_v55 }
 0x264   : > { %22551 = vmatpush3.bf16.msra.mxu0 %v22548_v47  ;;  %v22564_v47 = vpack.c.bf16 %v2650_v60, %v2643_v43  ;;  %v32916_v43 = vand.u32 4294901760, %v27480_v11  ;;  %v32917_v60 = vand.u32 4294901760, %v27482_v5  ;;  %v32921_v11 = vand.u32 4294901760, %v27512_v1  ;;  %v3125_v1 = vld [vmem:[%s26592_s15 + $0x4] sm:$0xff] }
 0x265   : > { %22553 = vmatprep.subr.bf16.mxu0 %v22552_v34 }
 0x268   : > { %22555 = vmatpush3.bf16.msra.mxu0 %v22552_v34  ;;  %v22576_v34 = vpack.c.bf16 %v27507_v59, %v27505_v42  ;;  %v22652_v42 = vpack.c.bf16 %v2620_v46, %v2613_v14  ;;  %v3133_v14 = vld [vmem:[#allocation4 + $0x228] sm:$0xff] }
 0x269   : > { %22557 = vmatprep.subr.bf16.mxu0 %v22556_v37  ;;  %v3160_v21 = vand.u32 4294901760, %v3133_v14 }
 0x26c   : > { %22559 = vmatpush3.bf16.msra.mxu0 %v22556_v37  ;;  %v22588_v37 = vpack.c.bf16 %v27560_v10, %v27557_v3  ;;  %v3151_v3 = vand.u32 4294901760, %v3130_v30  ;;  %v3132_v10 = vld [vmem:[#allocation4 + $0x220] sm:$0xff] }
 0x26d   : > { %22561 = vmatprep.subr.bf16.mxu0 %v22560_v19 }
 0x270   : > { %22563 = vmatpush3.bf16.msra.mxu0 %v22560_v19 }
 0x271   : > { %22565 = vmatprep.subr.bf16.mxu0 %v22564_v47 }
 0x274   : > { %22567 = vmatpush3.bf16.msra.mxu0 %v22564_v47  ;;  %v22636_v47 = vpack.c.bf16 %v32917_v60, %v32916_v43 }
 0x275   : > { %22569 = vmatprep.subr.bf16.mxu0 %v22568_v58 }
 0x277   : > { %18216 = vmatmul.mubr.f32.vlgmr.msra.gmra.mrb[0].mxu0 %v27468_v61 }
 0x278   : > { %22571 = vmatpush3.bf16.msra.mxu0 %v22568_v58  ;;  %18250 = vmatprep.mubr.f32.mxu0 %v27421_v6  ;;  %v32914_v6 = vand.u32 4294901760, %v27456_v13  ;;  %v32918_v58 = vand.u32 4294901760, %v27491_v26  ;;  %v32919_v13 = vand.u32 4294901760, %v27507_v59  ;;  %v22656_v59 = vpack.c.bf16 %v2634_v27, %v2627_v36  ;;  %v3134_v36 = vld [vmem:[#allocation4 + $0x230] sm:$0xff]  ;;  %v3135_v27 = vld [vmem:[#allocation4 + $0x238] sm:$0xff] }
 0x279   : > { %22573 = vmatprep.subr.bf16.mxu0 %v22572_v2  ;;  %v3163_v12 = vand.u32 4294901760, %v3134_v36 }
 0x27a   : > { %v22632_v19 = vpack.c.bf16 %v32915_v48, %v32914_v6  ;;  %v22640_v33 = vpack.c.bf16 %v32919_v13, %v2571_v16  ;;  %v27696_v16 = vand.u32 4294901760, %v3125_v1  ;;  %v3126_v48 = vld [vmem:[%s26592_s15 + $0xc] sm:$0xff] }
 0x27b   : > { %v27748_v13 = vand.u32 4294901760, %v3126_v48 }
 0x27c   : > { %22575 = vmatpush3.bf16.msra.mxu0 %v22572_v2  ;;  %v32920_v2 = vand.u32 4294901760, %v27510_v25  ;;  %v22660_v25 = vpack.c.bf16 %v2648_v7, %v2641_v15  ;;  %v3136_v15 = vld [vmem:[#allocation4 + $0x240] sm:$0xff]  ;;  %v3137_v7 = vld [vmem:[#allocation4 + $0x248] sm:$0xff] }
 0x27d   : > { %22577 = vmatprep.subr.bf16.mxu0 %v22576_v34 }
 0x27e   : > { %v22644_v5 = vpack.c.bf16 %v32921_v11, %v32920_v2 }
 0x280   : > { %22579 = vmatpush3.bf16.msra.mxu0 %v22576_v34 }
 0x281   : > { %22581 = vmatprep.subr.bf16.mxu0 %v22580_v35 }
 0x284   : > { %22583 = vmatpush3.bf16.msra.mxu0 %v22580_v35  ;;  %v3169_v35 = vand.u32 4294901760, %v3136_v15 }
 0x285   : > { %22585 = vmatprep.subr.bf16.mxu0 %v22584_v54 }
 0x288   : > { %22587 = vmatpush3.bf16.msra.mxu0 %v22584_v54  ;;  %v27727_v54 = vld [vmem:[#allocation4 + $0x250] sm:$0xff] }
 0x289   : > { %22589 = vmatprep.subr.bf16.mxu0 %v22588_v37  ;;  %v3175_v43 = vand.u32 4294901760, %v27727_v54 }
 0x28c   : > { %22591 = vmatpush3.bf16.msra.mxu0 %v22588_v37  ;;  %v27729_v37 = vld [vmem:[#allocation4 + $0x258] sm:$0xff] }
 0x28d   : > { %22593 = vmatprep.subr.bf16.mxu0 %v22592_v32  ;;  %v3178_v60 = vand.u32 4294901760, %v27729_v37 }
 0x28f   : > { %v27754_v11 = vpack.c.bf16 %v3178_v60, %v3175_v43 }
 0x290   : > { %22595 = vmatpush3.bf16.msra.mxu0 %v22592_v32  ;;  %v27732_v32 = vld [vmem:[#allocation4 + $0x260] sm:$0xff] }
 0x291   : > { %22597 = vmatprep.subr.bf16.mxu0 %v22596_v56 }
 0x294   : > { %22599 = vmatpush3.bf16.msra.mxu0 %v22596_v56  ;;  %v27734_v56 = vld [vmem:[#allocation4 + $0x268] sm:$0xff] }
 0x295   : > { %22601 = vmatprep.subr.bf16.mxu0 %v27432_v38 }
 0x297   : > { %18251 = vmatmul.mubr.f32.vlgmr.msra.gmra.mrb[0].mxu0 %v27491_v26  ;;  %v22648_v26 = vpack.c.bf16 %v2606_v9, %v2599_v40  ;;  %v3131_v40 = vld [vmem:[#allocation4 + $0x218] sm:$0xff] }
 0x298   : > { %22603 = vmatpush3.bf16.msra.mxu0 %v27432_v38  ;;  %18285 = vmatprep.mubr.f32.mxu0 %v32913_v24 }
 0x299   : > { %22605 = vmatprep.subr.bf16.mxu0 %v27436_v39 }
 0x29c   : > { %22607 = vmatpush3.bf16.msra.mxu0 %v27436_v39 }
 0x29d   : > { %22609 = vmatprep.subr.bf16.mxu0 %v27441_v22 }
 0x2a0   : > { %22611 = vmatpush3.bf16.msra.mxu0 %v27441_v22 }
 0x2a1   : > { %22613 = vmatprep.subr.bf16.mxu0 %v27445_v28 }
 0x2a4   : > { %22615 = vmatpush3.bf16.msra.mxu0 %v27445_v28 }
 0x2a5   : > { %22617 = vmatprep.subr.bf16.mxu0 %v27462_v20 }
 0x2a8   : > { %22619 = vmatpush3.bf16.msra.mxu0 %v27462_v20 }
 0x2a9   : > { %22621 = vmatprep.subr.bf16.mxu0 %v27474_v18 }
 0x2ac   : > { %22623 = vmatpush3.bf16.msra.mxu0 %v27474_v18 }
 0x2ad   : > { %22625 = vmatprep.subr.bf16.mxu0 %v27488_v31 }
 0x2b0   : > { %22627 = vmatpush3.bf16.msra.mxu0 %v27488_v31 }
 0x2b1   : > { %22629 = vmatprep.subr.bf16.mxu0 %v27519_v29 }
 0x2b4   : > { %22631 = vmatpush3.bf16.msra.mxu0 %v27519_v29 }
 0x2b5   : > { %22633 = vmatprep.subr.bf16.mxu0 %v22632_v19 }
 0x2b7   : > { %18286 = vmatmul.mubr.f32.vlgmr.msra.gmra.mrb[0].mxu0 %v32918_v58  ;;  %v3184_v58 = vand.u32 4294901760, %v27734_v56 }
 0x2b8   : > { %22635 = vmatpush3.bf16.msra.mxu0 %v22632_v19  ;;  %18320 = vmatprep.mubr.f32.mxu0 %v27416_v49 }
 0x2b9   : > { %22637 = vmatprep.subr.bf16.mxu0 %v22636_v47 }
 0x2bc   : > { %22639 = vmatpush3.bf16.msra.mxu0 %v22636_v47  ;;  %v3181_v47 = vand.u32 4294901760, %v27732_v32 }
 0x2bd   : > { %22641 = vmatprep.subr.bf16.mxu0 %v22640_v33 }
 0x2c0   : > { %22643 = vmatpush3.bf16.msra.mxu0 %v22640_v33 }
 0x2c1   : > { %22645 = vmatprep.subr.bf16.mxu0 %v22644_v5 }
 0x2c4   : > { %22647 = vmatpush3.bf16.msra.mxu0 %v22644_v5  ;;  %v27756_v5 = vld [vmem:[#allocation4 + $0x270] sm:$0xff] }
 0x2c5   : > { %22649 = vmatprep.subr.bf16.mxu0 %v22648_v26 }
 0x2c8   : > { %22651 = vmatpush3.bf16.msra.mxu0 %v22648_v26  ;;  %v27758_v26 = vld [vmem:[#allocation4 + $0x278] sm:$0xff] }
 0x2c9   : > { %22653 = vmatprep.subr.bf16.mxu0 %v22652_v42 }
 0x2cc   : > { %22655 = vmatpush3.bf16.msra.mxu0 %v22652_v42  ;;  %v27760_v42 = vsub.f32 %v3130_v30, %v3151_v3 }
 0x2cd   : > { %22657 = vmatprep.subr.bf16.mxu0 %v22656_v59 }
 0x2ce   : > { %v32797_v30 = vand.u32 4294901760, %v27760_v42 }
 0x2d0   : > { %22659 = vmatpush3.bf16.msra.mxu0 %v22656_v59 }
 0x2d1   : > { %22661 = vmatprep.subr.bf16.mxu0 %v22660_v25 }
 0x2d4   : > { %22663 = vmatpush3.bf16.msra.mxu0 %v22660_v25  ;;  %v27768_v25 = vpack.c.bf16 %v3184_v58, %v3181_v47 }
 0x2d5   : > { %22665 = vmatprep.subr.bf16.mxu0 %v27432_v38 }
 0x2d7   : > { %18321 = vmatmul.mubr.f32.vlgmr.msra.gmra.mrb[0].mxu0 %v27468_v61 }
 0x2d8   : > { %22667 = vmatpush3.bf16.msra.mxu0 %v27432_v38  ;;  %18355 = vmatprep.mubr.f32.mxu0 %v27416_v49  ;;  %v27701_v49 = vsub.f32 %v3125_v1, %v27696_v16  ;;  %v3128_v38 = vld [vmem:[#allocation4 + $0x200] sm:$0xff]  ;;  %v27771_v1 = vsub.f32 %v3126_v48, %v27748_v13 }
 0x2d9   : > { %22669 = vmatprep.subr.bf16.mxu0 %v27436_v39 }
 0x2dc   : > { %22671 = vmatpush3.bf16.msra.mxu0 %v27436_v39  ;;  %v3129_v39 = vld [vmem:[#allocation4 + $0x208] sm:$0xff] }
 0x2dd   : > { %22673 = vmatprep.subr.bf16.mxu0 %v27441_v22  ;;  %v3148_v8 = vand.u32 4294901760, %v3129_v39 }
 0x2df   : > { %v27738_v6 = vsub.f32 %v3129_v39, %v3148_v8  ;;  %v32798_v39 = vand.u32 4294901760, %v27758_v26 }
 0x2e0   : > { %22675 = vmatpush3.bf16.msra.mxu0 %v27441_v22  ;;  %v32795_v22 = vand.u32 4294901760, %v27701_v49 }
 0x2e1   : > { %22677 = vmatprep.subr.bf16.mxu0 %v27445_v28  ;;  %v32793_v2 = vand.u32 4294901760, %v27738_v6 }
 0x2e4   : > { %22679 = vmatpush3.bf16.msra.mxu0 %v27445_v28  ;;  %v3145_v28 = vand.u32 4294901760, %v3128_v38 }
 0x2e5   : > { %22681 = vmatprep.subr.bf16.mxu0 %v27462_v20 }
 0x2e6   : > { %v27712_v9 = vpack.c.bf16 %v3148_v8, %v3145_v28  ;;  %v27736_v24 = vsub.f32 %v3128_v38, %v3145_v28  ;;  %v32800_v38 = vand.u32 4294901760, %v27756_v5  ;;  %v3256_v8 = vsub.f32 %v27738_v6, %v32793_v2 }
 0x2e8   : > { %22683 = vmatpush3.bf16.msra.mxu0 %v27462_v20  ;;  %v3228_v20 = vsub.f32 %v27701_v49, %v32795_v22  ;;  %v32794_v33 = vand.u32 4294901760, %v27736_v24  ;;  %v27799_v2 = vpack.c.bf16 %v32798_v39, %v32800_v38  ;;  %v3257_v22 = vand.u32 4294901760, %v3256_v8 }
 0x2e9   : > { %22685 = vmatprep.subr.bf16.mxu0 %v27474_v18 }
 0x2ea   : > { %v3229_v46 = vand.u32 4294901760, %v3228_v20  ;;  %v3249_v28 = vsub.f32 %v27736_v24, %v32794_v33 }
 0x2ec   : > { %22687 = vmatpush3.bf16.msra.mxu0 %v27474_v18  ;;  %v3154_v18 = vand.u32 4294901760, %v3131_v40  ;;  %v3250_v33 = vand.u32 4294901760, %v3249_v28  ;;  %v27816_v28 = vsub.f32 %v3136_v15, %v3169_v35 }
 0x2ed   : > { %22689 = vmatprep.subr.bf16.mxu0 %v27488_v31 }
 0x2ee   : > { %v27716_v41 = vpack.c.bf16 %v3154_v18, %v3151_v3  ;;  %v27762_v59 = vsub.f32 %v3131_v40, %v3154_v18  ;;  %v27787_v3 = vsub.f32 %v3133_v14, %v3160_v21  ;;  %v32799_v18 = vand.u32 4294901760, %v27771_v1 }
 0x2f0   : > { %22691 = vmatpush3.bf16.msra.mxu0 %v27488_v31  ;;  %v3157_v31 = vand.u32 4294901760, %v3132_v10  ;;  %v32796_v40 = vand.u32 4294901760, %v27762_v59 }
 0x2f1   : > { %22693 = vmatprep.subr.bf16.mxu0 %v27519_v29 }
 0x2f2   : > { %v27721_v55 = vpack.c.bf16 %v3160_v21, %v3157_v31  ;;  %v27785_v20 = vsub.f32 %v3132_v10, %v3157_v31  ;;  %v3263_v10 = vsub.f32 %v27760_v42, %v32797_v30  ;;  %v3270_v14 = vsub.f32 %v27762_v59, %v32796_v40 }
 0x2f3   : > { %v32802_v21 = vand.u32 4294901760, %v27787_v3 }
 0x2f4   : > { %22695 = vmatpush3.bf16.msra.mxu0 %v27519_v29  ;;  %v3166_v29 = vand.u32 4294901760, %v3135_v27  ;;  %v3276_v31 = vand.u32 4294901760, %v27785_v20  ;;  %v3264_v40 = vand.u32 4294901760, %v3263_v10  ;;  %v3271_v30 = vand.u32 4294901760, %v3270_v14 }
 0x2f5   : > { %22697 = vmatprep.subr.bf16.mxu0 %v27712_v9 }
 0x2f6   : > { %v27725_v34 = vpack.c.bf16 %v3166_v29, %v3163_v12  ;;  %v27792_v48 = vsub.f32 %v3135_v27, %v3166_v29  ;;  %v22728_v29 = vpack.c.bf16 %v3257_v22, %v3250_v33  ;;  %v3277_v39 = vsub.f32 %v27785_v20, %v3276_v31 }
 0x2f7   : > { %18356 = vmatmul.mubr.f32.vlgmr.msra.gmra.mrb[0].mxu0 %v27468_v61  ;;  %v3172_v61 = vand.u32 4294901760, %v3137_v7  ;;  %v27840_v33 = vsub.f32 %v27729_v37, %v3178_v60  ;;  %v22732_v10 = vpack.c.bf16 %v3271_v30, %v3264_v40 }
 0x2f8   : > { %22699 = vmatpush3.bf16.msra.mxu0 %v27712_v9  ;;  %18390 = vmatprep.mubr.f32.mxu0 %v3229_v46  ;;  %v27790_v46 = vsub.f32 %v3134_v36, %v3163_v12  ;;  %v3238_v36 = vsub.f32 %v27771_v1, %v32799_v18  ;;  %v32803_v12 = vand.u32 4294901760, %v27792_v48  ;;  %v3284_v18 = vsub.f32 %v27787_v3, %v32802_v21 }
 0x2f9   : > { %22701 = vmatprep.subr.bf16.mxu0 %v27716_v41  ;;  %v27742_v19 = vpack.c.bf16 %v3172_v61, %v3169_v35  ;;  %v27818_v8 = vsub.f32 %v3137_v7, %v3172_v61  ;;  %v3304_v7 = vand.u32 4294901760, %v27816_v28  ;;  %v27837_v61 = vsub.f32 %v27727_v54, %v3175_v43 }
 0x2fa   : > { %v32801_v27 = vand.u32 4294901760, %v27790_v46  ;;  %v3239_v38 = vand.u32 4294901760, %v3238_v36  ;;  %v3298_v15 = vsub.f32 %v27792_v48, %v32803_v12  ;;  %v3278_v14 = vand.u32 4294901760, %v3277_v39 }
 0x2fb   : > { %v3311_v35 = vand.u32 4294901760, %v27818_v8  ;;  %v3285_v36 = vand.u32 4294901760, %v3284_v18  ;;  %v3305_v12 = vsub.f32 %v27816_v28, %v3304_v7  ;;  %v3318_v43 = vand.u32 4294901760, %v27837_v61 }
 0x2fc   : > { %22703 = vmatpush3.bf16.msra.mxu0 %v27716_v41  ;;  %v3291_v22 = vsub.f32 %v27790_v46, %v32801_v27  ;;  %v3299_v21 = vand.u32 4294901760, %v3298_v15  ;;  %v3325_v37 = vand.u32 4294901760, %v27840_v33  ;;  %v27859_v39 = vsub.f32 %v27734_v56, %v3184_v58 }
 0x2fd   : > { %22705 = vmatprep.subr.bf16.mxu0 %v27721_v55  ;;  %v3312_v54 = vsub.f32 %v27818_v8, %v3311_v35  ;;  %v22736_v60 = vpack.c.bf16 %v3285_v36, %v3278_v14  ;;  %v3306_v40 = vand.u32 4294901760, %v3305_v12  ;;  %v32922_v56 = vand.u32 4294901760, %v27756_v5 }
 0x2fe   : > { %v3292_v27 = vand.u32 4294901760, %v3291_v22  ;;  %v3326_v22 = vsub.f32 %v27840_v33, %v3325_v37 }
 0x2ff   : > { %v3313_v18 = vand.u32 4294901760, %v3312_v54  ;;  %v27872_v58 = vsub.f32 %v27756_v5, %v32922_v56 }
 0x300   : > { %22707 = vmatpush3.bf16.msra.mxu0 %v27721_v55  ;;  %v22740_v30 = vpack.c.bf16 %v3299_v21, %v3292_v27  ;;  %v32923_v21 = vand.u32 4294901760, %v27758_v26 }
 0x301   : > { %22709 = vmatprep.subr.bf16.mxu0 %v27725_v34  ;;  %v22744_v12 = vpack.c.bf16 %v3313_v18, %v3306_v40  ;;  %v3346_v5 = vand.u32 4294901760, %v27872_v58 }
 0x302   : > { %v27877_v27 = vsub.f32 %v27758_v26, %v32923_v21 }
 0x303   : > { %v3347_v18 = vsub.f32 %v27872_v58, %v3346_v5 }
 0x304   : > { %22711 = vmatpush3.bf16.msra.mxu0 %v27725_v34  ;;  %v3353_v54 = vand.u32 4294901760, %v27877_v27 }
 0x305   : > { %22713 = vmatprep.subr.bf16.mxu0 %v27742_v19  ;;  %v3348_v56 = vand.u32 4294901760, %v3347_v18  ;;  %v32924_v18 = vand.u32 4294901760, %v27701_v49 }
 0x308   : > { %22715 = vmatpush3.bf16.msra.mxu0 %v27742_v19 }
 0x309   : > { %22717 = vmatprep.subr.bf16.mxu0 %v27754_v11 }
 0x30c   : > { %22719 = vmatpush3.bf16.msra.mxu0 %v27754_v11 }
 0x30d   : > { %22721 = vmatprep.subr.bf16.mxu0 %v27768_v25 }
 0x310   : > { %22723 = vmatpush3.bf16.msra.mxu0 %v27768_v25 }
 0x311   : > { %22725 = vmatprep.subr.bf16.mxu0 %v27799_v2 }
 0x314   : > { %22727 = vmatpush3.bf16.msra.mxu0 %v27799_v2 }
 0x315   : > { %22729 = vmatprep.subr.bf16.mxu0 %v22728_v29 }
 0x317   : > { %18391 = vmatmul.mubr.f32.vlgmr.msra.gmra.mrb[0].mxu0 %v3239_v38  ;;  %v27854_v38 = vsub.f32 %v27732_v32, %v3181_v47  ;;  %v3339_v47 = vand.u32 4294901760, %v27859_v39 }
 0x318   : > { %22731 = vmatpush3.bf16.msra.mxu0 %v22728_v29  ;;  %18425 = vmatprep.mubr.f32.mxu0 %v27696_v16  ;;  %v3319_v29 = vsub.f32 %v27837_v61, %v3318_v43 }
 0x319   : > { %22733 = vmatprep.subr.bf16.mxu0 %v22732_v10  ;;  %v3332_v32 = vand.u32 4294901760, %v27854_v38  ;;  %v3340_v36 = vsub.f32 %v27859_v39, %v3339_v47 }
 0x31a   : > { %v3320_v15 = vand.u32 4294901760, %v3319_v29  ;;  %v3354_v29 = vsub.f32 %v27877_v27, %v3353_v54 }
 0x31b   : > { %v3333_v14 = vsub.f32 %v27854_v38, %v3332_v32  ;;  %v3341_v40 = vand.u32 4294901760, %v3340_v36  ;;  %v22776_v36 = vpack.c.bf16 %v27818_v8, %v27816_v28  ;;  %v3835_v8 = vld [vmem:[#allocation4 + $0x290] sm:$0xff] }
 0x31c   : > { %22735 = vmatpush3.bf16.msra.mxu0 %v22732_v10  ;;  %v3327_v10 = vand.u32 4294901760, %v3326_v22  ;;  %v3355_v21 = vand.u32 4294901760, %v3354_v29  ;;  %v32926_v29 = vand.u32 4294901760, %v27738_v6 }
 0x31d   : > { %22737 = vmatprep.subr.bf16.mxu0 %v22736_v60 }
 0x31e   : > { %v22748_v26 = vpack.c.bf16 %v3327_v10, %v3320_v15  ;;  %v22760_v15 = vpack.c.bf16 %v27738_v6, %v27736_v24  ;;  %v22764_v10 = vpack.c.bf16 %v27762_v59, %v27760_v42 }
 0x320   : > { %22739 = vmatpush3.bf16.msra.mxu0 %v22736_v60  ;;  %v3334_v60 = vand.u32 4294901760, %v3333_v14  ;;  %v22772_v14 = vpack.c.bf16 %v27792_v48, %v27790_v46 }
 0x321   : > { %22741 = vmatprep.subr.bf16.mxu0 %v22740_v30 }
 0x322   : > { %v22752_v22 = vpack.c.bf16 %v3341_v40, %v3334_v60  ;;  %v22784_v60 = vpack.c.bf16 %v27859_v39, %v27854_v38  ;;  %v22788_v40 = vpack.c.bf16 %v27877_v27, %v27872_v58 }
 0x324   : > { %22743 = vmatpush3.bf16.msra.mxu0 %v22740_v30  ;;  %v22756_v30 = vpack.c.bf16 %v3355_v21, %v3348_v56  ;;  %v32927_v56 = vand.u32 4294901760, %v27760_v42  ;;  %v32928_v21 = vand.u32 4294901760, %v27762_v59  ;;  %v32932_v42 = vand.u32 4294901760, %v27792_v48  ;;  %v3830_v48 = vld [vmem:[%s26592_s15 + $0x5] sm:$0xff] }
 0x325   : > { %22745 = vmatprep.subr.bf16.mxu0 %v22744_v12 }
 0x328   : > { %22747 = vmatpush3.bf16.msra.mxu0 %v22744_v12  ;;  %v22768_v12 = vpack.c.bf16 %v27787_v3, %v27785_v20  ;;  %v22844_v20 = vpack.c.bf16 %v3325_v37, %v3318_v43  ;;  %v3838_v43 = vld [vmem:[#allocation4 + $0x2a8] sm:$0xff] }
 0x329   : > { %22749 = vmatprep.subr.bf16.mxu0 %v22748_v26  ;;  %v3865_v39 = vand.u32 4294901760, %v3838_v43 }
 0x32c   : > { %22751 = vmatpush3.bf16.msra.mxu0 %v22748_v26  ;;  %v22780_v26 = vpack.c.bf16 %v27840_v33, %v27837_v61  ;;  %v3856_v61 = vand.u32 4294901760, %v3835_v8  ;;  %v3837_v33 = vld [vmem:[#allocation4 + $0x2a0] sm:$0xff] }
 0x32d   : > { %22753 = vmatprep.subr.bf16.mxu0 %v22752_v22 }
 0x330   : > { %22755 = vmatpush3.bf16.msra.mxu0 %v22752_v22 }
 0x331   : > { %22757 = vmatprep.subr.bf16.mxu0 %v22756_v30 }
 0x334   : > { %22759 = vmatpush3.bf16.msra.mxu0 %v22756_v30  ;;  %v22828_v30 = vpack.c.bf16 %v32928_v21, %v32927_v56 }
 0x335   : > { %22761 = vmatprep.subr.bf16.mxu0 %v22760_v15 }
 0x337   : > { %18426 = vmatmul.mubr.f32.vlgmr.msra.gmra.mrb[0].mxu0 %v27748_v13 }
 0x338   : > { %22763 = vmatpush3.bf16.msra.mxu0 %v22760_v15  ;;  %18460 = vmatprep.mubr.f32.mxu0 %v27701_v49  ;;  %v32925_v49 = vand.u32 4294901760, %v27736_v24  ;;  %v32929_v15 = vand.u32 4294901760, %v27771_v1  ;;  %v32930_v24 = vand.u32 4294901760, %v27787_v3  ;;  %v22848_v3 = vpack.c.bf16 %v3339_v47, %v3332_v32  ;;  %v3839_v32 = vld [vmem:[#allocation4 + $0x2b0] sm:$0xff]  ;;  %v3840_v47 = vld [vmem:[#allocation4 + $0x2b8] sm:$0xff] }
 0x339   : > { %22765 = vmatprep.subr.bf16.mxu0 %v22764_v10  ;;  %v3868_v27 = vand.u32 4294901760, %v3839_v32 }
 0x33a   : > { %v22824_v22 = vpack.c.bf16 %v32926_v29, %v32925_v49  ;;  %v22832_v6 = vpack.c.bf16 %v32930_v24, %v3276_v31  ;;  %v27976_v31 = vand.u32 4294901760, %v3830_v48  ;;  %v3831_v29 = vld [vmem:[%s26592_s15 + $0xd] sm:$0xff] }
 0x33b   : > { %v28028_v24 = vand.u32 4294901760, %v3831_v29 }
 0x33c   : > { %22767 = vmatpush3.bf16.msra.mxu0 %v22764_v10  ;;  %v32931_v10 = vand.u32 4294901760, %v27790_v46  ;;  %v22852_v46 = vpack.c.bf16 %v3353_v54, %v3346_v5  ;;  %v3841_v5 = vld [vmem:[#allocation4 + $0x2c0] sm:$0xff]  ;;  %v3842_v54 = vld [vmem:[#allocation4 + $0x2c8] sm:$0xff] }
 0x33d   : > { %22769 = vmatprep.subr.bf16.mxu0 %v22768_v12 }
 0x33e   : > { %v22836_v59 = vpack.c.bf16 %v32932_v42, %v32931_v10 }
 0x340   : > { %22771 = vmatpush3.bf16.msra.mxu0 %v22768_v12 }
 0x341   : > { %22773 = vmatprep.subr.bf16.mxu0 %v22772_v14 }
 0x344   : > { %22775 = vmatpush3.bf16.msra.mxu0 %v22772_v14  ;;  %v3874_v14 = vand.u32 4294901760, %v3841_v5 }
 0x345   : > { %22777 = vmatprep.subr.bf16.mxu0 %v22776_v36 }
 0x348   : > { %22779 = vmatpush3.bf16.msra.mxu0 %v22776_v36  ;;  %v28007_v36 = vld [vmem:[#allocation4 + $0x2d0] sm:$0xff] }
 0x349   : > { %22781 = vmatprep.subr.bf16.mxu0 %v22780_v26  ;;  %v3880_v56 = vand.u32 4294901760, %v28007_v36 }
 0x34c   : > { %22783 = vmatpush3.bf16.msra.mxu0 %v22780_v26  ;;  %v28009_v26 = vld [vmem:[#allocation4 + $0x2d8] sm:$0xff] }
 0x34d   : > { %22785 = vmatprep.subr.bf16.mxu0 %v22784_v60  ;;  %v3883_v21 = vand.u32 4294901760, %v28009_v26 }
 0x34f   : > { %v28034_v42 = vpack.c.bf16 %v3883_v21, %v3880_v56 }
 0x350   : > { %22787 = vmatpush3.bf16.msra.mxu0 %v22784_v60  ;;  %v28012_v60 = vld [vmem:[#allocation4 + $0x2e0] sm:$0xff] }
 0x351   : > { %22789 = vmatprep.subr.bf16.mxu0 %v22788_v40 }
 0x354   : > { %22791 = vmatpush3.bf16.msra.mxu0 %v22788_v40  ;;  %v28014_v40 = vld [vmem:[#allocation4 + $0x2e8] sm:$0xff] }
 0x355   : > { %22793 = vmatprep.subr.bf16.mxu0 %v27712_v9 }
 0x357   : > { %18461 = vmatmul.mubr.f32.vlgmr.msra.gmra.mrb[0].mxu0 %v27771_v1  ;;  %v22840_v1 = vpack.c.bf16 %v3311_v35, %v3304_v7  ;;  %v3836_v7 = vld [vmem:[#allocation4 + $0x298] sm:$0xff] }
 0x358   : > { %22795 = vmatpush3.bf16.msra.mxu0 %v27712_v9  ;;  %18495 = vmatprep.mubr.f32.mxu0 %v32924_v18 }
 0x359   : > { %22797 = vmatprep.subr.bf16.mxu0 %v27716_v41 }
 0x35c   : > { %22799 = vmatpush3.bf16.msra.mxu0 %v27716_v41 }
 0x35d   : > { %22801 = vmatprep.subr.bf16.mxu0 %v27721_v55 }
 0x360   : > { %22803 = vmatpush3.bf16.msra.mxu0 %v27721_v55 }
 0x361   : > { %22805 = vmatprep.subr.bf16.mxu0 %v27725_v34 }
 0x364   : > { %22807 = vmatpush3.bf16.msra.mxu0 %v27725_v34 }
 0x365   : > { %22809 = vmatprep.subr.bf16.mxu0 %v27742_v19 }
 0x368   : > { %22811 = vmatpush3.bf16.msra.mxu0 %v27742_v19 }
 0x369   : > { %22813 = vmatprep.subr.bf16.mxu0 %v27754_v11 }
 0x36c   : > { %22815 = vmatpush3.bf16.msra.mxu0 %v27754_v11 }
 0x36d   : > { %22817 = vmatprep.subr.bf16.mxu0 %v27768_v25 }
 0x370   : > { %22819 = vmatpush3.bf16.msra.mxu0 %v27768_v25 }
 0x371   : > { %22821 = vmatprep.subr.bf16.mxu0 %v27799_v2 }
 0x374   : > { %22823 = vmatpush3.bf16.msra.mxu0 %v27799_v2 }
 0x375   : > { %22825 = vmatprep.subr.bf16.mxu0 %v22824_v22 }
 0x377   : > { %18496 = vmatmul.mubr.f32.vlgmr.msra.gmra.mrb[0].mxu0 %v32929_v15  ;;  %v3889_v15 = vand.u32 4294901760, %v28014_v40 }
 0x378   : > { %22827 = vmatpush3.bf16.msra.mxu0 %v22824_v22  ;;  %18530 = vmatprep.mubr.f32.mxu0 %v27696_v16 }
 0x379   : > { %22829 = vmatprep.subr.bf16.mxu0 %v22828_v30 }
 0x37c   : > { %22831 = vmatpush3.bf16.msra.mxu0 %v22828_v30  ;;  %v3886_v30 = vand.u32 4294901760, %v28012_v60 }
 0x37d   : > { %22833 = vmatprep.subr.bf16.mxu0 %v22832_v6 }
 0x380   : > { %22835 = vmatpush3.bf16.msra.mxu0 %v22832_v6 }
 0x381   : > { %22837 = vmatprep.subr.bf16.mxu0 %v22836_v59 }
 0x384   : > { %22839 = vmatpush3.bf16.msra.mxu0 %v22836_v59  ;;  %v28036_v59 = vld [vmem:[#allocation4 + $0x2f0] sm:$0xff] }
 0x385   : > { %22841 = vmatprep.subr.bf16.mxu0 %v22840_v1 }
 0x388   : > { %22843 = vmatpush3.bf16.msra.mxu0 %v22840_v1  ;;  %v28038_v1 = vld [vmem:[#allocation4 + $0x2f8] sm:$0xff] }
 0x389   : > { %22845 = vmatprep.subr.bf16.mxu0 %v22844_v20 }
 0x38c   : > { %22847 = vmatpush3.bf16.msra.mxu0 %v22844_v20  ;;  %v28040_v20 = vsub.f32 %v3835_v8, %v3856_v61 }
 0x38d   : > { %22849 = vmatprep.subr.bf16.mxu0 %v22848_v3 }
 0x38e   : > { %v32808_v8 = vand.u32 4294901760, %v28040_v20 }
 0x390   : > { %22851 = vmatpush3.bf16.msra.mxu0 %v22848_v3 }
 0x391   : > { %22853 = vmatprep.subr.bf16.mxu0 %v22852_v46 }
 0x394   : > { %22855 = vmatpush3.bf16.msra.mxu0 %v22852_v46  ;;  %v28048_v46 = vpack.c.bf16 %v3889_v15, %v3886_v30 }
 0x395   : > { %22857 = vmatprep.subr.bf16.mxu0 %v27712_v9 }
 0x397   : > { %18531 = vmatmul.mubr.f32.vlgmr.msra.gmra.mrb[0].mxu0 %v27748_v13 }
 0x398   : > { %22859 = vmatpush3.bf16.msra.mxu0 %v27712_v9  ;;  %18565 = vmatprep.mubr.f32.mxu0 %v27696_v16  ;;  %v27981_v16 = vsub.f32 %v3830_v48, %v27976_v31  ;;  %v3833_v9 = vld [vmem:[#allocation4 + $0x280] sm:$0xff]  ;;  %v28051_v48 = vsub.f32 %v3831_v29, %v28028_v24 }
 0x399   : > { %22861 = vmatprep.subr.bf16.mxu0 %v27716_v41 }
 0x39c   : > { %22863 = vmatpush3.bf16.msra.mxu0 %v27716_v41  ;;  %v3834_v41 = vld [vmem:[#allocation4 + $0x288] sm:$0xff] }
 0x39d   : > { %22865 = vmatprep.subr.bf16.mxu0 %v27721_v55  ;;  %v3853_v28 = vand.u32 4294901760, %v3834_v41 }
 0x39f   : > { %v28018_v49 = vsub.f32 %v3834_v41, %v3853_v28  ;;  %v32809_v41 = vand.u32 4294901760, %v28038_v1 }
 0x3a0   : > { %22867 = vmatpush3.bf16.msra.mxu0 %v27721_v55  ;;  %v32806_v55 = vand.u32 4294901760, %v27981_v16 }
 0x3a1   : > { %22869 = vmatprep.subr.bf16.mxu0 %v27725_v34  ;;  %v32804_v10 = vand.u32 4294901760, %v28018_v49 }
 0x3a4   : > { %22871 = vmatpush3.bf16.msra.mxu0 %v27725_v34  ;;  %v3850_v34 = vand.u32 4294901760, %v3833_v9 }
 0x3a5   : > { %22873 = vmatprep.subr.bf16.mxu0 %v27742_v19 }
 0x3a6   : > { %v27992_v35 = vpack.c.bf16 %v3853_v28, %v3850_v34  ;;  %v28016_v18 = vsub.f32 %v3833_v9, %v3850_v34  ;;  %v32811_v9 = vand.u32 4294901760, %v28036_v59  ;;  %v3961_v28 = vsub.f32 %v28018_v49, %v32804_v10 }
 0x3a8   : > { %22875 = vmatpush3.bf16.msra.mxu0 %v27742_v19  ;;  %v3933_v19 = vsub.f32 %v27981_v16, %v32806_v55  ;;  %v32805_v6 = vand.u32 4294901760, %v28016_v18  ;;  %v28079_v10 = vpack.c.bf16 %v32809_v41, %v32811_v9  ;;  %v3962_v55 = vand.u32 4294901760, %v3961_v28 }
 0x3a9   : > { %22877 = vmatprep.subr.bf16.mxu0 %v27754_v11 }
 0x3aa   : > { %v3934_v37 = vand.u32 4294901760, %v3933_v19  ;;  %v3954_v34 = vsub.f32 %v28016_v18, %v32805_v6 }
 0x3ac   : > { %22879 = vmatpush3.bf16.msra.mxu0 %v27754_v11  ;;  %v3859_v11 = vand.u32 4294901760, %v3836_v7  ;;  %v3955_v6 = vand.u32 4294901760, %v3954_v34  ;;  %v28096_v34 = vsub.f32 %v3841_v5, %v3874_v14 }
 0x3ad   : > { %22881 = vmatprep.subr.bf16.mxu0 %v27768_v25 }
 0x3ae   : > { %v27996_v38 = vpack.c.bf16 %v3859_v11, %v3856_v61  ;;  %v28042_v3 = vsub.f32 %v3836_v7, %v3859_v11  ;;  %v28067_v61 = vsub.f32 %v3838_v43, %v3865_v39  ;;  %v32810_v11 = vand.u32 4294901760, %v28051_v48 }
 0x3b0   : > { %22883 = vmatpush3.bf16.msra.mxu0 %v27768_v25  ;;  %v3862_v25 = vand.u32 4294901760, %v3837_v33  ;;  %v32807_v7 = vand.u32 4294901760, %v28042_v3 }
 0x3b1   : > { %22885 = vmatprep.subr.bf16.mxu0 %v27799_v2 }
 0x3b2   : > { %v28001_v58 = vpack.c.bf16 %v3865_v39, %v3862_v25  ;;  %v28065_v19 = vsub.f32 %v3837_v33, %v3862_v25  ;;  %v3968_v33 = vsub.f32 %v28040_v20, %v32808_v8  ;;  %v3975_v43 = vsub.f32 %v28042_v3, %v32807_v7 }
 0x3b3   : > { %v32813_v39 = vand.u32 4294901760, %v28067_v61 }
 0x3b4   : > { %22887 = vmatpush3.bf16.msra.mxu0 %v27799_v2  ;;  %v3871_v2 = vand.u32 4294901760, %v3840_v47  ;;  %v3981_v25 = vand.u32 4294901760, %v28065_v19  ;;  %v3969_v7 = vand.u32 4294901760, %v3968_v33  ;;  %v3976_v8 = vand.u32 4294901760, %v3975_v43 }
 0x3b5   : > { %22889 = vmatprep.subr.bf16.mxu0 %v27992_v35 }
 0x3b6   : > { %v28005_v12 = vpack.c.bf16 %v3871_v2, %v3868_v27  ;;  %v28072_v29 = vsub.f32 %v3840_v47, %v3871_v2  ;;  %v22920_v2 = vpack.c.bf16 %v3962_v55, %v3955_v6  ;;  %v3982_v41 = vsub.f32 %v28065_v19, %v3981_v25 }
 0x3b7   : > { %18566 = vmatmul.mubr.f32.vlgmr.msra.gmra.mrb[0].mxu0 %v27748_v13  ;;  %v3877_v13 = vand.u32 4294901760, %v3842_v54  ;;  %v28120_v6 = vsub.f32 %v28009_v26, %v3883_v21  ;;  %v22924_v33 = vpack.c.bf16 %v3976_v8, %v3969_v7 }
 0x3b8   : > { %22891 = vmatpush3.bf16.msra.mxu0 %v27992_v35  ;;  %18600 = vmatprep.mubr.f32.mxu0 %v3934_v37  ;;  %v28070_v37 = vsub.f32 %v3839_v32, %v3868_v27  ;;  %v3943_v32 = vsub.f32 %v28051_v48, %v32810_v11  ;;  %v32814_v27 = vand.u32 4294901760, %v28072_v29  ;;  %v3989_v11 = vsub.f32 %v28067_v61, %v32813_v39 }
 0x3b9   : > { %22893 = vmatprep.subr.bf16.mxu0 %v27996_v38  ;;  %v28022_v22 = vpack.c.bf16 %v3877_v13, %v3874_v14  ;;  %v28098_v28 = vsub.f32 %v3842_v54, %v3877_v13  ;;  %v4009_v54 = vand.u32 4294901760, %v28096_v34  ;;  %v28117_v13 = vsub.f32 %v28007_v36, %v3880_v56 }
 0x3ba   : > { %v32812_v47 = vand.u32 4294901760, %v28070_v37  ;;  %v3944_v9 = vand.u32 4294901760, %v3943_v32  ;;  %v4003_v5 = vsub.f32 %v28072_v29, %v32814_v27  ;;  %v3983_v43 = vand.u32 4294901760, %v3982_v41 }
 0x3bb   : > { %v4016_v14 = vand.u32 4294901760, %v28098_v28  ;;  %v3990_v32 = vand.u32 4294901760, %v3989_v11  ;;  %v4010_v27 = vsub.f32 %v28096_v34, %v4009_v54  ;;  %v4023_v56 = vand.u32 4294901760, %v28117_v13 }
 0x3bc   : > { %22895 = vmatpush3.bf16.msra.mxu0 %v27996_v38  ;;  %v3996_v55 = vsub.f32 %v28070_v37, %v32812_v47  ;;  %v4004_v39 = vand.u32 4294901760, %v4003_v5  ;;  %v4030_v26 = vand.u32 4294901760, %v28120_v6  ;;  %v28139_v41 = vsub.f32 %v28014_v40, %v3889_v15 }
 0x3bd   : > { %22897 = vmatprep.subr.bf16.mxu0 %v28001_v58  ;;  %v4017_v36 = vsub.f32 %v28098_v28, %v4016_v14  ;;  %v22928_v21 = vpack.c.bf16 %v3990_v32, %v3983_v43  ;;  %v4011_v7 = vand.u32 4294901760, %v4010_v27  ;;  %v32933_v40 = vand.u32 4294901760, %v28036_v59 }
 0x3be   : > { %v3997_v47 = vand.u32 4294901760, %v3996_v55  ;;  %v4031_v55 = vsub.f32 %v28120_v6, %v4030_v26 }
 0x3bf   : > { %v4018_v11 = vand.u32 4294901760, %v4017_v36  ;;  %v28152_v15 = vsub.f32 %v28036_v59, %v32933_v40 }
 0x3c0   : > { %22899 = vmatpush3.bf16.msra.mxu0 %v28001_v58  ;;  %v22932_v8 = vpack.c.bf16 %v4004_v39, %v3997_v47  ;;  %v32934_v39 = vand.u32 4294901760, %v28038_v1 }
 0x3c1   : > { %22901 = vmatprep.subr.bf16.mxu0 %v28005_v12  ;;  %v22936_v27 = vpack.c.bf16 %v4018_v11, %v4011_v7  ;;  %v4051_v59 = vand.u32 4294901760, %v28152_v15 }
 0x3c2   : > { %v28157_v47 = vsub.f32 %v28038_v1, %v32934_v39 }
 0x3c3   : > { %v4052_v11 = vsub.f32 %v28152_v15, %v4051_v59 }
 0x3c4   : > { %22903 = vmatpush3.bf16.msra.mxu0 %v28005_v12  ;;  %v4058_v36 = vand.u32 4294901760, %v28157_v47 }
 0x3c5   : > { %22905 = vmatprep.subr.bf16.mxu0 %v28022_v22  ;;  %v4053_v40 = vand.u32 4294901760, %v4052_v11  ;;  %v32935_v11 = vand.u32 4294901760, %v27981_v16 }
 0x3c8   : > { %22907 = vmatpush3.bf16.msra.mxu0 %v28022_v22 }
 0x3c9   : > { %22909 = vmatprep.subr.bf16.mxu0 %v28034_v42 }
 0x3cc   : > { %22911 = vmatpush3.bf16.msra.mxu0 %v28034_v42 }
 0x3cd   : > { %22913 = vmatprep.subr.bf16.mxu0 %v28048_v46 }
 0x3d0   : > { %22915 = vmatpush3.bf16.msra.mxu0 %v28048_v46 }
 0x3d1   : > { %22917 = vmatprep.subr.bf16.mxu0 %v28079_v10 }
 0x3d4   : > { %22919 = vmatpush3.bf16.msra.mxu0 %v28079_v10 }
 0x3d5   : > { %22921 = vmatprep.subr.bf16.mxu0 %v22920_v2 }
 0x3d7   : > { %18601 = vmatmul.mubr.f32.vlgmr.msra.gmra.mrb[0].mxu0 %v3944_v9  ;;  %v28134_v9 = vsub.f32 %v28012_v60, %v3886_v30  ;;  %v4044_v30 = vand.u32 4294901760, %v28139_v41 }
 0x3d8   : > { %22923 = vmatpush3.bf16.msra.mxu0 %v22920_v2  ;;  %18635 = vmatprep.mubr.f32.mxu0 %v27976_v31  ;;  %v4024_v2 = vsub.f32 %v28117_v13, %v4023_v56 }
 0x3d9   : > { %22925 = vmatprep.subr.bf16.mxu0 %v22924_v33  ;;  %v4037_v60 = vand.u32 4294901760, %v28134_v9  ;;  %v4045_v32 = vsub.f32 %v28139_v41, %v4044_v30 }
 0x3da   : > { %v4025_v5 = vand.u32 4294901760, %v4024_v2  ;;  %v4059_v2 = vsub.f32 %v28157_v47, %v4058_v36 }
 0x3db   : > { %v4038_v43 = vsub.f32 %v28134_v9, %v4037_v60  ;;  %v4046_v7 = vand.u32 4294901760, %v4045_v32  ;;  %v22968_v32 = vpack.c.bf16 %v28098_v28, %v28096_v34  ;;  %v4540_v28 = vld [vmem:[#allocation4 + $0x310] sm:$0xff] }
 0x3dc   : > { %22927 = vmatpush3.bf16.msra.mxu0 %v22924_v33  ;;  %v4032_v33 = vand.u32 4294901760, %v4031_v55  ;;  %v4060_v39 = vand.u32 4294901760, %v4059_v2  ;;  %v32937_v2 = vand.u32 4294901760, %v28018_v49 }
 0x3dd   : > { %22929 = vmatprep.subr.bf16.mxu0 %v22928_v21 }
 0x3de   : > { %v22940_v1 = vpack.c.bf16 %v4032_v33, %v4025_v5  ;;  %v22952_v5 = vpack.c.bf16 %v28018_v49, %v28016_v18  ;;  %v22956_v33 = vpack.c.bf16 %v28042_v3, %v28040_v20 }
 0x3e0   : > { %22931 = vmatpush3.bf16.msra.mxu0 %v22928_v21  ;;  %v4039_v21 = vand.u32 4294901760, %v4038_v43  ;;  %v22964_v43 = vpack.c.bf16 %v28072_v29, %v28070_v37 }
 0x3e1   : > { %22933 = vmatprep.subr.bf16.mxu0 %v22932_v8 }
 0x3e2   : > { %v22944_v55 = vpack.c.bf16 %v4046_v7, %v4039_v21  ;;  %v22976_v21 = vpack.c.bf16 %v28139_v41, %v28134_v9  ;;  %v22980_v7 = vpack.c.bf16 %v28157_v47, %v28152_v15 }
 0x3e4   : > { %22935 = vmatpush3.bf16.msra.mxu0 %v22932_v8  ;;  %v22948_v8 = vpack.c.bf16 %v4060_v39, %v4053_v40  ;;  %v32938_v40 = vand.u32 4294901760, %v28040_v20  ;;  %v32939_v39 = vand.u32 4294901760, %v28042_v3  ;;  %v32943_v20 = vand.u32 4294901760, %v28072_v29  ;;  %v4535_v29 = vld [vmem:[%s26592_s15 + $0x6] sm:$0xff] }
 0x3e5   : > { %22937 = vmatprep.subr.bf16.mxu0 %v22936_v27 }
 0x3e8   : > { %22939 = vmatpush3.bf16.msra.mxu0 %v22936_v27  ;;  %v22960_v27 = vpack.c.bf16 %v28067_v61, %v28065_v19  ;;  %v23036_v19 = vpack.c.bf16 %v4030_v26, %v4023_v56  ;;  %v4543_v56 = vld [vmem:[#allocation4 + $0x328] sm:$0xff] }
 0x3e9   : > { %22941 = vmatprep.subr.bf16.mxu0 %v22940_v1  ;;  %v4570_v41 = vand.u32 4294901760, %v4543_v56 }
 0x3ec   : > { %22943 = vmatpush3.bf16.msra.mxu0 %v22940_v1  ;;  %v22972_v1 = vpack.c.bf16 %v28120_v6, %v28117_v13  ;;  %v4561_v13 = vand.u32 4294901760, %v4540_v28  ;;  %v4542_v6 = vld [vmem:[#allocation4 + $0x320] sm:$0xff] }
 0x3ed   : > { %22945 = vmatprep.subr.bf16.mxu0 %v22944_v55 }
 0x3f0   : > { %22947 = vmatpush3.bf16.msra.mxu0 %v22944_v55 }
 0x3f1   : > { %22949 = vmatprep.subr.bf16.mxu0 %v22948_v8 }
 0x3f4   : > { %22951 = vmatpush3.bf16.msra.mxu0 %v22948_v8  ;;  %v23020_v8 = vpack.c.bf16 %v32939_v39, %v32938_v40 }
 0x3f5   : > { %22953 = vmatprep.subr.bf16.mxu0 %v22952_v5 }
 0x3f7   : > { %18636 = vmatmul.mubr.f32.vlgmr.msra.gmra.mrb[0].mxu0 %v28028_v24 }
 0x3f8   : > { %22955 = vmatpush3.bf16.msra.mxu0 %v22952_v5  ;;  %18670 = vmatprep.mubr.f32.mxu0 %v27981_v16  ;;  %v32936_v16 = vand.u32 4294901760, %v28016_v18  ;;  %v32940_v5 = vand.u32 4294901760, %v28051_v48  ;;  %v32941_v18 = vand.u32 4294901760, %v28067_v61  ;;  %v23040_v61 = vpack.c.bf16 %v4044_v30, %v4037_v60  ;;  %v4544_v60 = vld [vmem:[#allocation4 + $0x330] sm:$0xff]  ;;  %v4545_v30 = vld [vmem:[#allocation4 + $0x338] sm:$0xff] }
 0x3f9   : > { %22957 = vmatprep.subr.bf16.mxu0 %v22956_v33  ;;  %v4573_v47 = vand.u32 4294901760, %v4544_v60 }
 0x3fa   : > { %v23016_v55 = vpack.c.bf16 %v32937_v2, %v32936_v16  ;;  %v23024_v49 = vpack.c.bf16 %v32941_v18, %v3981_v25  ;;  %v28256_v25 = vand.u32 4294901760, %v4535_v29  ;;  %v4536_v2 = vld [vmem:[%s26592_s15 + $0xe] sm:$0xff] }
 0x3fb   : > { %v28308_v18 = vand.u32 4294901760, %v4536_v2 }
 0x3fc   : > { %22959 = vmatpush3.bf16.msra.mxu0 %v22956_v33  ;;  %v32942_v33 = vand.u32 4294901760, %v28070_v37  ;;  %v23044_v37 = vpack.c.bf16 %v4058_v36, %v4051_v59  ;;  %v4546_v59 = vld [vmem:[#allocation4 + $0x340] sm:$0xff]  ;;  %v4547_v36 = vld [vmem:[#allocation4 + $0x348] sm:$0xff] }
 0x3fd   : > { %22961 = vmatprep.subr.bf16.mxu0 %v22960_v27 }
 0x3fe   : > { %v23028_v3 = vpack.c.bf16 %v32943_v20, %v32942_v33 }
 0x400   : > { %22963 = vmatpush3.bf16.msra.mxu0 %v22960_v27 }
 0x401   : > { %22965 = vmatprep.subr.bf16.mxu0 %v22964_v43 }
 0x404   : > { %22967 = vmatpush3.bf16.msra.mxu0 %v22964_v43  ;;  %v4579_v43 = vand.u32 4294901760, %v4546_v59 }
 0x405   : > { %22969 = vmatprep.subr.bf16.mxu0 %v22968_v32 }
 0x408   : > { %22971 = vmatpush3.bf16.msra.mxu0 %v22968_v32  ;;  %v28287_v32 = vld [vmem:[#allocation4 + $0x350] sm:$0xff] }
 0x409   : > { %22973 = vmatprep.subr.bf16.mxu0 %v22972_v1  ;;  %v4585_v40 = vand.u32 4294901760, %v28287_v32 }
 0x40c   : > { %22975 = vmatpush3.bf16.msra.mxu0 %v22972_v1  ;;  %v28289_v1 = vld [vmem:[#allocation4 + $0x358] sm:$0xff] }
 0x40d   : > { %22977 = vmatprep.subr.bf16.mxu0 %v22976_v21  ;;  %v4588_v39 = vand.u32 4294901760, %v28289_v1 }
 0x40f   : > { %v28314_v20 = vpack.c.bf16 %v4588_v39, %v4585_v40 }
 0x410   : > { %22979 = vmatpush3.bf16.msra.mxu0 %v22976_v21  ;;  %v28292_v21 = vld [vmem:[#allocation4 + $0x360] sm:$0xff] }
 0x411   : > { %22981 = vmatprep.subr.bf16.mxu0 %v22980_v7 }
 0x414   : > { %22983 = vmatpush3.bf16.msra.mxu0 %v22980_v7  ;;  %v28294_v7 = vld [vmem:[#allocation4 + $0x368] sm:$0xff] }
 0x415   : > { %22985 = vmatprep.subr.bf16.mxu0 %v27992_v35 }
 0x417   : > { %18671 = vmatmul.mubr.f32.vlgmr.msra.gmra.mrb[0].mxu0 %v28051_v48  ;;  %v23032_v48 = vpack.c.bf16 %v4016_v14, %v4009_v54  ;;  %v4541_v54 = vld [vmem:[#allocation4 + $0x318] sm:$0xff] }
 0x418   : > { %22987 = vmatpush3.bf16.msra.mxu0 %v27992_v35  ;;  %18705 = vmatprep.mubr.f32.mxu0 %v32935_v11 }
 0x419   : > { %22989 = vmatprep.subr.bf16.mxu0 %v27996_v38 }
 0x41c   : > { %22991 = vmatpush3.bf16.msra.mxu0 %v27996_v38 }
 0x41d   : > { %22993 = vmatprep.subr.bf16.mxu0 %v28001_v58 }
 0x420   : > { %22995 = vmatpush3.bf16.msra.mxu0 %v28001_v58 }
 0x421   : > { %22997 = vmatprep.subr.bf16.mxu0 %v28005_v12 }
 0x424   : > { %22999 = vmatpush3.bf16.msra.mxu0 %v28005_v12 }
 0x425   : > { %23001 = vmatprep.subr.bf16.mxu0 %v28022_v22 }
 0x428   : > { %23003 = vmatpush3.bf16.msra.mxu0 %v28022_v22 }
 0x429   : > { %23005 = vmatprep.subr.bf16.mxu0 %v28034_v42 }
 0x42c   : > { %23007 = vmatpush3.bf16.msra.mxu0 %v28034_v42 }
 0x42d   : > { %23009 = vmatprep.subr.bf16.mxu0 %v28048_v46 }
 0x430   : > { %23011 = vmatpush3.bf16.msra.mxu0 %v28048_v46 }
 0x431   : > { %23013 = vmatprep.subr.bf16.mxu0 %v28079_v10 }
 0x434   : > { %23015 = vmatpush3.bf16.msra.mxu0 %v28079_v10 }
 0x435   : > { %23017 = vmatprep.subr.bf16.mxu0 %v23016_v55 }
 0x437   : > { %18706 = vmatmul.mubr.f32.vlgmr.msra.gmra.mrb[0].mxu0 %v32940_v5  ;;  %v4594_v5 = vand.u32 4294901760, %v28294_v7 }
 0x438   : > { %23019 = vmatpush3.bf16.msra.mxu0 %v23016_v55  ;;  %18740 = vmatprep.mubr.f32.mxu0 %v27976_v31 }
 0x439   : > { %23021 = vmatprep.subr.bf16.mxu0 %v23020_v8 }
 0x43c   : > { %23023 = vmatpush3.bf16.msra.mxu0 %v23020_v8  ;;  %v4591_v8 = vand.u32 4294901760, %v28292_v21 }
 0x43d   : > { %23025 = vmatprep.subr.bf16.mxu0 %v23024_v49 }
 0x440   : > { %23027 = vmatpush3.bf16.msra.mxu0 %v23024_v49 }
 0x441   : > { %23029 = vmatprep.subr.bf16.mxu0 %v23028_v3 }
 0x444   : > { %23031 = vmatpush3.bf16.msra.mxu0 %v23028_v3  ;;  %v28316_v3 = vld [vmem:[#allocation4 + $0x370] sm:$0xff] }
 0x445   : > { %23033 = vmatprep.subr.bf16.mxu0 %v23032_v48 }
 0x448   : > { %23035 = vmatpush3.bf16.msra.mxu0 %v23032_v48  ;;  %v28318_v48 = vld [vmem:[#allocation4 + $0x378] sm:$0xff] }
 0x449   : > { %23037 = vmatprep.subr.bf16.mxu0 %v23036_v19 }
 0x44c   : > { %23039 = vmatpush3.bf16.msra.mxu0 %v23036_v19  ;;  %v28320_v19 = vsub.f32 %v4540_v28, %v4561_v13 }
 0x44d   : > { %23041 = vmatprep.subr.bf16.mxu0 %v23040_v61 }
 0x44e   : > { %v32819_v28 = vand.u32 4294901760, %v28320_v19 }
 0x450   : > { %23043 = vmatpush3.bf16.msra.mxu0 %v23040_v61 }
 0x451   : > { %23045 = vmatprep.subr.bf16.mxu0 %v23044_v37 }
 0x454   : > { %23047 = vmatpush3.bf16.msra.mxu0 %v23044_v37  ;;  %v28328_v37 = vpack.c.bf16 %v4594_v5, %v4591_v8 }
 0x455   : > { %23049 = vmatprep.subr.bf16.mxu0 %v27992_v35 }
 0x457   : > { %18741 = vmatmul.mubr.f32.vlgmr.msra.gmra.mrb[0].mxu0 %v28028_v24 }
 0x458   : > { %23051 = vmatpush3.bf16.msra.mxu0 %v27992_v35  ;;  %18775 = vmatprep.mubr.f32.mxu0 %v27976_v31  ;;  %v28261_v31 = vsub.f32 %v4535_v29, %v28256_v25  ;;  %v4538_v35 = vld [vmem:[#allocation4 + $0x300] sm:$0xff]  ;;  %v28331_v29 = vsub.f32 %v4536_v2, %v28308_v18 }
 0x459   : > { %23053 = vmatprep.subr.bf16.mxu0 %v27996_v38 }
 0x45c   : > { %23055 = vmatpush3.bf16.msra.mxu0 %v27996_v38  ;;  %v4539_v38 = vld [vmem:[#allocation4 + $0x308] sm:$0xff] }
 0x45d   : > { %23057 = vmatprep.subr.bf16.mxu0 %v28001_v58  ;;  %v4558_v34 = vand.u32 4294901760, %v4539_v38 }
 0x45f   : > { %v28298_v16 = vsub.f32 %v4539_v38, %v4558_v34  ;;  %v32820_v38 = vand.u32 4294901760, %v28318_v48 }
 0x460   : > { %23059 = vmatpush3.bf16.msra.mxu0 %v28001_v58  ;;  %v32817_v58 = vand.u32 4294901760, %v28261_v31 }
 0x461   : > { %23061 = vmatprep.subr.bf16.mxu0 %v28005_v12  ;;  %v32815_v33 = vand.u32 4294901760, %v28298_v16 }
 0x464   : > { %23063 = vmatpush3.bf16.msra.mxu0 %v28005_v12  ;;  %v4555_v12 = vand.u32 4294901760, %v4538_v35 }
 0x465   : > { %23065 = vmatprep.subr.bf16.mxu0 %v28022_v22 }
 0x466   : > { %v28272_v14 = vpack.c.bf16 %v4558_v34, %v4555_v12  ;;  %v28296_v11 = vsub.f32 %v4538_v35, %v4555_v12  ;;  %v32822_v35 = vand.u32 4294901760, %v28316_v3  ;;  %v4666_v34 = vsub.f32 %v28298_v16, %v32815_v33 }
 0x468   : > { %23067 = vmatpush3.bf16.msra.mxu0 %v28022_v22  ;;  %v4638_v22 = vsub.f32 %v28261_v31, %v32817_v58  ;;  %v32816_v49 = vand.u32 4294901760, %v28296_v11  ;;  %v28359_v33 = vpack.c.bf16 %v32820_v38, %v32822_v35  ;;  %v4667_v58 = vand.u32 4294901760, %v4666_v34 }
 0x469   : > { %23069 = vmatprep.subr.bf16.mxu0 %v28034_v42 }
 0x46a   : > { %v4639_v26 = vand.u32 4294901760, %v4638_v22  ;;  %v4659_v12 = vsub.f32 %v28296_v11, %v32816_v49 }
 0x46c   : > { %23071 = vmatpush3.bf16.msra.mxu0 %v28034_v42  ;;  %v4564_v42 = vand.u32 4294901760, %v4541_v54  ;;  %v4660_v49 = vand.u32 4294901760, %v4659_v12  ;;  %v28376_v12 = vsub.f32 %v4546_v59, %v4579_v43 }
 0x46d   : > { %23073 = vmatprep.subr.bf16.mxu0 %v28048_v46 }
 0x46e   : > { %v28276_v9 = vpack.c.bf16 %v4564_v42, %v4561_v13  ;;  %v28322_v61 = vsub.f32 %v4541_v54, %v4564_v42  ;;  %v28347_v13 = vsub.f32 %v4543_v56, %v4570_v41  ;;  %v32821_v42 = vand.u32 4294901760, %v28331_v29 }
 0x470   : > { %23075 = vmatpush3.bf16.msra.mxu0 %v28048_v46  ;;  %v4567_v46 = vand.u32 4294901760, %v4542_v6  ;;  %v32818_v54 = vand.u32 4294901760, %v28322_v61 }
 0x471   : > { %23077 = vmatprep.subr.bf16.mxu0 %v28079_v10 }
 0x472   : > { %v28281_v15 = vpack.c.bf16 %v4570_v41, %v4567_v46  ;;  %v28345_v22 = vsub.f32 %v4542_v6, %v4567_v46  ;;  %v4673_v6 = vsub.f32 %v28320_v19, %v32819_v28  ;;  %v4680_v56 = vsub.f32 %v28322_v61, %v32818_v54 }
 0x473   : > { %v32824_v41 = vand.u32 4294901760, %v28347_v13 }
 0x474   : > { %23079 = vmatpush3.bf16.msra.mxu0 %v28079_v10  ;;  %v4576_v10 = vand.u32 4294901760, %v4545_v30  ;;  %v4686_v46 = vand.u32 4294901760, %v28345_v22  ;;  %v4674_v54 = vand.u32 4294901760, %v4673_v6  ;;  %v4681_v28 = vand.u32 4294901760, %v4680_v56 }
 0x475   : > { %23081 = vmatprep.subr.bf16.mxu0 %v28272_v14 }
 0x476   : > { %v28285_v27 = vpack.c.bf16 %v4576_v10, %v4573_v47  ;;  %v28352_v2 = vsub.f32 %v4545_v30, %v4576_v10  ;;  %v23112_v10 = vpack.c.bf16 %v4667_v58, %v4660_v49  ;;  %v4687_v38 = vsub.f32 %v28345_v22, %v4686_v46 }
 0x477   : > { %18776 = vmatmul.mubr.f32.vlgmr.msra.gmra.mrb[0].mxu0 %v28028_v24  ;;  %v4582_v24 = vand.u32 4294901760, %v4547_v36  ;;  %v28400_v49 = vsub.f32 %v28289_v1, %v4588_v39  ;;  %v23116_v6 = vpack.c.bf16 %v4681_v28, %v4674_v54 }
 0x478   : > { %23083 = vmatpush3.bf16.msra.mxu0 %v28272_v14  ;;  %18810 = vmatprep.mubr.f32.mxu0 %v4639_v26  ;;  %v28350_v26 = vsub.f32 %v4544_v60, %v4573_v47  ;;  %v4648_v60 = vsub.f32 %v28331_v29, %v32821_v42  ;;  %v32825_v47 = vand.u32 4294901760, %v28352_v2  ;;  %v4694_v42 = vsub.f32 %v28347_v13, %v32824_v41 }
 0x479   : > { %23085 = vmatprep.subr.bf16.mxu0 %v28276_v9  ;;  %v28302_v55 = vpack.c.bf16 %v4582_v24, %v4579_v43  ;;  %v28378_v34 = vsub.f32 %v4547_v36, %v4582_v24  ;;  %v4714_v36 = vand.u32 4294901760, %v28376_v12  ;;  %v28397_v24 = vsub.f32 %v28287_v32, %v4585_v40 }
 0x47a   : > { %v32823_v30 = vand.u32 4294901760, %v28350_v26  ;;  %v4649_v35 = vand.u32 4294901760, %v4648_v60  ;;  %v4708_v59 = vsub.f32 %v28352_v2, %v32825_v47  ;;  %v4688_v56 = vand.u32 4294901760, %v4687_v38 }
 0x47b   : > { %v4721_v43 = vand.u32 4294901760, %v28378_v34  ;;  %v4695_v60 = vand.u32 4294901760, %v4694_v42  ;;  %v4715_v47 = vsub.f32 %v28376_v12, %v4714_v36  ;;  %v4728_v40 = vand.u32 4294901760, %v28397_v24 }
 0x47c   : > { %23087 = vmatpush3.bf16.msra.mxu0 %v28276_v9  ;;  %v4701_v58 = vsub.f32 %v28350_v26, %v32823_v30  ;;  %v4709_v41 = vand.u32 4294901760, %v4708_v59  ;;  %v4735_v1 = vand.u32 4294901760, %v28400_v49  ;;  %v28419_v38 = vsub.f32 %v28294_v7, %v4594_v5 }
 0x47d   : > { %23089 = vmatprep.subr.bf16.mxu0 %v28281_v15  ;;  %v4722_v32 = vsub.f32 %v28378_v34, %v4721_v43  ;;  %v23120_v39 = vpack.c.bf16 %v4695_v60, %v4688_v56  ;;  %v4716_v54 = vand.u32 4294901760, %v4715_v47  ;;  %v32944_v7 = vand.u32 4294901760, %v28316_v3 }
 0x47e   : > { %v4702_v30 = vand.u32 4294901760, %v4701_v58  ;;  %v4736_v58 = vsub.f32 %v28400_v49, %v4735_v1 }
 0x47f   : > { %v4723_v42 = vand.u32 4294901760, %v4722_v32  ;;  %v28432_v5 = vsub.f32 %v28316_v3, %v32944_v7 }
 0x480   : > { %23091 = vmatpush3.bf16.msra.mxu0 %v28281_v15  ;;  %v23124_v28 = vpack.c.bf16 %v4709_v41, %v4702_v30  ;;  %v32945_v41 = vand.u32 4294901760, %v28318_v48 }
 0x481   : > { %23093 = vmatprep.subr.bf16.mxu0 %v28285_v27  ;;  %v23128_v47 = vpack.c.bf16 %v4723_v42, %v4716_v54  ;;  %v4756_v3 = vand.u32 4294901760, %v28432_v5 }
 0x482   : > { %v28437_v30 = vsub.f32 %v28318_v48, %v32945_v41 }
 0x483   : > { %v4757_v42 = vsub.f32 %v28432_v5, %v4756_v3 }
 0x484   : > { %23095 = vmatpush3.bf16.msra.mxu0 %v28285_v27  ;;  %v4763_v32 = vand.u32 4294901760, %v28437_v30 }
 0x485   : > { %23097 = vmatprep.subr.bf16.mxu0 %v28302_v55  ;;  %v4758_v7 = vand.u32 4294901760, %v4757_v42  ;;  %v32946_v42 = vand.u32 4294901760, %v28261_v31 }
 0x488   : > { %23099 = vmatpush3.bf16.msra.mxu0 %v28302_v55 }
 0x489   : > { %23101 = vmatprep.subr.bf16.mxu0 %v28314_v20 }
 0x48c   : > { %23103 = vmatpush3.bf16.msra.mxu0 %v28314_v20 }
 0x48d   : > { %23105 = vmatprep.subr.bf16.mxu0 %v28328_v37 }
 0x490   : > { %23107 = vmatpush3.bf16.msra.mxu0 %v28328_v37 }
 0x491   : > { %23109 = vmatprep.subr.bf16.mxu0 %v28359_v33 }
 0x494   : > { %23111 = vmatpush3.bf16.msra.mxu0 %v28359_v33 }
 0x495   : > { %23113 = vmatprep.subr.bf16.mxu0 %v23112_v10 }
 0x497   : > { %18811 = vmatmul.mubr.f32.vlgmr.msra.gmra.mrb[0].mxu0 %v4649_v35  ;;  %v28414_v35 = vsub.f32 %v28292_v21, %v4591_v8  ;;  %v4749_v8 = vand.u32 4294901760, %v28419_v38 }
 0x498   : > { %23115 = vmatpush3.bf16.msra.mxu0 %v23112_v10  ;;  %18845 = vmatprep.mubr.f32.mxu0 %v28256_v25  ;;  %v4729_v10 = vsub.f32 %v28397_v24, %v4728_v40 }
 0x499   : > { %23117 = vmatprep.subr.bf16.mxu0 %v23116_v6  ;;  %v4742_v21 = vand.u32 4294901760, %v28414_v35  ;;  %v4750_v60 = vsub.f32 %v28419_v38, %v4749_v8 }
 0x49a   : > { %v4730_v59 = vand.u32 4294901760, %v4729_v10  ;;  %v4764_v10 = vsub.f32 %v28437_v30, %v4763_v32 }
 0x49b   : > { %v4743_v56 = vsub.f32 %v28414_v35, %v4742_v21  ;;  %v4751_v54 = vand.u32 4294901760, %v4750_v60  ;;  %v23160_v60 = vpack.c.bf16 %v28378_v34, %v28376_v12  ;;  %v5245_v34 = vld [vmem:[#allocation4 + $0x390] sm:$0xff] }
 0x49c   : > { %23119 = vmatpush3.bf16.msra.mxu0 %v23116_v6  ;;  %v4737_v6 = vand.u32 4294901760, %v4736_v58  ;;  %v4765_v41 = vand.u32 4294901760, %v4764_v10  ;;  %v32948_v10 = vand.u32 4294901760, %v28298_v16 }
 0x49d   : > { %23121 = vmatprep.subr.bf16.mxu0 %v23120_v39 }
 0x49e   : > { %v23132_v48 = vpack.c.bf16 %v4737_v6, %v4730_v59  ;;  %v23144_v59 = vpack.c.bf16 %v28298_v16, %v28296_v11  ;;  %v23148_v6 = vpack.c.bf16 %v28322_v61, %v28320_v19 }
 0x4a0   : > { %23123 = vmatpush3.bf16.msra.mxu0 %v23120_v39  ;;  %v4744_v39 = vand.u32 4294901760, %v4743_v56  ;;  %v23156_v56 = vpack.c.bf16 %v28352_v2, %v28350_v26 }
 0x4a1   : > { %23125 = vmatprep.subr.bf16.mxu0 %v23124_v28 }
 0x4a2   : > { %v23136_v58 = vpack.c.bf16 %v4751_v54, %v4744_v39  ;;  %v23168_v39 = vpack.c.bf16 %v28419_v38, %v28414_v35  ;;  %v23172_v54 = vpack.c.bf16 %v28437_v30, %v28432_v5 }
 0x4a4   : > { %23127 = vmatpush3.bf16.msra.mxu0 %v23124_v28  ;;  %v23140_v28 = vpack.c.bf16 %v4765_v41, %v4758_v7  ;;  %v32949_v7 = vand.u32 4294901760, %v28320_v19  ;;  %v32950_v41 = vand.u32 4294901760, %v28322_v61  ;;  %v32954_v19 = vand.u32 4294901760, %v28352_v2  ;;  %v5240_v2 = vld [vmem:[%s26592_s15 + $0x7] sm:$0xff] }
 0x4a5   : > { %23129 = vmatprep.subr.bf16.mxu0 %v23128_v47 }
 0x4a8   : > { %23131 = vmatpush3.bf16.msra.mxu0 %v23128_v47  ;;  %v23152_v47 = vpack.c.bf16 %v28347_v13, %v28345_v22  ;;  %v23228_v22 = vpack.c.bf16 %v4735_v1, %v4728_v40  ;;  %v5248_v40 = vld [vmem:[#allocation4 + $0x3a8] sm:$0xff] }
 0x4a9   : > { %23133 = vmatprep.subr.bf16.mxu0 %v23132_v48  ;;  %v5275_v38 = vand.u32 4294901760, %v5248_v40 }
 0x4ac   : > { %23135 = vmatpush3.bf16.msra.mxu0 %v23132_v48  ;;  %v23164_v48 = vpack.c.bf16 %v28400_v49, %v28397_v24  ;;  %v5266_v24 = vand.u32 4294901760, %v5245_v34  ;;  %v5247_v49 = vld [vmem:[#allocation4 + $0x3a0] sm:$0xff] }
 0x4ad   : > { %23137 = vmatprep.subr.bf16.mxu0 %v23136_v58 }
 0x4b0   : > { %23139 = vmatpush3.bf16.msra.mxu0 %v23136_v58 }
 0x4b1   : > { %23141 = vmatprep.subr.bf16.mxu0 %v23140_v28 }
 0x4b4   : > { %23143 = vmatpush3.bf16.msra.mxu0 %v23140_v28  ;;  %v23212_v28 = vpack.c.bf16 %v32950_v41, %v32949_v7 }
 0x4b5   : > { %23145 = vmatprep.subr.bf16.mxu0 %v23144_v59 }
 0x4b7   : > { %18846 = vmatmul.mubr.f32.vlgmr.msra.gmra.mrb[0].mxu0 %v28308_v18 }
 0x4b8   : > { %23147 = vmatpush3.bf16.msra.mxu0 %v23144_v59  ;;  %18880 = vmatprep.mubr.f32.mxu0 %v28261_v31  ;;  %v32947_v31 = vand.u32 4294901760, %v28296_v11  ;;  %v32951_v59 = vand.u32 4294901760, %v28331_v29  ;;  %v32952_v11 = vand.u32 4294901760, %v28347_v13  ;;  %v23232_v13 = vpack.c.bf16 %v4749_v8, %v4742_v21  ;;  %v5249_v21 = vld [vmem:[#allocation4 + $0x3b0] sm:$0xff]  ;;  %v5250_v8 = vld [vmem:[#allocation4 + $0x3b8] sm:$0xff] }
 0x4b9   : > { %23149 = vmatprep.subr.bf16.mxu0 %v23148_v6  ;;  %v5278_v30 = vand.u32 4294901760, %v5249_v21 }
 0x4ba   : > { %v23208_v58 = vpack.c.bf16 %v32948_v10, %v32947_v31  ;;  %v23216_v16 = vpack.c.bf16 %v32952_v11, %v4686_v46  ;;  %v28536_v46 = vand.u32 4294901760, %v5240_v2  ;;  %v5241_v10 = vld [vmem:[%s26592_s15 + $0xf] sm:$0xff] }
 0x4bb   : > { %v28588_v11 = vand.u32 4294901760, %v5241_v10 }
 0x4bc   : > { %23151 = vmatpush3.bf16.msra.mxu0 %v23148_v6  ;;  %v32953_v6 = vand.u32 4294901760, %v28350_v26  ;;  %v23236_v26 = vpack.c.bf16 %v4763_v32, %v4756_v3  ;;  %v5251_v3 = vld [vmem:[#allocation4 + $0x3c0] sm:$0xff]  ;;  %v5252_v32 = vld [vmem:[#allocation4 + $0x3c8] sm:$0xff] }
 0x4bd   : > { %23153 = vmatprep.subr.bf16.mxu0 %v23152_v47 }
 0x4be   : > { %v23220_v61 = vpack.c.bf16 %v32954_v19, %v32953_v6 }
 0x4c0   : > { %23155 = vmatpush3.bf16.msra.mxu0 %v23152_v47 }
 0x4c1   : > { %23157 = vmatprep.subr.bf16.mxu0 %v23156_v56 }
 0x4c4   : > { %23159 = vmatpush3.bf16.msra.mxu0 %v23156_v56  ;;  %v5284_v56 = vand.u32 4294901760, %v5251_v3 }
 0x4c5   : > { %23161 = vmatprep.subr.bf16.mxu0 %v23160_v60 }
 0x4c8   : > { %23163 = vmatpush3.bf16.msra.mxu0 %v23160_v60  ;;  %v28567_v60 = vld [vmem:[#allocation4 + $0x3d0] sm:$0xff] }
 0x4c9   : > { %23165 = vmatprep.subr.bf16.mxu0 %v23164_v48  ;;  %v5290_v7 = vand.u32 4294901760, %v28567_v60 }
 0x4cc   : > { %23167 = vmatpush3.bf16.msra.mxu0 %v23164_v48  ;;  %v28569_v48 = vld [vmem:[#allocation4 + $0x3d8] sm:$0xff] }
 0x4cd   : > { %23169 = vmatprep.subr.bf16.mxu0 %v23168_v39  ;;  %v5293_v41 = vand.u32 4294901760, %v28569_v48 }
 0x4cf   : > { %v28594_v19 = vpack.c.bf16 %v5293_v41, %v5290_v7 }
 0x4d0   : > { %23171 = vmatpush3.bf16.msra.mxu0 %v23168_v39  ;;  %v28572_v39 = vld [vmem:[#allocation4 + $0x3e0] sm:$0xff] }
 0x4d1   : > { %23173 = vmatprep.subr.bf16.mxu0 %v23172_v54 }
 0x4d4   : > { %23175 = vmatpush3.bf16.msra.mxu0 %v23172_v54  ;;  %v28574_v54 = vld [vmem:[#allocation4 + $0x3e8] sm:$0xff] }
 0x4d5   : > { %23177 = vmatprep.subr.bf16.mxu0 %v28272_v14 }
 0x4d7   : > { %18881 = vmatmul.mubr.f32.vlgmr.msra.gmra.mrb[0].mxu0 %v28331_v29  ;;  %v23224_v29 = vpack.c.bf16 %v4721_v43, %v4714_v36  ;;  %v5246_v36 = vld [vmem:[#allocation4 + $0x398] sm:$0xff] }
 0x4d8   : > { %23179 = vmatpush3.bf16.msra.mxu0 %v28272_v14  ;;  %18915 = vmatprep.mubr.f32.mxu0 %v32946_v42 }
 0x4d9   : > { %23181 = vmatprep.subr.bf16.mxu0 %v28276_v9 }
 0x4dc   : > { %23183 = vmatpush3.bf16.msra.mxu0 %v28276_v9 }
 0x4dd   : > { %23185 = vmatprep.subr.bf16.mxu0 %v28281_v15 }
 0x4e0   : > { %23187 = vmatpush3.bf16.msra.mxu0 %v28281_v15 }
 0x4e1   : > { %23189 = vmatprep.subr.bf16.mxu0 %v28285_v27 }
 0x4e4   : > { %23191 = vmatpush3.bf16.msra.mxu0 %v28285_v27 }
 0x4e5   : > { %23193 = vmatprep.subr.bf16.mxu0 %v28302_v55 }
 0x4e8   : > { %23195 = vmatpush3.bf16.msra.mxu0 %v28302_v55 }
 0x4e9   : > { %23197 = vmatprep.subr.bf16.mxu0 %v28314_v20 }
 0x4ec   : > { %23199 = vmatpush3.bf16.msra.mxu0 %v28314_v20 }
 0x4ed   : > { %23201 = vmatprep.subr.bf16.mxu0 %v28328_v37 }
 0x4f0   : > { %23203 = vmatpush3.bf16.msra.mxu0 %v28328_v37 }
 0x4f1   : > { %23205 = vmatprep.subr.bf16.mxu0 %v28359_v33 }
 0x4f4   : > { %23207 = vmatpush3.bf16.msra.mxu0 %v28359_v33 }
 0x4f5   : > { %23209 = vmatprep.subr.bf16.mxu0 %v23208_v58 }
 0x4f7   : > { %18916 = vmatmul.mubr.f32.vlgmr.msra.gmra.mrb[0].mxu0 %v32951_v59  ;;  %v5299_v59 = vand.u32 4294901760, %v28574_v54 }
 0x4f8   : > { %23211 = vmatpush3.bf16.msra.mxu0 %v23208_v58  ;;  %18950 = vmatprep.mubr.f32.mxu0 %v28256_v25 }
 0x4f9   : > { %23213 = vmatprep.subr.bf16.mxu0 %v23212_v28 }
 0x4fc   : > { %23215 = vmatpush3.bf16.msra.mxu0 %v23212_v28  ;;  %v5296_v28 = vand.u32 4294901760, %v28572_v39 }
 0x4fd   : > { %23217 = vmatprep.subr.bf16.mxu0 %v23216_v16 }
 0x500   : > { %23219 = vmatpush3.bf16.msra.mxu0 %v23216_v16 }
 0x501   : > { %23221 = vmatprep.subr.bf16.mxu0 %v23220_v61 }
 0x504   : > { %23223 = vmatpush3.bf16.msra.mxu0 %v23220_v61  ;;  %v28596_v61 = vld [vmem:[#allocation4 + $0x3f0] sm:$0xff] }
 0x505   : > { %23225 = vmatprep.subr.bf16.mxu0 %v23224_v29 }
 0x508   : > { %23227 = vmatpush3.bf16.msra.mxu0 %v23224_v29  ;;  %v28598_v29 = vld [vmem:[#allocation4 + $0x3f8] sm:$0xff] }
 0x509   : > { %23229 = vmatprep.subr.bf16.mxu0 %v23228_v22 }
 0x50c   : > { %23231 = vmatpush3.bf16.msra.mxu0 %v23228_v22  ;;  %v28600_v22 = vsub.f32 %v5245_v34, %v5266_v24 }
 0x50d   : > { %23233 = vmatprep.subr.bf16.mxu0 %v23232_v13 }
 0x50e   : > { %v32830_v34 = vand.u32 4294901760, %v28600_v22 }
 0x510   : > { %23235 = vmatpush3.bf16.msra.mxu0 %v23232_v13 }
 0x511   : > { %23237 = vmatprep.subr.bf16.mxu0 %v23236_v26 }
 0x514   : > { %23239 = vmatpush3.bf16.msra.mxu0 %v23236_v26  ;;  %v28608_v26 = vpack.c.bf16 %v5299_v59, %v5296_v28 }
 0x515   : > { %23241 = vmatprep.subr.bf16.mxu0 %v28272_v14 }
 0x517   : > { %18951 = vmatmul.mubr.f32.vlgmr.msra.gmra.mrb[0].mxu0 %v28308_v18 }
 0x518   : > { %23243 = vmatpush3.bf16.msra.mxu0 %v28272_v14  ;;  %18985 = vmatprep.mubr.f32.mxu0 %v28256_v25  ;;  %v28541_v25 = vsub.f32 %v5240_v2, %v28536_v46  ;;  %v5243_v14 = vld [vmem:[#allocation4 + $0x380] sm:$0xff]  ;;  %v28611_v2 = vsub.f32 %v5241_v10, %v28588_v11 }
 0x519   : > { %23245 = vmatprep.subr.bf16.mxu0 %v28276_v9 }
 0x51c   : > { %23247 = vmatpush3.bf16.msra.mxu0 %v28276_v9  ;;  %v5244_v9 = vld [vmem:[#allocation4 + $0x388] sm:$0xff] }
 0x51d   : > { %23249 = vmatprep.subr.bf16.mxu0 %v28281_v15  ;;  %v5263_v12 = vand.u32 4294901760, %v5244_v9 }
 0x51f   : > { %v28578_v31 = vsub.f32 %v5244_v9, %v5263_v12  ;;  %v32831_v9 = vand.u32 4294901760, %v28598_v29 }
 0x520   : > { %23251 = vmatpush3.bf16.msra.mxu0 %v28281_v15  ;;  %v32828_v15 = vand.u32 4294901760, %v28541_v25 }
 0x521   : > { %23253 = vmatprep.subr.bf16.mxu0 %v28285_v27  ;;  %v32826_v6 = vand.u32 4294901760, %v28578_v31 }
 0x524   : > { %23255 = vmatpush3.bf16.msra.mxu0 %v28285_v27  ;;  %v5260_v27 = vand.u32 4294901760, %v5243_v14 }
 0x525   : > { %23257 = vmatprep.subr.bf16.mxu0 %v28302_v55 }
 0x526   : > { %v28552_v43 = vpack.c.bf16 %v5263_v12, %v5260_v27  ;;  %v28576_v42 = vsub.f32 %v5243_v14, %v5260_v27  ;;  %v32833_v14 = vand.u32 4294901760, %v28596_v61  ;;  %v5371_v12 = vsub.f32 %v28578_v31, %v32826_v6 }
 0x528   : > { %23259 = vmatpush3.bf16.msra.mxu0 %v28302_v55  ;;  %v5343_v55 = vsub.f32 %v28541_v25, %v32828_v15  ;;  %v32827_v16 = vand.u32 4294901760, %v28576_v42  ;;  %v28639_v6 = vpack.c.bf16 %v32831_v9, %v32833_v14  ;;  %v5372_v15 = vand.u32 4294901760, %v5371_v12 }
 0x529   : > { %23261 = vmatprep.subr.bf16.mxu0 %v28314_v20 }
 0x52a   : > { %v5344_v1 = vand.u32 4294901760, %v5343_v55  ;;  %v5364_v27 = vsub.f32 %v28576_v42, %v32827_v16 }
 0x52c   : > { %23263 = vmatpush3.bf16.msra.mxu0 %v28314_v20  ;;  %v5269_v20 = vand.u32 4294901760, %v5246_v36  ;;  %v5365_v16 = vand.u32 4294901760, %v5364_v27  ;;  %v28656_v27 = vsub.f32 %v5251_v3, %v5284_v56 }
 0x52d   : > { %23265 = vmatprep.subr.bf16.mxu0 %v28328_v37 }
 0x52e   : > { %v28556_v35 = vpack.c.bf16 %v5269_v20, %v5266_v24  ;;  %v28602_v13 = vsub.f32 %v5246_v36, %v5269_v20  ;;  %v28627_v24 = vsub.f32 %v5248_v40, %v5275_v38  ;;  %v32832_v20 = vand.u32 4294901760, %v28611_v2 }
 0x530   : > { %23267 = vmatpush3.bf16.msra.mxu0 %v28328_v37  ;;  %v5272_v37 = vand.u32 4294901760, %v5247_v49  ;;  %v32829_v36 = vand.u32 4294901760, %v28602_v13 }
 0x531   : > { %23269 = vmatprep.subr.bf16.mxu0 %v28359_v33 }
 0x532   : > { %v28561_v5 = vpack.c.bf16 %v5275_v38, %v5272_v37  ;;  %v28625_v55 = vsub.f32 %v5247_v49, %v5272_v37  ;;  %v5378_v49 = vsub.f32 %v28600_v22, %v32830_v34  ;;  %v5385_v40 = vsub.f32 %v28602_v13, %v32829_v36 }
 0x533   : > { %v32835_v38 = vand.u32 4294901760, %v28627_v24 }
 0x534   : > { %23271 = vmatpush3.bf16.msra.mxu0 %v28359_v33  ;;  %v5281_v33 = vand.u32 4294901760, %v5250_v8  ;;  %v5391_v37 = vand.u32 4294901760, %v28625_v55  ;;  %v5379_v36 = vand.u32 4294901760, %v5378_v49  ;;  %v5386_v34 = vand.u32 4294901760, %v5385_v40 }
 0x535   : > { %23273 = vmatprep.subr.bf16.mxu0 %v28552_v43 }
 0x536   : > { %v28565_v47 = vpack.c.bf16 %v5281_v33, %v5278_v30  ;;  %v28632_v10 = vsub.f32 %v5250_v8, %v5281_v33  ;;  %v23304_v33 = vpack.c.bf16 %v5372_v15, %v5365_v16  ;;  %v5392_v9 = vsub.f32 %v28625_v55, %v5391_v37 }
 0x537   : > { %18986 = vmatmul.mubr.f32.vlgmr.msra.gmra.mrb[0].mxu0 %v28308_v18  ;;  %v5287_v18 = vand.u32 4294901760, %v5252_v32  ;;  %v28680_v16 = vsub.f32 %v28569_v48, %v5293_v41  ;;  %v23308_v49 = vpack.c.bf16 %v5386_v34, %v5379_v36 }
 0x538   : > { %23275 = vmatpush3.bf16.msra.mxu0 %v28552_v43  ;;  %19020 = vmatprep.mubr.f32.mxu0 %v5344_v1  ;;  %v28630_v1 = vsub.f32 %v5249_v21, %v5278_v30  ;;  %v5353_v21 = vsub.f32 %v28611_v2, %v32832_v20  ;;  %v32836_v30 = vand.u32 4294901760, %v28632_v10  ;;  %v5399_v20 = vsub.f32 %v28627_v24, %v32835_v38 }
 0x539   : > { %23277 = vmatprep.subr.bf16.mxu0 %v28556_v35  ;;  %v28582_v58 = vpack.c.bf16 %v5287_v18, %v5284_v56  ;;  %v28658_v12 = vsub.f32 %v5252_v32, %v5287_v18  ;;  %v5419_v32 = vand.u32 4294901760, %v28656_v27  ;;  %v28677_v18 = vsub.f32 %v28567_v60, %v5290_v7 }
 0x53a   : > { %v32834_v8 = vand.u32 4294901760, %v28630_v1  ;;  %v5354_v14 = vand.u32 4294901760, %v5353_v21  ;;  %v5413_v3 = vsub.f32 %v28632_v10, %v32836_v30  ;;  %v5393_v40 = vand.u32 4294901760, %v5392_v9 }
 0x53b   : > { %v5426_v56 = vand.u32 4294901760, %v28658_v12  ;;  %v5400_v21 = vand.u32 4294901760, %v5399_v20  ;;  %v5420_v30 = vsub.f32 %v28656_v27, %v5419_v32  ;;  %v5433_v7 = vand.u32 4294901760, %v28677_v18 }
 0x53c   : > { %23279 = vmatpush3.bf16.msra.mxu0 %v28556_v35  ;;  %v5406_v15 = vsub.f32 %v28630_v1, %v32834_v8  ;;  %v5414_v38 = vand.u32 4294901760, %v5413_v3  ;;  %v5440_v48 = vand.u32 4294901760, %v28680_v16  ;;  %v28699_v9 = vsub.f32 %v28574_v54, %v5299_v59 }
 0x53d   : > { %23281 = vmatprep.subr.bf16.mxu0 %v28561_v5  ;;  %v5427_v60 = vsub.f32 %v28658_v12, %v5426_v56  ;;  %v23312_v41 = vpack.c.bf16 %v5400_v21, %v5393_v40  ;;  %v5421_v36 = vand.u32 4294901760, %v5420_v30  ;;  %v32955_v54 = vand.u32 4294901760, %v28596_v61 }
 0x53e   : > { %v5407_v8 = vand.u32 4294901760, %v5406_v15  ;;  %v5441_v15 = vsub.f32 %v28680_v16, %v5440_v48 }
 0x53f   : > { %v5428_v20 = vand.u32 4294901760, %v5427_v60  ;;  %v28712_v59 = vsub.f32 %v28596_v61, %v32955_v54 }
 0x540   : > { %23283 = vmatpush3.bf16.msra.mxu0 %v28561_v5  ;;  %v23316_v34 = vpack.c.bf16 %v5414_v38, %v5407_v8  ;;  %v32956_v38 = vand.u32 4294901760, %v28598_v29 }
 0x541   : > { %23285 = vmatprep.subr.bf16.mxu0 %v28565_v47  ;;  %v23320_v30 = vpack.c.bf16 %v5428_v20, %v5421_v36  ;;  %v5461_v61 = vand.u32 4294901760, %v28712_v59 }
 0x542   : > { %v28717_v8 = vsub.f32 %v28598_v29, %v32956_v38 }
 0x543   : > { %v5462_v20 = vsub.f32 %v28712_v59, %v5461_v61 }
 0x544   : > { %23287 = vmatpush3.bf16.msra.mxu0 %v28565_v47  ;;  %v5468_v60 = vand.u32 4294901760, %v28717_v8 }
 0x545   : > { %23289 = vmatprep.subr.bf16.mxu0 %v28582_v58  ;;  %v5463_v54 = vand.u32 4294901760, %v5462_v20  ;;  %v32957_v20 = vand.u32 4294901760, %v28541_v25 }
 0x548   : > { %23291 = vmatpush3.bf16.msra.mxu0 %v28582_v58 }
 0x549   : > { %23293 = vmatprep.subr.bf16.mxu0 %v28594_v19 }
 0x54c   : > { %23295 = vmatpush3.bf16.msra.mxu0 %v28594_v19 }
 0x54d   : > { %23297 = vmatprep.subr.bf16.mxu0 %v28608_v26 }
 0x550   : > { %23299 = vmatpush3.bf16.msra.mxu0 %v28608_v26 }
 0x551   : > { %23301 = vmatprep.subr.bf16.mxu0 %v28639_v6 }
 0x554   : > { %23303 = vmatpush3.bf16.msra.mxu0 %v28639_v6 }
 0x555   : > { %23305 = vmatprep.subr.bf16.mxu0 %v23304_v33 }
 0x557   : > { %19021 = vmatmul.mubr.f32.vlgmr.msra.gmra.mrb[0].mxu0 %v5354_v14  ;;  %v28694_v14 = vsub.f32 %v28572_v39, %v5296_v28  ;;  %v5454_v28 = vand.u32 4294901760, %v28699_v9 }
 0x558   : > { %23307 = vmatpush3.bf16.msra.mxu0 %v23304_v33  ;;  %19055 = vmatprep.mubr.f32.mxu0 %v28536_v46  ;;  %v5434_v33 = vsub.f32 %v28677_v18, %v5433_v7 }
 0x559   : > { %23309 = vmatprep.subr.bf16.mxu0 %v23308_v49  ;;  %v5447_v39 = vand.u32 4294901760, %v28694_v14  ;;  %v5455_v21 = vsub.f32 %v28699_v9, %v5454_v28 }
 0x55a   : > { %v5435_v3 = vand.u32 4294901760, %v5434_v33  ;;  %v5469_v33 = vsub.f32 %v28717_v8, %v5468_v60 }
 0x55b   : > { %v5448_v40 = vsub.f32 %v28694_v14, %v5447_v39  ;;  %v5456_v36 = vand.u32 4294901760, %v5455_v21  ;;  %v23352_v21 = vpack.c.bf16 %v28658_v12, %v28656_v27  ;;  %v5950_v12 = vld [vmem:[#allocation4 + $0x410] sm:$0xff] }
 0x55c   : > { %23311 = vmatpush3.bf16.msra.mxu0 %v23308_v49  ;;  %v5442_v49 = vand.u32 4294901760, %v5441_v15  ;;  %v5470_v38 = vand.u32 4294901760, %v5469_v33  ;;  %v32959_v33 = vand.u32 4294901760, %v28578_v31 }
 0x55d   : > { %23313 = vmatprep.subr.bf16.mxu0 %v23312_v41 }
 0x55e   : > { %v23324_v29 = vpack.c.bf16 %v5442_v49, %v5435_v3  ;;  %v23336_v3 = vpack.c.bf16 %v28578_v31, %v28576_v42  ;;  %v23340_v49 = vpack.c.bf16 %v28602_v13, %v28600_v22 }
 0x560   : > { %23315 = vmatpush3.bf16.msra.mxu0 %v23312_v41  ;;  %v5449_v41 = vand.u32 4294901760, %v5448_v40  ;;  %v23348_v40 = vpack.c.bf16 %v28632_v10, %v28630_v1 }
 0x561   : > { %23317 = vmatprep.subr.bf16.mxu0 %v23316_v34 }
 0x562   : > { %v23328_v15 = vpack.c.bf16 %v5456_v36, %v5449_v41  ;;  %v23360_v41 = vpack.c.bf16 %v28699_v9, %v28694_v14  ;;  %v23364_v36 = vpack.c.bf16 %v28717_v8, %v28712_v59 }
 0x564   : > { %23319 = vmatpush3.bf16.msra.mxu0 %v23316_v34  ;;  %v23332_v34 = vpack.c.bf16 %v5470_v38, %v5463_v54  ;;  %v32960_v54 = vand.u32 4294901760, %v28600_v22  ;;  %v32961_v38 = vand.u32 4294901760, %v28602_v13  ;;  %v32965_v22 = vand.u32 4294901760, %v28632_v10  ;;  %v5945_v10 = vld [vmem:[%s26592_s15 + $0x8] sm:$0xff] }
 0x565   : > { %23321 = vmatprep.subr.bf16.mxu0 %v23320_v30 }
 0x568   : > { %23323 = vmatpush3.bf16.msra.mxu0 %v23320_v30  ;;  %v23344_v30 = vpack.c.bf16 %v28627_v24, %v28625_v55  ;;  %v23420_v55 = vpack.c.bf16 %v5440_v48, %v5433_v7  ;;  %v5953_v7 = vld [vmem:[#allocation4 + $0x428] sm:$0xff] }
 0x569   : > { %23325 = vmatprep.subr.bf16.mxu0 %v23324_v29  ;;  %v5980_v9 = vand.u32 4294901760, %v5953_v7 }
 0x56c   : > { %23327 = vmatpush3.bf16.msra.mxu0 %v23324_v29  ;;  %v23356_v29 = vpack.c.bf16 %v28680_v16, %v28677_v18  ;;  %v5971_v18 = vand.u32 4294901760, %v5950_v12  ;;  %v5952_v16 = vld [vmem:[#allocation4 + $0x420] sm:$0xff] }
 0x56d   : > { %23329 = vmatprep.subr.bf16.mxu0 %v23328_v15 }
 0x570   : > { %23331 = vmatpush3.bf16.msra.mxu0 %v23328_v15 }
 0x571   : > { %23333 = vmatprep.subr.bf16.mxu0 %v23332_v34 }
 0x574   : > { %23335 = vmatpush3.bf16.msra.mxu0 %v23332_v34  ;;  %v23404_v34 = vpack.c.bf16 %v32961_v38, %v32960_v54 }
 0x575   : > { %23337 = vmatprep.subr.bf16.mxu0 %v23336_v3 }
 0x577   : > { %19056 = vmatmul.mubr.f32.vlgmr.msra.gmra.mrb[0].mxu0 %v28588_v11 }
 0x578   : > { %23339 = vmatpush3.bf16.msra.mxu0 %v23336_v3  ;;  %19090 = vmatprep.mubr.f32.mxu0 %v28541_v25  ;;  %v32958_v25 = vand.u32 4294901760, %v28576_v42  ;;  %v32962_v3 = vand.u32 4294901760, %v28611_v2  ;;  %v32963_v42 = vand.u32 4294901760, %v28627_v24  ;;  %v23424_v24 = vpack.c.bf16 %v5454_v28, %v5447_v39  ;;  %v5954_v39 = vld [vmem:[#allocation4 + $0x430] sm:$0xff]  ;;  %v5955_v28 = vld [vmem:[#allocation4 + $0x438] sm:$0xff] }
 0x579   : > { %23341 = vmatprep.subr.bf16.mxu0 %v23340_v49  ;;  %v5983_v8 = vand.u32 4294901760, %v5954_v39 }
 0x57a   : > { %v23400_v15 = vpack.c.bf16 %v32959_v33, %v32958_v25  ;;  %v23408_v31 = vpack.c.bf16 %v32963_v42, %v5391_v37  ;;  %v28816_v37 = vand.u32 4294901760, %v5945_v10  ;;  %v5946_v33 = vld [vmem:[%s26592_s15 + $0x10] sm:$0xff] }
 0x57b   : > { %v28868_v42 = vand.u32 4294901760, %v5946_v33 }
 0x57c   : > { %23343 = vmatpush3.bf16.msra.mxu0 %v23340_v49  ;;  %v32964_v49 = vand.u32 4294901760, %v28630_v1  ;;  %v23428_v1 = vpack.c.bf16 %v5468_v60, %v5461_v61  ;;  %v5956_v61 = vld [vmem:[#allocation4 + $0x440] sm:$0xff]  ;;  %v5957_v60 = vld [vmem:[#allocation4 + $0x448] sm:$0xff] }
 0x57d   : > { %23345 = vmatprep.subr.bf16.mxu0 %v23344_v30 }
 0x57e   : > { %v23412_v13 = vpack.c.bf16 %v32965_v22, %v32964_v49 }
 0x580   : > { %23347 = vmatpush3.bf16.msra.mxu0 %v23344_v30 }
 0x581   : > { %23349 = vmatprep.subr.bf16.mxu0 %v23348_v40 }
 0x584   : > { %23351 = vmatpush3.bf16.msra.mxu0 %v23348_v40  ;;  %v5989_v40 = vand.u32 4294901760, %v5956_v61 }
 0x585   : > { %23353 = vmatprep.subr.bf16.mxu0 %v23352_v21 }
 0x588   : > { %23355 = vmatpush3.bf16.msra.mxu0 %v23352_v21  ;;  %v28847_v21 = vld [vmem:[#allocation4 + $0x450] sm:$0xff] }
 0x589   : > { %23357 = vmatprep.subr.bf16.mxu0 %v23356_v29  ;;  %v5995_v54 = vand.u32 4294901760, %v28847_v21 }
 0x58c   : > { %23359 = vmatpush3.bf16.msra.mxu0 %v23356_v29  ;;  %v28849_v29 = vld [vmem:[#allocation4 + $0x458] sm:$0xff] }
 0x58d   : > { %23361 = vmatprep.subr.bf16.mxu0 %v23360_v41  ;;  %v5998_v38 = vand.u32 4294901760, %v28849_v29 }
 0x58f   : > { %v28874_v22 = vpack.c.bf16 %v5998_v38, %v5995_v54 }
 0x590   : > { %23363 = vmatpush3.bf16.msra.mxu0 %v23360_v41  ;;  %v28852_v41 = vld [vmem:[#allocation4 + $0x460] sm:$0xff] }
 0x591   : > { %23365 = vmatprep.subr.bf16.mxu0 %v23364_v36 }
 0x594   : > { %23367 = vmatpush3.bf16.msra.mxu0 %v23364_v36  ;;  %v28854_v36 = vld [vmem:[#allocation4 + $0x468] sm:$0xff] }
 0x595   : > { %23369 = vmatprep.subr.bf16.mxu0 %v28552_v43 }
 0x597   : > { %19091 = vmatmul.mubr.f32.vlgmr.msra.gmra.mrb[0].mxu0 %v28611_v2  ;;  %v23416_v2 = vpack.c.bf16 %v5426_v56, %v5419_v32  ;;  %v5951_v32 = vld [vmem:[#allocation4 + $0x418] sm:$0xff] }
 0x598   : > { %23371 = vmatpush3.bf16.msra.mxu0 %v28552_v43  ;;  %19125 = vmatprep.mubr.f32.mxu0 %v32957_v20 }
 0x599   : > { %23373 = vmatprep.subr.bf16.mxu0 %v28556_v35 }
 0x59c   : > { %23375 = vmatpush3.bf16.msra.mxu0 %v28556_v35 }
 0x59d   : > { %23377 = vmatprep.subr.bf16.mxu0 %v28561_v5 }
 0x5a0   : > { %23379 = vmatpush3.bf16.msra.mxu0 %v28561_v5 }
 0x5a1   : > { %23381 = vmatprep.subr.bf16.mxu0 %v28565_v47 }
 0x5a4   : > { %23383 = vmatpush3.bf16.msra.mxu0 %v28565_v47 }
 0x5a5   : > { %23385 = vmatprep.subr.bf16.mxu0 %v28582_v58 }
 0x5a8   : > { %23387 = vmatpush3.bf16.msra.mxu0 %v28582_v58 }
 0x5a9   : > { %23389 = vmatprep.subr.bf16.mxu0 %v28594_v19 }
 0x5ac   : > { %23391 = vmatpush3.bf16.msra.mxu0 %v28594_v19 }
 0x5ad   : > { %23393 = vmatprep.subr.bf16.mxu0 %v28608_v26 }
 0x5b0   : > { %23395 = vmatpush3.bf16.msra.mxu0 %v28608_v26 }
 0x5b1   : > { %23397 = vmatprep.subr.bf16.mxu0 %v28639_v6 }
 0x5b4   : > { %23399 = vmatpush3.bf16.msra.mxu0 %v28639_v6 }
 0x5b5   : > { %23401 = vmatprep.subr.bf16.mxu0 %v23400_v15 }
 0x5b7   : > { %19126 = vmatmul.mubr.f32.vlgmr.msra.gmra.mrb[0].mxu0 %v32962_v3  ;;  %v6004_v3 = vand.u32 4294901760, %v28854_v36 }
 0x5b8   : > { %23403 = vmatpush3.bf16.msra.mxu0 %v23400_v15  ;;  %19160 = vmatprep.mubr.f32.mxu0 %v28536_v46 }
 0x5b9   : > { %23405 = vmatprep.subr.bf16.mxu0 %v23404_v34 }
 0x5bc   : > { %23407 = vmatpush3.bf16.msra.mxu0 %v23404_v34  ;;  %v6001_v34 = vand.u32 4294901760, %v28852_v41 }
 0x5bd   : > { %23409 = vmatprep.subr.bf16.mxu0 %v23408_v31 }
 0x5c0   : > { %23411 = vmatpush3.bf16.msra.mxu0 %v23408_v31 }
 0x5c1   : > { %23413 = vmatprep.subr.bf16.mxu0 %v23412_v13 }
 0x5c4   : > { %23415 = vmatpush3.bf16.msra.mxu0 %v23412_v13  ;;  %v28876_v13 = vld [vmem:[#allocation4 + $0x470] sm:$0xff] }
 0x5c5   : > { %23417 = vmatprep.subr.bf16.mxu0 %v23416_v2 }
 0x5c8   : > { %23419 = vmatpush3.bf16.msra.mxu0 %v23416_v2  ;;  %v28878_v2 = vld [vmem:[#allocation4 + $0x478] sm:$0xff] }
 0x5c9   : > { %23421 = vmatprep.subr.bf16.mxu0 %v23420_v55 }
 0x5cc   : > { %23423 = vmatpush3.bf16.msra.mxu0 %v23420_v55  ;;  %v28880_v55 = vsub.f32 %v5950_v12, %v5971_v18 }
 0x5cd   : > { %23425 = vmatprep.subr.bf16.mxu0 %v23424_v24 }
 0x5ce   : > { %v32841_v12 = vand.u32 4294901760, %v28880_v55 }
 0x5d0   : > { %23427 = vmatpush3.bf16.msra.mxu0 %v23424_v24 }
 0x5d1   : > { %23429 = vmatprep.subr.bf16.mxu0 %v23428_v1 }
 0x5d4   : > { %23431 = vmatpush3.bf16.msra.mxu0 %v23428_v1  ;;  %v28888_v1 = vpack.c.bf16 %v6004_v3, %v6001_v34 }
 0x5d5   : > { %23433 = vmatprep.subr.bf16.mxu0 %v28552_v43 }
 0x5d7   : > { %19161 = vmatmul.mubr.f32.vlgmr.msra.gmra.mrb[0].mxu0 %v28588_v11 }
 0x5d8   : > { %23435 = vmatpush3.bf16.msra.mxu0 %v28552_v43  ;;  %19195 = vmatprep.mubr.f32.mxu0 %v28536_v46  ;;  %v28821_v46 = vsub.f32 %v5945_v10, %v28816_v37  ;;  %v5948_v43 = vld [vmem:[#allocation4 + $0x400] sm:$0xff]  ;;  %v28891_v10 = vsub.f32 %v5946_v33, %v28868_v42 }
 0x5d9   : > { %23437 = vmatprep.subr.bf16.mxu0 %v28556_v35 }
 0x5dc   : > { %23439 = vmatpush3.bf16.msra.mxu0 %v28556_v35  ;;  %v5949_v35 = vld [vmem:[#allocation4 + $0x408] sm:$0xff] }
 0x5dd   : > { %23441 = vmatprep.subr.bf16.mxu0 %v28561_v5  ;;  %v5968_v27 = vand.u32 4294901760, %v5949_v35 }
 0x5df   : > { %v28858_v25 = vsub.f32 %v5949_v35, %v5968_v27  ;;  %v32842_v35 = vand.u32 4294901760, %v28878_v2 }
 0x5e0   : > { %23443 = vmatpush3.bf16.msra.mxu0 %v28561_v5  ;;  %v32839_v5 = vand.u32 4294901760, %v28821_v46 }
 0x5e1   : > { %23445 = vmatprep.subr.bf16.mxu0 %v28565_v47  ;;  %v32837_v49 = vand.u32 4294901760, %v28858_v25 }
 0x5e4   : > { %23447 = vmatpush3.bf16.msra.mxu0 %v28565_v47  ;;  %v5965_v47 = vand.u32 4294901760, %v5948_v43 }
 0x5e5   : > { %23449 = vmatprep.subr.bf16.mxu0 %v28582_v58 }
 0x5e6   : > { %v28832_v56 = vpack.c.bf16 %v5968_v27, %v5965_v47  ;;  %v28856_v20 = vsub.f32 %v5948_v43, %v5965_v47  ;;  %v32844_v43 = vand.u32 4294901760, %v28876_v13  ;;  %v6076_v27 = vsub.f32 %v28858_v25, %v32837_v49 }
 0x5e8   : > { %23451 = vmatpush3.bf16.msra.mxu0 %v28582_v58  ;;  %v6048_v58 = vsub.f32 %v28821_v46, %v32839_v5  ;;  %v32838_v31 = vand.u32 4294901760, %v28856_v20  ;;  %v28919_v49 = vpack.c.bf16 %v32842_v35, %v32844_v43  ;;  %v6077_v5 = vand.u32 4294901760, %v6076_v27 }
 0x5e9   : > { %23453 = vmatprep.subr.bf16.mxu0 %v28594_v19 }
 0x5ea   : > { %v6049_v48 = vand.u32 4294901760, %v6048_v58  ;;  %v6069_v47 = vsub.f32 %v28856_v20, %v32838_v31 }
 0x5ec   : > { %23455 = vmatpush3.bf16.msra.mxu0 %v28594_v19  ;;  %v5974_v19 = vand.u32 4294901760, %v5951_v32  ;;  %v6070_v31 = vand.u32 4294901760, %v6069_v47  ;;  %v28936_v47 = vsub.f32 %v5956_v61, %v5989_v40 }
 0x5ed   : > { %23457 = vmatprep.subr.bf16.mxu0 %v28608_v26 }
 0x5ee   : > { %v28836_v14 = vpack.c.bf16 %v5974_v19, %v5971_v18  ;;  %v28882_v24 = vsub.f32 %v5951_v32, %v5974_v19  ;;  %v28907_v18 = vsub.f32 %v5953_v7, %v5980_v9  ;;  %v32843_v19 = vand.u32 4294901760, %v28891_v10 }
 0x5f0   : > { %23459 = vmatpush3.bf16.msra.mxu0 %v28608_v26  ;;  %v5977_v26 = vand.u32 4294901760, %v5952_v16  ;;  %v32840_v32 = vand.u32 4294901760, %v28882_v24 }
 0x5f1   : > { %23461 = vmatprep.subr.bf16.mxu0 %v28639_v6 }
 0x5f2   : > { %v28841_v59 = vpack.c.bf16 %v5980_v9, %v5977_v26  ;;  %v28905_v58 = vsub.f32 %v5952_v16, %v5977_v26  ;;  %v6083_v16 = vsub.f32 %v28880_v55, %v32841_v12  ;;  %v6090_v7 = vsub.f32 %v28882_v24, %v32840_v32 }
 0x5f3   : > { %v32846_v9 = vand.u32 4294901760, %v28907_v18 }
 0x5f4   : > { %23463 = vmatpush3.bf16.msra.mxu0 %v28639_v6  ;;  %v5986_v6 = vand.u32 4294901760, %v5955_v28  ;;  %v6096_v26 = vand.u32 4294901760, %v28905_v58  ;;  %v6084_v32 = vand.u32 4294901760, %v6083_v16  ;;  %v6091_v12 = vand.u32 4294901760, %v6090_v7 }
 0x5f5   : > { %23465 = vmatprep.subr.bf16.mxu0 %v28832_v56 }
 0x5f6   : > { %v28845_v30 = vpack.c.bf16 %v5986_v6, %v5983_v8  ;;  %v28912_v33 = vsub.f32 %v5955_v28, %v5986_v6  ;;  %v23496_v6 = vpack.c.bf16 %v6077_v5, %v6070_v31  ;;  %v6097_v35 = vsub.f32 %v28905_v58, %v6096_v26 }
 0x5f7   : > { %19196 = vmatmul.mubr.f32.vlgmr.msra.gmra.mrb[0].mxu0 %v28588_v11  ;;  %v5992_v11 = vand.u32 4294901760, %v5957_v60  ;;  %v28960_v31 = vsub.f32 %v28849_v29, %v5998_v38  ;;  %v23500_v16 = vpack.c.bf16 %v6091_v12, %v6084_v32 }
 0x5f8   : > { %23467 = vmatpush3.bf16.msra.mxu0 %v28832_v56  ;;  %19230 = vmatprep.mubr.f32.mxu0 %v6049_v48  ;;  %v28910_v48 = vsub.f32 %v5954_v39, %v5983_v8  ;;  %v6058_v39 = vsub.f32 %v28891_v10, %v32843_v19  ;;  %v32847_v8 = vand.u32 4294901760, %v28912_v33  ;;  %v6104_v19 = vsub.f32 %v28907_v18, %v32846_v9 }
 0x5f9   : > { %23469 = vmatprep.subr.bf16.mxu0 %v28836_v14  ;;  %v28862_v15 = vpack.c.bf16 %v5992_v11, %v5989_v40  ;;  %v28938_v27 = vsub.f32 %v5957_v60, %v5992_v11  ;;  %v6124_v60 = vand.u32 4294901760, %v28936_v47  ;;  %v28957_v11 = vsub.f32 %v28847_v21, %v5995_v54 }
 0x5fa   : > { %v32845_v28 = vand.u32 4294901760, %v28910_v48  ;;  %v6059_v43 = vand.u32 4294901760, %v6058_v39  ;;  %v6118_v61 = vsub.f32 %v28912_v33, %v32847_v8  ;;  %v6098_v7 = vand.u32 4294901760, %v6097_v35 }
 0x5fb   : > { %v6131_v40 = vand.u32 4294901760, %v28938_v27  ;;  %v6105_v39 = vand.u32 4294901760, %v6104_v19  ;;  %v6125_v8 = vsub.f32 %v28936_v47, %v6124_v60  ;;  %v6138_v54 = vand.u32 4294901760, %v28957_v11 }
 0x5fc   : > { %23471 = vmatpush3.bf16.msra.mxu0 %v28836_v14  ;;  %v6111_v5 = vsub.f32 %v28910_v48, %v32845_v28  ;;  %v6119_v9 = vand.u32 4294901760, %v6118_v61  ;;  %v6145_v29 = vand.u32 4294901760, %v28960_v31  ;;  %v28979_v35 = vsub.f32 %v28854_v36, %v6004_v3 }
 0x5fd   : > { %23473 = vmatprep.subr.bf16.mxu0 %v28841_v59  ;;  %v6132_v21 = vsub.f32 %v28938_v27, %v6131_v40  ;;  %v23504_v38 = vpack.c.bf16 %v6105_v39, %v6098_v7  ;;  %v6126_v32 = vand.u32 4294901760, %v6125_v8  ;;  %v32966_v36 = vand.u32 4294901760, %v28876_v13 }
 0x5fe   : > { %v6112_v28 = vand.u32 4294901760, %v6111_v5  ;;  %v6146_v5 = vsub.f32 %v28960_v31, %v6145_v29 }
 0x5ff   : > { %v6133_v19 = vand.u32 4294901760, %v6132_v21  ;;  %v28992_v3 = vsub.f32 %v28876_v13, %v32966_v36 }
 0x600   : > { %23475 = vmatpush3.bf16.msra.mxu0 %v28841_v59  ;;  %v23508_v12 = vpack.c.bf16 %v6119_v9, %v6112_v28  ;;  %v32967_v9 = vand.u32 4294901760, %v28878_v2 }
 0x601   : > { %23477 = vmatprep.subr.bf16.mxu0 %v28845_v30  ;;  %v23512_v8 = vpack.c.bf16 %v6133_v19, %v6126_v32  ;;  %v6166_v13 = vand.u32 4294901760, %v28992_v3 }
 0x602   : > { %v28997_v28 = vsub.f32 %v28878_v2, %v32967_v9 }
 0x603   : > { %v6167_v19 = vsub.f32 %v28992_v3, %v6166_v13 }
 0x604   : > { %23479 = vmatpush3.bf16.msra.mxu0 %v28845_v30  ;;  %v6173_v21 = vand.u32 4294901760, %v28997_v28 }
 0x605   : > { %23481 = vmatprep.subr.bf16.mxu0 %v28862_v15  ;;  %v6168_v36 = vand.u32 4294901760, %v6167_v19  ;;  %v32968_v19 = vand.u32 4294901760, %v28821_v46 }
 0x608   : > { %23483 = vmatpush3.bf16.msra.mxu0 %v28862_v15 }
 0x609   : > { %23485 = vmatprep.subr.bf16.mxu0 %v28874_v22 }
 0x60c   : > { %23487 = vmatpush3.bf16.msra.mxu0 %v28874_v22 }
 0x60d   : > { %23489 = vmatprep.subr.bf16.mxu0 %v28888_v1 }
 0x610   : > { %23491 = vmatpush3.bf16.msra.mxu0 %v28888_v1 }
 0x611   : > { %23493 = vmatprep.subr.bf16.mxu0 %v28919_v49 }
 0x614   : > { %23495 = vmatpush3.bf16.msra.mxu0 %v28919_v49 }
 0x615   : > { %23497 = vmatprep.subr.bf16.mxu0 %v23496_v6 }
 0x617   : > { %19231 = vmatmul.mubr.f32.vlgmr.msra.gmra.mrb[0].mxu0 %v6059_v43  ;;  %v28974_v43 = vsub.f32 %v28852_v41, %v6001_v34  ;;  %v6159_v34 = vand.u32 4294901760, %v28979_v35 }
 0x618   : > { %23499 = vmatpush3.bf16.msra.mxu0 %v23496_v6  ;;  %19265 = vmatprep.mubr.f32.mxu0 %v28816_v37  ;;  %v6139_v6 = vsub.f32 %v28957_v11, %v6138_v54 }
 0x619   : > { %23501 = vmatprep.subr.bf16.mxu0 %v23500_v16  ;;  %v6152_v41 = vand.u32 4294901760, %v28974_v43  ;;  %v6160_v39 = vsub.f32 %v28979_v35, %v6159_v34 }
 0x61a   : > { %v6140_v61 = vand.u32 4294901760, %v6139_v6  ;;  %v6174_v6 = vsub.f32 %v28997_v28, %v6173_v21 }
 0x61b   : > { %v6153_v7 = vsub.f32 %v28974_v43, %v6152_v41  ;;  %v6161_v32 = vand.u32 4294901760, %v6160_v39  ;;  %v23544_v39 = vpack.c.bf16 %v28938_v27, %v28936_v47  ;;  %v23612_v47 = vpack.c.bf16 %v6145_v29, %v6138_v54  ;;  %v32993_v54 = vld [vmem:[#allocation16_spill] sm:$0xff] }
 0x61c   : > { %23503 = vmatpush3.bf16.msra.mxu0 %v23500_v16  ;;  %v6147_v16 = vand.u32 4294901760, %v6146_v5  ;;  %v6175_v9 = vand.u32 4294901760, %v6174_v6  ;;  %v32970_v6 = vand.u32 4294901760, %v28858_v25  ;;  %v32994_v29 = vand.u32 4294901760, %v32993_v54 }
 0x61d   : > { %23505 = vmatprep.subr.bf16.mxu0 %v23504_v38 }
 0x61e   : > { %v23516_v2 = vpack.c.bf16 %v6147_v16, %v6140_v61  ;;  %v23528_v61 = vpack.c.bf16 %v28858_v25, %v28856_v20  ;;  %v23532_v16 = vpack.c.bf16 %v28882_v24, %v28880_v55  ;;  %v32975_v25 = vand.u32 4294901760, %v28882_v24 }
 0x620   : > { %23507 = vmatpush3.bf16.msra.mxu0 %v23504_v38  ;;  %v6154_v38 = vand.u32 4294901760, %v6153_v7  ;;  %v23540_v7 = vpack.c.bf16 %v28912_v33, %v28910_v48 }
 0x621   : > { %23509 = vmatprep.subr.bf16.mxu0 %v23508_v12 }
 0x622   : > { %v23520_v5 = vpack.c.bf16 %v6161_v32, %v6154_v38  ;;  %v23552_v38 = vpack.c.bf16 %v28979_v35, %v28974_v43  ;;  %v23556_v32 = vpack.c.bf16 %v28997_v28, %v28992_v3  ;;  %v23620_v43 = vpack.c.bf16 %v6173_v21, %v6166_v13  ;;  %v33001_v13 = vld [vmem:[#allocation13_spill] sm:$0xff] }
 0x623   : > { %v21992_v3 = vpack.c.bf16 %v26707_v45, %v26702_v44  ;;  %v21996_v28 = vpack.c.bf16 %v26729_v51, %v26724_v50 }
 0x624   : > { %23511 = vmatpush3.bf16.msra.mxu0 %v23508_v12  ;;  %v23524_v12 = vpack.c.bf16 %v6175_v9, %v6168_v36  ;;  %v32971_v36 = vand.u32 4294901760, %v26702_v44 }
 0x625   : > { %23513 = vmatprep.subr.bf16.mxu0 %v23512_v8 }
 0x626   : > { %v452_v9 = vsub.f32 %v26702_v44, %v32971_v36  ;;  %v22000_v44 = vpack.c.bf16 %v26752_v57, %v26739_v53 }
 0x628   : > { %23515 = vmatpush3.bf16.msra.mxu0 %v23512_v8  ;;  %v23536_v8 = vpack.c.bf16 %v28907_v18, %v28905_v58 }
 0x629   : > { %23517 = vmatprep.subr.bf16.mxu0 %v23516_v2 }
 0x62c   : > { %23519 = vmatpush3.bf16.msra.mxu0 %v23516_v2  ;;  %v23548_v2 = vpack.c.bf16 %v28960_v31, %v28957_v11  ;;  %v23616_v11 = vpack.c.bf16 %v6159_v34, %v6152_v41  ;;  %v32997_v41 = vld [vmem:[#allocation18_spill] sm:$0xff] }
 0x62d   : > { %23521 = vmatprep.subr.bf16.mxu0 %v23520_v5  ;;  %v32998_v34 = vand.u32 4294901760, %v32997_v41 }
 0x630   : > { %23523 = vmatpush3.bf16.msra.mxu0 %v23520_v5 }
 0x631   : > { %23525 = vmatprep.subr.bf16.mxu0 %v23524_v12 }
 0x634   : > { %23527 = vmatpush3.bf16.msra.mxu0 %v23524_v12  ;;  %v32972_v12 = vand.u32 4294901760, %v26707_v45 }
 0x635   : > { %23529 = vmatprep.subr.bf16.mxu0 %v23528_v61 }
 0x637   : > { %19266 = vmatmul.mubr.f32.vlgmr.msra.gmra.mrb[0].mxu0 %v28868_v42 }
 0x638   : > { %23531 = vmatpush3.bf16.msra.mxu0 %v23528_v61  ;;  %19300 = vmatprep.mubr.f32.mxu0 %v28821_v46  ;;  %v32969_v46 = vand.u32 4294901760, %v28856_v20  ;;  %v459_v61 = vsub.f32 %v26707_v45, %v32972_v12  ;;  %v32974_v20 = vand.u32 4294901760, %v28880_v55  ;;  %v32979_v55 = vand.u32 4294901760, %v28891_v10 }
 0x639   : > { %23533 = vmatprep.subr.bf16.mxu0 %v23532_v16  ;;  %v22004_v45 = vpack.c.bf16 %v26772_v63, %v26767_v62 }
 0x63a   : > { %v23592_v5 = vpack.c.bf16 %v32970_v6, %v32969_v46  ;;  %v32977_v6 = vand.u32 4294901760, %v26724_v50 }
 0x63c   : > { %23535 = vmatpush3.bf16.msra.mxu0 %v23532_v16  ;;  %v32973_v16 = vand.u32 4294901760, %v26633_v23  ;;  %v466_v36 = vsub.f32 %v26724_v50, %v32977_v6  ;;  %v32985_v6 = vand.u32 4294901760, %v26767_v62  ;;  %v6650_v50 = vld [vmem:[%s26592_s15 + $0x9] sm:$0xff] }
 0x63d   : > { %23537 = vmatprep.subr.bf16.mxu0 %v23536_v8 }
 0x63e   : > { %v467_v24 = vand.u32 4294901760, %v466_v36  ;;  %v494_v36 = vsub.f32 %v26767_v62, %v32985_v6  ;;  %v550_v6 = vsub.f32 %v32997_v41, %v32998_v34  ;;  %v6653_v62 = vld [vmem:[#allocation4 + $0x480] sm:$0xff]  ;;  %v29232_v34 = vld [vmem:[#allocation4 + $0x4f8] sm:$0xff] }
 0x640   : > { %23539 = vmatpush3.bf16.msra.mxu0 %v23536_v8  ;;  %v431_v8 = vsub.f32 %v26633_v23, %v32973_v16 }
 0x641   : > { %23541 = vmatprep.subr.bf16.mxu0 %v23540_v7 }
 0x644   : > { %23543 = vmatpush3.bf16.msra.mxu0 %v23540_v7  ;;  %v453_v7 = vand.u32 4294901760, %v452_v9  ;;  %v32978_v9 = vand.u32 4294901760, %v26729_v51 }
 0x645   : > { %23545 = vmatprep.subr.bf16.mxu0 %v23544_v39 }
 0x646   : > { %v473_v12 = vsub.f32 %v26729_v51, %v32978_v9  ;;  %v32986_v9 = vand.u32 4294901760, %v26772_v63  ;;  %v22008_v51 = vpack.c.bf16 %v26791_v4, %v26779_v0 }
 0x648   : > { %23547 = vmatpush3.bf16.msra.mxu0 %v23544_v39  ;;  %v460_v39 = vand.u32 4294901760, %v459_v61  ;;  %v474_v16 = vand.u32 4294901760, %v473_v12  ;;  %v495_v12 = vand.u32 4294901760, %v494_v36  ;;  %v32999_v36 = vld [vmem:[#allocation19_spill] sm:$0xff] }
 0x649   : > { %23549 = vmatprep.subr.bf16.mxu0 %v23548_v2 }
 0x64a   : > { %v21960_v46 = vpack.c.bf16 %v460_v39, %v453_v7  ;;  %v21964_v39 = vpack.c.bf16 %v474_v16, %v467_v24 }
 0x64c   : > { %23551 = vmatpush3.bf16.msra.mxu0 %v23548_v2  ;;  %v23596_v2 = vpack.c.bf16 %v32975_v25, %v32974_v20  ;;  %21961 = vmatprep.subr.bf16.mxu1 %v21960_v46  ;;  %v32981_v20 = vand.u32 4294901760, %v26739_v53 }
 0x64d   : > { %23553 = vmatprep.subr.bf16.mxu0 %v23552_v38 }
 0x64e   : > { %v480_v25 = vsub.f32 %v26739_v53, %v32981_v20 }
 0x650   : > { %23555 = vmatpush3.bf16.msra.mxu0 %v23552_v38  ;;  %v32976_v38 = vand.u32 4294901760, %v26733_v52 }
 0x651   : > { %23557 = vmatprep.subr.bf16.mxu0 %v23556_v32 }
 0x654   : > { %23559 = vmatpush3.bf16.msra.mxu0 %v23556_v32  ;;  %v441_v32 = vsub.f32 %v26733_v52, %v32976_v38 }
 0x655   : > { %23561 = vmatprep.subr.bf16.mxu0 %v28832_v56 }
 0x656   : > { %v442_v61 = vand.u32 4294901760, %v441_v32 }
 0x657   : > { %19301 = vmatmul.mubr.f32.vlgmr.msra.gmra.mrb[0].mxu0 %v28891_v10  ;;  %v32982_v10 = vand.u32 4294901760, %v26752_v57 }
 0x658   : > { %23563 = vmatpush3.bf16.msra.mxu0 %v28832_v56  ;;  %19335 = vmatprep.mubr.f32.mxu0 %v32968_v19  ;;  %v432_v19 = vand.u32 4294901760, %v431_v8  ;;  %v32980_v8 = vand.u32 4294901760, %v28907_v18  ;;  %v32983_v18 = vand.u32 4294901760, %v28910_v48  ;;  %v23608_v48 = vpack.c.bf16 %v6131_v40, %v6124_v60  ;;  %v32989_v60 = vld [vmem:[#allocation14_spill] sm:$0xff] }
 0x659   : > { %23565 = vmatprep.subr.bf16.mxu0 %v28836_v14  ;;  %v487_v38 = vsub.f32 %v26752_v57, %v32982_v10  ;;  %v32990_v40 = vand.u32 4294901760, %v32989_v60 }
 0x65a   : > { %17550 = vmatprep.mubr.f32.mxu1 %v432_v19  ;;  %v23600_v7 = vpack.c.bf16 %v32980_v8, %v6096_v26  ;;  %v32984_v26 = vand.u32 4294901760, %v28912_v33 }
 0x65b   : > { %17551 = vmatmul.mubr.f32.vlgmr.msra.gmra.mrb[0].mxu1 %v442_v61  ;;  %v488_v58 = vand.u32 4294901760, %v487_v38 }
 0x65c   : > { %23567 = vmatpush3.bf16.msra.mxu0 %v28836_v14  ;;  %21963 = vmatpush3.bf16.msra.mxu1 %v21960_v46  ;;  %v23604_v32 = vpack.c.bf16 %v32984_v26, %v32983_v18  ;;  %v501_v46 = vsub.f32 %v26772_v63, %v32986_v9  ;;  %v33000_v9 = vand.u32 4294901760, %v32999_v36  ;;  %v6654_v63 = vld [vmem:[#allocation4 + $0x488] sm:$0xff] }
 0x65d   : > { %23569 = vmatprep.subr.bf16.mxu0 %v28841_v59  ;;  %17585 = vmatprep.mubr.f32.mxu1 %v26616_v17 }
 0x65e   : > { %21965 = vmatprep.subr.bf16.mxu1 %v21964_v39  ;;  %v502_v17 = vand.u32 4294901760, %v501_v46  ;;  %v557_v46 = vsub.f32 %v32999_v36, %v33000_v9 }
 0x660   : > { %23571 = vmatpush3.bf16.msra.mxu0 %v28841_v59  ;;  %21967 = vmatpush3.bf16.msra.mxu1 %v21964_v39  ;;  %v21972_v33 = vpack.c.bf16 %v502_v17, %v495_v12  ;;  %v32991_v39 = vld [vmem:[#allocation15_spill] sm:$0xff]  ;;  %v551_v12 = vand.u32 4294901760, %v550_v6  ;;  %v558_v17 = vand.u32 4294901760, %v557_v46 }
 0x661   : > { %23573 = vmatprep.subr.bf16.mxu0 %v28845_v30  ;;  %v32992_v20 = vand.u32 4294901760, %v32991_v39  ;;  %v22012_v57 = vpack.c.bf16 %v32991_v39, %v32989_v60 }
 0x664   : > { %23575 = vmatpush3.bf16.msra.mxu0 %v28845_v30 }
 0x665   : > { %23577 = vmatprep.subr.bf16.mxu0 %v28862_v15 }
 0x668   : > { %23579 = vmatpush3.bf16.msra.mxu0 %v28862_v15 }
 0x669   : > { %23581 = vmatprep.subr.bf16.mxu0 %v28874_v22 }
 0x66c   : > { %23583 = vmatpush3.bf16.msra.mxu0 %v28874_v22 }
 0x66d   : > { %23585 = vmatprep.subr.bf16.mxu0 %v28888_v1 }
 0x670   : > { %23587 = vmatpush3.bf16.msra.mxu0 %v28888_v1 }
 0x671   : > { %23589 = vmatprep.subr.bf16.mxu0 %v28919_v49 }
 0x674   : > { %23591 = vmatpush3.bf16.msra.mxu0 %v28919_v49 }
 0x675   : > { %23593 = vmatprep.subr.bf16.mxu0 %v23592_v5 }
 0x677   : > { %19336 = vmatmul.mubr.f32.vlgmr.msra.gmra.mrb[0].mxu0 %v32979_v55  ;;  %v32988_v55 = vand.u32 4294901760, %v26791_v4 }
 0x678   : > { %23595 = vmatpush3.bf16.msra.mxu0 %v23592_v5  ;;  %19370 = vmatprep.mubr.f32.mxu0 %v28816_v37  ;;  %v481_v5 = vand.u32 4294901760, %v480_v25  ;;  %v529_v25 = vsub.f32 %v32991_v39, %v32992_v20 }
 0x679   : > { %23597 = vmatprep.subr.bf16.mxu0 %v23596_v2  ;;  %v515_v24 = vsub.f32 %v26791_v4, %v32988_v55 }
 0x67a   : > { %v21968_v19 = vpack.c.bf16 %v488_v58, %v481_v5  ;;  %v530_v38 = vand.u32 4294901760, %v529_v25  ;;  %v536_v5 = vsub.f32 %v32993_v54, %v32994_v29  ;;  %v32995_v58 = vld [vmem:[#allocation17_spill] sm:$0xff]  ;;  %v29201_v25 = vld [vmem:[#allocation4 + $0x4d0] sm:$0xff] }
 0x67b   : > { %v516_v8 = vand.u32 4294901760, %v515_v24  ;;  %v32996_v18 = vand.u32 4294901760, %v32995_v58  ;;  %v22016_v4 = vpack.c.bf16 %v32995_v58, %v32993_v54  ;;  %v6651_v54 = vld [vmem:[%s26592_s15 + $0x11] sm:$0xff]  ;;  %s32682_s15 = scalar_lea.hbm %s32732_s7, %s15249_s19 }
 0x67c   : > { %23599 = vmatpush3.bf16.msra.mxu0 %v23596_v2  ;;  %21969 = vmatprep.subr.bf16.mxu1 %v21968_v19  ;;  %v32987_v2 = vand.u32 4294901760, %v26779_v0 }
 0x67d   : > { %23601 = vmatprep.subr.bf16.mxu0 %v23600_v7  ;;  %21971 = vmatpush3.bf16.msra.mxu1 %v21968_v19  ;;  %v543_v26 = vsub.f32 %v32995_v58, %v32996_v18 }
 0x67e   : > { %v508_v61 = vsub.f32 %v26779_v0, %v32987_v2  ;;  %21973 = vmatprep.subr.bf16.mxu1 %v21972_v33  ;;  %v6657_v2 = vld [vmem:[#allocation4 + $0x4a0] sm:$0xff] }
 0x67f   : > { %v544_v19 = vand.u32 4294901760, %v543_v26  ;;  %v6682_v24 = vand.u32 4294901760, %v6657_v2 }
 0x680   : > { %23603 = vmatpush3.bf16.msra.mxu0 %v23600_v7  ;;  %v509_v16 = vand.u32 4294901760, %v508_v61  ;;  %v522_v7 = vsub.f32 %v32989_v60, %v32990_v40  ;;  %v6658_v61 = vld [vmem:[#allocation4 + $0x4a8] sm:$0xff]  ;;  %v6661_v40 = vld [vmem:[#allocation4 + $0x4c0] sm:$0xff] }
 0x681   : > { %23605 = vmatprep.subr.bf16.mxu0 %v23604_v32  ;;  %21975 = vmatpush3.bf16.msra.mxu1 %v21972_v33  ;;  %v6694_v39 = vand.u32 4294901760, %v6661_v40 }
 0x682   : > { %v21976_v27 = vpack.c.bf16 %v516_v8, %v509_v16  ;;  %v523_v10 = vand.u32 4294901760, %v522_v7  ;;  %v6685_v16 = vand.u32 4294901760, %v6658_v61  ;;  %v6659_v8 = vld [vmem:[#allocation4 + $0x4b0] sm:$0xff]  ;;  %v6662_v7 = vld [vmem:[#allocation4 + $0x4c8] sm:$0xff] }
 0x683   : > { %v6697_v20 = vand.u32 4294901760, %v6662_v7 }
 0x684   : > { %23607 = vmatpush3.bf16.msra.mxu0 %v23604_v32  ;;  %21977 = vmatprep.subr.bf16.mxu1 %v21976_v27  ;;  %v21980_v31 = vpack.c.bf16 %v530_v38, %v523_v10  ;;  %v537_v32 = vand.u32 4294901760, %v536_v5  ;;  %v29203_v10 = vld [vmem:[#allocation4 + $0x4d8] sm:$0xff]  ;;  %v29206_v38 = vld [vmem:[#allocation4 + $0x4e0] sm:$0xff]  ;;  %v6700_v5 = vand.u32 4294901760, %v29201_v25 }
 0x685   : > { %23609 = vmatprep.subr.bf16.mxu0 %v23608_v48  ;;  %21979 = vmatpush3.bf16.msra.mxu1 %v21976_v27  ;;  %v29194_v27 = vpack.c.bf16 %v6685_v16, %v6682_v24  ;;  %v29216_v29 = vpack.c.bf16 %v6697_v20, %v6694_v39  ;;  %v6703_v58 = vand.u32 4294901760, %v29203_v10  ;;  %v6706_v18 = vand.u32 4294901760, %v29206_v38 }
 0x686   : > { %21981 = vmatprep.subr.bf16.mxu1 %v21980_v31  ;;  %v21984_v35 = vpack.c.bf16 %v544_v19, %v537_v32  ;;  %v29222_v32 = vand.u32 4294901760, %v6651_v54 }
 0x688   : > { %23611 = vmatpush3.bf16.msra.mxu0 %v23608_v48  ;;  %v21988_v48 = vpack.c.bf16 %v558_v17, %v551_v12  ;;  %v29245_v46 = vsub.f32 %v6651_v54, %v29222_v32  ;;  %v6715_v17 = vand.u32 4294901760, %v29232_v34 }
 0x689   : > { %23613 = vmatprep.subr.bf16.mxu0 %v23612_v47  ;;  %21983 = vmatpush3.bf16.msra.mxu1 %v21980_v31 }
 0x68a   : > { %21985 = vmatprep.subr.bf16.mxu1 %v21984_v35 }
 0x68c   : > { %23615 = vmatpush3.bf16.msra.mxu0 %v23612_v47  ;;  %v6660_v47 = vld [vmem:[#allocation4 + $0x4b8] sm:$0xff] }
 0x68d   : > { %23617 = vmatprep.subr.bf16.mxu0 %v23616_v11  ;;  %21987 = vmatpush3.bf16.msra.mxu1 %v21984_v35  ;;  %v6691_v60 = vand.u32 4294901760, %v6660_v47  ;;  %v29228_v35 = vpack.c.bf16 %v6703_v58, %v6700_v5 }
 0x68e   : > { %21989 = vmatprep.subr.bf16.mxu1 %v21988_v48 }
 0x690   : > { %23619 = vmatpush3.bf16.msra.mxu0 %v23616_v11  ;;  %v29208_v11 = vld [vmem:[#allocation4 + $0x4e8] sm:$0xff] }
 0x691   : > { %23621 = vmatprep.subr.bf16.mxu0 %v23620_v43  ;;  %21991 = vmatpush3.bf16.msra.mxu1 %v21988_v48  ;;  %v6709_v26 = vand.u32 4294901760, %v29208_v11 }
 0x692   : > { %21993 = vmatprep.subr.bf16.mxu1 %v21992_v3 }
 0x693   : > { %v29242_v9 = vpack.c.bf16 %v6709_v26, %v6706_v18 }
 0x694   : > { %23623 = vmatpush3.bf16.msra.mxu0 %v23620_v43  ;;  %17586 = vmatmul.mubr.f32.vlgmr.msra.gmra.mrb[0].mxu1 %v33001_v13 }
 0x695   : > { %23625 = vmatprep.subr.bf16.mxu0 %v28832_v56  ;;  %21995 = vmatpush3.bf16.msra.mxu1 %v21992_v3 }
 0x696   : > { %17620 = vmatprep.mubr.f32.mxu1 %v26633_v23  ;;  %21997 = vmatprep.subr.bf16.mxu1 %v21996_v28  ;;  %v29161_v23 = vand.u32 4294901760, %v6650_v50 }
 0x697   : > { %19371 = vmatmul.mubr.f32.vlgmr.msra.gmra.mrb[0].mxu0 %v28868_v42 }
 0x698   : > { %23627 = vmatpush3.bf16.msra.mxu0 %v28832_v56  ;;  %19405 = vmatprep.mubr.f32.mxu0 %v28816_v37  ;;  %v29168_v53 = vsub.f32 %v6650_v50, %v29161_v23  ;;  %v6670_v37 = vand.u32 4294901760, %v6653_v62  ;;  %v6673_v56 = vand.u32 4294901760, %v6654_v63  ;;  %v6762_v50 = vand.u32 4294901760, %v29245_v46 }
 0x699   : > { %23629 = vmatprep.subr.bf16.mxu0 %v28836_v14  ;;  %21999 = vmatpush3.bf16.msra.mxu1 %v21996_v28 }
 0x69a   : > { %22001 = vmatprep.subr.bf16.mxu1 %v22000_v44  ;;  %v6752_v0 = vand.u32 4294901760, %v29168_v53  ;;  %v29210_v31 = vsub.f32 %v6653_v62, %v6670_v37 }
 0x69c   : > { %23631 = vmatpush3.bf16.msra.mxu0 %v28836_v14  ;;  %v6655_v14 = vld [vmem:[#allocation4 + $0x490] sm:$0xff]  ;;  %v6773_v19 = vand.u32 4294901760, %v29210_v31 }
 0x69d   : > { %23633 = vmatprep.subr.bf16.mxu0 %v28841_v59  ;;  %22003 = vmatpush3.bf16.msra.mxu1 %v22000_v44  ;;  %v6676_v21 = vand.u32 4294901760, %v6655_v14  ;;  %v29259_v44 = vsub.f32 %v6657_v2, %v6682_v24  ;;  %v29290_v2 = vsub.f32 %v6661_v40, %v6694_v39  ;;  %v29311_v39 = vsub.f32 %v29201_v25, %v6700_v5 }
 0x69e   : > { %22005 = vmatprep.subr.bf16.mxu1 %v22004_v45  ;;  %v6774_v48 = vsub.f32 %v29210_v31, %v6773_v19 }
 0x69f   : > { %v29234_v6 = vsub.f32 %v6655_v14, %v6676_v21  ;;  %v6801_v14 = vand.u32 4294901760, %v29259_v44  ;;  %v6829_v40 = vand.u32 4294901760, %v29290_v2  ;;  %v6843_v5 = vand.u32 4294901760, %v29311_v39 }
 0x6a0   : > { %23635 = vmatpush3.bf16.msra.mxu0 %v28841_v59  ;;  %v6656_v59 = vld [vmem:[#allocation4 + $0x498] sm:$0xff] }
 0x6a1   : > { %23637 = vmatprep.subr.bf16.mxu0 %v28845_v30  ;;  %22007 = vmatpush3.bf16.msra.mxu1 %v22004_v45  ;;  %v6679_v33 = vand.u32 4294901760, %v6656_v59  ;;  %v6787_v28 = vand.u32 4294901760, %v29234_v6  ;;  %v29261_v45 = vsub.f32 %v6658_v61, %v6685_v16  ;;  %v29292_v61 = vsub.f32 %v6662_v7, %v6697_v20 }
 0x6a2   : > { %22009 = vmatprep.subr.bf16.mxu1 %v22008_v51  ;;  %v6802_v16 = vsub.f32 %v29259_v44, %v6801_v14  ;;  %v29314_v20 = vsub.f32 %v29203_v10, %v6703_v58 }
 0x6a3   : > { %v29189_v55 = vpack.c.bf16 %v6679_v33, %v6676_v21  ;;  %v6836_v7 = vand.u32 4294901760, %v29292_v61 }
 0x6a4   : > { %23639 = vmatpush3.bf16.msra.mxu0 %v28845_v30  ;;  %v6753_v30 = vsub.f32 %v29168_v53, %v6752_v0  ;;  %v6850_v10 = vand.u32 4294901760, %v29314_v20 }
 0x6a5   : > { %23641 = vmatprep.subr.bf16.mxu0 %v28862_v15  ;;  %22011 = vmatpush3.bf16.msra.mxu1 %v22008_v51  ;;  %v6837_v25 = vsub.f32 %v29292_v61, %v6836_v7 }
 0x6a6   : > { %22013 = vmatprep.subr.bf16.mxu1 %v22012_v57 }
 0x6a8   : > { %23643 = vmatpush3.bf16.msra.mxu0 %v28862_v15  ;;  %v22020_v15 = vpack.c.bf16 %v32999_v36, %v32997_v41  ;;  %v29230_v41 = vld [vmem:[#allocation4 + $0x4f0] sm:$0xff]  ;;  %v29236_v36 = vsub.f32 %v6656_v59, %v6679_v33  ;;  %v6808_v59 = vand.u32 4294901760, %v29261_v45 }
 0x6a9   : > { %23645 = vmatprep.subr.bf16.mxu0 %v28874_v22  ;;  %22015 = vmatpush3.bf16.msra.mxu1 %v22012_v57  ;;  %v6712_v12 = vand.u32 4294901760, %v29230_v41  ;;  %v29266_v57 = vsub.f32 %v6660_v47, %v6691_v60 }
 0x6aa   : > { %22017 = vmatprep.subr.bf16.mxu1 %v22016_v4  ;;  %v6794_v13 = vand.u32 4294901760, %v29236_v36 }
 0x6ab   : > { %v29273_v62 = vpack.c.bf16 %v6715_v17, %v6712_v12  ;;  %v6822_v21 = vand.u32 4294901760, %v29266_v57 }
 0x6ac   : > { %23647 = vmatpush3.bf16.msra.mxu0 %v28874_v22  ;;  %v29185_v22 = vpack.c.bf16 %v6673_v56, %v6670_v37  ;;  %v6788_v37 = vsub.f32 %v29234_v6, %v6787_v28 }
 0x6ad   : > { %23649 = vmatprep.subr.bf16.mxu0 %v28888_v1  ;;  %22019 = vmatpush3.bf16.msra.mxu1 %v22016_v4 }
 0x6ae   : > { %22021 = vmatprep.subr.bf16.mxu1 %v22020_v15 }
 0x6b0   : > { %23651 = vmatpush3.bf16.msra.mxu0 %v28888_v1  ;;  %v6754_v1 = vand.u32 4294901760, %v6753_v30  ;;  %v6763_v30 = vsub.f32 %v29245_v46, %v6762_v50 }
 0x6b1   : > { %23653 = vmatprep.subr.bf16.mxu0 %v28919_v49  ;;  %22023 = vmatpush3.bf16.msra.mxu1 %v22020_v15 }
 0x6b2   : > { %v6764_v47 = vand.u32 4294901760, %v6763_v30  ;;  %v29333_v30 = vsub.f32 %v29208_v11, %v6709_v26  ;;  %v29346_v11 = vsub.f32 %v29230_v41, %v6712_v12  ;;  %v29351_v26 = vsub.f32 %v29232_v34, %v6715_v17 }
 0x6b4   : > { %23655 = vmatpush3.bf16.msra.mxu0 %v28919_v49  ;;  %v6688_v49 = vand.u32 4294901760, %v6659_v8  ;;  %17621 = vmatmul.mubr.f32.vlgmr.msra.gmra.mrb[0].mxu1 %v26733_v52  ;;  %v29212_v52 = vsub.f32 %v6654_v63, %v6673_v56  ;;  %v6775_v63 = vand.u32 4294901760, %v6774_v48  ;;  %v6795_v56 = vsub.f32 %v29236_v36, %v6794_v13 }
 0x6b5   : > { %23657 = vmatprep.subr.bf16.mxu0 %v29185_v22  ;;  %v6803_v48 = vand.u32 4294901760, %v6802_v16  ;;  %v6844_v16 = vsub.f32 %v29311_v39, %v6843_v5  ;;  %v6871_v41 = vand.u32 4294901760, %v29346_v11  ;;  %v6878_v12 = vand.u32 4294901760, %v29351_v26 }
 0x6b6   : > { %v6780_v43 = vand.u32 4294901760, %v29212_v52  ;;  %v29264_v51 = vsub.f32 %v6659_v8, %v6688_v49  ;;  %v6796_v24 = vand.u32 4294901760, %v6795_v56  ;;  %v6809_v8 = vsub.f32 %v29261_v45, %v6808_v59 }
 0x6b7   : > { %19406 = vmatmul.mubr.f32.vlgmr.msra.gmra.mrb[0].mxu0 %v28868_v42  ;;  %v29199_v42 = vpack.c.bf16 %v6691_v60, %v6688_v49  ;;  %v6823_v60 = vsub.f32 %v29266_v57, %v6822_v21  ;;  %v29328_v56 = vsub.f32 %v29206_v38, %v6706_v18  ;;  %v6864_v18 = vand.u32 4294901760, %v29333_v30 }
 0x6b8   : > { %23659 = vmatpush3.bf16.msra.mxu0 %v29185_v22  ;;  %19440 = vmatprep.mubr.f32.mxu0 %v6754_v1  ;;  %v6781_v3 = vsub.f32 %v29212_v52, %v6780_v43  ;;  %v6815_v15 = vand.u32 4294901760, %v29264_v51  ;;  %v6789_v1 = vand.u32 4294901760, %v6788_v37  ;;  %v6830_v37 = vsub.f32 %v29290_v2, %v6829_v40 }
 0x6b9   : > { %23661 = vmatprep.subr.bf16.mxu0 %v29189_v55  ;;  %v6857_v38 = vand.u32 4294901760, %v29328_v56 }
 0x6ba   : > { %v6782_v4 = vand.u32 4294901760, %v6781_v3  ;;  %v6816_v49 = vsub.f32 %v29264_v51, %v6815_v15  ;;  %v23692_v54 = vpack.c.bf16 %v6796_v24, %v6789_v1  ;;  %v6810_v3 = vand.u32 4294901760, %v6809_v8 }
 0x6bb   : > { %v6831_v1 = vand.u32 4294901760, %v6830_v37  ;;  %v6838_v24 = vand.u32 4294901760, %v6837_v25  ;;  %v6851_v8 = vsub.f32 %v29314_v20, %v6850_v10 }
 0x6bc   : > { %23663 = vmatpush3.bf16.msra.mxu0 %v29189_v55  ;;  %v23688_v33 = vpack.c.bf16 %v6782_v4, %v6775_v63  ;;  %v6817_v63 = vand.u32 4294901760, %v6816_v49  ;;  %v6824_v4 = vand.u32 4294901760, %v6823_v60  ;;  %v23696_v58 = vpack.c.bf16 %v6810_v3, %v6803_v48 }
 0x6bd   : > { %23665 = vmatprep.subr.bf16.mxu0 %v29194_v27  ;;  %v6845_v49 = vand.u32 4294901760, %v6844_v16  ;;  %v6852_v60 = vand.u32 4294901760, %v6851_v8  ;;  %v6865_v48 = vsub.f32 %v29333_v30, %v6864_v18  ;;  %v23728_v16 = vpack.c.bf16 %v29261_v45, %v29259_v44  ;;  %v7401_v45 = vld [vmem:[#allocation7 + $0xc0] sm:$0xff] }
 0x6be   : > { %v23732_v8 = vpack.c.bf16 %v29266_v57, %v29264_v51  ;;  %v7434_v51 = vand.u32 4294901760, %v7401_v45 }
 0x6bf   : > { %v23708_v34 = vpack.c.bf16 %v6852_v60, %v6845_v49  ;;  %v6866_v3 = vand.u32 4294901760, %v6865_v48  ;;  %v23740_v49 = vpack.c.bf16 %v29314_v20, %v29311_v39  ;;  %v23744_v60 = vpack.c.bf16 %v29333_v30, %v29328_v56  ;;  %v29385_v48 = vld [vmem:[#allocation7 + $0x80] sm:$0xff]  ;;  %v29505_v39 = vld [vmem:[#allocation7 + $0xf8] sm:$0xff] }
 0x6c0   : > { %23667 = vmatpush3.bf16.msra.mxu0 %v29194_v27  ;;  %v7455_v30 = vand.u32 4294901760, %v29505_v39 }
 0x6c1   : > { %23669 = vmatprep.subr.bf16.mxu0 %v29199_v42 }
 0x6c4   : > { %23671 = vmatpush3.bf16.msra.mxu0 %v29199_v42 }
 0x6c5   : > { %23673 = vmatprep.subr.bf16.mxu0 %v29216_v29 }
 0x6c8   : > { %23675 = vmatpush3.bf16.msra.mxu0 %v29216_v29 }
 0x6c9   : > { %23677 = vmatprep.subr.bf16.mxu0 %v29228_v35 }
 0x6cc   : > { %23679 = vmatpush3.bf16.msra.mxu0 %v29228_v35 }
 0x6cd   : > { %23681 = vmatprep.subr.bf16.mxu0 %v29242_v9 }
 0x6d0   : > { %23683 = vmatpush3.bf16.msra.mxu0 %v29242_v9 }
 0x6d1   : > { %23685 = vmatprep.subr.bf16.mxu0 %v29273_v62 }
 0x6d4   : > { %23687 = vmatpush3.bf16.msra.mxu0 %v29273_v62 }
 0x6d5   : > { %23689 = vmatprep.subr.bf16.mxu0 %v23688_v33 }
 0x6d7   : > { %19441 = vmatmul.mubr.f32.vlgmr.msra.gmra.mrb[0].mxu0 %v6764_v47  ;;  %v23704_v47 = vpack.c.bf16 %v6838_v24, %v6831_v1  ;;  %v23720_v1 = vpack.c.bf16 %v29212_v52, %v29210_v31  ;;  %v23724_v24 = vpack.c.bf16 %v29236_v36, %v29234_v6  ;;  %v23792_v31 = vpack.c.bf16 %v6808_v59, %v6801_v14  ;;  %v7403_v14 = vld [vmem:[#allocation7 + $0xd0] sm:$0xff]  ;;  %v7404_v59 = vld [vmem:[#allocation7 + $0xd8] sm:$0xff] }
 0x6d8   : > { %23691 = vmatpush3.bf16.msra.mxu0 %v23688_v33  ;;  %19475 = vmatprep.mubr.f32.mxu0 %v29161_v23  ;;  %v23700_v33 = vpack.c.bf16 %v6824_v4, %v6817_v63  ;;  %v6872_v63 = vsub.f32 %v29346_v11, %v6871_v41  ;;  %v6879_v4 = vsub.f32 %v29351_v26, %v6878_v12 }
 0x6d9   : > { %23693 = vmatprep.subr.bf16.mxu0 %v23692_v54  ;;  %v23796_v52 = vpack.c.bf16 %v6822_v21, %v6815_v15  ;;  %v23808_v6 = vpack.c.bf16 %v6864_v18, %v6857_v38  ;;  %v23812_v36 = vpack.c.bf16 %v6878_v12, %v6871_v41  ;;  %v29500_v15 = vld [vmem:[#allocation7 + $0xe0] sm:$0xff]  ;;  %v7440_v21 = vand.u32 4294901760, %v7403_v14 }
 0x6da   : > { %v6873_v25 = vand.u32 4294901760, %v6872_v63 }
 0x6dc   : > { %23695 = vmatpush3.bf16.msra.mxu0 %v23692_v54  ;;  %v6858_v54 = vsub.f32 %v29328_v56, %v6857_v38 }
 0x6dd   : > { %23697 = vmatprep.subr.bf16.mxu0 %v23696_v58 }
 0x6de   : > { %v6859_v17 = vand.u32 4294901760, %v6858_v54  ;;  %v23748_v54 = vpack.c.bf16 %v29351_v26, %v29346_v11 }
 0x6e0   : > { %23699 = vmatpush3.bf16.msra.mxu0 %v23696_v58  ;;  %v23712_v37 = vpack.c.bf16 %v6866_v3, %v6859_v17  ;;  %v6880_v58 = vand.u32 4294901760, %v6879_v4  ;;  %v29389_v17 = vld [vmem:[#allocation7 + $0x90] sm:$0xff]  ;;  %v7410_v3 = vand.u32 4294901760, %v29385_v48  ;;  %v29393_v4 = vld [vmem:[#allocation7 + $0x98] sm:$0xff] }
 0x6e1   : > { %23701 = vmatprep.subr.bf16.mxu0 %v23700_v33 }
 0x6e2   : > { %v29523_v18 = vsub.f32 %v29385_v48, %v7410_v3 }
 0x6e4   : > { %23703 = vmatpush3.bf16.msra.mxu0 %v23700_v33  ;;  %v23716_v33 = vpack.c.bf16 %v6880_v58, %v6873_v25  ;;  %v7419_v25 = vand.u32 4294901760, %v29393_v4  ;;  %v7513_v26 = vand.u32 4294901760, %v29523_v18 }
 0x6e5   : > { %23705 = vmatprep.subr.bf16.mxu0 %v23704_v47 }
 0x6e6   : > { %v7514_v12 = vsub.f32 %v29523_v18, %v7513_v26 }
 0x6e8   : > { %23707 = vmatpush3.bf16.msra.mxu0 %v23704_v47  ;;  %v23736_v47 = vpack.c.bf16 %v29292_v61, %v29290_v2  ;;  %v7443_v2 = vand.u32 4294901760, %v7404_v59  ;;  %v7406_v61 = vld [vmem:[#allocation7 + $0xe8] sm:$0xff] }
 0x6e9   : > { %23709 = vmatprep.subr.bf16.mxu0 %v23708_v34  ;;  %v7449_v20 = vand.u32 4294901760, %v7406_v61 }
 0x6ec   : > { %23711 = vmatpush3.bf16.msra.mxu0 %v23708_v34  ;;  %v29387_v34 = vld [vmem:[#allocation7 + $0x88] sm:$0xff] }
 0x6ed   : > { %23713 = vmatprep.subr.bf16.mxu0 %v23712_v37  ;;  %v7413_v63 = vand.u32 4294901760, %v29387_v34 }
 0x6ef   : > { %v29401_v58 = vpack.c.bf16 %v7413_v63, %v7410_v3  ;;  %v29528_v11 = vsub.f32 %v29387_v34, %v7413_v63 }
 0x6f0   : > { %23715 = vmatpush3.bf16.msra.mxu0 %v23712_v37  ;;  %v7416_v37 = vand.u32 4294901760, %v29389_v17 }
 0x6f1   : > { %23717 = vmatprep.subr.bf16.mxu0 %v23716_v33  ;;  %23849 = vmatprep.subr.bf16.mxu1 %v29401_v58  ;;  %v7520_v41 = vand.u32 4294901760, %v29528_v11 }
 0x6f2   : > { %23851 = vmatpush3.bf16.msra.mxu1 %v29401_v58 }
 0x6f4   : > { %23719 = vmatpush3.bf16.msra.mxu0 %v23716_v33  ;;  %v29407_v33 = vpack.c.bf16 %v7419_v25, %v7416_v37 }
 0x6f5   : > { %23721 = vmatprep.subr.bf16.mxu0 %v23720_v1 }
 0x6f6   : > { %23853 = vmatprep.subr.bf16.mxu1 %v29407_v33 }
 0x6f7   : > { %19476 = vmatmul.mubr.f32.vlgmr.msra.gmra.mrb[0].mxu0 %v29222_v32  ;;  %23855 = vmatpush3.bf16.msra.mxu1 %v29407_v33 }
 0x6f8   : > { %23723 = vmatpush3.bf16.msra.mxu0 %v23720_v1  ;;  %19510 = vmatprep.mubr.f32.mxu0 %v29168_v53  ;;  %v23784_v53 = vpack.c.bf16 %v6780_v43, %v6773_v19  ;;  %v23800_v19 = vpack.c.bf16 %v6836_v7, %v6829_v40  ;;  %v23804_v43 = vpack.c.bf16 %v6850_v10, %v6843_v5  ;;  %v7446_v40 = vand.u32 4294901760, %v29500_v15  ;;  %v29503_v7 = vld [vmem:[#allocation7 + $0xf0] sm:$0xff] }
 0x6f9   : > { %23725 = vmatprep.subr.bf16.mxu0 %v23724_v24  ;;  %v29509_v5 = vpack.c.bf16 %v7443_v2, %v7440_v21  ;;  %v7452_v56 = vand.u32 4294901760, %v29503_v7  ;;  %v7521_v1 = vsub.f32 %v29528_v11, %v7520_v41 }
 0x6fa   : > { %v29511_v10 = vpack.c.bf16 %v7449_v20, %v7446_v40 }
 0x6fb   : > { %v29518_v38 = vpack.c.bf16 %v7455_v30, %v7452_v56 }
 0x6fc   : > { %23727 = vmatpush3.bf16.msra.mxu0 %v23724_v24  ;;  %v7515_v24 = vand.u32 4294901760, %v7514_v12 }
 0x6fd   : > { %23729 = vmatprep.subr.bf16.mxu0 %v23728_v16 }
 0x700   : > { %23731 = vmatpush3.bf16.msra.mxu0 %v23728_v16  ;;  %v7522_v16 = vand.u32 4294901760, %v7521_v1 }
 0x701   : > { %23733 = vmatprep.subr.bf16.mxu0 %v23732_v8 }
 0x704   : > { %23735 = vmatpush3.bf16.msra.mxu0 %v23732_v8  ;;  %v29541_v8 = vpack.c.bf16 %v7522_v16, %v7515_v24 }
 0x705   : > { %23737 = vmatprep.subr.bf16.mxu0 %v23736_v47 }
 0x708   : > { %23739 = vmatpush3.bf16.msra.mxu0 %v23736_v47 }
 0x709   : > { %23741 = vmatprep.subr.bf16.mxu0 %v23740_v49 }
 0x70c   : > { %23743 = vmatpush3.bf16.msra.mxu0 %v23740_v49 }
 0x70d   : > { %23745 = vmatprep.subr.bf16.mxu0 %v23744_v60 }
 0x710   : > { %23747 = vmatpush3.bf16.msra.mxu0 %v23744_v60 }
 0x711   : > { %23749 = vmatprep.subr.bf16.mxu0 %v23748_v54 }
 0x714   : > { %23751 = vmatpush3.bf16.msra.mxu0 %v23748_v54 }
 0x715   : > { %23753 = vmatprep.subr.bf16.mxu0 %v29185_v22 }
 0x717   : > { %19511 = vmatmul.mubr.f32.vlgmr.msra.gmra.mrb[0].mxu0 %v29245_v46 }
 0x718   : > { %23755 = vmatpush3.bf16.msra.mxu0 %v29185_v22  ;;  %19545 = vmatprep.mubr.f32.mxu0 %v6752_v0  ;;  %v23788_v0 = vpack.c.bf16 %v6794_v13, %v6787_v28  ;;  %v7400_v28 = vld [vmem:[#allocation7 + $0xb8] sm:$0xff]  ;;  %v26405_v13 = vmov 0.0  }
 0x719   : > { %23757 = vmatprep.subr.bf16.mxu0 %v29189_v55  ;;  %7356 = vst [vmem:[#allocation2 + $0x8] sm:$0xff] %v26405_v13  ;;  %7357 = vst [vmem:[#allocation2 + $0x10] sm:$0xff] %v26405_v13 }
 0x71a   : > { %7358 = vst [vmem:[#allocation2 + $0x18] sm:$0xff] %v26405_v13  ;;  %7355 = vst [vmem:[#allocation2] sm:$0xff] %v26405_v13 }
 0x71c   : > { %23759 = vmatpush3.bf16.msra.mxu0 %v29189_v55 }
 0x71d   : > { %23761 = vmatprep.subr.bf16.mxu0 %v29194_v27 }
 0x720   : > { %23763 = vmatpush3.bf16.msra.mxu0 %v29194_v27 }
 0x721   : > { %23765 = vmatprep.subr.bf16.mxu0 %v29199_v42 }
 0x724   : > { %23767 = vmatpush3.bf16.msra.mxu0 %v29199_v42 }
 0x725   : > { %23769 = vmatprep.subr.bf16.mxu0 %v29216_v29 }
 0x728   : > { %23771 = vmatpush3.bf16.msra.mxu0 %v29216_v29 }
 0x729   : > { %23773 = vmatprep.subr.bf16.mxu0 %v29228_v35 }
 0x72c   : > { %23775 = vmatpush3.bf16.msra.mxu0 %v29228_v35 }
 0x72d   : > { %23777 = vmatprep.subr.bf16.mxu0 %v29242_v9 }
 0x730   : > { %23779 = vmatpush3.bf16.msra.mxu0 %v29242_v9 }
 0x731   : > { %23781 = vmatprep.subr.bf16.mxu0 %v29273_v62 }
 0x734   : > { %23783 = vmatpush3.bf16.msra.mxu0 %v29273_v62 }
 0x735   : > { %23785 = vmatprep.subr.bf16.mxu0 %v23784_v53 }
 0x737   : > { %19546 = vmatmul.mubr.f32.vlgmr.msra.gmra.mrb[0].mxu0 %v6762_v50  ;;  %v7402_v50 = vld [vmem:[#allocation7 + $0xc8] sm:$0xff] }
 0x738   : > { %23787 = vmatpush3.bf16.msra.mxu0 %v23784_v53  ;;  %19580 = vmatprep.mubr.f32.mxu0 %v29161_v23  ;;  %v7437_v57 = vand.u32 4294901760, %v7402_v50 }
 0x739   : > { %23789 = vmatprep.subr.bf16.mxu0 %v23788_v0 }
 0x73c   : > { %23791 = vmatpush3.bf16.msra.mxu0 %v23788_v0 }
 0x73d   : > { %23793 = vmatprep.subr.bf16.mxu0 %v23792_v31 }
 0x740   : > { %23795 = vmatpush3.bf16.msra.mxu0 %v23792_v31 }
 0x741   : > { %23797 = vmatprep.subr.bf16.mxu0 %v23796_v52 }
 0x744   : > { %23799 = vmatpush3.bf16.msra.mxu0 %v23796_v52 }
 0x745   : > { %23801 = vmatprep.subr.bf16.mxu0 %v23800_v19 }
 0x748   : > { %23803 = vmatpush3.bf16.msra.mxu0 %v23800_v19 }
 0x749   : > { %23805 = vmatprep.subr.bf16.mxu0 %v23804_v43 }
 0x74c   : > { %23807 = vmatpush3.bf16.msra.mxu0 %v23804_v43 }
 0x74d   : > { %23809 = vmatprep.subr.bf16.mxu0 %v23808_v6 }
 0x750   : > { %23811 = vmatpush3.bf16.msra.mxu0 %v23808_v6  ;;  %v29567_v6 = vsub.f32 %v7401_v45, %v7434_v51 }
 0x751   : > { %23813 = vmatprep.subr.bf16.mxu0 %v23812_v36 }
 0x754   : > { %23815 = vmatpush3.bf16.msra.mxu0 %v23812_v36  ;;  %v29569_v36 = vsub.f32 %v7402_v50, %v7437_v57 }
 0x755   : > { %23817 = vmatprep.subr.bf16.mxu0 %v29185_v22 }
 0x757   : > { %19581 = vmatmul.mubr.f32.vlgmr.msra.gmra.mrb[0].mxu0 %v29222_v32 }
 0x758   : > { %23819 = vmatpush3.bf16.msra.mxu0 %v29185_v22  ;;  %19615 = vmatprep.mubr.f32.mxu0 %v29161_v23 }
 0x759   : > { %23821 = vmatprep.subr.bf16.mxu0 %v29189_v55 }
 0x75c   : > { %23823 = vmatpush3.bf16.msra.mxu0 %v29189_v55  ;;  %v7397_v55 = vld [vmem:[#allocation7 + $0xa0] sm:$0xff] }
 0x75d   : > { %23825 = vmatprep.subr.bf16.mxu0 %v29194_v27 }
 0x760   : > { %23827 = vmatpush3.bf16.msra.mxu0 %v29194_v27  ;;  %v7398_v27 = vld [vmem:[#allocation7 + $0xa8] sm:$0xff] }
 0x761   : > { %23829 = vmatprep.subr.bf16.mxu0 %v29199_v42 }
 0x764   : > { %23831 = vmatpush3.bf16.msra.mxu0 %v29199_v42  ;;  %v7422_v42 = vand.u32 4294901760, %v7397_v55 }
 0x765   : > { %23833 = vmatprep.subr.bf16.mxu0 %v29216_v29 }
 0x766   : > { %v29543_v47 = vsub.f32 %v7397_v55, %v7422_v42 }
 0x768   : > { %23835 = vmatpush3.bf16.msra.mxu0 %v29216_v29  ;;  %v7425_v29 = vand.u32 4294901760, %v7398_v27  ;;  %v7541_v60 = vand.u32 4294901760, %v29543_v47 }
 0x769   : > { %23837 = vmatprep.subr.bf16.mxu0 %v29228_v35 }
 0x76a   : > { %v29490_v46 = vpack.c.bf16 %v7425_v29, %v7422_v42  ;;  %v29545_v49 = vsub.f32 %v7398_v27, %v7425_v29  ;;  %v7542_v48 = vsub.f32 %v29543_v47, %v7541_v60  ;;  %v7569_v42 = vand.u32 4294901760, %v29567_v6 }
 0x76b   : > { %v32854_v29 = vand.u32 4294901760, %v29569_v36 }
 0x76c   : > { %23839 = vmatpush3.bf16.msra.mxu0 %v29228_v35  ;;  %v7399_v35 = vld [vmem:[#allocation7 + $0xb0] sm:$0xff]  ;;  %23857 = vmatprep.subr.bf16.mxu1 %v29490_v46  ;;  %v7548_v54 = vand.u32 4294901760, %v29545_v49  ;;  %v7543_v53 = vand.u32 4294901760, %v7542_v48 }
 0x76d   : > { %23841 = vmatprep.subr.bf16.mxu0 %v29242_v9  ;;  %23859 = vmatpush3.bf16.msra.mxu1 %v29490_v46  ;;  %v7577_v13 = vsub.f32 %v29569_v36, %v32854_v29 }
 0x76e   : > { %v7549_v34 = vsub.f32 %v29545_v49, %v7548_v54 }
 0x770   : > { %23843 = vmatpush3.bf16.msra.mxu0 %v29242_v9  ;;  %v7431_v9 = vand.u32 4294901760, %v7400_v28  ;;  %v7550_v0 = vand.u32 4294901760, %v7549_v34 }
 0x771   : > { %23845 = vmatprep.subr.bf16.mxu0 %v29273_v62 }
 0x772   : > { %v29558_v63 = vsub.f32 %v7400_v28, %v7431_v9  ;;  %v29562_v19 = vpack.c.bf16 %v7550_v0, %v7543_v53  ;;  %v7570_v28 = vsub.f32 %v29567_v6, %v7569_v42 }
 0x774   : > { %23847 = vmatpush3.bf16.msra.mxu0 %v29273_v62  ;;  %v29498_v62 = vpack.c.bf16 %v7437_v57, %v7434_v51  ;;  %v7562_v52 = vand.u32 4294901760, %v29558_v63  ;;  %v7571_v50 = vand.u32 4294901760, %v7570_v28  ;;  %v7578_v51 = vand.u32 4294901760, %v7577_v13 }
 0x775   : > { %v23912_v13 = vpack.c.bf16 %v29528_v11, %v29523_v18  ;;  %v23984_v18 = vpack.c.bf16 %v7548_v54, %v7541_v60 }
 0x776   : > { %v7563_v55 = vsub.f32 %v29558_v63, %v7562_v52  ;;  %v29590_v1 = vpack.c.bf16 %v7578_v51, %v7571_v50  ;;  %v29631_v50 = vpack.c.bf16 %v29545_v49, %v29543_v47 }
 0x777   : > { %19616 = vmatmul.mubr.f32.vlgmr.msra.gmra.mrb[0].mxu0 %v29222_v32  ;;  %v7428_v32 = vand.u32 4294901760, %v7399_v35 }
 0x779   : > { %v29494_v44 = vpack.c.bf16 %v7431_v9, %v7428_v32  ;;  %v29556_v3 = vsub.f32 %v7399_v35, %v7428_v32  ;;  %v7564_v35 = vand.u32 4294901760, %v7563_v55  ;;  %v29582_v32 = vsub.f32 %v7403_v14, %v7440_v21 }
 0x77a   : > { %v29584_v9 = vsub.f32 %v7404_v59, %v7443_v2  ;;  %v29599_v59 = vsub.f32 %v29500_v15, %v7446_v40  ;;  %v29601_v21 = vsub.f32 %v7406_v61, %v7449_v20  ;;  %v29614_v15 = vsub.f32 %v29505_v39, %v7455_v30 }
 0x77b   : > { %23861 = vmatprep.subr.bf16.mxu1 %v29494_v44  ;;  %v7555_v31 = vand.u32 4294901760, %v29556_v3  ;;  %v32853_v57 = vand.u32 4294901760, %v29582_v32  ;;  %v29635_v51 = vpack.c.bf16 %v29558_v63, %v29556_v3  ;;  %v33003_v47 = vand.u32 4294901760, %v29582_v32 }
 0x77c   : > { %23863 = vmatpush3.bf16.msra.mxu1 %v29494_v44  ;;  %v32852_v12 = vand.u32 4294901760, %v29584_v9  ;;  %v32851_v48 = vand.u32 4294901760, %v29599_v59  ;;  %v32850_v34 = vand.u32 4294901760, %v29601_v21  ;;  %v32848_v55 = vand.u32 4294901760, %v29614_v15 }
 0x77d   : > { %23865 = vmatprep.subr.bf16.mxu1 %v29498_v62  ;;  %v7556_v43 = vsub.f32 %v29556_v3, %v7555_v31  ;;  %v7584_v24 = vsub.f32 %v29582_v32, %v32853_v57  ;;  %v23988_v11 = vpack.c.bf16 %v7562_v52, %v7555_v31  ;;  %v33004_v49 = vand.u32 4294901760, %v29584_v9 }
 0x77e   : > { %v7591_v14 = vsub.f32 %v29584_v9, %v32852_v12  ;;  %v7598_v0 = vsub.f32 %v29599_v59, %v32851_v48  ;;  %v7605_v61 = vsub.f32 %v29601_v21, %v32850_v34  ;;  %v29666_v34 = vsub.f32 %v29393_v4, %v7419_v25 }
 0x77f   : > { %v7557_v27 = vand.u32 4294901760, %v7556_v43  ;;  %v7585_v2 = vand.u32 4294901760, %v7584_v24  ;;  %v29611_v43 = vsub.f32 %v29503_v7, %v7452_v56  ;;  %v7619_v7 = vsub.f32 %v29614_v15, %v32848_v55 }
 0x780   : > { %23867 = vmatpush3.bf16.msra.mxu1 %v29498_v62  ;;  %v7592_v16 = vand.u32 4294901760, %v7591_v14  ;;  %v7599_v40 = vand.u32 4294901760, %v7598_v0  ;;  %v29639_v24 = vpack.c.bf16 %v29569_v36, %v29567_v6  ;;  %v29643_v14 = vpack.c.bf16 %v29584_v9, %v29582_v32  ;;  %v7375_v32 = vld [vmem:[#allocation7 + $0x8] sm:$0xff] }
 0x781   : > { %23869 = vmatprep.subr.bf16.mxu1 %v29509_v5  ;;  %v29586_v45 = vpack.c.bf16 %v7564_v35, %v7557_v27  ;;  %v32849_v20 = vand.u32 4294901760, %v29611_v43  ;;  %v7606_v27 = vand.u32 4294901760, %v7605_v61  ;;  %v7620_v30 = vand.u32 4294901760, %v7619_v7  ;;  %v15242_v61 = vld [vmem:[%s32727_s2] ss:$0 sm:$0xff] }
 0x782   : > { %v29605_v53 = vpack.c.bf16 %v7592_v16, %v7585_v2  ;;  %v29647_v2 = vpack.c.bf16 %v29601_v21, %v29599_v59  ;;  %v29651_v16 = vpack.c.bf16 %v29614_v15, %v29611_v43  ;;  %v23996_v60 = vpack.c.bf16 %v33004_v49, %v33003_v47 }
 0x783   : > { %v7612_v35 = vsub.f32 %v29611_v43, %v32849_v20  ;;  %v23904_v39 = vpack.c.bf16 %v7606_v27, %v7599_v40  ;;  %v29661_v20 = vsub.f32 %v29389_v17, %v7416_v37  ;;  %v33005_v54 = vand.u32 4294901760, %v29599_v59  ;;  %v7378_v59 = vld [vmem:[#allocation7 + $0x20] sm:$0xff] }
 0x784   : > { %23871 = vmatpush3.bf16.msra.mxu1 %v29509_v5  ;;  %v33006_v3 = vand.u32 4294901760, %v29601_v21  ;;  %v33007_v31 = vand.u32 4294901760, %v29611_v43  ;;  %v33008_v52 = vand.u32 4294901760, %v29614_v15  ;;  %v8097_v9 = vand.u32 4294901760, %v7375_v32  ;;  %v7379_v21 = vld [vmem:[#allocation7 + $0x28] sm:$0xff]  ;;  %v7380_v43 = vld [vmem:[#allocation7 + $0x30] sm:$0xff] }
 0x785   : > { %23873 = vmatprep.subr.bf16.mxu1 %v29511_v10  ;;  %v7613_v56 = vand.u32 4294901760, %v7612_v35  ;;  %v7381_v15 = vld [vmem:[#allocation7 + $0x38] sm:$0xff] }
 0x786   : > { %v24000_v63 = vpack.c.bf16 %v33006_v3, %v33005_v54  ;;  %v24004_v6 = vpack.c.bf16 %v33008_v52, %v33007_v31 }
 0x787   : > { %v29486_v23 = vpop.f32.mrb[0].mxu1  ;;  %v23908_v28 = vpack.c.bf16 %v7620_v30, %v7613_v56 }
 0x788   : > { %v29488_v22 = vpop.f32.mrb[1].mxu1  ;;  %23875 = vmatpush3.bf16.msra.mxu1 %v29511_v10 }
 0x789   : > { %23877 = vmatprep.subr.bf16.mxu1 %v29518_v38 }
 0x78c   : > { %23879 = vmatpush3.bf16.msra.mxu1 %v29518_v38 }
 0x78d   : > { %23881 = vmatprep.subr.bf16.mxu1 %v29541_v8 }
 0x84a   : > { %v19617_v0 = vpop.f32.mrb[0].mxu0 }
 0x84b   : > { %v25960_v40 = vadd.f32 %v19617_v0, %v29486_v23  ;;  %v7343_v27 = vpop.f32.mrb[1].mxu0  ;;  %v7527_v23 = vand.u32 4294901760, %v29661_v20 }
 0x84c   : > { %v25961_v35 = vadd.f32 %v7343_v27, %v29488_v22  ;;  %v7534_v22 = vand.u32 4294901760, %v29666_v34 }
 0x84d   : > { %v7367_v7 = vadd.f32 %v25960_v40, %v15242_v61  ;;  %v7528_v17 = vsub.f32 %v29661_v20, %v7527_v23 }
 0x84e   : > { %v7366_v56 = vadd.f32 %v25961_v35, %v15242_v61  ;;  %v7535_v37 = vsub.f32 %v29666_v34, %v7534_v22 }
 0x84f   : > { %v7369_v30 = vmax.f32 %v7367_v7, 0.0  ;;  %v7529_v7 = vand.u32 4294901760, %v7528_v17 }
 0x850   : > { %v7368_v55 = vmax.f32 %v7366_v56, 0.0  ;;  %v7536_v56 = vand.u32 4294901760, %v7535_v37 }
 0x851   : > { %7371 = vst [vmem:[#allocation2 + $0xc] sm:$0xff] %v7369_v30 }
 0x852   : > { %7370 = vst [vmem:[#allocation2 + $0x4] sm:$0xff] %v7368_v55  ;;  %v23884_v29 = vpack.c.bf16 %v7536_v56, %v7529_v7  ;;  %v29834_v56 = vld [vmem:[#allocation7 + $0x70] sm:$0xff] }
 0x859   : > { %v7390_v0 = vld [vmem:[#allocation2 + $0x1] sm:$0xff]  ;;  %v7391_v61 = vld [vmem:[#allocation2 + $0x9] sm:$0xff] }
 0x85a   : > { %v29670_v40 = vand.u32 4294901760, %v7390_v0  ;;  %v29672_v27 = vand.u32 4294901760, %v7391_v61 }
 0x85c   : > { %v7491_v4 = vsub.f32 %v7390_v0, %v29670_v40  ;;  %v29682_v25 = vsub.f32 %v7391_v61, %v29672_v27  ;;  %v29817_v61 = vsub.f32 %v7375_v32, %v8097_v9 }
 0x85e   : > { %v7492_v55 = vand.u32 4294901760, %v7491_v4  ;;  %v7502_v35 = vand.u32 4294901760, %v29682_v25 }
 0x860   : > { %v7493_v30 = vsub.f32 %v7491_v4, %v7492_v55  ;;  %v7503_v48 = vsub.f32 %v29682_v25, %v7502_v35 }
 0x862   : > { %v7494_v12 = vand.u32 4294901760, %v7493_v30  ;;  %v7504_v57 = vand.u32 4294901760, %v7503_v48  ;;  %v29836_v30 = vld [vmem:[#allocation7 + $0x78] sm:$0xff] }
 0x864   : > { %19650 = vmatprep.mubr.f32.mxu1 %v7494_v12 }
 0x865   : > { %19651 = vmatmul.mubr.f32.vlgmr.msra.gmra.mrb[2].mxu1 %v7504_v57  ;;  %v7377_v57 = vld [vmem:[#allocation7 + $0x18] sm:$0xff] }
 0x866   : > { %23883 = vmatpush3.bf16.msra.mxu1 %v29541_v8  ;;  %19685 = vmatprep.mubr.f32.mxu1 %v29670_v40  ;;  %v23916_v8 = vpack.c.bf16 %v29666_v34, %v29661_v20  ;;  %v8106_v34 = vand.u32 4294901760, %v7378_v59 }
 0x867   : > { %23885 = vmatprep.subr.bf16.mxu1 %v23884_v29 }
 0x868   : > { %v29863_v54 = vsub.f32 %v7378_v59, %v8106_v34 }
 0x86a   : > { %23887 = vmatpush3.bf16.msra.mxu1 %v23884_v29  ;;  %v23980_v29 = vpack.c.bf16 %v7534_v22, %v7527_v23  ;;  %v29813_v23 = vld [vmem:[#allocation7 + $0x68] sm:$0xff] }
 0x86b   : > { %23889 = vmatprep.subr.bf16.mxu1 %v29562_v19  ;;  %v7373_v22 = vld [vmem:[#allocation2 + $0x8] sm:$0xff] }
 0x86e   : > { %23891 = vmatpush3.bf16.msra.mxu1 %v29562_v19  ;;  %v23976_v19 = vpack.c.bf16 %v7520_v41, %v7513_v26  ;;  %v33002_v26 = vand.u32 4294901760, %v29569_v36  ;;  %v7372_v36 = vld [vmem:[#allocation2] sm:$0xff] }
 0x86f   : > { %23893 = vmatprep.subr.bf16.mxu1 %v29586_v45 }
 0x870   : > { %v23992_v41 = vpack.c.bf16 %v33002_v26, %v7569_v42  ;;  %v29776_v42 = vand.u32 4294901760, %v7372_v36  ;;  %v8139_v26 = vand.u32 4294901760, %v29836_v30 }
 0x872   : > { %23895 = vmatpush3.bf16.msra.mxu1 %v29586_v45  ;;  %v7376_v45 = vld [vmem:[#allocation7 + $0x10] sm:$0xff] }
 0x873   : > { %23897 = vmatprep.subr.bf16.mxu1 %v29590_v1  ;;  %v8100_v12 = vand.u32 4294901760, %v7376_v45 }
 0x876   : > { %23899 = vmatpush3.bf16.msra.mxu1 %v29590_v1  ;;  %v8103_v1 = vand.u32 4294901760, %v7377_v57 }
 0x877   : > { %23901 = vmatprep.subr.bf16.mxu1 %v29605_v53 }
 0x878   : > { %v29795_v48 = vpack.c.bf16 %v8103_v1, %v8100_v12 }
 0x87a   : > { %23903 = vmatpush3.bf16.msra.mxu1 %v29605_v53 }
 0x87b   : > { %23905 = vmatprep.subr.bf16.mxu1 %v23904_v39 }
 0x87e   : > { %23907 = vmatpush3.bf16.msra.mxu1 %v23904_v39  ;;  %v8112_v39 = vand.u32 4294901760, %v7380_v43 }
 0x87f   : > { %23909 = vmatprep.subr.bf16.mxu1 %v23908_v28 }
 0x882   : > { %23911 = vmatpush3.bf16.msra.mxu1 %v23908_v28  ;;  %v7382_v28 = vld [vmem:[#allocation7 + $0x40] sm:$0xff] }
 0x883   : > { %23913 = vmatprep.subr.bf16.mxu1 %v23912_v13 }
 0x885   : > { %19686 = vmatmul.mubr.f32.vlgmr.msra.gmra.mrb[2].mxu1 %v29672_v27 }
 0x886   : > { %23915 = vmatpush3.bf16.msra.mxu1 %v23912_v13  ;;  %19720 = vmatprep.mubr.f32.mxu1 %v7491_v4  ;;  %v7383_v13 = vld [vmem:[#allocation7 + $0x48] sm:$0xff]  ;;  %v8133_v4 = vand.u32 4294901760, %v29813_v23 }
 0x887   : > { %23917 = vmatprep.subr.bf16.mxu1 %v23916_v8 }
 0x88a   : > { %23919 = vmatpush3.bf16.msra.mxu1 %v23916_v8  ;;  %v29838_v8 = vsub.f32 %v7376_v45, %v8100_v12 }
 0x88b   : > { %23921 = vmatprep.subr.bf16.mxu1 %v29631_v50 }
 0x88c   : > { %v8211_v49 = vand.u32 4294901760, %v29838_v8 }
 0x88e   : > { %23923 = vmatpush3.bf16.msra.mxu1 %v29631_v50  ;;  %v8212_v32 = vsub.f32 %v29838_v8, %v8211_v49 }
 0x88f   : > { %23925 = vmatprep.subr.bf16.mxu1 %v29635_v51 }
 0x892   : > { %23927 = vmatpush3.bf16.msra.mxu1 %v29635_v51  ;;  %v8118_v51 = vand.u32 4294901760, %v7382_v28 }
 0x893   : > { %23929 = vmatprep.subr.bf16.mxu1 %v29639_v24 }
 0x894   : > { %v29894_v59 = vsub.f32 %v7382_v28, %v8118_v51 }
 0x896   : > { %23931 = vmatpush3.bf16.msra.mxu1 %v29639_v24  ;;  %v8121_v24 = vand.u32 4294901760, %v7383_v13 }
 0x897   : > { %23933 = vmatprep.subr.bf16.mxu1 %v29643_v14 }
 0x89a   : > { %23935 = vmatpush3.bf16.msra.mxu1 %v29643_v14  ;;  %v29806_v14 = vld [vmem:[#allocation7 + $0x50] sm:$0xff] }
 0x89b   : > { %23937 = vmatprep.subr.bf16.mxu1 %v29647_v2 }
 0x89e   : > { %23939 = vmatpush3.bf16.msra.mxu1 %v29647_v2  ;;  %v29808_v2 = vld [vmem:[#allocation7 + $0x58] sm:$0xff] }
 0x89f   : > { %23941 = vmatprep.subr.bf16.mxu1 %v29651_v16  ;;  %v8127_v17 = vand.u32 4294901760, %v29808_v2 }
 0x8a2   : > { %23943 = vmatpush3.bf16.msra.mxu1 %v29651_v16  ;;  %v29811_v16 = vld [vmem:[#allocation7 + $0x60] sm:$0xff] }
 0x8a3   : > { %23945 = vmatprep.subr.bf16.mxu1 %v29401_v58  ;;  %v8130_v37 = vand.u32 4294901760, %v29811_v16 }
 0x8a5   : > { %19721 = vmatmul.mubr.f32.vlgmr.msra.gmra.mrb[2].mxu1 %v29682_v25  ;;  %v29826_v25 = vand.u32 4294901760, %v7373_v22 }
 0x8a6   : > { %23947 = vmatpush3.bf16.msra.mxu1 %v29401_v58  ;;  %19755 = vmatprep.mubr.f32.mxu1 %v7492_v55 }
 0x8a7   : > { %23949 = vmatprep.subr.bf16.mxu1 %v29407_v33 }
 0x8aa   : > { %23951 = vmatpush3.bf16.msra.mxu1 %v29407_v33 }
 0x8ab   : > { %23953 = vmatprep.subr.bf16.mxu1 %v29490_v46 }
 0x8ae   : > { %23955 = vmatpush3.bf16.msra.mxu1 %v29490_v46 }
 0x8af   : > { %23957 = vmatprep.subr.bf16.mxu1 %v29494_v44 }
 0x8b2   : > { %23959 = vmatpush3.bf16.msra.mxu1 %v29494_v44 }
 0x8b3   : > { %23961 = vmatprep.subr.bf16.mxu1 %v29498_v62 }
 0x8b6   : > { %23963 = vmatpush3.bf16.msra.mxu1 %v29498_v62 }
 0x8b7   : > { %23965 = vmatprep.subr.bf16.mxu1 %v29509_v5 }
 0x8ba   : > { %23967 = vmatpush3.bf16.msra.mxu1 %v29509_v5 }
 0x8bb   : > { %23969 = vmatprep.subr.bf16.mxu1 %v29511_v10 }
 0x8be   : > { %23971 = vmatpush3.bf16.msra.mxu1 %v29511_v10 }
 0x8bf   : > { %23973 = vmatprep.subr.bf16.mxu1 %v29518_v38 }
 0x8c2   : > { %23975 = vmatpush3.bf16.msra.mxu1 %v29518_v38 }
 0x8c3   : > { %23977 = vmatprep.subr.bf16.mxu1 %v23976_v19 }
 0x8c5   : > { %19756 = vmatmul.mubr.f32.vlgmr.msra.gmra.mrb[2].mxu1 %v7502_v35  ;;  %v8204_v35 = vand.u32 4294901760, %v29817_v61 }
 0x8c6   : > { %23979 = vmatpush3.bf16.msra.mxu1 %v23976_v19  ;;  %19790 = vmatprep.mubr.f32.mxu1 %v29670_v40  ;;  %v29840_v19 = vsub.f32 %v7377_v57, %v8103_v1 }
 0x8c7   : > { %23981 = vmatprep.subr.bf16.mxu1 %v23980_v29  ;;  %v8205_v47 = vsub.f32 %v29817_v61, %v8204_v35 }
 0x8ca   : > { %23983 = vmatpush3.bf16.msra.mxu1 %v23980_v29  ;;  %v29846_v29 = vpack.c.bf16 %v8133_v4, %v8130_v37 }
 0x8cb   : > { %23985 = vmatprep.subr.bf16.mxu1 %v23984_v18 }
 0x8ce   : > { %23987 = vmatpush3.bf16.msra.mxu1 %v23984_v18  ;;  %v29849_v18 = vsub.f32 %v7373_v22, %v29826_v25 }
 0x8cf   : > { %23989 = vmatprep.subr.bf16.mxu1 %v23988_v11 }
 0x8d2   : > { %23991 = vmatpush3.bf16.msra.mxu1 %v23988_v11  ;;  %v8136_v11 = vand.u32 4294901760, %v29834_v56 }
 0x8d3   : > { %23993 = vmatprep.subr.bf16.mxu1 %v23992_v41 }
 0x8d4   : > { %v29876_v52 = vpack.c.bf16 %v8139_v26, %v8136_v11 }
 0x8d6   : > { %23995 = vmatpush3.bf16.msra.mxu1 %v23992_v41 }
 0x8d7   : > { %23997 = vmatprep.subr.bf16.mxu1 %v23996_v60 }
 0x8da   : > { %23999 = vmatpush3.bf16.msra.mxu1 %v23996_v60  ;;  %v8218_v60 = vand.u32 4294901760, %v29840_v19 }
 0x8db   : > { %24001 = vmatprep.subr.bf16.mxu1 %v24000_v63 }
 0x8de   : > { %24003 = vmatpush3.bf16.msra.mxu1 %v24000_v63  ;;  %v29867_v63 = vsub.f32 %v7380_v43, %v8112_v39 }
 0x8df   : > { %24005 = vmatprep.subr.bf16.mxu1 %v24004_v6 }
 0x8e0   : > { %v8239_v57 = vand.u32 4294901760, %v29867_v63 }
 0x8e2   : > { %24007 = vmatpush3.bf16.msra.mxu1 %v24004_v6  ;;  %v8186_v6 = vand.u32 4294901760, %v29849_v18 }
 0x8e3   : > { %24009 = vmatprep.subr.bf16.mxu1 %v29401_v58 }
 0x8e4   : > { %v8187_v1 = vsub.f32 %v29849_v18, %v8186_v6 }
 0x8e5   : > { %19791 = vmatmul.mubr.f32.vlgmr.msra.gmra.mrb[2].mxu1 %v29672_v27 }
 0x8e6   : > { %24011 = vmatpush3.bf16.msra.mxu1 %v29401_v58  ;;  %19825 = vmatprep.mubr.f32.mxu1 %v29670_v40  ;;  %v7374_v58 = vld [vmem:[#allocation7] sm:$0xff]  ;;  %v29820_v40 = vpack.c.bf16 %v8121_v24, %v8118_v51  ;;  %v29918_v51 = vsub.f32 %v29808_v2, %v8127_v17 }
 0x8e7   : > { %24013 = vmatprep.subr.bf16.mxu1 %v29407_v33 }
 0x8ea   : > { %24015 = vmatpush3.bf16.msra.mxu1 %v29407_v33  ;;  %v29781_v33 = vsub.f32 %v7372_v36, %v29776_v42 }
 0x8eb   : > { %24017 = vmatprep.subr.bf16.mxu1 %v29490_v46 }
 0x8ee   : > { %24019 = vmatpush3.bf16.msra.mxu1 %v29490_v46  ;;  %v8094_v46 = vand.u32 4294901760, %v7374_v58 }
 0x8ef   : > { %24021 = vmatprep.subr.bf16.mxu1 %v29494_v44 }
 0x8f0   : > { %v29815_v0 = vsub.f32 %v7374_v58, %v8094_v46  ;;  %v8206_v58 = vand.u32 4294901760, %v8205_v47 }
 0x8f2   : > { %24023 = vmatpush3.bf16.msra.mxu1 %v29494_v44  ;;  %v8176_v44 = vand.u32 4294901760, %v29781_v33  ;;  %v8197_v55 = vand.u32 4294901760, %v29815_v0 }
 0x8f3   : > { %24025 = vmatprep.subr.bf16.mxu1 %v29498_v62 }
 0x8f4   : > { %v8198_v41 = vsub.f32 %v29815_v0, %v8197_v55 }
 0x8f6   : > { %24027 = vmatpush3.bf16.msra.mxu1 %v29498_v62  ;;  %v29788_v62 = vpack.c.bf16 %v8097_v9, %v8094_v46  ;;  %v8199_v36 = vand.u32 4294901760, %v8198_v41  ;;  %v8219_v46 = vsub.f32 %v29840_v19, %v8218_v60  ;;  %v8225_v9 = vand.u32 4294901760, %v29863_v54 }
 0x8f7   : > { %24029 = vmatprep.subr.bf16.mxu1 %v29509_v5 }
 0x8fa   : > { %24031 = vmatpush3.bf16.msra.mxu1 %v29509_v5  ;;  %v8177_v5 = vsub.f32 %v29781_v33, %v8176_v44 }
 0x8fb   : > { %24033 = vmatprep.subr.bf16.mxu1 %v29511_v10 }
 0x8fc   : > { %v8178_v53 = vand.u32 4294901760, %v8177_v5  ;;  %v24072_v5 = vpack.c.bf16 %v8206_v58, %v8199_v36 }
 0x8fe   : > { %24035 = vmatpush3.bf16.msra.mxu1 %v29511_v10  ;;  %v8109_v10 = vand.u32 4294901760, %v7379_v21 }
 0x8ff   : > { %24037 = vmatprep.subr.bf16.mxu1 %v29518_v38 }
 0x900   : > { %v29800_v20 = vpack.c.bf16 %v8109_v10, %v8106_v34  ;;  %v29865_v3 = vsub.f32 %v7379_v21, %v8109_v10  ;;  %v29896_v21 = vsub.f32 %v7383_v13, %v8121_v24  ;;  %v8213_v34 = vand.u32 4294901760, %v8212_v32 }
 0x901   : > { %v8220_v10 = vand.u32 4294901760, %v8219_v46  ;;  %v8188_v24 = vand.u32 4294901760, %v8187_v1  ;;  %v29932_v46 = vsub.f32 %v29811_v16, %v8130_v37  ;;  %v29937_v1 = vsub.f32 %v29813_v23, %v8133_v4 }
 0x902   : > { %24039 = vmatpush3.bf16.msra.mxu1 %v29518_v38  ;;  %v8115_v38 = vand.u32 4294901760, %v7381_v15  ;;  %v8232_v45 = vand.u32 4294901760, %v29865_v3  ;;  %v8260_v28 = vand.u32 4294901760, %v29896_v21  ;;  %v29950_v23 = vsub.f32 %v29834_v56, %v8136_v11 }
 0x903   : > { %24041 = vmatprep.subr.bf16.mxu1 %v29788_v62  ;;  %v24076_v22 = vpack.c.bf16 %v8220_v10, %v8213_v34  ;;  %v8281_v16 = vand.u32 4294901760, %v29932_v46  ;;  %v8288_v37 = vand.u32 4294901760, %v29937_v1  ;;  %v29955_v4 = vsub.f32 %v29836_v30, %v8139_v26 }
 0x904   : > { %v29804_v50 = vpack.c.bf16 %v8115_v38, %v8112_v39  ;;  %v29869_v31 = vsub.f32 %v7381_v15, %v8115_v38  ;;  %v8233_v43 = vsub.f32 %v29865_v3, %v8232_v45  ;;  %v8240_v15 = vsub.f32 %v29867_v63, %v8239_v57 }
 0x905   : > { %19826 = vmatmul.mubr.f32.vlgmr.msra.gmra.mrb[2].mxu1 %v29672_v27  ;;  %v8124_v27 = vand.u32 4294901760, %v29806_v14  ;;  %v8253_v38 = vand.u32 4294901760, %v29894_v59  ;;  %v8295_v56 = vand.u32 4294901760, %v29950_v23  ;;  %v8302_v11 = vand.u32 4294901760, %v29955_v4 }
 0x906   : > { %24043 = vmatpush3.bf16.msra.mxu1 %v29788_v62  ;;  %19860 = vmatprep.mubr.f32.mxu1 %v8178_v53  ;;  %v8246_v12 = vand.u32 4294901760, %v29869_v31  ;;  %v8226_v53 = vsub.f32 %v29863_v54, %v8225_v9  ;;  %v8234_v47 = vand.u32 4294901760, %v8233_v43  ;;  %v8241_v36 = vand.u32 4294901760, %v8240_v15 }
 0x907   : > { %24045 = vmatprep.subr.bf16.mxu1 %v29795_v48  ;;  %v29832_v7 = vpack.c.bf16 %v8127_v17, %v8124_v27  ;;  %v29915_v13 = vsub.f32 %v29806_v14, %v8124_v27  ;;  %v8254_v32 = vsub.f32 %v29894_v59, %v8253_v38  ;;  %v8261_v14 = vsub.f32 %v29896_v21, %v8260_v28 }
 0x908   : > { %v8247_v39 = vsub.f32 %v29869_v31, %v8246_v12  ;;  %v8227_v41 = vand.u32 4294901760, %v8226_v53  ;;  %v8274_v27 = vand.u32 4294901760, %v29918_v51 }
 0x909   : > { %v8267_v2 = vand.u32 4294901760, %v29915_v13  ;;  %v8255_v34 = vand.u32 4294901760, %v8254_v32  ;;  %v8262_v10 = vand.u32 4294901760, %v8261_v14 }
 0x90a   : > { %24047 = vmatpush3.bf16.msra.mxu1 %v29795_v48  ;;  %v8248_v58 = vand.u32 4294901760, %v8247_v39  ;;  %v24080_v17 = vpack.c.bf16 %v8234_v47, %v8227_v41  ;;  %v8275_v43 = vsub.f32 %v29918_v51, %v8274_v27  ;;  %v8289_v41 = vsub.f32 %v29937_v1, %v8288_v37 }
 0x90b   : > { %24049 = vmatprep.subr.bf16.mxu1 %v29800_v20  ;;  %v8268_v53 = vsub.f32 %v29915_v13, %v8267_v2  ;;  %v24088_v15 = vpack.c.bf16 %v8262_v10, %v8255_v34  ;;  %v24104_v34 = vpack.c.bf16 %v29817_v61, %v29815_v0  ;;  %v24108_v10 = vpack.c.bf16 %v29840_v19, %v29838_v8 }
 0x90c   : > { %v8290_v47 = vand.u32 4294901760, %v8289_v41  ;;  %v24176_v0 = vpack.c.bf16 %v8232_v45, %v8225_v9  ;;  %v24180_v61 = vpack.c.bf16 %v8246_v12, %v8239_v57  ;;  %v24192_v8 = vpack.c.bf16 %v8288_v37, %v8281_v16  ;;  %v8785_v9 = vld [vmem:[#allocation7 + $0x128] sm:$0xff] }
 0x90d   : > { %v8269_v39 = vand.u32 4294901760, %v8268_v53  ;;  %v24112_v53 = vpack.c.bf16 %v29865_v3, %v29863_v54  ;;  %v24196_v19 = vpack.c.bf16 %v8302_v11, %v8295_v56  ;;  %v8782_v54 = vld [vmem:[#allocation7 + $0x110] sm:$0xff]  ;;  %v8783_v3 = vld [vmem:[#allocation7 + $0x118] sm:$0xff]  ;;  %v30091_v37 = vld [vmem:[#allocation7 + $0x168] sm:$0xff] }
 0x90e   : > { %24051 = vmatpush3.bf16.msra.mxu1 %v29800_v20 }
 0x90f   : > { %24053 = vmatprep.subr.bf16.mxu1 %v29804_v50 }
 0x912   : > { %24055 = vmatpush3.bf16.msra.mxu1 %v29804_v50 }
 0x913   : > { %24057 = vmatprep.subr.bf16.mxu1 %v29820_v40 }
 0x916   : > { %24059 = vmatpush3.bf16.msra.mxu1 %v29820_v40 }
 0x917   : > { %24061 = vmatprep.subr.bf16.mxu1 %v29832_v7 }
 0x91a   : > { %24063 = vmatpush3.bf16.msra.mxu1 %v29832_v7 }
 0x91b   : > { %24065 = vmatprep.subr.bf16.mxu1 %v29846_v29 }
 0x91e   : > { %24067 = vmatpush3.bf16.msra.mxu1 %v29846_v29 }
 0x91f   : > { %24069 = vmatprep.subr.bf16.mxu1 %v29876_v52 }
 0x922   : > { %24071 = vmatpush3.bf16.msra.mxu1 %v29876_v52 }
 0x923   : > { %24073 = vmatprep.subr.bf16.mxu1 %v24072_v5 }
 0x925   : > { %19861 = vmatmul.mubr.f32.vlgmr.msra.gmra.mrb[2].mxu1 %v8188_v24  ;;  %v8276_v24 = vand.u32 4294901760, %v8275_v43  ;;  %v24116_v43 = vpack.c.bf16 %v29869_v31, %v29867_v63  ;;  %v8803_v63 = vand.u32 4294901760, %v8782_v54  ;;  %v8806_v31 = vand.u32 4294901760, %v8783_v3 }
 0x926   : > { %24075 = vmatpush3.bf16.msra.mxu1 %v24072_v5  ;;  %19895 = vmatprep.mubr.f32.mxu1 %v29776_v42  ;;  %v24084_v5 = vpack.c.bf16 %v8248_v58, %v8241_v36  ;;  %v8296_v36 = vsub.f32 %v29950_v23, %v8295_v56  ;;  %v8303_v58 = vsub.f32 %v29955_v4, %v8302_v11 }
 0x927   : > { %24077 = vmatprep.subr.bf16.mxu1 %v24076_v22  ;;  %v24092_v30 = vpack.c.bf16 %v8276_v24, %v8269_v39  ;;  %v24124_v39 = vpack.c.bf16 %v29918_v51, %v29915_v13  ;;  %v24128_v24 = vpack.c.bf16 %v29937_v1, %v29932_v46  ;;  %v30073_v45 = vpack.c.bf16 %v8806_v31, %v8803_v63  ;;  %v8788_v13 = vld [vmem:[#allocation7 + $0x140] sm:$0xff]  ;;  %v8789_v51 = vld [vmem:[#allocation7 + $0x148] sm:$0xff]  ;;  %v30086_v1 = vld [vmem:[#allocation7 + $0x158] sm:$0xff] }
 0x928   : > { %v8297_v14 = vand.u32 4294901760, %v8296_v36 }
 0x92a   : > { %24079 = vmatpush3.bf16.msra.mxu1 %v24076_v22  ;;  %v8282_v22 = vsub.f32 %v29932_v46, %v8281_v16  ;;  %v8824_v46 = vand.u32 4294901760, %v8789_v51  ;;  %v30089_v16 = vld [vmem:[#allocation7 + $0x160] sm:$0xff] }
 0x92b   : > { %24081 = vmatprep.subr.bf16.mxu1 %v24080_v17 }
 0x92c   : > { %v8283_v26 = vand.u32 4294901760, %v8282_v22  ;;  %v24132_v22 = vpack.c.bf16 %v29955_v4, %v29950_v23  ;;  %v8778_v23 = vld [vmem:[#allocation2 + $0xa] sm:$0xff] }
 0x92d   : > { %v30104_v36 = vand.u32 4294901760, %v8778_v23 }
 0x92e   : > { %24083 = vmatpush3.bf16.msra.mxu1 %v24080_v17  ;;  %v24096_v32 = vpack.c.bf16 %v8290_v47, %v8283_v26  ;;  %v8304_v17 = vand.u32 4294901760, %v8303_v58  ;;  %v8833_v26 = vand.u32 4294901760, %v30089_v16  ;;  %v8836_v47 = vand.u32 4294901760, %v30091_v37 }
 0x92f   : > { %24085 = vmatprep.subr.bf16.mxu1 %v24084_v5 }
 0x932   : > { %24087 = vmatpush3.bf16.msra.mxu1 %v24084_v5  ;;  %v24100_v5 = vpack.c.bf16 %v8304_v17, %v8297_v14  ;;  %v30112_v17 = vld [vmem:[#allocation7 + $0x170] sm:$0xff] }
 0x933   : > { %24089 = vmatprep.subr.bf16.mxu1 %v24088_v15 }
 0x936   : > { %24091 = vmatpush3.bf16.msra.mxu1 %v24088_v15  ;;  %v24120_v15 = vpack.c.bf16 %v29896_v21, %v29894_v59  ;;  %v8786_v59 = vld [vmem:[#allocation7 + $0x130] sm:$0xff]  ;;  %v8787_v21 = vld [vmem:[#allocation7 + $0x138] sm:$0xff] }
 0x937   : > { %24093 = vmatprep.subr.bf16.mxu1 %v24092_v30 }
 0x93a   : > { %24095 = vmatpush3.bf16.msra.mxu1 %v24092_v30  ;;  %v8830_v30 = vand.u32 4294901760, %v30086_v1 }
 0x93b   : > { %24097 = vmatprep.subr.bf16.mxu1 %v24096_v32 }
 0x93e   : > { %24099 = vmatpush3.bf16.msra.mxu1 %v24096_v32 }
 0x93f   : > { %24101 = vmatprep.subr.bf16.mxu1 %v24100_v5 }
 0x942   : > { %24103 = vmatpush3.bf16.msra.mxu1 %v24100_v5  ;;  %v30114_v5 = vld [vmem:[#allocation7 + $0x178] sm:$0xff] }
 0x943   : > { %24105 = vmatprep.subr.bf16.mxu1 %v24104_v34 }
 0x945   : > { %19896 = vmatmul.mubr.f32.vlgmr.msra.gmra.mrb[2].mxu1 %v29826_v25 }
 0x946   : > { %24107 = vmatpush3.bf16.msra.mxu1 %v24104_v34  ;;  %19930 = vmatprep.mubr.f32.mxu1 %v29781_v33  ;;  %v24168_v33 = vpack.c.bf16 %v8204_v35, %v8197_v55  ;;  %v24184_v55 = vpack.c.bf16 %v8260_v28, %v8253_v38  ;;  %v24188_v35 = vpack.c.bf16 %v8274_v27, %v8267_v2  ;;  %v8815_v28 = vand.u32 4294901760, %v8786_v59 }
 0x947   : > { %24109 = vmatprep.subr.bf16.mxu1 %v24108_v10  ;;  %v8821_v27 = vand.u32 4294901760, %v8788_v13  ;;  %v30116_v34 = vsub.f32 %v8782_v54, %v8803_v63 }
 0x949   : > { %v30098_v56 = vpack.c.bf16 %v8824_v46, %v8821_v27 }
 0x94a   : > { %24111 = vmatpush3.bf16.msra.mxu1 %v24108_v10  ;;  %v30118_v10 = vsub.f32 %v8783_v3, %v8806_v31 }
 0x94b   : > { %24113 = vmatprep.subr.bf16.mxu1 %v24112_v53 }
 0x94e   : > { %24115 = vmatpush3.bf16.msra.mxu1 %v24112_v53  ;;  %v30124_v53 = vpack.c.bf16 %v8836_v47, %v8833_v26 }
 0x94f   : > { %24117 = vmatprep.subr.bf16.mxu1 %v24116_v43 }
 0x952   : > { %24119 = vmatpush3.bf16.msra.mxu1 %v24116_v43  ;;  %v30127_v43 = vsub.f32 %v8778_v23, %v30104_v36 }
 0x953   : > { %24121 = vmatprep.subr.bf16.mxu1 %v24120_v15 }
 0x956   : > { %24123 = vmatpush3.bf16.msra.mxu1 %v24120_v15  ;;  %v8839_v15 = vand.u32 4294901760, %v30112_v17 }
 0x957   : > { %24125 = vmatprep.subr.bf16.mxu1 %v24124_v39 }
 0x95a   : > { %24127 = vmatpush3.bf16.msra.mxu1 %v24124_v39  ;;  %v8842_v39 = vand.u32 4294901760, %v30114_v5 }
 0x95b   : > { %24129 = vmatprep.subr.bf16.mxu1 %v24128_v24 }
 0x95e   : > { %24131 = vmatpush3.bf16.msra.mxu1 %v24128_v24 }
 0x95f   : > { %24133 = vmatprep.subr.bf16.mxu1 %v24132_v22 }
 0x962   : > { %24135 = vmatpush3.bf16.msra.mxu1 %v24132_v22 }
 0x963   : > { %24137 = vmatprep.subr.bf16.mxu1 %v29788_v62 }
 0x965   : > { %19931 = vmatmul.mubr.f32.vlgmr.msra.gmra.mrb[2].mxu1 %v29849_v18  ;;  %v8777_v18 = vld [vmem:[#allocation2 + $0x2] sm:$0xff] }
 0x966   : > { %24139 = vmatpush3.bf16.msra.mxu1 %v29788_v62  ;;  %19965 = vmatprep.mubr.f32.mxu1 %v8176_v44  ;;  %v24172_v44 = vpack.c.bf16 %v8218_v60, %v8211_v49  ;;  %v30054_v49 = vand.u32 4294901760, %v8777_v18 }
 0x967   : > { %24141 = vmatprep.subr.bf16.mxu1 %v29795_v48 }
 0x96a   : > { %24143 = vmatpush3.bf16.msra.mxu1 %v29795_v48 }
 0x96b   : > { %24145 = vmatprep.subr.bf16.mxu1 %v29800_v20 }
 0x96e   : > { %24147 = vmatpush3.bf16.msra.mxu1 %v29800_v20 }
 0x96f   : > { %24149 = vmatprep.subr.bf16.mxu1 %v29804_v50 }
 0x972   : > { %24151 = vmatpush3.bf16.msra.mxu1 %v29804_v50 }
 0x973   : > { %24153 = vmatprep.subr.bf16.mxu1 %v29820_v40 }
 0x976   : > { %24155 = vmatpush3.bf16.msra.mxu1 %v29820_v40 }
 0x977   : > { %24157 = vmatprep.subr.bf16.mxu1 %v29832_v7 }
 0x97a   : > { %24159 = vmatpush3.bf16.msra.mxu1 %v29832_v7 }
 0x97b   : > { %24161 = vmatprep.subr.bf16.mxu1 %v29846_v29 }
 0x97e   : > { %24163 = vmatpush3.bf16.msra.mxu1 %v29846_v29 }
 0x97f   : > { %24165 = vmatprep.subr.bf16.mxu1 %v29876_v52 }
 0x982   : > { %24167 = vmatpush3.bf16.msra.mxu1 %v29876_v52 }
 0x983   : > { %24169 = vmatprep.subr.bf16.mxu1 %v24168_v33 }
 0x985   : > { %19966 = vmatmul.mubr.f32.vlgmr.msra.gmra.mrb[2].mxu1 %v8186_v6  ;;  %v8784_v6 = vld [vmem:[#allocation7 + $0x120] sm:$0xff] }
 0x986   : > { %24171 = vmatpush3.bf16.msra.mxu1 %v24168_v33  ;;  %20000 = vmatprep.mubr.f32.mxu1 %v29776_v42  ;;  %v8809_v57 = vand.u32 4294901760, %v8784_v6  ;;  %v8914_v33 = vand.u32 4294901760, %v30116_v34 }
 0x987   : > { %24173 = vmatprep.subr.bf16.mxu1 %v24172_v44 }
 0x98a   : > { %24175 = vmatpush3.bf16.msra.mxu1 %v24172_v44  ;;  %v8921_v44 = vand.u32 4294901760, %v30118_v10 }
 0x98b   : > { %24177 = vmatprep.subr.bf16.mxu1 %v24176_v0 }
 0x98e   : > { %24179 = vmatpush3.bf16.msra.mxu1 %v24176_v0  ;;  %v30141_v0 = vsub.f32 %v8784_v6, %v8809_v57  ;;  %v30172_v6 = vsub.f32 %v8788_v13, %v8821_v27  ;;  %v30196_v27 = vsub.f32 %v30086_v1, %v8830_v30 }
 0x98f   : > { %24181 = vmatprep.subr.bf16.mxu1 %v24180_v61 }
 0x992   : > { %24183 = vmatpush3.bf16.msra.mxu1 %v24180_v61 }
 0x993   : > { %24185 = vmatprep.subr.bf16.mxu1 %v24184_v55 }
 0x996   : > { %24187 = vmatpush3.bf16.msra.mxu1 %v24184_v55  ;;  %v30145_v55 = vsub.f32 %v8786_v59, %v8815_v28 }
 0x997   : > { %24189 = vmatprep.subr.bf16.mxu1 %v24188_v35 }
 0x998   : > { %v8942_v3 = vand.u32 4294901760, %v30145_v55 }
 0x99a   : > { %24191 = vmatpush3.bf16.msra.mxu1 %v24188_v35 }
 0x99b   : > { %24193 = vmatprep.subr.bf16.mxu1 %v24192_v8 }
 0x99e   : > { %24195 = vmatpush3.bf16.msra.mxu1 %v24192_v8  ;;  %v30154_v8 = vpack.c.bf16 %v8842_v39, %v8839_v15 }
 0x99f   : > { %24197 = vmatprep.subr.bf16.mxu1 %v24196_v19 }
 0x9a2   : > { %24199 = vmatpush3.bf16.msra.mxu1 %v24196_v19  ;;  %v8889_v19 = vand.u32 4294901760, %v30127_v43 }
 0x9a3   : > { %24201 = vmatprep.subr.bf16.mxu1 %v29788_v62 }
 0x9a4   : > { %v8890_v31 = vsub.f32 %v30127_v43, %v8889_v19 }
 0x9a5   : > { %20001 = vmatmul.mubr.f32.vlgmr.msra.gmra.mrb[2].mxu1 %v29826_v25 }
 0x9a6   : > { %24203 = vmatpush3.bf16.msra.mxu1 %v29788_v62  ;;  %20035 = vmatprep.mubr.f32.mxu1 %v29776_v42  ;;  %v8780_v42 = vld [vmem:[#allocation7 + $0x100] sm:$0xff]  ;;  %v8781_v62 = vld [vmem:[#allocation7 + $0x108] sm:$0xff] }
 0x9a7   : > { %24205 = vmatprep.subr.bf16.mxu1 %v29795_v48  ;;  %v8800_v60 = vand.u32 4294901760, %v8781_v62 }
 0x9a9   : > { %v30095_v41 = vsub.f32 %v8781_v62, %v8800_v60  ;;  %v8915_v62 = vsub.f32 %v30116_v34, %v8914_v33 }
 0x9aa   : > { %24207 = vmatpush3.bf16.msra.mxu1 %v29795_v48  ;;  %v30059_v48 = vsub.f32 %v8777_v18, %v30054_v49 }
 0x9ab   : > { %24209 = vmatprep.subr.bf16.mxu1 %v29800_v20  ;;  %v8907_v32 = vand.u32 4294901760, %v30095_v41 }
 0x9ad   : > { %v8908_v22 = vsub.f32 %v30095_v41, %v8907_v32 }
 0x9ae   : > { %24211 = vmatpush3.bf16.msra.mxu1 %v29800_v20  ;;  %v8797_v20 = vand.u32 4294901760, %v8780_v42 }
 0x9af   : > { %24213 = vmatprep.subr.bf16.mxu1 %v29804_v50 }
 0x9b0   : > { %v30093_v4 = vsub.f32 %v8780_v42, %v8797_v20  ;;  %v8909_v42 = vand.u32 4294901760, %v8908_v22 }
 0x9b2   : > { %24215 = vmatpush3.bf16.msra.mxu1 %v29804_v50  ;;  %v8879_v50 = vand.u32 4294901760, %v30059_v48  ;;  %v8900_v58 = vand.u32 4294901760, %v30093_v4 }
 0x9b3   : > { %24217 = vmatprep.subr.bf16.mxu1 %v29820_v40 }
 0x9b4   : > { %v8901_v24 = vsub.f32 %v30093_v4, %v8900_v58 }
 0x9b6   : > { %24219 = vmatpush3.bf16.msra.mxu1 %v29820_v40  ;;  %v30066_v40 = vpack.c.bf16 %v8800_v60, %v8797_v20  ;;  %v8902_v18 = vand.u32 4294901760, %v8901_v24  ;;  %v8922_v20 = vsub.f32 %v30118_v10, %v8921_v44  ;;  %v8928_v60 = vand.u32 4294901760, %v30141_v0 }
 0x9b7   : > { %24221 = vmatprep.subr.bf16.mxu1 %v29832_v7 }
 0x9ba   : > { %24223 = vmatpush3.bf16.msra.mxu1 %v29832_v7  ;;  %v8880_v7 = vsub.f32 %v30059_v48, %v8879_v50 }
 0x9bb   : > { %24225 = vmatprep.subr.bf16.mxu1 %v29846_v29 }
 0x9bc   : > { %v8881_v12 = vand.u32 4294901760, %v8880_v7  ;;  %v24264_v7 = vpack.c.bf16 %v8909_v42, %v8902_v18 }
 0x9be   : > { %24227 = vmatpush3.bf16.msra.mxu1 %v29846_v29  ;;  %v8812_v29 = vand.u32 4294901760, %v8785_v9 }
 0x9bf   : > { %24229 = vmatprep.subr.bf16.mxu1 %v29876_v52 }
 0x9c0   : > { %v30078_v38 = vpack.c.bf16 %v8812_v29, %v8809_v57  ;;  %v30143_v61 = vsub.f32 %v8785_v9, %v8812_v29  ;;  %v30174_v9 = vsub.f32 %v8789_v51, %v8824_v46  ;;  %v8916_v57 = vand.u32 4294901760, %v8915_v62 }
 0x9c1   : > { %v8923_v29 = vand.u32 4294901760, %v8922_v20  ;;  %v8891_v46 = vand.u32 4294901760, %v8890_v31  ;;  %v30210_v20 = vsub.f32 %v30089_v16, %v8833_v26  ;;  %v30215_v31 = vsub.f32 %v30091_v37, %v8836_v47 }
 0x9c2   : > { %24231 = vmatpush3.bf16.msra.mxu1 %v29876_v52  ;;  %v8818_v52 = vand.u32 4294901760, %v8787_v21  ;;  %v8935_v54 = vand.u32 4294901760, %v30143_v61  ;;  %v8963_v13 = vand.u32 4294901760, %v30174_v9  ;;  %v30228_v37 = vsub.f32 %v30112_v17, %v8839_v15 }
 0x9c3   : > { %24233 = vmatprep.subr.bf16.mxu1 %v30066_v40  ;;  %v24268_v23 = vpack.c.bf16 %v8923_v29, %v8916_v57  ;;  %v8984_v16 = vand.u32 4294901760, %v30210_v20  ;;  %v8991_v26 = vand.u32 4294901760, %v30215_v31  ;;  %v30233_v47 = vsub.f32 %v30114_v5, %v8842_v39 }
 0x9c4   : > { %v30082_v2 = vpack.c.bf16 %v8818_v52, %v8815_v28  ;;  %v30147_v35 = vsub.f32 %v8787_v21, %v8818_v52  ;;  %v8936_v59 = vsub.f32 %v30143_v61, %v8935_v54  ;;  %v8943_v21 = vsub.f32 %v30145_v55, %v8942_v3 }
 0x9c5   : > { %20036 = vmatmul.mubr.f32.vlgmr.msra.gmra.mrb[2].mxu1 %v29826_v25  ;;  %v30084_v25 = vld [vmem:[#allocation7 + $0x150] sm:$0xff]  ;;  %v8956_v52 = vand.u32 4294901760, %v30172_v6  ;;  %v8998_v17 = vand.u32 4294901760, %v30228_v37  ;;  %v9005_v15 = vand.u32 4294901760, %v30233_v47 }
 0x9c6   : > { %24235 = vmatpush3.bf16.msra.mxu1 %v30066_v40  ;;  %20070 = vmatprep.mubr.f32.mxu1 %v8881_v12  ;;  %v8827_v11 = vand.u32 4294901760, %v30084_v25  ;;  %v8949_v63 = vand.u32 4294901760, %v30147_v35  ;;  %v8929_v12 = vsub.f32 %v30141_v0, %v8928_v60  ;;  %v8937_v22 = vand.u32 4294901760, %v8936_v59 }
 0x9c7   : > { %24237 = vmatprep.subr.bf16.mxu1 %v30073_v45  ;;  %v8944_v18 = vand.u32 4294901760, %v8943_v21  ;;  %v8957_v62 = vsub.f32 %v30172_v6, %v8956_v52 }
 0x9c8   : > { %v30110_v14 = vpack.c.bf16 %v8830_v30, %v8827_v11  ;;  %v8950_v28 = vsub.f32 %v30147_v35, %v8949_v63  ;;  %v30193_v51 = vsub.f32 %v30084_v25, %v8827_v11  ;;  %v8930_v24 = vand.u32 4294901760, %v8929_v12 }
 0x9c9   : > { %v8964_v25 = vsub.f32 %v30174_v9, %v8963_v13  ;;  %v8977_v11 = vand.u32 4294901760, %v30196_v27  ;;  %v8958_v57 = vand.u32 4294901760, %v8957_v62 }
 0x9ca   : > { %24239 = vmatpush3.bf16.msra.mxu1 %v30073_v45  ;;  %v8951_v42 = vand.u32 4294901760, %v8950_v28  ;;  %v8970_v1 = vand.u32 4294901760, %v30193_v51  ;;  %v24272_v30 = vpack.c.bf16 %v8937_v22, %v8930_v24  ;;  %v8992_v24 = vsub.f32 %v30215_v31, %v8991_v26 }
 0x9cb   : > { %24241 = vmatprep.subr.bf16.mxu1 %v30078_v38  ;;  %v8965_v29 = vand.u32 4294901760, %v8964_v25  ;;  %v8978_v59 = vsub.f32 %v30196_v27, %v8977_v11 }
 0x9cc   : > { %v8971_v12 = vsub.f32 %v30193_v51, %v8970_v1  ;;  %v8993_v22 = vand.u32 4294901760, %v8992_v24 }
 0x9cd   : > { %v24280_v21 = vpack.c.bf16 %v8965_v29, %v8958_v57  ;;  %v24296_v57 = vpack.c.bf16 %v30095_v41, %v30093_v4  ;;  %v24300_v29 = vpack.c.bf16 %v30118_v10, %v30116_v34  ;;  %v24368_v4 = vpack.c.bf16 %v8935_v54, %v8928_v60  ;;  %v9490_v60 = vld [vmem:[#allocation7 + $0x1a8] sm:$0xff] }
 0x9ce   : > { %24243 = vmatpush3.bf16.msra.mxu1 %v30078_v38  ;;  %v8972_v28 = vand.u32 4294901760, %v8971_v12  ;;  %v24304_v12 = vpack.c.bf16 %v30143_v61, %v30141_v0  ;;  %v24372_v41 = vpack.c.bf16 %v8949_v63, %v8942_v3  ;;  %v24384_v34 = vpack.c.bf16 %v8991_v26, %v8984_v16  ;;  %v9487_v0 = vld [vmem:[#allocation7 + $0x190] sm:$0xff]  ;;  %v9488_v61 = vld [vmem:[#allocation7 + $0x198] sm:$0xff]  ;;  %v30369_v26 = vld [vmem:[#allocation7 + $0x1e8] sm:$0xff] }
 0x9cf   : > { %24245 = vmatprep.subr.bf16.mxu1 %v30082_v2  ;;  %v24388_v10 = vpack.c.bf16 %v9005_v15, %v8998_v17 }
 0x9d2   : > { %24247 = vmatpush3.bf16.msra.mxu1 %v30082_v2 }
 0x9d3   : > { %24249 = vmatprep.subr.bf16.mxu1 %v30098_v56 }
 0x9d6   : > { %24251 = vmatpush3.bf16.msra.mxu1 %v30098_v56 }
 0x9d7   : > { %24253 = vmatprep.subr.bf16.mxu1 %v30110_v14 }
 0x9da   : > { %24255 = vmatpush3.bf16.msra.mxu1 %v30110_v14 }
 0x9db   : > { %24257 = vmatprep.subr.bf16.mxu1 %v30124_v53 }
 0x9de   : > { %24259 = vmatpush3.bf16.msra.mxu1 %v30124_v53 }
 0x9df   : > { %24261 = vmatprep.subr.bf16.mxu1 %v30154_v8 }
 0x9e2   : > { %24263 = vmatpush3.bf16.msra.mxu1 %v30154_v8 }
 0x9e3   : > { %24265 = vmatprep.subr.bf16.mxu1 %v24264_v7 }
 0x9e5   : > { %20071 = vmatmul.mubr.f32.vlgmr.msra.gmra.mrb[2].mxu1 %v8891_v46  ;;  %v8979_v46 = vand.u32 4294901760, %v8978_v59  ;;  %v24308_v59 = vpack.c.bf16 %v30147_v35, %v30145_v55  ;;  %v9508_v55 = vand.u32 4294901760, %v9487_v0  ;;  %v9511_v35 = vand.u32 4294901760, %v9488_v61 }
 0x9e6   : > { %24267 = vmatpush3.bf16.msra.mxu1 %v24264_v7  ;;  %20105 = vmatprep.mubr.f32.mxu1 %v30054_v49  ;;  %v24276_v7 = vpack.c.bf16 %v8951_v42, %v8944_v18  ;;  %v8999_v18 = vsub.f32 %v30228_v37, %v8998_v17  ;;  %v9006_v42 = vsub.f32 %v30233_v47, %v9005_v15 }
 0x9e7   : > { %24269 = vmatprep.subr.bf16.mxu1 %v24268_v23  ;;  %v24284_v5 = vpack.c.bf16 %v8979_v46, %v8972_v28  ;;  %v24316_v28 = vpack.c.bf16 %v30196_v27, %v30193_v51  ;;  %v24320_v46 = vpack.c.bf16 %v30215_v31, %v30210_v20  ;;  %v30351_v54 = vpack.c.bf16 %v9511_v35, %v9508_v55  ;;  %v9493_v51 = vld [vmem:[#allocation7 + $0x1c0] sm:$0xff]  ;;  %v9494_v27 = vld [vmem:[#allocation7 + $0x1c8] sm:$0xff]  ;;  %v30364_v31 = vld [vmem:[#allocation7 + $0x1d8] sm:$0xff] }
 0x9e8   : > { %v9000_v25 = vand.u32 4294901760, %v8999_v18 }
 0x9ea   : > { %24271 = vmatpush3.bf16.msra.mxu1 %v24268_v23  ;;  %v8985_v23 = vsub.f32 %v30210_v20, %v8984_v16  ;;  %v9529_v20 = vand.u32 4294901760, %v9494_v27  ;;  %v30367_v16 = vld [vmem:[#allocation7 + $0x1e0] sm:$0xff] }
 0x9eb   : > { %24273 = vmatprep.subr.bf16.mxu1 %v24272_v30 }
 0x9ec   : > { %v8986_v39 = vand.u32 4294901760, %v8985_v23  ;;  %v24324_v23 = vpack.c.bf16 %v30233_v47, %v30228_v37  ;;  %v9483_v37 = vld [vmem:[#allocation2 + $0xb] sm:$0xff] }
 0x9ed   : > { %v30382_v18 = vand.u32 4294901760, %v9483_v37 }
 0x9ee   : > { %24275 = vmatpush3.bf16.msra.mxu1 %v24272_v30  ;;  %v24288_v62 = vpack.c.bf16 %v8993_v22, %v8986_v39  ;;  %v9007_v30 = vand.u32 4294901760, %v9006_v42  ;;  %v9538_v39 = vand.u32 4294901760, %v30367_v16  ;;  %v9541_v22 = vand.u32 4294901760, %v30369_v26 }
 0x9ef   : > { %24277 = vmatprep.subr.bf16.mxu1 %v24276_v7 }
 0x9f2   : > { %24279 = vmatpush3.bf16.msra.mxu1 %v24276_v7  ;;  %v24292_v7 = vpack.c.bf16 %v9007_v30, %v9000_v25  ;;  %v30390_v30 = vld [vmem:[#allocation7 + $0x1f0] sm:$0xff] }
 0x9f3   : > { %24281 = vmatprep.subr.bf16.mxu1 %v24280_v21 }
 0x9f6   : > { %24283 = vmatpush3.bf16.msra.mxu1 %v24280_v21  ;;  %v24312_v21 = vpack.c.bf16 %v30174_v9, %v30172_v6  ;;  %v9491_v6 = vld [vmem:[#allocation7 + $0x1b0] sm:$0xff]  ;;  %v9492_v9 = vld [vmem:[#allocation7 + $0x1b8] sm:$0xff] }
 0x9f7   : > { %24285 = vmatprep.subr.bf16.mxu1 %v24284_v5 }
 0x9fa   : > { %24287 = vmatpush3.bf16.msra.mxu1 %v24284_v5  ;;  %v9535_v5 = vand.u32 4294901760, %v30364_v31 }
 0x9fb   : > { %24289 = vmatprep.subr.bf16.mxu1 %v24288_v62 }
 0x9fe   : > { %24291 = vmatpush3.bf16.msra.mxu1 %v24288_v62 }
 0x9ff   : > { %24293 = vmatprep.subr.bf16.mxu1 %v24292_v7 }
 0xa02   : > { %24295 = vmatpush3.bf16.msra.mxu1 %v24292_v7  ;;  %v30392_v7 = vld [vmem:[#allocation7 + $0x1f8] sm:$0xff] }
 0xa03   : > { %24297 = vmatprep.subr.bf16.mxu1 %v24296_v57 }
 0xa05   : > { %20106 = vmatmul.mubr.f32.vlgmr.msra.gmra.mrb[2].mxu1 %v30104_v36 }
 0xa06   : > { %24299 = vmatpush3.bf16.msra.mxu1 %v24296_v57  ;;  %20140 = vmatprep.mubr.f32.mxu1 %v30059_v48  ;;  %v24360_v48 = vpack.c.bf16 %v8907_v32, %v8900_v58  ;;  %v24376_v58 = vpack.c.bf16 %v8963_v13, %v8956_v52  ;;  %v24380_v32 = vpack.c.bf16 %v8977_v11, %v8970_v1  ;;  %v9520_v13 = vand.u32 4294901760, %v9491_v6 }
 0xa07   : > { %24301 = vmatprep.subr.bf16.mxu1 %v24300_v29  ;;  %v9526_v11 = vand.u32 4294901760, %v9493_v51  ;;  %v30394_v57 = vsub.f32 %v9487_v0, %v9508_v55 }
 0xa09   : > { %v30376_v17 = vpack.c.bf16 %v9529_v20, %v9526_v11 }
 0xa0a   : > { %24303 = vmatpush3.bf16.msra.mxu1 %v24300_v29  ;;  %v30396_v29 = vsub.f32 %v9488_v61, %v9511_v35 }
 0xa0b   : > { %24305 = vmatprep.subr.bf16.mxu1 %v24304_v12 }
 0xa0e   : > { %24307 = vmatpush3.bf16.msra.mxu1 %v24304_v12  ;;  %v30402_v12 = vpack.c.bf16 %v9541_v22, %v9538_v39 }
 0xa0f   : > { %24309 = vmatprep.subr.bf16.mxu1 %v24308_v59 }
 0xa12   : > { %24311 = vmatpush3.bf16.msra.mxu1 %v24308_v59  ;;  %v30405_v59 = vsub.f32 %v9483_v37, %v30382_v18 }
 0xa13   : > { %24313 = vmatprep.subr.bf16.mxu1 %v24312_v21 }
 0xa16   : > { %24315 = vmatpush3.bf16.msra.mxu1 %v24312_v21  ;;  %v9544_v21 = vand.u32 4294901760, %v30390_v30 }
 0xa17   : > { %24317 = vmatprep.subr.bf16.mxu1 %v24316_v28 }
 0xa1a   : > { %24319 = vmatpush3.bf16.msra.mxu1 %v24316_v28  ;;  %v9547_v28 = vand.u32 4294901760, %v30392_v7 }
 0xa1b   : > { %24321 = vmatprep.subr.bf16.mxu1 %v24320_v46 }
 0xa1e   : > { %24323 = vmatpush3.bf16.msra.mxu1 %v24320_v46 }
 0xa1f   : > { %24325 = vmatprep.subr.bf16.mxu1 %v24324_v23 }
 0xa22   : > { %24327 = vmatpush3.bf16.msra.mxu1 %v24324_v23 }
 0xa23   : > { %24329 = vmatprep.subr.bf16.mxu1 %v30066_v40 }
 0xa25   : > { %20141 = vmatmul.mubr.f32.vlgmr.msra.gmra.mrb[2].mxu1 %v30127_v43  ;;  %v9482_v43 = vld [vmem:[#allocation2 + $0x3] sm:$0xff] }
 0xa26   : > { %24331 = vmatpush3.bf16.msra.mxu1 %v30066_v40  ;;  %20175 = vmatprep.mubr.f32.mxu1 %v8879_v50  ;;  %v24364_v50 = vpack.c.bf16 %v8921_v44, %v8914_v33  ;;  %v30332_v33 = vand.u32 4294901760, %v9482_v43 }
 0xa27   : > { %24333 = vmatprep.subr.bf16.mxu1 %v30073_v45 }
 0xa2a   : > { %24335 = vmatpush3.bf16.msra.mxu1 %v30073_v45 }
 0xa2b   : > { %24337 = vmatprep.subr.bf16.mxu1 %v30078_v38 }
 0xa2e   : > { %24339 = vmatpush3.bf16.msra.mxu1 %v30078_v38 }
 0xa2f   : > { %24341 = vmatprep.subr.bf16.mxu1 %v30082_v2 }
 0xa32   : > { %24343 = vmatpush3.bf16.msra.mxu1 %v30082_v2 }
 0xa33   : > { %24345 = vmatprep.subr.bf16.mxu1 %v30098_v56 }
 0xa36   : > { %24347 = vmatpush3.bf16.msra.mxu1 %v30098_v56 }
 0xa37   : > { %24349 = vmatprep.subr.bf16.mxu1 %v30110_v14 }
 0xa3a   : > { %24351 = vmatpush3.bf16.msra.mxu1 %v30110_v14 }
 0xa3b   : > { %24353 = vmatprep.subr.bf16.mxu1 %v30124_v53 }
 0xa3e   : > { %24355 = vmatpush3.bf16.msra.mxu1 %v30124_v53 }
 0xa3f   : > { %24357 = vmatprep.subr.bf16.mxu1 %v30154_v8 }
 0xa42   : > { %24359 = vmatpush3.bf16.msra.mxu1 %v30154_v8 }
 0xa43   : > { %24361 = vmatprep.subr.bf16.mxu1 %v24360_v48 }
 0xa45   : > { %20176 = vmatmul.mubr.f32.vlgmr.msra.gmra.mrb[2].mxu1 %v8889_v19  ;;  %v9489_v19 = vld [vmem:[#allocation7 + $0x1a0] sm:$0xff] }
 0xa46   : > { %24363 = vmatpush3.bf16.msra.mxu1 %v24360_v48  ;;  %20210 = vmatprep.mubr.f32.mxu1 %v30054_v49  ;;  %v9514_v3 = vand.u32 4294901760, %v9489_v19  ;;  %v9619_v48 = vand.u32 4294901760, %v30394_v57 }
 0xa47   : > { %24365 = vmatprep.subr.bf16.mxu1 %v24364_v50 }
 0xa4a   : > { %24367 = vmatpush3.bf16.msra.mxu1 %v24364_v50  ;;  %v9626_v50 = vand.u32 4294901760, %v30396_v29 }
 0xa4b   : > { %24369 = vmatprep.subr.bf16.mxu1 %v24368_v4 }
 0xa4e   : > { %24371 = vmatpush3.bf16.msra.mxu1 %v24368_v4  ;;  %v30419_v4 = vsub.f32 %v9489_v19, %v9514_v3  ;;  %v30450_v19 = vsub.f32 %v9493_v51, %v9526_v11  ;;  %v30474_v11 = vsub.f32 %v30364_v31, %v9535_v5 }
 0xa4f   : > { %24373 = vmatprep.subr.bf16.mxu1 %v24372_v41 }
 0xa52   : > { %24375 = vmatpush3.bf16.msra.mxu1 %v24372_v41 }
 0xa53   : > { %24377 = vmatprep.subr.bf16.mxu1 %v24376_v58 }
 0xa56   : > { %24379 = vmatpush3.bf16.msra.mxu1 %v24376_v58  ;;  %v30423_v58 = vsub.f32 %v9491_v6, %v9520_v13 }
 0xa57   : > { %24381 = vmatprep.subr.bf16.mxu1 %v24380_v32 }
 0xa58   : > { %v9647_v61 = vand.u32 4294901760, %v30423_v58 }
 0xa5a   : > { %24383 = vmatpush3.bf16.msra.mxu1 %v24380_v32 }
 0xa5b   : > { %24385 = vmatprep.subr.bf16.mxu1 %v24384_v34 }
 0xa5e   : > { %24387 = vmatpush3.bf16.msra.mxu1 %v24384_v34  ;;  %v30432_v34 = vpack.c.bf16 %v9547_v28, %v9544_v21 }
 0xa5f   : > { %24389 = vmatprep.subr.bf16.mxu1 %v24388_v10 }
 0xa62   : > { %24391 = vmatpush3.bf16.msra.mxu1 %v24388_v10  ;;  %v9594_v10 = vand.u32 4294901760, %v30405_v59 }
 0xa63   : > { %24393 = vmatprep.subr.bf16.mxu1 %v30066_v40 }
 0xa64   : > { %v9595_v35 = vsub.f32 %v30405_v59, %v9594_v10 }
 0xa65   : > { %20211 = vmatmul.mubr.f32.vlgmr.msra.gmra.mrb[2].mxu1 %v30104_v36 }
 0xa66   : > { %24395 = vmatpush3.bf16.msra.mxu1 %v30066_v40  ;;  %20245 = vmatprep.mubr.f32.mxu1 %v30054_v49  ;;  %v9485_v49 = vld [vmem:[#allocation7 + $0x180] sm:$0xff]  ;;  %v9486_v40 = vld [vmem:[#allocation7 + $0x188] sm:$0xff] }
 0xa67   : > { %24397 = vmatprep.subr.bf16.mxu1 %v30073_v45  ;;  %v9505_v44 = vand.u32 4294901760, %v9486_v40 }
 0xa69   : > { %v30373_v24 = vsub.f32 %v9486_v40, %v9505_v44  ;;  %v9620_v40 = vsub.f32 %v30394_v57, %v9619_v48 }
 0xa6a   : > { %24399 = vmatpush3.bf16.msra.mxu1 %v30073_v45  ;;  %v30337_v45 = vsub.f32 %v9482_v43, %v30332_v33 }
 0xa6b   : > { %24401 = vmatprep.subr.bf16.mxu1 %v30078_v38  ;;  %v9612_v62 = vand.u32 4294901760, %v30373_v24 }
 0xa6d   : > { %v9613_v23 = vsub.f32 %v30373_v24, %v9612_v62 }
 0xa6e   : > { %24403 = vmatpush3.bf16.msra.mxu1 %v30078_v38  ;;  %v9502_v38 = vand.u32 4294901760, %v9485_v49 }
 0xa6f   : > { %24405 = vmatprep.subr.bf16.mxu1 %v30082_v2 }
 0xa70   : > { %v30371_v47 = vsub.f32 %v9485_v49, %v9502_v38  ;;  %v9614_v49 = vand.u32 4294901760, %v9613_v23 }
 0xa72   : > { %24407 = vmatpush3.bf16.msra.mxu1 %v30082_v2  ;;  %v9584_v2 = vand.u32 4294901760, %v30337_v45  ;;  %v9605_v42 = vand.u32 4294901760, %v30371_v47 }
 0xa73   : > { %24409 = vmatprep.subr.bf16.mxu1 %v30098_v56 }
 0xa74   : > { %v9606_v46 = vsub.f32 %v30371_v47, %v9605_v42 }
 0xa76   : > { %24411 = vmatpush3.bf16.msra.mxu1 %v30098_v56  ;;  %v30344_v56 = vpack.c.bf16 %v9505_v44, %v9502_v38  ;;  %v9607_v43 = vand.u32 4294901760, %v9606_v46  ;;  %v9627_v38 = vsub.f32 %v30396_v29, %v9626_v50  ;;  %v9633_v44 = vand.u32 4294901760, %v30419_v4 }
 0xa77   : > { %24413 = vmatprep.subr.bf16.mxu1 %v30110_v14 }
 0xa7a   : > { %24415 = vmatpush3.bf16.msra.mxu1 %v30110_v14  ;;  %v9585_v14 = vsub.f32 %v30337_v45, %v9584_v2 }
 0xa7b   : > { %24417 = vmatprep.subr.bf16.mxu1 %v30124_v53 }
 0xa7c   : > { %v9586_v63 = vand.u32 4294901760, %v9585_v14  ;;  %v24456_v14 = vpack.c.bf16 %v9614_v49, %v9607_v43 }
 0xa7e   : > { %24419 = vmatpush3.bf16.msra.mxu1 %v30124_v53  ;;  %v9517_v53 = vand.u32 4294901760, %v9490_v60 }
 0xa7f   : > { %24421 = vmatprep.subr.bf16.mxu1 %v30154_v8 }
 0xa80   : > { %v30356_v52 = vpack.c.bf16 %v9517_v53, %v9514_v3  ;;  %v30421_v41 = vsub.f32 %v9490_v60, %v9517_v53  ;;  %v30452_v60 = vsub.f32 %v9494_v27, %v9529_v20  ;;  %v9621_v3 = vand.u32 4294901760, %v9620_v40 }
 0xa81   : > { %v9628_v53 = vand.u32 4294901760, %v9627_v38  ;;  %v9596_v20 = vand.u32 4294901760, %v9595_v35  ;;  %v30488_v38 = vsub.f32 %v30367_v16, %v9538_v39  ;;  %v30493_v35 = vsub.f32 %v30369_v26, %v9541_v22 }
 0xa82   : > { %24423 = vmatpush3.bf16.msra.mxu1 %v30154_v8  ;;  %v9523_v8 = vand.u32 4294901760, %v9492_v9  ;;  %v9640_v0 = vand.u32 4294901760, %v30421_v41  ;;  %v9668_v51 = vand.u32 4294901760, %v30452_v60  ;;  %v30506_v26 = vsub.f32 %v30390_v30, %v9544_v21 }
 0xa83   : > { %24425 = vmatprep.subr.bf16.mxu1 %v30344_v56  ;;  %v24460_v37 = vpack.c.bf16 %v9628_v53, %v9621_v3  ;;  %v9689_v16 = vand.u32 4294901760, %v30488_v38  ;;  %v9696_v39 = vand.u32 4294901760, %v30493_v35  ;;  %v30511_v22 = vsub.f32 %v30392_v7, %v9547_v28 }
 0xa84   : > { %v30360_v1 = vpack.c.bf16 %v9523_v8, %v9520_v13  ;;  %v30425_v32 = vsub.f32 %v9492_v9, %v9523_v8  ;;  %v9641_v6 = vsub.f32 %v30421_v41, %v9640_v0  ;;  %v9648_v9 = vsub.f32 %v30423_v58, %v9647_v61 }
 0xa85   : > { %20246 = vmatmul.mubr.f32.vlgmr.msra.gmra.mrb[2].mxu1 %v30104_v36  ;;  %v30362_v36 = vld [vmem:[#allocation7 + $0x1d0] sm:$0xff]  ;;  %v9661_v8 = vand.u32 4294901760, %v30450_v19  ;;  %v9703_v30 = vand.u32 4294901760, %v30506_v26  ;;  %v9710_v21 = vand.u32 4294901760, %v30511_v22 }
 0xa86   : > { %24427 = vmatpush3.bf16.msra.mxu1 %v30344_v56  ;;  %20280 = vmatprep.mubr.f32.mxu1 %v9586_v63  ;;  %v9532_v15 = vand.u32 4294901760, %v30362_v36  ;;  %v9654_v55 = vand.u32 4294901760, %v30425_v32  ;;  %v9634_v63 = vsub.f32 %v30419_v4, %v9633_v44  ;;  %v9642_v23 = vand.u32 4294901760, %v9641_v6 }
 0xa87   : > { %24429 = vmatprep.subr.bf16.mxu1 %v30351_v54  ;;  %v9649_v43 = vand.u32 4294901760, %v9648_v9  ;;  %v9662_v40 = vsub.f32 %v30450_v19, %v9661_v8 }
 0xa88   : > { %v30388_v25 = vpack.c.bf16 %v9535_v5, %v9532_v15  ;;  %v9655_v13 = vsub.f32 %v30425_v32, %v9654_v55  ;;  %v30471_v27 = vsub.f32 %v30362_v36, %v9532_v15  ;;  %v9635_v46 = vand.u32 4294901760, %v9634_v63 }
 0xa89   : > { %v9669_v36 = vsub.f32 %v30452_v60, %v9668_v51  ;;  %v9682_v15 = vand.u32 4294901760, %v30474_v11  ;;  %v9663_v3 = vand.u32 4294901760, %v9662_v40 }
 0xa8a   : > { %24431 = vmatpush3.bf16.msra.mxu1 %v30351_v54  ;;  %v9656_v49 = vand.u32 4294901760, %v9655_v13  ;;  %v9675_v31 = vand.u32 4294901760, %v30471_v27  ;;  %v24464_v5 = vpack.c.bf16 %v9642_v23, %v9635_v46  ;;  %v9697_v46 = vsub.f32 %v30493_v35, %v9696_v39 }
 0xa8b   : > { %24433 = vmatprep.subr.bf16.mxu1 %v30356_v52  ;;  %v9670_v53 = vand.u32 4294901760, %v9669_v36  ;;  %v9683_v6 = vsub.f32 %v30474_v11, %v9682_v15 }
 0xa8c   : > { %v9676_v63 = vsub.f32 %v30471_v27, %v9675_v31  ;;  %v9698_v23 = vand.u32 4294901760, %v9697_v46 }
 0xa8d   : > { %v24472_v9 = vpack.c.bf16 %v9670_v53, %v9663_v3  ;;  %v24488_v3 = vpack.c.bf16 %v30373_v24, %v30371_v47  ;;  %v24492_v53 = vpack.c.bf16 %v30396_v29, %v30394_v57  ;;  %v24560_v47 = vpack.c.bf16 %v9640_v0, %v9633_v44  ;;  %v10195_v44 = vld [vmem:[#allocation7 + $0x228] sm:$0xff] }
 0xa8e   : > { %24435 = vmatpush3.bf16.msra.mxu1 %v30356_v52  ;;  %v9677_v13 = vand.u32 4294901760, %v9676_v63  ;;  %v24496_v63 = vpack.c.bf16 %v30421_v41, %v30419_v4  ;;  %v24564_v24 = vpack.c.bf16 %v9654_v55, %v9647_v61  ;;  %v24576_v57 = vpack.c.bf16 %v9696_v39, %v9689_v16  ;;  %v10192_v4 = vld [vmem:[#allocation7 + $0x210] sm:$0xff]  ;;  %v10193_v41 = vld [vmem:[#allocation7 + $0x218] sm:$0xff]  ;;  %v30647_v39 = vld [vmem:[#allocation7 + $0x268] sm:$0xff] }
 0xa8f   : > { %24437 = vmatprep.subr.bf16.mxu1 %v30360_v1  ;;  %v24580_v29 = vpack.c.bf16 %v9710_v21, %v9703_v30 }
 0xa92   : > { %24439 = vmatpush3.bf16.msra.mxu1 %v30360_v1 }
 0xa93   : > { %24441 = vmatprep.subr.bf16.mxu1 %v30376_v17 }
 0xa96   : > { %24443 = vmatpush3.bf16.msra.mxu1 %v30376_v17 }
 0xa97   : > { %24445 = vmatprep.subr.bf16.mxu1 %v30388_v25 }
 0xa9a   : > { %24447 = vmatpush3.bf16.msra.mxu1 %v30388_v25 }
 0xa9b   : > { %24449 = vmatprep.subr.bf16.mxu1 %v30402_v12 }
 0xa9e   : > { %24451 = vmatpush3.bf16.msra.mxu1 %v30402_v12 }
 0xa9f   : > { %24453 = vmatprep.subr.bf16.mxu1 %v30432_v34 }
 0xaa2   : > { %24455 = vmatpush3.bf16.msra.mxu1 %v30432_v34 }
 0xaa3   : > { %24457 = vmatprep.subr.bf16.mxu1 %v24456_v14 }
 0xaa5   : > { %20281 = vmatmul.mubr.f32.vlgmr.msra.gmra.mrb[2].mxu1 %v9596_v20  ;;  %v9684_v20 = vand.u32 4294901760, %v9683_v6  ;;  %v24500_v6 = vpack.c.bf16 %v30425_v32, %v30423_v58  ;;  %v10213_v58 = vand.u32 4294901760, %v10192_v4  ;;  %v10216_v32 = vand.u32 4294901760, %v10193_v41 }
 0xaa6   : > { %24459 = vmatpush3.bf16.msra.mxu1 %v24456_v14  ;;  %20315 = vmatprep.mubr.f32.mxu1 %v30332_v33  ;;  %v24468_v14 = vpack.c.bf16 %v9656_v49, %v9649_v43  ;;  %v9704_v43 = vsub.f32 %v30506_v26, %v9703_v30  ;;  %v9711_v49 = vsub.f32 %v30511_v22, %v9710_v21 }
 0xaa7   : > { %24461 = vmatprep.subr.bf16.mxu1 %v24460_v37  ;;  %v24476_v7 = vpack.c.bf16 %v9684_v20, %v9677_v13  ;;  %v24508_v13 = vpack.c.bf16 %v30474_v11, %v30471_v27  ;;  %v24512_v20 = vpack.c.bf16 %v30493_v35, %v30488_v38  ;;  %v30629_v0 = vpack.c.bf16 %v10216_v32, %v10213_v58  ;;  %v10198_v27 = vld [vmem:[#allocation7 + $0x240] sm:$0xff]  ;;  %v10199_v11 = vld [vmem:[#allocation7 + $0x248] sm:$0xff]  ;;  %v30642_v35 = vld [vmem:[#allocation7 + $0x258] sm:$0xff] }
 0xaa8   : > { %v9705_v36 = vand.u32 4294901760, %v9704_v43 }
 0xaaa   : > { %24463 = vmatpush3.bf16.msra.mxu1 %v24460_v37  ;;  %v9690_v37 = vsub.f32 %v30488_v38, %v9689_v16  ;;  %v10234_v38 = vand.u32 4294901760, %v10199_v11  ;;  %v30645_v16 = vld [vmem:[#allocation7 + $0x260] sm:$0xff] }
 0xaab   : > { %24465 = vmatprep.subr.bf16.mxu1 %v24464_v5 }
 0xaac   : > { %v9691_v28 = vand.u32 4294901760, %v9690_v37  ;;  %v24516_v37 = vpack.c.bf16 %v30511_v22, %v30506_v26  ;;  %v10188_v26 = vld [vmem:[#allocation2 + $0xc] sm:$0xff] }
 0xaad   : > { %v30660_v43 = vand.u32 4294901760, %v10188_v26 }
 0xaae   : > { %24467 = vmatpush3.bf16.msra.mxu1 %v24464_v5  ;;  %v24480_v40 = vpack.c.bf16 %v9698_v23, %v9691_v28  ;;  %v9712_v5 = vand.u32 4294901760, %v9711_v49  ;;  %v10243_v28 = vand.u32 4294901760, %v30645_v16  ;;  %v10246_v23 = vand.u32 4294901760, %v30647_v39 }
 0xaaf   : > { %24469 = vmatprep.subr.bf16.mxu1 %v24468_v14 }
 0xab2   : > { %24471 = vmatpush3.bf16.msra.mxu1 %v24468_v14  ;;  %v24484_v14 = vpack.c.bf16 %v9712_v5, %v9705_v36  ;;  %v30668_v5 = vld [vmem:[#allocation7 + $0x270] sm:$0xff] }
 0xab3   : > { %24473 = vmatprep.subr.bf16.mxu1 %v24472_v9 }
 0xab6   : > { %24475 = vmatpush3.bf16.msra.mxu1 %v24472_v9  ;;  %v24504_v9 = vpack.c.bf16 %v30452_v60, %v30450_v19  ;;  %v10196_v19 = vld [vmem:[#allocation7 + $0x230] sm:$0xff]  ;;  %v10197_v60 = vld [vmem:[#allocation7 + $0x238] sm:$0xff] }
 0xab7   : > { %24477 = vmatprep.subr.bf16.mxu1 %v24476_v7 }
 0xaba   : > { %24479 = vmatpush3.bf16.msra.mxu1 %v24476_v7  ;;  %v10240_v7 = vand.u32 4294901760, %v30642_v35 }
 0xabb   : > { %24481 = vmatprep.subr.bf16.mxu1 %v24480_v40 }
 0xabe   : > { %24483 = vmatpush3.bf16.msra.mxu1 %v24480_v40 }
 0xabf   : > { %24485 = vmatprep.subr.bf16.mxu1 %v24484_v14 }
 0xac2   : > { %24487 = vmatpush3.bf16.msra.mxu1 %v24484_v14  ;;  %v30670_v14 = vld [vmem:[#allocation7 + $0x278] sm:$0xff] }
 0xac3   : > { %24489 = vmatprep.subr.bf16.mxu1 %v24488_v3 }
 0xac5   : > { %20316 = vmatmul.mubr.f32.vlgmr.msra.gmra.mrb[2].mxu1 %v30382_v18 }
 0xac6   : > { %24491 = vmatpush3.bf16.msra.mxu1 %v24488_v3  ;;  %20350 = vmatprep.mubr.f32.mxu1 %v30337_v45  ;;  %v24552_v45 = vpack.c.bf16 %v9612_v62, %v9605_v42  ;;  %v24568_v42 = vpack.c.bf16 %v9668_v51, %v9661_v8  ;;  %v24572_v62 = vpack.c.bf16 %v9682_v15, %v9675_v31  ;;  %v10225_v51 = vand.u32 4294901760, %v10196_v19 }
 0xac7   : > { %24493 = vmatprep.subr.bf16.mxu1 %v24492_v53  ;;  %v10231_v15 = vand.u32 4294901760, %v10198_v27  ;;  %v30672_v3 = vsub.f32 %v10192_v4, %v10213_v58 }
 0xac9   : > { %v30654_v30 = vpack.c.bf16 %v10234_v38, %v10231_v15 }
 0xaca   : > { %24495 = vmatpush3.bf16.msra.mxu1 %v24492_v53  ;;  %v30674_v53 = vsub.f32 %v10193_v41, %v10216_v32 }
 0xacb   : > { %24497 = vmatprep.subr.bf16.mxu1 %v24496_v63 }
 0xace   : > { %24499 = vmatpush3.bf16.msra.mxu1 %v24496_v63  ;;  %v30680_v63 = vpack.c.bf16 %v10246_v23, %v10243_v28 }
 0xacf   : > { %24501 = vmatprep.subr.bf16.mxu1 %v24500_v6 }
 0xad2   : > { %24503 = vmatpush3.bf16.msra.mxu1 %v24500_v6  ;;  %v30683_v6 = vsub.f32 %v10188_v26, %v30660_v43 }
 0xad3   : > { %24505 = vmatprep.subr.bf16.mxu1 %v24504_v9 }
 0xad6   : > { %24507 = vmatpush3.bf16.msra.mxu1 %v24504_v9  ;;  %v10249_v9 = vand.u32 4294901760, %v30668_v5 }
 0xad7   : > { %24509 = vmatprep.subr.bf16.mxu1 %v24508_v13 }
 0xada   : > { %24511 = vmatpush3.bf16.msra.mxu1 %v24508_v13  ;;  %v10252_v13 = vand.u32 4294901760, %v30670_v14 }
 0xadb   : > { %24513 = vmatprep.subr.bf16.mxu1 %v24512_v20 }
 0xade   : > { %24515 = vmatpush3.bf16.msra.mxu1 %v24512_v20 }
 0xadf   : > { %24517 = vmatprep.subr.bf16.mxu1 %v24516_v37 }
 0xae2   : > { %24519 = vmatpush3.bf16.msra.mxu1 %v24516_v37 }
 0xae3   : > { %24521 = vmatprep.subr.bf16.mxu1 %v30344_v56 }
 0xae5   : > { %20351 = vmatmul.mubr.f32.vlgmr.msra.gmra.mrb[2].mxu1 %v30405_v59  ;;  %v10187_v59 = vld [vmem:[#allocation2 + $0x4] sm:$0xff] }
 0xae6   : > { %24523 = vmatpush3.bf16.msra.mxu1 %v30344_v56  ;;  %20385 = vmatprep.mubr.f32.mxu1 %v9584_v2  ;;  %v24556_v2 = vpack.c.bf16 %v9626_v50, %v9619_v48  ;;  %v30610_v48 = vand.u32 4294901760, %v10187_v59 }
 0xae7   : > { %24525 = vmatprep.subr.bf16.mxu1 %v30351_v54 }
 0xaea   : > { %24527 = vmatpush3.bf16.msra.mxu1 %v30351_v54 }
 0xaeb   : > { %24529 = vmatprep.subr.bf16.mxu1 %v30356_v52 }
 0xaee   : > { %24531 = vmatpush3.bf16.msra.mxu1 %v30356_v52 }
 0xaef   : > { %24533 = vmatprep.subr.bf16.mxu1 %v30360_v1 }
 0xaf2   : > { %24535 = vmatpush3.bf16.msra.mxu1 %v30360_v1 }
 0xaf3   : > { %24537 = vmatprep.subr.bf16.mxu1 %v30376_v17 }
 0xaf6   : > { %24539 = vmatpush3.bf16.msra.mxu1 %v30376_v17 }
 0xaf7   : > { %24541 = vmatprep.subr.bf16.mxu1 %v30388_v25 }
 0xafa   : > { %24543 = vmatpush3.bf16.msra.mxu1 %v30388_v25 }
 0xafb   : > { %24545 = vmatprep.subr.bf16.mxu1 %v30402_v12 }
 0xafe   : > { %24547 = vmatpush3.bf16.msra.mxu1 %v30402_v12 }
 0xaff   : > { %24549 = vmatprep.subr.bf16.mxu1 %v30432_v34 }
 0xb02   : > { %24551 = vmatpush3.bf16.msra.mxu1 %v30432_v34 }
 0xb03   : > { %24553 = vmatprep.subr.bf16.mxu1 %v24552_v45 }
 0xb05   : > { %20386 = vmatmul.mubr.f32.vlgmr.msra.gmra.mrb[2].mxu1 %v9594_v10  ;;  %v10194_v10 = vld [vmem:[#allocation7 + $0x220] sm:$0xff] }
 0xb06   : > { %24555 = vmatpush3.bf16.msra.mxu1 %v24552_v45  ;;  %20420 = vmatprep.mubr.f32.mxu1 %v30332_v33  ;;  %v10219_v61 = vand.u32 4294901760, %v10194_v10  ;;  %v10324_v45 = vand.u32 4294901760, %v30672_v3 }
 0xb07   : > { %24557 = vmatprep.subr.bf16.mxu1 %v24556_v2 }
 0xb0a   : > { %24559 = vmatpush3.bf16.msra.mxu1 %v24556_v2  ;;  %v10331_v2 = vand.u32 4294901760, %v30674_v53 }
 0xb0b   : > { %24561 = vmatprep.subr.bf16.mxu1 %v24560_v47 }
 0xb0e   : > { %24563 = vmatpush3.bf16.msra.mxu1 %v24560_v47  ;;  %v30697_v47 = vsub.f32 %v10194_v10, %v10219_v61  ;;  %v30728_v10 = vsub.f32 %v10198_v27, %v10231_v15  ;;  %v30752_v15 = vsub.f32 %v30642_v35, %v10240_v7 }
 0xb0f   : > { %24565 = vmatprep.subr.bf16.mxu1 %v24564_v24 }
 0xb12   : > { %24567 = vmatpush3.bf16.msra.mxu1 %v24564_v24 }
 0xb13   : > { %24569 = vmatprep.subr.bf16.mxu1 %v24568_v42 }
 0xb16   : > { %24571 = vmatpush3.bf16.msra.mxu1 %v24568_v42  ;;  %v30701_v42 = vsub.f32 %v10196_v19, %v10225_v51 }
 0xb17   : > { %24573 = vmatprep.subr.bf16.mxu1 %v24572_v62 }
 0xb18   : > { %v10352_v41 = vand.u32 4294901760, %v30701_v42 }
 0xb1a   : > { %24575 = vmatpush3.bf16.msra.mxu1 %v24572_v62 }
 0xb1b   : > { %24577 = vmatprep.subr.bf16.mxu1 %v24576_v57 }
 0xb1e   : > { %24579 = vmatpush3.bf16.msra.mxu1 %v24576_v57  ;;  %v30710_v57 = vpack.c.bf16 %v10252_v13, %v10249_v9 }
 0xb1f   : > { %24581 = vmatprep.subr.bf16.mxu1 %v24580_v29 }
 0xb22   : > { %24583 = vmatpush3.bf16.msra.mxu1 %v24580_v29  ;;  %v10299_v29 = vand.u32 4294901760, %v30683_v6 }
 0xb23   : > { %24585 = vmatprep.subr.bf16.mxu1 %v30344_v56 }
 0xb24   : > { %v10300_v32 = vsub.f32 %v30683_v6, %v10299_v29 }
 0xb25   : > { %20421 = vmatmul.mubr.f32.vlgmr.msra.gmra.mrb[2].mxu1 %v30382_v18 }
 0xb26   : > { %24587 = vmatpush3.bf16.msra.mxu1 %v30344_v56  ;;  %20455 = vmatprep.mubr.f32.mxu1 %v30332_v33  ;;  %v10190_v33 = vld [vmem:[#allocation7 + $0x200] sm:$0xff]  ;;  %v10191_v56 = vld [vmem:[#allocation7 + $0x208] sm:$0xff] }
 0xb27   : > { %24589 = vmatprep.subr.bf16.mxu1 %v30351_v54  ;;  %v10210_v50 = vand.u32 4294901760, %v10191_v56 }
 0xb29   : > { %v30651_v46 = vsub.f32 %v10191_v56, %v10210_v50  ;;  %v10325_v56 = vsub.f32 %v30672_v3, %v10324_v45 }
 0xb2a   : > { %24591 = vmatpush3.bf16.msra.mxu1 %v30351_v54  ;;  %v30615_v54 = vsub.f32 %v10187_v59, %v30610_v48 }
 0xb2b   : > { %24593 = vmatprep.subr.bf16.mxu1 %v30356_v52  ;;  %v10317_v40 = vand.u32 4294901760, %v30651_v46 }
 0xb2d   : > { %v10318_v37 = vsub.f32 %v30651_v46, %v10317_v40 }
 0xb2e   : > { %24595 = vmatpush3.bf16.msra.mxu1 %v30356_v52  ;;  %v10207_v52 = vand.u32 4294901760, %v10190_v33 }
 0xb2f   : > { %24597 = vmatprep.subr.bf16.mxu1 %v30360_v1 }
 0xb30   : > { %v30649_v22 = vsub.f32 %v10190_v33, %v10207_v52  ;;  %v10319_v33 = vand.u32 4294901760, %v10318_v37 }
 0xb32   : > { %24599 = vmatpush3.bf16.msra.mxu1 %v30360_v1  ;;  %v10289_v1 = vand.u32 4294901760, %v30615_v54  ;;  %v10310_v49 = vand.u32 4294901760, %v30649_v22 }
 0xb33   : > { %24601 = vmatprep.subr.bf16.mxu1 %v30376_v17 }
 0xb34   : > { %v10311_v20 = vsub.f32 %v30649_v22, %v10310_v49 }
 0xb36   : > { %24603 = vmatpush3.bf16.msra.mxu1 %v30376_v17  ;;  %v30622_v17 = vpack.c.bf16 %v10210_v50, %v10207_v52  ;;  %v10312_v59 = vand.u32 4294901760, %v10311_v20  ;;  %v10332_v52 = vsub.f32 %v30674_v53, %v10331_v2  ;;  %v10338_v50 = vand.u32 4294901760, %v30697_v47 }
 0xb37   : > { %24605 = vmatprep.subr.bf16.mxu1 %v30388_v25 }
 0xb3a   : > { %24607 = vmatpush3.bf16.msra.mxu1 %v30388_v25  ;;  %v10290_v25 = vsub.f32 %v30615_v54, %v10289_v1 }
 0xb3b   : > { %24609 = vmatprep.subr.bf16.mxu1 %v30402_v12 }
 0xb3c   : > { %v10291_v55 = vand.u32 4294901760, %v10290_v25  ;;  %v24648_v25 = vpack.c.bf16 %v10319_v33, %v10312_v59 }
 0xb3e   : > { %24611 = vmatpush3.bf16.msra.mxu1 %v30402_v12  ;;  %v10222_v12 = vand.u32 4294901760, %v10195_v44 }
 0xb3f   : > { %24613 = vmatprep.subr.bf16.mxu1 %v30432_v34 }
 0xb40   : > { %v30634_v8 = vpack.c.bf16 %v10222_v12, %v10219_v61  ;;  %v30699_v24 = vsub.f32 %v10195_v44, %v10222_v12  ;;  %v30730_v44 = vsub.f32 %v10199_v11, %v10234_v38  ;;  %v10326_v61 = vand.u32 4294901760, %v10325_v56 }
 0xb41   : > { %v10333_v12 = vand.u32 4294901760, %v10332_v52  ;;  %v10301_v38 = vand.u32 4294901760, %v10300_v32  ;;  %v30766_v52 = vsub.f32 %v30645_v16, %v10243_v28  ;;  %v30771_v32 = vsub.f32 %v30647_v39, %v10246_v23 }
 0xb42   : > { %24615 = vmatpush3.bf16.msra.mxu1 %v30432_v34  ;;  %v10228_v34 = vand.u32 4294901760, %v10197_v60  ;;  %v10345_v4 = vand.u32 4294901760, %v30699_v24  ;;  %v10373_v27 = vand.u32 4294901760, %v30730_v44  ;;  %v30784_v39 = vsub.f32 %v30668_v5, %v10249_v9 }
 0xb43   : > { %24617 = vmatprep.subr.bf16.mxu1 %v30622_v17  ;;  %v24652_v26 = vpack.c.bf16 %v10333_v12, %v10326_v61  ;;  %v10394_v16 = vand.u32 4294901760, %v30766_v52  ;;  %v10401_v28 = vand.u32 4294901760, %v30771_v32  ;;  %v30789_v23 = vsub.f32 %v30670_v14, %v10252_v13 }
 0xb44   : > { %v30638_v31 = vpack.c.bf16 %v10228_v34, %v10225_v51  ;;  %v30703_v62 = vsub.f32 %v10197_v60, %v10228_v34  ;;  %v10346_v19 = vsub.f32 %v30699_v24, %v10345_v4  ;;  %v10353_v60 = vsub.f32 %v30701_v42, %v10352_v41 }
 0xb45   : > { %20456 = vmatmul.mubr.f32.vlgmr.msra.gmra.mrb[2].mxu1 %v30382_v18  ;;  %v30640_v18 = vld [vmem:[#allocation7 + $0x250] sm:$0xff]  ;;  %v10366_v34 = vand.u32 4294901760, %v30728_v10  ;;  %v10408_v5 = vand.u32 4294901760, %v30784_v39  ;;  %v10415_v9 = vand.u32 4294901760, %v30789_v23 }
 0xb46   : > { %24619 = vmatpush3.bf16.msra.mxu1 %v30622_v17  ;;  %20490 = vmatprep.mubr.f32.mxu1 %v10291_v55  ;;  %v10237_v21 = vand.u32 4294901760, %v30640_v18  ;;  %v10359_v58 = vand.u32 4294901760, %v30703_v62  ;;  %v10339_v55 = vsub.f32 %v30697_v47, %v10338_v50  ;;  %v10347_v37 = vand.u32 4294901760, %v10346_v19 }
 0xb47   : > { %24621 = vmatprep.subr.bf16.mxu1 %v30629_v0  ;;  %v10354_v59 = vand.u32 4294901760, %v10353_v60  ;;  %v10367_v56 = vsub.f32 %v30728_v10, %v10366_v34 }
 0xb48   : > { %v30666_v36 = vpack.c.bf16 %v10240_v7, %v10237_v21  ;;  %v10360_v51 = vsub.f32 %v30703_v62, %v10359_v58  ;;  %v30749_v11 = vsub.f32 %v30640_v18, %v10237_v21  ;;  %v10340_v20 = vand.u32 4294901760, %v10339_v55 }
 0xb49   : > { %v10374_v18 = vsub.f32 %v30730_v44, %v10373_v27  ;;  %v10387_v21 = vand.u32 4294901760, %v30752_v15  ;;  %v10368_v61 = vand.u32 4294901760, %v10367_v56 }
 0xb4a   : > { %24623 = vmatpush3.bf16.msra.mxu1 %v30629_v0  ;;  %v10361_v33 = vand.u32 4294901760, %v10360_v51  ;;  %v10380_v35 = vand.u32 4294901760, %v30749_v11  ;;  %v24656_v7 = vpack.c.bf16 %v10347_v37, %v10340_v20  ;;  %v10402_v20 = vsub.f32 %v30771_v32, %v10401_v28 }
 0xb4b   : > { %24625 = vmatprep.subr.bf16.mxu1 %v30634_v8  ;;  %v10375_v12 = vand.u32 4294901760, %v10374_v18  ;;  %v10388_v19 = vsub.f32 %v30752_v15, %v10387_v21 }
 0xb4c   : > { %v10381_v55 = vsub.f32 %v30749_v11, %v10380_v35  ;;  %v10403_v37 = vand.u32 4294901760, %v10402_v20 }
 0xb4d   : > { %v24664_v60 = vpack.c.bf16 %v10375_v12, %v10368_v61  ;;  %v24680_v61 = vpack.c.bf16 %v30651_v46, %v30649_v22  ;;  %v24684_v12 = vpack.c.bf16 %v30674_v53, %v30672_v3  ;;  %v24752_v22 = vpack.c.bf16 %v10345_v4, %v10338_v50  ;;  %v10900_v50 = vld [vmem:[#allocation7 + $0x2a8] sm:$0xff] }
 0xb4e   : > { %24627 = vmatpush3.bf16.msra.mxu1 %v30634_v8  ;;  %v10382_v51 = vand.u32 4294901760, %v10381_v55  ;;  %v24688_v55 = vpack.c.bf16 %v30699_v24, %v30697_v47  ;;  %v24756_v46 = vpack.c.bf16 %v10359_v58, %v10352_v41  ;;  %v24768_v3 = vpack.c.bf16 %v10401_v28, %v10394_v16  ;;  %v10897_v47 = vld [vmem:[#allocation7 + $0x290] sm:$0xff]  ;;  %v10898_v24 = vld [vmem:[#allocation7 + $0x298] sm:$0xff]  ;;  %v30925_v28 = vld [vmem:[#allocation7 + $0x2e8] sm:$0xff] }
 0xb4f   : > { %24629 = vmatprep.subr.bf16.mxu1 %v30638_v31  ;;  %v24772_v53 = vpack.c.bf16 %v10415_v9, %v10408_v5 }
 0xb52   : > { %24631 = vmatpush3.bf16.msra.mxu1 %v30638_v31 }
 0xb53   : > { %24633 = vmatprep.subr.bf16.mxu1 %v30654_v30 }
 0xb56   : > { %24635 = vmatpush3.bf16.msra.mxu1 %v30654_v30 }
 0xb57   : > { %24637 = vmatprep.subr.bf16.mxu1 %v30666_v36 }
 0xb5a   : > { %24639 = vmatpush3.bf16.msra.mxu1 %v30666_v36 }
 0xb5b   : > { %24641 = vmatprep.subr.bf16.mxu1 %v30680_v63 }
 0xb5e   : > { %24643 = vmatpush3.bf16.msra.mxu1 %v30680_v63 }
 0xb5f   : > { %24645 = vmatprep.subr.bf16.mxu1 %v30710_v57 }
 0xb62   : > { %24647 = vmatpush3.bf16.msra.mxu1 %v30710_v57 }
 0xb63   : > { %24649 = vmatprep.subr.bf16.mxu1 %v24648_v25 }
 0xb65   : > { %20491 = vmatmul.mubr.f32.vlgmr.msra.gmra.mrb[2].mxu1 %v10301_v38  ;;  %v10389_v38 = vand.u32 4294901760, %v10388_v19  ;;  %v24692_v19 = vpack.c.bf16 %v30703_v62, %v30701_v42  ;;  %v10918_v42 = vand.u32 4294901760, %v10897_v47  ;;  %v10921_v62 = vand.u32 4294901760, %v10898_v24 }
 0xb66   : > { %24651 = vmatpush3.bf16.msra.mxu1 %v24648_v25  ;;  %20525 = vmatprep.mubr.f32.mxu1 %v30610_v48  ;;  %v24660_v25 = vpack.c.bf16 %v10361_v33, %v10354_v59  ;;  %v10409_v59 = vsub.f32 %v30784_v39, %v10408_v5  ;;  %v10416_v33 = vsub.f32 %v30789_v23, %v10415_v9 }
 0xb67   : > { %24653 = vmatprep.subr.bf16.mxu1 %v24652_v26  ;;  %v24668_v14 = vpack.c.bf16 %v10389_v38, %v10382_v51  ;;  %v24700_v51 = vpack.c.bf16 %v30752_v15, %v30749_v11  ;;  %v24704_v38 = vpack.c.bf16 %v30771_v32, %v30766_v52  ;;  %v30907_v4 = vpack.c.bf16 %v10921_v62, %v10918_v42  ;;  %v10903_v11 = vld [vmem:[#allocation7 + $0x2c0] sm:$0xff]  ;;  %v10904_v15 = vld [vmem:[#allocation7 + $0x2c8] sm:$0xff]  ;;  %v30920_v32 = vld [vmem:[#allocation7 + $0x2d8] sm:$0xff] }
 0xb68   : > { %v10410_v18 = vand.u32 4294901760, %v10409_v59 }
 0xb6a   : > { %24655 = vmatpush3.bf16.msra.mxu1 %v24652_v26  ;;  %v10395_v26 = vsub.f32 %v30766_v52, %v10394_v16  ;;  %v10939_v52 = vand.u32 4294901760, %v10904_v15  ;;  %v30923_v16 = vld [vmem:[#allocation7 + $0x2e0] sm:$0xff] }
 0xb6b   : > { %24657 = vmatprep.subr.bf16.mxu1 %v24656_v7 }
 0xb6c   : > { %v10396_v13 = vand.u32 4294901760, %v10395_v26  ;;  %v24708_v26 = vpack.c.bf16 %v30789_v23, %v30784_v39  ;;  %v10893_v39 = vld [vmem:[#allocation2 + $0xd] sm:$0xff] }
 0xb6d   : > { %v30938_v59 = vand.u32 4294901760, %v10893_v39 }
 0xb6e   : > { %24659 = vmatpush3.bf16.msra.mxu1 %v24656_v7  ;;  %v24672_v56 = vpack.c.bf16 %v10403_v37, %v10396_v13  ;;  %v10417_v7 = vand.u32 4294901760, %v10416_v33  ;;  %v10948_v13 = vand.u32 4294901760, %v30923_v16  ;;  %v10951_v37 = vand.u32 4294901760, %v30925_v28 }
 0xb6f   : > { %24661 = vmatprep.subr.bf16.mxu1 %v24660_v25 }
 0xb72   : > { %24663 = vmatpush3.bf16.msra.mxu1 %v24660_v25  ;;  %v24676_v25 = vpack.c.bf16 %v10417_v7, %v10410_v18  ;;  %v30946_v7 = vld [vmem:[#allocation7 + $0x2f0] sm:$0xff] }
 0xb73   : > { %24665 = vmatprep.subr.bf16.mxu1 %v24664_v60 }
 0xb76   : > { %24667 = vmatpush3.bf16.msra.mxu1 %v24664_v60  ;;  %v24696_v60 = vpack.c.bf16 %v30730_v44, %v30728_v10  ;;  %v10901_v10 = vld [vmem:[#allocation7 + $0x2b0] sm:$0xff]  ;;  %v10902_v44 = vld [vmem:[#allocation7 + $0x2b8] sm:$0xff] }
 0xb77   : > { %24669 = vmatprep.subr.bf16.mxu1 %v24668_v14 }
 0xb7a   : > { %24671 = vmatpush3.bf16.msra.mxu1 %v24668_v14  ;;  %v10945_v14 = vand.u32 4294901760, %v30920_v32 }
 0xb7b   : > { %24673 = vmatprep.subr.bf16.mxu1 %v24672_v56 }
 0xb7e   : > { %24675 = vmatpush3.bf16.msra.mxu1 %v24672_v56 }
 0xb7f   : > { %24677 = vmatprep.subr.bf16.mxu1 %v24676_v25 }
 0xb82   : > { %24679 = vmatpush3.bf16.msra.mxu1 %v24676_v25  ;;  %v30948_v25 = vld [vmem:[#allocation7 + $0x2f8] sm:$0xff] }
 0xb83   : > { %24681 = vmatprep.subr.bf16.mxu1 %v24680_v61 }
 0xb85   : > { %20526 = vmatmul.mubr.f32.vlgmr.msra.gmra.mrb[2].mxu1 %v30660_v43 }
 0xb86   : > { %24683 = vmatpush3.bf16.msra.mxu1 %v24680_v61  ;;  %20560 = vmatprep.mubr.f32.mxu1 %v30615_v54  ;;  %v24744_v54 = vpack.c.bf16 %v10317_v40, %v10310_v49  ;;  %v24760_v49 = vpack.c.bf16 %v10373_v27, %v10366_v34  ;;  %v24764_v40 = vpack.c.bf16 %v10387_v21, %v10380_v35  ;;  %v10930_v27 = vand.u32 4294901760, %v10901_v10 }
 0xb87   : > { %24685 = vmatprep.subr.bf16.mxu1 %v24684_v12  ;;  %v10936_v21 = vand.u32 4294901760, %v10903_v11  ;;  %v30950_v61 = vsub.f32 %v10897_v47, %v10918_v42 }
 0xb89   : > { %v30932_v5 = vpack.c.bf16 %v10939_v52, %v10936_v21 }
 0xb8a   : > { %24687 = vmatpush3.bf16.msra.mxu1 %v24684_v12  ;;  %v30952_v12 = vsub.f32 %v10898_v24, %v10921_v62 }
 0xb8b   : > { %24689 = vmatprep.subr.bf16.mxu1 %v24688_v55 }
 0xb8e   : > { %24691 = vmatpush3.bf16.msra.mxu1 %v24688_v55  ;;  %v30958_v55 = vpack.c.bf16 %v10951_v37, %v10948_v13 }
 0xb8f   : > { %24693 = vmatprep.subr.bf16.mxu1 %v24692_v19 }
 0xb92   : > { %24695 = vmatpush3.bf16.msra.mxu1 %v24692_v19  ;;  %v30961_v19 = vsub.f32 %v10893_v39, %v30938_v59 }
 0xb93   : > { %24697 = vmatprep.subr.bf16.mxu1 %v24696_v60 }
 0xb96   : > { %24699 = vmatpush3.bf16.msra.mxu1 %v24696_v60  ;;  %v10954_v60 = vand.u32 4294901760, %v30946_v7 }
 0xb97   : > { %24701 = vmatprep.subr.bf16.mxu1 %v24700_v51 }
 0xb9a   : > { %24703 = vmatpush3.bf16.msra.mxu1 %v24700_v51  ;;  %v10957_v51 = vand.u32 4294901760, %v30948_v25 }
 0xb9b   : > { %24705 = vmatprep.subr.bf16.mxu1 %v24704_v38 }
 0xb9e   : > { %24707 = vmatpush3.bf16.msra.mxu1 %v24704_v38 }
 0xb9f   : > { %24709 = vmatprep.subr.bf16.mxu1 %v24708_v26 }
 0xba2   : > { %24711 = vmatpush3.bf16.msra.mxu1 %v24708_v26 }
 0xba3   : > { %24713 = vmatprep.subr.bf16.mxu1 %v30622_v17 }
 0xba5   : > { %20561 = vmatmul.mubr.f32.vlgmr.msra.gmra.mrb[2].mxu1 %v30683_v6  ;;  %v10892_v6 = vld [vmem:[#allocation2 + $0x5] sm:$0xff] }
 0xba6   : > { %24715 = vmatpush3.bf16.msra.mxu1 %v30622_v17  ;;  %20595 = vmatprep.mubr.f32.mxu1 %v10289_v1  ;;  %v24748_v1 = vpack.c.bf16 %v10331_v2, %v10324_v45  ;;  %v30888_v45 = vand.u32 4294901760, %v10892_v6 }
 0xba7   : > { %24717 = vmatprep.subr.bf16.mxu1 %v30629_v0 }
 0xbaa   : > { %24719 = vmatpush3.bf16.msra.mxu1 %v30629_v0 }
 0xbab   : > { %24721 = vmatprep.subr.bf16.mxu1 %v30634_v8 }
 0xbae   : > { %24723 = vmatpush3.bf16.msra.mxu1 %v30634_v8 }
 0xbaf   : > { %24725 = vmatprep.subr.bf16.mxu1 %v30638_v31 }
 0xbb2   : > { %24727 = vmatpush3.bf16.msra.mxu1 %v30638_v31 }
 0xbb3   : > { %24729 = vmatprep.subr.bf16.mxu1 %v30654_v30 }
 0xbb6   : > { %24731 = vmatpush3.bf16.msra.mxu1 %v30654_v30 }
 0xbb7   : > { %24733 = vmatprep.subr.bf16.mxu1 %v30666_v36 }
 0xbba   : > { %24735 = vmatpush3.bf16.msra.mxu1 %v30666_v36 }
 0xbbb   : > { %24737 = vmatprep.subr.bf16.mxu1 %v30680_v63 }
 0xbbe   : > { %24739 = vmatpush3.bf16.msra.mxu1 %v30680_v63 }
 0xbbf   : > { %24741 = vmatprep.subr.bf16.mxu1 %v30710_v57 }
 0xbc2   : > { %24743 = vmatpush3.bf16.msra.mxu1 %v30710_v57 }
 0xbc3   : > { %24745 = vmatprep.subr.bf16.mxu1 %v24744_v54 }
 0xbc5   : > { %20596 = vmatmul.mubr.f32.vlgmr.msra.gmra.mrb[2].mxu1 %v10299_v29  ;;  %v10899_v29 = vld [vmem:[#allocation7 + $0x2a0] sm:$0xff] }
 0xbc6   : > { %24747 = vmatpush3.bf16.msra.mxu1 %v24744_v54  ;;  %20630 = vmatprep.mubr.f32.mxu1 %v30610_v48  ;;  %v10924_v41 = vand.u32 4294901760, %v10899_v29  ;;  %v11029_v54 = vand.u32 4294901760, %v30950_v61 }
 0xbc7   : > { %24749 = vmatprep.subr.bf16.mxu1 %v24748_v1 }
 0xbca   : > { %24751 = vmatpush3.bf16.msra.mxu1 %v24748_v1  ;;  %v11036_v1 = vand.u32 4294901760, %v30952_v12 }
 0xbcb   : > { %24753 = vmatprep.subr.bf16.mxu1 %v24752_v22 }
 0xbce   : > { %24755 = vmatpush3.bf16.msra.mxu1 %v24752_v22  ;;  %v30975_v22 = vsub.f32 %v10899_v29, %v10924_v41  ;;  %v31006_v29 = vsub.f32 %v10903_v11, %v10936_v21  ;;  %v31030_v21 = vsub.f32 %v30920_v32, %v10945_v14 }
 0xbcf   : > { %24757 = vmatprep.subr.bf16.mxu1 %v24756_v46 }
 0xbd2   : > { %24759 = vmatpush3.bf16.msra.mxu1 %v24756_v46 }
 0xbd3   : > { %24761 = vmatprep.subr.bf16.mxu1 %v24760_v49 }
 0xbd6   : > { %24763 = vmatpush3.bf16.msra.mxu1 %v24760_v49  ;;  %v30979_v49 = vsub.f32 %v10901_v10, %v10930_v27 }
 0xbd7   : > { %24765 = vmatprep.subr.bf16.mxu1 %v24764_v40 }
 0xbd8   : > { %v11057_v24 = vand.u32 4294901760, %v30979_v49 }
 0xbda   : > { %24767 = vmatpush3.bf16.msra.mxu1 %v24764_v40 }
 0xbdb   : > { %24769 = vmatprep.subr.bf16.mxu1 %v24768_v3 }
 0xbde   : > { %24771 = vmatpush3.bf16.msra.mxu1 %v24768_v3  ;;  %v30988_v3 = vpack.c.bf16 %v10957_v51, %v10954_v60 }
 0xbdf   : > { %24773 = vmatprep.subr.bf16.mxu1 %v24772_v53 }
 0xbe2   : > { %24775 = vmatpush3.bf16.msra.mxu1 %v24772_v53  ;;  %v11004_v53 = vand.u32 4294901760, %v30961_v19 }
 0xbe3   : > { %24777 = vmatprep.subr.bf16.mxu1 %v30622_v17 }
 0xbe4   : > { %v11005_v62 = vsub.f32 %v30961_v19, %v11004_v53 }
 0xbe5   : > { %20631 = vmatmul.mubr.f32.vlgmr.msra.gmra.mrb[2].mxu1 %v30660_v43 }
 0xbe6   : > { %24779 = vmatpush3.bf16.msra.mxu1 %v30622_v17  ;;  %20665 = vmatprep.mubr.f32.mxu1 %v30610_v48  ;;  %v10895_v48 = vld [vmem:[#allocation7 + $0x280] sm:$0xff]  ;;  %v10896_v17 = vld [vmem:[#allocation7 + $0x288] sm:$0xff] }
 0xbe7   : > { %24781 = vmatprep.subr.bf16.mxu1 %v30629_v0  ;;  %v10915_v2 = vand.u32 4294901760, %v10896_v17 }
 0xbe9   : > { %v30929_v20 = vsub.f32 %v10896_v17, %v10915_v2  ;;  %v11030_v17 = vsub.f32 %v30950_v61, %v11029_v54 }
 0xbea   : > { %24783 = vmatpush3.bf16.msra.mxu1 %v30629_v0  ;;  %v30893_v0 = vsub.f32 %v10892_v6, %v30888_v45 }
 0xbeb   : > { %24785 = vmatprep.subr.bf16.mxu1 %v30634_v8  ;;  %v11022_v56 = vand.u32 4294901760, %v30929_v20 }
 0xbed   : > { %v11023_v26 = vsub.f32 %v30929_v20, %v11022_v56 }
 0xbee   : > { %24787 = vmatpush3.bf16.msra.mxu1 %v30634_v8  ;;  %v10912_v8 = vand.u32 4294901760, %v10895_v48 }
 0xbef   : > { %24789 = vmatprep.subr.bf16.mxu1 %v30638_v31 }
 0xbf0   : > { %v30927_v23 = vsub.f32 %v10895_v48, %v10912_v8  ;;  %v11024_v48 = vand.u32 4294901760, %v11023_v26 }
 0xbf2   : > { %24791 = vmatpush3.bf16.msra.mxu1 %v30638_v31  ;;  %v10994_v31 = vand.u32 4294901760, %v30893_v0  ;;  %v11015_v33 = vand.u32 4294901760, %v30927_v23 }
 0xbf3   : > { %24793 = vmatprep.subr.bf16.mxu1 %v30654_v30 }
 0xbf4   : > { %v11016_v38 = vsub.f32 %v30927_v23, %v11015_v33 }
 0xbf6   : > { %24795 = vmatpush3.bf16.msra.mxu1 %v30654_v30  ;;  %v30900_v30 = vpack.c.bf16 %v10915_v2, %v10912_v8  ;;  %v11017_v6 = vand.u32 4294901760, %v11016_v38  ;;  %v11037_v8 = vsub.f32 %v30952_v12, %v11036_v1  ;;  %v11043_v2 = vand.u32 4294901760, %v30975_v22 }
 0xbf7   : > { %24797 = vmatprep.subr.bf16.mxu1 %v30666_v36 }
 0xbfa   : > { %24799 = vmatpush3.bf16.msra.mxu1 %v30666_v36  ;;  %v10995_v36 = vsub.f32 %v30893_v0, %v10994_v31 }
 0xbfb   : > { %24801 = vmatprep.subr.bf16.mxu1 %v30680_v63 }
 0xbfc   : > { %v10996_v58 = vand.u32 4294901760, %v10995_v36  ;;  %v24840_v36 = vpack.c.bf16 %v11024_v48, %v11017_v6 }
 0xbfe   : > { %24803 = vmatpush3.bf16.msra.mxu1 %v30680_v63  ;;  %v10927_v63 = vand.u32 4294901760, %v10900_v50 }
 0xbff   : > { %24805 = vmatprep.subr.bf16.mxu1 %v30710_v57 }
 0xc00   : > { %v30912_v34 = vpack.c.bf16 %v10927_v63, %v10924_v41  ;;  %v30977_v46 = vsub.f32 %v10900_v50, %v10927_v63  ;;  %v31008_v50 = vsub.f32 %v10904_v15, %v10939_v52  ;;  %v11031_v41 = vand.u32 4294901760, %v11030_v17 }
 0xc01   : > { %v11038_v63 = vand.u32 4294901760, %v11037_v8  ;;  %v11006_v52 = vand.u32 4294901760, %v11005_v62  ;;  %v31044_v8 = vsub.f32 %v30923_v16, %v10948_v13  ;;  %v31049_v62 = vsub.f32 %v30925_v28, %v10951_v37 }
 0xc02   : > { %24807 = vmatpush3.bf16.msra.mxu1 %v30710_v57  ;;  %v10933_v57 = vand.u32 4294901760, %v10902_v44  ;;  %v11050_v47 = vand.u32 4294901760, %v30977_v46  ;;  %v11078_v11 = vand.u32 4294901760, %v31008_v50  ;;  %v31062_v28 = vsub.f32 %v30946_v7, %v10954_v60 }
 0xc03   : > { %24809 = vmatprep.subr.bf16.mxu1 %v30900_v30  ;;  %v24844_v39 = vpack.c.bf16 %v11038_v63, %v11031_v41  ;;  %v11099_v16 = vand.u32 4294901760, %v31044_v8  ;;  %v11106_v13 = vand.u32 4294901760, %v31049_v62  ;;  %v31067_v37 = vsub.f32 %v30948_v25, %v10957_v51 }
 0xc04   : > { %v30916_v35 = vpack.c.bf16 %v10933_v57, %v10930_v27  ;;  %v30981_v40 = vsub.f32 %v10902_v44, %v10933_v57  ;;  %v11051_v10 = vsub.f32 %v30977_v46, %v11050_v47  ;;  %v11058_v44 = vsub.f32 %v30979_v49, %v11057_v24 }
 0xc05   : > { %20666 = vmatmul.mubr.f32.vlgmr.msra.gmra.mrb[2].mxu1 %v30660_v43  ;;  %v30918_v43 = vld [vmem:[#allocation7 + $0x2d0] sm:$0xff]  ;;  %v11071_v57 = vand.u32 4294901760, %v31006_v29  ;;  %v11113_v7 = vand.u32 4294901760, %v31062_v28  ;;  %v11120_v60 = vand.u32 4294901760, %v31067_v37 }
 0xc06   : > { %24811 = vmatpush3.bf16.msra.mxu1 %v30900_v30  ;;  %20700 = vmatprep.mubr.f32.mxu1 %v10996_v58  ;;  %v10942_v9 = vand.u32 4294901760, %v30918_v43  ;;  %v11064_v42 = vand.u32 4294901760, %v30981_v40  ;;  %v11044_v58 = vsub.f32 %v30975_v22, %v11043_v2  ;;  %v11052_v26 = vand.u32 4294901760, %v11051_v10 }
 0xc07   : > { %24813 = vmatprep.subr.bf16.mxu1 %v30907_v4  ;;  %v11059_v6 = vand.u32 4294901760, %v11058_v44  ;;  %v11072_v17 = vsub.f32 %v31006_v29, %v11071_v57 }
 0xc08   : > { %v30944_v18 = vpack.c.bf16 %v10945_v14, %v10942_v9  ;;  %v11065_v27 = vsub.f32 %v30981_v40, %v11064_v42  ;;  %v31027_v15 = vsub.f32 %v30918_v43, %v10942_v9  ;;  %v11045_v38 = vand.u32 4294901760, %v11044_v58 }
 0xc09   : > { %v11079_v43 = vsub.f32 %v31008_v50, %v11078_v11  ;;  %v11092_v9 = vand.u32 4294901760, %v31030_v21  ;;  %v11073_v41 = vand.u32 4294901760, %v11072_v17 }
 0xc0a   : > { %24815 = vmatpush3.bf16.msra.mxu1 %v30907_v4  ;;  %v11066_v48 = vand.u32 4294901760, %v11065_v27  ;;  %v11085_v32 = vand.u32 4294901760, %v31027_v15  ;;  %v24848_v14 = vpack.c.bf16 %v11052_v26, %v11045_v38  ;;  %v11107_v38 = vsub.f32 %v31049_v62, %v11106_v13 }
 0xc0b   : > { %24817 = vmatprep.subr.bf16.mxu1 %v30912_v34  ;;  %v11080_v63 = vand.u32 4294901760, %v11079_v43  ;;  %v11093_v10 = vsub.f32 %v31030_v21, %v11092_v9 }
 0xc0c   : > { %v11086_v58 = vsub.f32 %v31027_v15, %v11085_v32  ;;  %v11108_v26 = vand.u32 4294901760, %v11107_v38 }
 0xc0d   : > { %v24856_v44 = vpack.c.bf16 %v11080_v63, %v11073_v41  ;;  %v24872_v41 = vpack.c.bf16 %v30929_v20, %v30927_v23  ;;  %v24876_v63 = vpack.c.bf16 %v30952_v12, %v30950_v61  ;;  %v24944_v23 = vpack.c.bf16 %v11050_v47, %v11043_v2  ;;  %v11605_v2 = vld [vmem:[#allocation7 + $0x328] sm:$0xff] }
 0xc0e   : > { %24819 = vmatpush3.bf16.msra.mxu1 %v30912_v34  ;;  %v11087_v27 = vand.u32 4294901760, %v11086_v58  ;;  %v24880_v58 = vpack.c.bf16 %v30977_v46, %v30975_v22  ;;  %v24948_v20 = vpack.c.bf16 %v11064_v42, %v11057_v24  ;;  %v24960_v61 = vpack.c.bf16 %v11106_v13, %v11099_v16  ;;  %v11602_v22 = vld [vmem:[#allocation7 + $0x310] sm:$0xff]  ;;  %v11603_v46 = vld [vmem:[#allocation7 + $0x318] sm:$0xff]  ;;  %v31203_v13 = vld [vmem:[#allocation7 + $0x360] sm:$0xff] }
 0xc0f   : > { %24821 = vmatprep.subr.bf16.mxu1 %v30916_v35  ;;  %v24964_v12 = vpack.c.bf16 %v11120_v60, %v11113_v7 }
 0xc12   : > { %24823 = vmatpush3.bf16.msra.mxu1 %v30916_v35 }
 0xc13   : > { %24825 = vmatprep.subr.bf16.mxu1 %v30932_v5 }
 0xc16   : > { %24827 = vmatpush3.bf16.msra.mxu1 %v30932_v5 }
 0xc17   : > { %24829 = vmatprep.subr.bf16.mxu1 %v30944_v18 }
 0xc1a   : > { %24831 = vmatpush3.bf16.msra.mxu1 %v30944_v18 }
 0xc1b   : > { %24833 = vmatprep.subr.bf16.mxu1 %v30958_v55 }
 0xc1e   : > { %24835 = vmatpush3.bf16.msra.mxu1 %v30958_v55 }
 0xc1f   : > { %24837 = vmatprep.subr.bf16.mxu1 %v30988_v3 }
 0xc22   : > { %24839 = vmatpush3.bf16.msra.mxu1 %v30988_v3 }
 0xc23   : > { %24841 = vmatprep.subr.bf16.mxu1 %v24840_v36 }
 0xc25   : > { %20701 = vmatmul.mubr.f32.vlgmr.msra.gmra.mrb[2].mxu1 %v11006_v52  ;;  %v11094_v52 = vand.u32 4294901760, %v11093_v10  ;;  %v24884_v10 = vpack.c.bf16 %v30981_v40, %v30979_v49  ;;  %v11623_v49 = vand.u32 4294901760, %v11602_v22  ;;  %v11626_v40 = vand.u32 4294901760, %v11603_v46 }
 0xc26   : > { %24843 = vmatpush3.bf16.msra.mxu1 %v24840_v36  ;;  %20735 = vmatprep.mubr.f32.mxu1 %v30888_v45  ;;  %v24852_v36 = vpack.c.bf16 %v11066_v48, %v11059_v6  ;;  %v11114_v6 = vsub.f32 %v31062_v28, %v11113_v7  ;;  %v11121_v48 = vsub.f32 %v31067_v37, %v11120_v60 }
 0xc27   : > { %24845 = vmatprep.subr.bf16.mxu1 %v24844_v39  ;;  %v24860_v25 = vpack.c.bf16 %v11094_v52, %v11087_v27  ;;  %v24892_v27 = vpack.c.bf16 %v31030_v21, %v31027_v15  ;;  %v24896_v52 = vpack.c.bf16 %v31049_v62, %v31044_v8  ;;  %v31185_v47 = vpack.c.bf16 %v11626_v40, %v11623_v49  ;;  %v11608_v15 = vld [vmem:[#allocation7 + $0x340] sm:$0xff]  ;;  %v11609_v21 = vld [vmem:[#allocation7 + $0x348] sm:$0xff]  ;;  %v31198_v62 = vld [vmem:[#allocation7 + $0x358] sm:$0xff] }
 0xc28   : > { %v11115_v43 = vand.u32 4294901760, %v11114_v6  ;;  %v11650_v7 = vand.u32 4294901760, %v31198_v62 }
 0xc2a   : > { %24847 = vmatpush3.bf16.msra.mxu1 %v24844_v39  ;;  %v11100_v39 = vsub.f32 %v31044_v8, %v11099_v16 }
 0xc2b   : > { %24849 = vmatprep.subr.bf16.mxu1 %v24848_v14 }
 0xc2c   : > { %v11101_v51 = vand.u32 4294901760, %v11100_v39  ;;  %v24900_v39 = vpack.c.bf16 %v31067_v37, %v31062_v28  ;;  %v31205_v28 = vld [vmem:[#allocation7 + $0x368] sm:$0xff] }
 0xc2d   : > { %v11598_v37 = vld [vmem:[#allocation2 + $0xe] sm:$0xff] }
 0xc2e   : > { %24851 = vmatpush3.bf16.msra.mxu1 %v24848_v14  ;;  %v24864_v17 = vpack.c.bf16 %v11108_v26, %v11101_v51  ;;  %v11122_v14 = vand.u32 4294901760, %v11121_v48  ;;  %v11653_v51 = vand.u32 4294901760, %v31203_v13  ;;  %v11656_v26 = vand.u32 4294901760, %v31205_v28 }
 0xc2f   : > { %24853 = vmatprep.subr.bf16.mxu1 %v24852_v36  ;;  %v31216_v6 = vand.u32 4294901760, %v11598_v37  ;;  %v31219_v48 = vsub.f32 %v11602_v22, %v11623_v49 }
 0xc32   : > { %24855 = vmatpush3.bf16.msra.mxu1 %v24852_v36  ;;  %v24868_v36 = vpack.c.bf16 %v11122_v14, %v11115_v43  ;;  %v31226_v14 = vld [vmem:[#allocation7 + $0x370] sm:$0xff] }
 0xc33   : > { %24857 = vmatprep.subr.bf16.mxu1 %v24856_v44 }
 0xc36   : > { %24859 = vmatpush3.bf16.msra.mxu1 %v24856_v44  ;;  %v24888_v44 = vpack.c.bf16 %v31008_v50, %v31006_v29  ;;  %v11606_v29 = vld [vmem:[#allocation7 + $0x330] sm:$0xff]  ;;  %v11607_v50 = vld [vmem:[#allocation7 + $0x338] sm:$0xff] }
 0xc37   : > { %24861 = vmatprep.subr.bf16.mxu1 %v24860_v25 }
 0xc3a   : > { %24863 = vmatpush3.bf16.msra.mxu1 %v24860_v25 }
 0xc3b   : > { %24865 = vmatprep.subr.bf16.mxu1 %v24864_v17 }
 0xc3e   : > { %24867 = vmatpush3.bf16.msra.mxu1 %v24864_v17  ;;  %v31221_v17 = vsub.f32 %v11603_v46, %v11626_v40 }
 0xc3f   : > { %24869 = vmatprep.subr.bf16.mxu1 %v24868_v36 }
 0xc42   : > { %24871 = vmatpush3.bf16.msra.mxu1 %v24868_v36  ;;  %v31228_v36 = vld [vmem:[#allocation7 + $0x378] sm:$0xff] }
 0xc43   : > { %24873 = vmatprep.subr.bf16.mxu1 %v24872_v41 }
 0xc45   : > { %20736 = vmatmul.mubr.f32.vlgmr.msra.gmra.mrb[2].mxu1 %v30938_v59 }
 0xc46   : > { %24875 = vmatpush3.bf16.msra.mxu1 %v24872_v41  ;;  %20770 = vmatprep.mubr.f32.mxu1 %v30893_v0  ;;  %v24936_v0 = vpack.c.bf16 %v11022_v56, %v11015_v33  ;;  %v24952_v33 = vpack.c.bf16 %v11078_v11, %v11071_v57  ;;  %v24956_v56 = vpack.c.bf16 %v11092_v9, %v11085_v32  ;;  %v11635_v11 = vand.u32 4294901760, %v11606_v29 }
 0xc47   : > { %24877 = vmatprep.subr.bf16.mxu1 %v24876_v63  ;;  %v11641_v32 = vand.u32 4294901760, %v11608_v15  ;;  %v11644_v9 = vand.u32 4294901760, %v11609_v21 }
 0xc49   : > { %v31201_v16 = vpack.c.bf16 %v11644_v9, %v11641_v32 }
 0xc4a   : > { %24879 = vmatpush3.bf16.msra.mxu1 %v24876_v63 }
 0xc4b   : > { %24881 = vmatprep.subr.bf16.mxu1 %v24880_v58 }
 0xc4e   : > { %24883 = vmatpush3.bf16.msra.mxu1 %v24880_v58  ;;  %v31236_v58 = vpack.c.bf16 %v11656_v26, %v11653_v51 }
 0xc4f   : > { %24885 = vmatprep.subr.bf16.mxu1 %v24884_v10 }
 0xc52   : > { %24887 = vmatpush3.bf16.msra.mxu1 %v24884_v10  ;;  %v31239_v10 = vsub.f32 %v11598_v37, %v31216_v6 }
 0xc53   : > { %24889 = vmatprep.subr.bf16.mxu1 %v24888_v44 }
 0xc56   : > { %24891 = vmatpush3.bf16.msra.mxu1 %v24888_v44  ;;  %v11659_v44 = vand.u32 4294901760, %v31226_v14 }
 0xc57   : > { %24893 = vmatprep.subr.bf16.mxu1 %v24892_v27 }
 0xc5a   : > { %24895 = vmatpush3.bf16.msra.mxu1 %v24892_v27  ;;  %v11662_v27 = vand.u32 4294901760, %v31228_v36 }
 0xc5b   : > { %24897 = vmatprep.subr.bf16.mxu1 %v24896_v52 }
 0xc5e   : > { %24899 = vmatpush3.bf16.msra.mxu1 %v24896_v52  ;;  %v11734_v52 = vand.u32 4294901760, %v31219_v48 }
 0xc5f   : > { %24901 = vmatprep.subr.bf16.mxu1 %v24900_v39 }
 0xc62   : > { %24903 = vmatpush3.bf16.msra.mxu1 %v24900_v39  ;;  %v11741_v39 = vand.u32 4294901760, %v31221_v17 }
 0xc63   : > { %24905 = vmatprep.subr.bf16.mxu1 %v30900_v30 }
 0xc65   : > { %20771 = vmatmul.mubr.f32.vlgmr.msra.gmra.mrb[2].mxu1 %v30961_v19  ;;  %v11597_v19 = vld [vmem:[#allocation2 + $0x6] sm:$0xff] }
 0xc66   : > { %24907 = vmatpush3.bf16.msra.mxu1 %v30900_v30  ;;  %20805 = vmatprep.mubr.f32.mxu1 %v10994_v31  ;;  %v24940_v31 = vpack.c.bf16 %v11036_v1, %v11029_v54  ;;  %v31166_v54 = vand.u32 4294901760, %v11597_v19 }
 0xc67   : > { %24909 = vmatprep.subr.bf16.mxu1 %v30907_v4 }
 0xc6a   : > { %24911 = vmatpush3.bf16.msra.mxu1 %v30907_v4 }
 0xc6b   : > { %24913 = vmatprep.subr.bf16.mxu1 %v30912_v34 }
 0xc6e   : > { %24915 = vmatpush3.bf16.msra.mxu1 %v30912_v34 }
 0xc6f   : > { %24917 = vmatprep.subr.bf16.mxu1 %v30916_v35 }
 0xc72   : > { %24919 = vmatpush3.bf16.msra.mxu1 %v30916_v35 }
 0xc73   : > { %24921 = vmatprep.subr.bf16.mxu1 %v30932_v5 }
 0xc76   : > { %24923 = vmatpush3.bf16.msra.mxu1 %v30932_v5 }
 0xc77   : > { %24925 = vmatprep.subr.bf16.mxu1 %v30944_v18 }
 0xc7a   : > { %24927 = vmatpush3.bf16.msra.mxu1 %v30944_v18 }
 0xc7b   : > { %24929 = vmatprep.subr.bf16.mxu1 %v30958_v55 }
 0xc7e   : > { %24931 = vmatpush3.bf16.msra.mxu1 %v30958_v55 }
 0xc7f   : > { %24933 = vmatprep.subr.bf16.mxu1 %v30988_v3 }
 0xc82   : > { %24935 = vmatpush3.bf16.msra.mxu1 %v30988_v3 }
 0xc83   : > { %24937 = vmatprep.subr.bf16.mxu1 %v24936_v0 }
 0xc85   : > { %20806 = vmatmul.mubr.f32.vlgmr.msra.gmra.mrb[2].mxu1 %v11004_v53  ;;  %v11604_v53 = vld [vmem:[#allocation7 + $0x320] sm:$0xff] }
 0xc86   : > { %24939 = vmatpush3.bf16.msra.mxu1 %v24936_v0  ;;  %20840 = vmatprep.mubr.f32.mxu1 %v30888_v45  ;;  %v11629_v24 = vand.u32 4294901760, %v11604_v53 }
 0xc87   : > { %24941 = vmatprep.subr.bf16.mxu1 %v24940_v31 }
 0xc8a   : > { %24943 = vmatpush3.bf16.msra.mxu1 %v24940_v31 }
 0xc8b   : > { %24945 = vmatprep.subr.bf16.mxu1 %v24944_v23 }
 0xc8e   : > { %24947 = vmatpush3.bf16.msra.mxu1 %v24944_v23  ;;  %v31253_v23 = vsub.f32 %v11604_v53, %v11629_v24  ;;  %v31284_v53 = vsub.f32 %v11608_v15, %v11641_v32  ;;  %v31308_v32 = vsub.f32 %v31198_v62, %v11650_v7 }
 0xc8f   : > { %24949 = vmatprep.subr.bf16.mxu1 %v24948_v20 }
 0xc92   : > { %24951 = vmatpush3.bf16.msra.mxu1 %v24948_v20 }
 0xc93   : > { %24953 = vmatprep.subr.bf16.mxu1 %v24952_v33 }
 0xc96   : > { %24955 = vmatpush3.bf16.msra.mxu1 %v24952_v33  ;;  %v31257_v33 = vsub.f32 %v11606_v29, %v11635_v11 }
 0xc97   : > { %24957 = vmatprep.subr.bf16.mxu1 %v24956_v56 }
 0xc98   : > { %v11762_v46 = vand.u32 4294901760, %v31257_v33 }
 0xc9a   : > { %24959 = vmatpush3.bf16.msra.mxu1 %v24956_v56 }
 0xc9b   : > { %24961 = vmatprep.subr.bf16.mxu1 %v24960_v61 }
 0xc9e   : > { %24963 = vmatpush3.bf16.msra.mxu1 %v24960_v61  ;;  %v31266_v61 = vpack.c.bf16 %v11662_v27, %v11659_v44 }
 0xc9f   : > { %24965 = vmatprep.subr.bf16.mxu1 %v24964_v12 }
 0xca2   : > { %24967 = vmatpush3.bf16.msra.mxu1 %v24964_v12  ;;  %v11709_v12 = vand.u32 4294901760, %v31239_v10 }
 0xca3   : > { %24969 = vmatprep.subr.bf16.mxu1 %v30900_v30 }
 0xca4   : > { %v11710_v40 = vsub.f32 %v31239_v10, %v11709_v12 }
 0xca5   : > { %20841 = vmatmul.mubr.f32.vlgmr.msra.gmra.mrb[2].mxu1 %v30938_v59 }
 0xca6   : > { %24971 = vmatpush3.bf16.msra.mxu1 %v30900_v30  ;;  %20875 = vmatprep.mubr.f32.mxu1 %v30888_v45  ;;  %v11600_v45 = vld [vmem:[#allocation7 + $0x300] sm:$0xff]  ;;  %v11601_v30 = vld [vmem:[#allocation7 + $0x308] sm:$0xff] }
 0xca7   : > { %24973 = vmatprep.subr.bf16.mxu1 %v30907_v4  ;;  %v11620_v1 = vand.u32 4294901760, %v11601_v30 }
 0xca9   : > { %v31212_v25 = vsub.f32 %v11601_v30, %v11620_v1 }
 0xcaa   : > { %24975 = vmatpush3.bf16.msra.mxu1 %v30907_v4  ;;  %v31171_v4 = vsub.f32 %v11597_v19, %v31166_v54  ;;  %v11735_v19 = vsub.f32 %v31219_v48, %v11734_v52 }
 0xcab   : > { %24977 = vmatprep.subr.bf16.mxu1 %v30912_v34  ;;  %v11727_v63 = vand.u32 4294901760, %v31212_v25 }
 0xcad   : > { %v11728_v31 = vsub.f32 %v31212_v25, %v11727_v63 }
 0xcae   : > { %24979 = vmatpush3.bf16.msra.mxu1 %v30912_v34  ;;  %v11617_v34 = vand.u32 4294901760, %v11600_v45 }
 0xcaf   : > { %24981 = vmatprep.subr.bf16.mxu1 %v30916_v35 }
 0xcb0   : > { %v31210_v60 = vsub.f32 %v11600_v45, %v11617_v34  ;;  %v11742_v45 = vsub.f32 %v31221_v17, %v11741_v39 }
 0xcb2   : > { %24983 = vmatpush3.bf16.msra.mxu1 %v30916_v35  ;;  %v11699_v35 = vand.u32 4294901760, %v31171_v4  ;;  %v11720_v41 = vand.u32 4294901760, %v31210_v60 }
 0xcb3   : > { %24985 = vmatprep.subr.bf16.mxu1 %v30932_v5 }
 0xcb4   : > { %v11721_v0 = vsub.f32 %v31210_v60, %v11720_v41 }
 0xcb6   : > { %24987 = vmatpush3.bf16.msra.mxu1 %v30932_v5  ;;  %v31178_v5 = vpack.c.bf16 %v11620_v1, %v11617_v34  ;;  %v11722_v30 = vand.u32 4294901760, %v11721_v0  ;;  %v11729_v34 = vand.u32 4294901760, %v11728_v31  ;;  %v11748_v1 = vand.u32 4294901760, %v31253_v23 }
 0xcb7   : > { %24989 = vmatprep.subr.bf16.mxu1 %v30944_v18 }
 0xcba   : > { %24991 = vmatpush3.bf16.msra.mxu1 %v30944_v18  ;;  %v11700_v18 = vsub.f32 %v31171_v4, %v11699_v35 }
 0xcbb   : > { %24993 = vmatprep.subr.bf16.mxu1 %v30958_v55 }
 0xcbc   : > { %v11701_v42 = vand.u32 4294901760, %v11700_v18  ;;  %v11736_v18 = vand.u32 4294901760, %v11735_v19 }
 0xcbe   : > { %24995 = vmatpush3.bf16.msra.mxu1 %v30958_v55  ;;  %v11632_v55 = vand.u32 4294901760, %v11605_v2 }
 0xcbf   : > { %24997 = vmatprep.subr.bf16.mxu1 %v30988_v3 }
 0xcc0   : > { %v31190_v57 = vpack.c.bf16 %v11632_v55, %v11629_v24  ;;  %v31255_v20 = vsub.f32 %v11605_v2, %v11632_v55  ;;  %v31286_v2 = vsub.f32 %v11609_v21, %v11644_v9  ;;  %v25032_v24 = vpack.c.bf16 %v11729_v34, %v11722_v30 }
 0xcc1   : > { %v11743_v55 = vand.u32 4294901760, %v11742_v45  ;;  %v11711_v9 = vand.u32 4294901760, %v11710_v40  ;;  %v31322_v34 = vsub.f32 %v31203_v13, %v11653_v51  ;;  %v31327_v40 = vsub.f32 %v31205_v28, %v11656_v26 }
 0xcc2   : > { %24999 = vmatpush3.bf16.msra.mxu1 %v30988_v3  ;;  %v11638_v3 = vand.u32 4294901760, %v11607_v50  ;;  %v11755_v22 = vand.u32 4294901760, %v31255_v20  ;;  %v11783_v15 = vand.u32 4294901760, %v31286_v2  ;;  %v31340_v28 = vsub.f32 %v31226_v14, %v11659_v44 }
 0xcc3   : > { %25001 = vmatprep.subr.bf16.mxu1 %v31178_v5  ;;  %v25036_v37 = vpack.c.bf16 %v11743_v55, %v11736_v18  ;;  %v11804_v13 = vand.u32 4294901760, %v31322_v34  ;;  %v11811_v51 = vand.u32 4294901760, %v31327_v40  ;;  %v31345_v26 = vsub.f32 %v31228_v36, %v11662_v27 }
 0xcc4   : > { %v31194_v8 = vpack.c.bf16 %v11638_v3, %v11635_v11  ;;  %v31259_v56 = vsub.f32 %v11607_v50, %v11638_v3  ;;  %v11756_v29 = vsub.f32 %v31255_v20, %v11755_v22  ;;  %v11763_v50 = vsub.f32 %v31257_v33, %v11762_v46 }
 0xcc5   : > { %20876 = vmatmul.mubr.f32.vlgmr.msra.gmra.mrb[2].mxu1 %v30938_v59  ;;  %v31196_v59 = vld [vmem:[#allocation7 + $0x350] sm:$0xff]  ;;  %v11776_v3 = vand.u32 4294901760, %v31284_v53  ;;  %v11818_v14 = vand.u32 4294901760, %v31340_v28  ;;  %v11825_v44 = vand.u32 4294901760, %v31345_v26 }
 0xcc6   : > { %25003 = vmatpush3.bf16.msra.mxu1 %v31178_v5  ;;  %20910 = vmatprep.mubr.f32.mxu1 %v11701_v42  ;;  %v11647_v38 = vand.u32 4294901760, %v31196_v59  ;;  %v11769_v49 = vand.u32 4294901760, %v31259_v56  ;;  %v11749_v42 = vsub.f32 %v31253_v23, %v11748_v1  ;;  %v11757_v31 = vand.u32 4294901760, %v11756_v29 }
 0xcc7   : > { %25005 = vmatprep.subr.bf16.mxu1 %v31185_v47  ;;  %v11764_v19 = vand.u32 4294901760, %v11763_v50  ;;  %v11777_v30 = vsub.f32 %v31284_v53, %v11776_v3 }
 0xcc8   : > { %v31224_v43 = vpack.c.bf16 %v11650_v7, %v11647_v38  ;;  %v11770_v11 = vsub.f32 %v31259_v56, %v11769_v49  ;;  %v31305_v21 = vsub.f32 %v31196_v59, %v11647_v38  ;;  %v11750_v0 = vand.u32 4294901760, %v11749_v42 }
 0xcc9   : > { %v11784_v59 = vsub.f32 %v31286_v2, %v11783_v15  ;;  %v11797_v38 = vand.u32 4294901760, %v31308_v32 }
 0xcca   : > { %25007 = vmatpush3.bf16.msra.mxu1 %v31185_v47  ;;  %v11771_v45 = vand.u32 4294901760, %v11770_v11  ;;  %v11790_v62 = vand.u32 4294901760, %v31305_v21  ;;  %v25040_v7 = vpack.c.bf16 %v11757_v31, %v11750_v0  ;;  %v11812_v0 = vsub.f32 %v31327_v40, %v11811_v51 }
 0xccb   : > { %25009 = vmatprep.subr.bf16.mxu1 %v31190_v57  ;;  %v11785_v55 = vand.u32 4294901760, %v11784_v59  ;;  %v11798_v29 = vsub.f32 %v31308_v32, %v11797_v38 }
 0xccc   : > { %v25044_v18 = vpack.c.bf16 %v11771_v45, %v11764_v19  ;;  %v11791_v42 = vsub.f32 %v31305_v21, %v11790_v62  ;;  %v11813_v31 = vand.u32 4294901760, %v11812_v0  ;;  %v11819_v19 = vsub.f32 %v31340_v28, %v11818_v14 }
 0xccd   : > { %v11826_v45 = vsub.f32 %v31345_v26, %v11825_v44 }
 0xcce   : > { %25011 = vmatpush3.bf16.msra.mxu1 %v31190_v57  ;;  %v11792_v11 = vand.u32 4294901760, %v11791_v42  ;;  %v11820_v59 = vand.u32 4294901760, %v11819_v19  ;;  %v25072_v42 = vpack.c.bf16 %v31255_v20, %v31253_v23  ;;  %v12307_v23 = vld [vmem:[#allocation7 + $0x390] sm:$0xff]  ;;  %v12308_v20 = vld [vmem:[#allocation7 + $0x398] sm:$0xff] }
 0xccf   : > { %25013 = vmatprep.subr.bf16.mxu1 %v31194_v8 }
 0xcd2   : > { %25015 = vmatpush3.bf16.msra.mxu1 %v31194_v8 }
 0xcd3   : > { %25017 = vmatprep.subr.bf16.mxu1 %v31201_v16 }
 0xcd6   : > { %25019 = vmatpush3.bf16.msra.mxu1 %v31201_v16 }
 0xcd7   : > { %25021 = vmatprep.subr.bf16.mxu1 %v31224_v43 }
 0xcda   : > { %25023 = vmatpush3.bf16.msra.mxu1 %v31224_v43 }
 0xcdb   : > { %25025 = vmatprep.subr.bf16.mxu1 %v31236_v58 }
 0xcde   : > { %25027 = vmatpush3.bf16.msra.mxu1 %v31236_v58 }
 0xcdf   : > { %25029 = vmatprep.subr.bf16.mxu1 %v31266_v61 }
 0xce2   : > { %25031 = vmatpush3.bf16.msra.mxu1 %v31266_v61 }
 0xce3   : > { %25033 = vmatprep.subr.bf16.mxu1 %v25032_v24 }
 0xce5   : > { %20911 = vmatmul.mubr.f32.vlgmr.msra.gmra.mrb[2].mxu1 %v11711_v9  ;;  %v11799_v9 = vand.u32 4294901760, %v11798_v29  ;;  %v25076_v29 = vpack.c.bf16 %v31259_v56, %v31257_v33  ;;  %v12328_v33 = vand.u32 4294901760, %v12307_v23  ;;  %v12331_v56 = vand.u32 4294901760, %v12308_v20 }
 0xce6   : > { %25035 = vmatpush3.bf16.msra.mxu1 %v25032_v24  ;;  %20945 = vmatprep.mubr.f32.mxu1 %v31166_v54  ;;  %v11778_v24 = vand.u32 4294901760, %v11777_v30 }
 0xce7   : > { %25037 = vmatprep.subr.bf16.mxu1 %v25036_v37  ;;  %v25052_v36 = vpack.c.bf16 %v11799_v9, %v11792_v11  ;;  %v25084_v11 = vpack.c.bf16 %v31308_v32, %v31305_v21  ;;  %v25088_v9 = vpack.c.bf16 %v31327_v40, %v31322_v34  ;;  %v12313_v21 = vld [vmem:[#allocation7 + $0x3c0] sm:$0xff]  ;;  %v12314_v32 = vld [vmem:[#allocation7 + $0x3c8] sm:$0xff]  ;;  %v31476_v40 = vld [vmem:[#allocation7 + $0x3d8] sm:$0xff] }
 0xce8   : > { %v25048_v50 = vpack.c.bf16 %v11785_v55, %v11778_v24  ;;  %v25064_v24 = vpack.c.bf16 %v31212_v25, %v31210_v60  ;;  %v25068_v55 = vpack.c.bf16 %v31221_v17, %v31219_v48  ;;  %v25136_v60 = vpack.c.bf16 %v11755_v22, %v11748_v1  ;;  %v12310_v1 = vld [vmem:[#allocation7 + $0x3a8] sm:$0xff] }
 0xce9   : > { %v25140_v25 = vpack.c.bf16 %v11769_v49, %v11762_v46  ;;  %v25144_v48 = vpack.c.bf16 %v11783_v15, %v11776_v3  ;;  %v25148_v17 = vpack.c.bf16 %v11797_v38, %v11790_v62  ;;  %v31463_v22 = vpack.c.bf16 %v12331_v56, %v12328_v33 }
 0xcea   : > { %25039 = vmatpush3.bf16.msra.mxu1 %v25036_v37  ;;  %v11805_v37 = vsub.f32 %v31322_v34, %v11804_v13  ;;  %v12346_v62 = vand.u32 4294901760, %v12313_v21  ;;  %v12349_v38 = vand.u32 4294901760, %v12314_v32 }
 0xceb   : > { %25041 = vmatprep.subr.bf16.mxu1 %v25040_v7 }
 0xcec   : > { %v11806_v27 = vand.u32 4294901760, %v11805_v37  ;;  %v25092_v37 = vpack.c.bf16 %v31345_v26, %v31340_v28  ;;  %v31483_v28 = vld [vmem:[#allocation7 + $0x3e8] sm:$0xff] }
 0xced   : > { %v12303_v26 = vld [vmem:[#allocation2 + $0xf] sm:$0xff] }
 0xcee   : > { %25043 = vmatpush3.bf16.msra.mxu1 %v25040_v7  ;;  %v25056_v30 = vpack.c.bf16 %v11813_v31, %v11806_v27  ;;  %v11827_v7 = vand.u32 4294901760, %v11826_v45  ;;  %v12361_v31 = vand.u32 4294901760, %v31483_v28  ;;  %v31494_v19 = vand.u32 4294901760, %v12303_v26 }
 0xcef   : > { %25045 = vmatprep.subr.bf16.mxu1 %v25044_v18  ;;  %v31497_v45 = vsub.f32 %v12307_v23, %v12328_v33 }
 0xcf2   : > { %25047 = vmatpush3.bf16.msra.mxu1 %v25044_v18  ;;  %v25060_v18 = vpack.c.bf16 %v11827_v7, %v11820_v59  ;;  %v31504_v7 = vld [vmem:[#allocation7 + $0x3f0] sm:$0xff] }
 0xcf3   : > { %25049 = vmatprep.subr.bf16.mxu1 %v25048_v50 }
 0xcf6   : > { %25051 = vmatpush3.bf16.msra.mxu1 %v25048_v50  ;;  %v25080_v50 = vpack.c.bf16 %v31286_v2, %v31284_v53  ;;  %v12311_v53 = vld [vmem:[#allocation7 + $0x3b0] sm:$0xff]  ;;  %v12312_v2 = vld [vmem:[#allocation7 + $0x3b8] sm:$0xff] }
 0xcf7   : > { %25053 = vmatprep.subr.bf16.mxu1 %v25052_v36  ;;  %v12340_v15 = vand.u32 4294901760, %v12311_v53 }
 0xcfa   : > { %25055 = vmatpush3.bf16.msra.mxu1 %v25052_v36 }
 0xcfb   : > { %25057 = vmatprep.subr.bf16.mxu1 %v25056_v30 }
 0xcfe   : > { %25059 = vmatpush3.bf16.msra.mxu1 %v25056_v30  ;;  %v31499_v30 = vsub.f32 %v12308_v20, %v12331_v56 }
 0xcff   : > { %25061 = vmatprep.subr.bf16.mxu1 %v25060_v18 }
 0xd02   : > { %25063 = vmatpush3.bf16.msra.mxu1 %v25060_v18  ;;  %v31506_v18 = vld [vmem:[#allocation7 + $0x3f8] sm:$0xff] }
 0xd03   : > { %25065 = vmatprep.subr.bf16.mxu1 %v25064_v24 }
 0xd05   : > { %20946 = vmatmul.mubr.f32.vlgmr.msra.gmra.mrb[2].mxu1 %v31216_v6 }
 0xd06   : > { %25067 = vmatpush3.bf16.msra.mxu1 %v25064_v24  ;;  %20980 = vmatprep.mubr.f32.mxu1 %v31171_v4  ;;  %v25128_v4 = vpack.c.bf16 %v11727_v63, %v11720_v41  ;;  %v25152_v41 = vpack.c.bf16 %v11811_v51, %v11804_v13  ;;  %v25156_v63 = vpack.c.bf16 %v11825_v44, %v11818_v14  ;;  %v31481_v51 = vld [vmem:[#allocation7 + $0x3e0] sm:$0xff]  ;;  %v12355_v14 = vand.u32 4294901760, %v31476_v40 }
 0xd07   : > { %25069 = vmatprep.subr.bf16.mxu1 %v25068_v55  ;;  %v31479_v13 = vpack.c.bf16 %v12349_v38, %v12346_v62  ;;  %v12358_v27 = vand.u32 4294901760, %v31481_v51 }
 0xd0a   : > { %25071 = vmatpush3.bf16.msra.mxu1 %v25068_v55 }
 0xd0b   : > { %25073 = vmatprep.subr.bf16.mxu1 %v25072_v42 }
 0xd0e   : > { %25075 = vmatpush3.bf16.msra.mxu1 %v25072_v42  ;;  %v31514_v42 = vpack.c.bf16 %v12361_v31, %v12358_v27 }
 0xd0f   : > { %25077 = vmatprep.subr.bf16.mxu1 %v25076_v29 }
 0xd12   : > { %25079 = vmatpush3.bf16.msra.mxu1 %v25076_v29  ;;  %v31517_v29 = vsub.f32 %v12303_v26, %v31494_v19 }
 0xd13   : > { %25081 = vmatprep.subr.bf16.mxu1 %v25080_v50 }
 0xd16   : > { %25083 = vmatpush3.bf16.msra.mxu1 %v25080_v50  ;;  %v12364_v50 = vand.u32 4294901760, %v31504_v7 }
 0xd17   : > { %25085 = vmatprep.subr.bf16.mxu1 %v25084_v11 }
 0xd1a   : > { %25087 = vmatpush3.bf16.msra.mxu1 %v25084_v11  ;;  %v12367_v11 = vand.u32 4294901760, %v31506_v18 }
 0xd1b   : > { %25089 = vmatprep.subr.bf16.mxu1 %v25088_v9 }
 0xd1e   : > { %25091 = vmatpush3.bf16.msra.mxu1 %v25088_v9  ;;  %v12439_v9 = vand.u32 4294901760, %v31497_v45 }
 0xd1f   : > { %25093 = vmatprep.subr.bf16.mxu1 %v25092_v37 }
 0xd22   : > { %25095 = vmatpush3.bf16.msra.mxu1 %v25092_v37  ;;  %v12446_v37 = vand.u32 4294901760, %v31499_v30 }
 0xd23   : > { %25097 = vmatprep.subr.bf16.mxu1 %v31178_v5 }
 0xd25   : > { %20981 = vmatmul.mubr.f32.vlgmr.msra.gmra.mrb[2].mxu1 %v31239_v10  ;;  %v12302_v10 = vld [vmem:[#allocation2 + $0x7] sm:$0xff] }
 0xd26   : > { %25099 = vmatpush3.bf16.msra.mxu1 %v31178_v5  ;;  %21015 = vmatprep.mubr.f32.mxu1 %v11699_v35  ;;  %v25132_v35 = vpack.c.bf16 %v11741_v39, %v11734_v52  ;;  %v31444_v52 = vand.u32 4294901760, %v12302_v10 }
 0xd27   : > { %25101 = vmatprep.subr.bf16.mxu1 %v31185_v47 }
 0xd2a   : > { %25103 = vmatpush3.bf16.msra.mxu1 %v31185_v47 }
 0xd2b   : > { %25105 = vmatprep.subr.bf16.mxu1 %v31190_v57 }
 0xd2e   : > { %25107 = vmatpush3.bf16.msra.mxu1 %v31190_v57 }
 0xd2f   : > { %25109 = vmatprep.subr.bf16.mxu1 %v31194_v8 }
 0xd32   : > { %25111 = vmatpush3.bf16.msra.mxu1 %v31194_v8 }
 0xd33   : > { %25113 = vmatprep.subr.bf16.mxu1 %v31201_v16 }
 0xd36   : > { %25115 = vmatpush3.bf16.msra.mxu1 %v31201_v16 }
 0xd37   : > { %25117 = vmatprep.subr.bf16.mxu1 %v31224_v43 }
 0xd3a   : > { %25119 = vmatpush3.bf16.msra.mxu1 %v31224_v43 }
 0xd3b   : > { %25121 = vmatprep.subr.bf16.mxu1 %v31236_v58 }
 0xd3e   : > { %25123 = vmatpush3.bf16.msra.mxu1 %v31236_v58 }
 0xd3f   : > { %25125 = vmatprep.subr.bf16.mxu1 %v31266_v61 }
 0xd42   : > { %25127 = vmatpush3.bf16.msra.mxu1 %v31266_v61 }
 0xd43   : > { %25129 = vmatprep.subr.bf16.mxu1 %v25128_v4 }
 0xd45   : > { %21016 = vmatmul.mubr.f32.vlgmr.msra.gmra.mrb[2].mxu1 %v11709_v12  ;;  %v12309_v12 = vld [vmem:[#allocation7 + $0x3a0] sm:$0xff] }
 0xd46   : > { %25131 = vmatpush3.bf16.msra.mxu1 %v25128_v4  ;;  %21050 = vmatprep.mubr.f32.mxu1 %v31166_v54  ;;  %v12334_v46 = vand.u32 4294901760, %v12309_v12 }
 0xd47   : > { %25133 = vmatprep.subr.bf16.mxu1 %v25132_v35 }
 0xd4a   : > { %25135 = vmatpush3.bf16.msra.mxu1 %v25132_v35 }
 0xd4b   : > { %25137 = vmatprep.subr.bf16.mxu1 %v25136_v60 }
 0xd4e   : > { %25139 = vmatpush3.bf16.msra.mxu1 %v25136_v60  ;;  %v31531_v60 = vsub.f32 %v12309_v12, %v12334_v46  ;;  %v31562_v12 = vsub.f32 %v12313_v21, %v12346_v62  ;;  %v31586_v62 = vsub.f32 %v31476_v40, %v12355_v14 }
 0xd4f   : > { %25141 = vmatprep.subr.bf16.mxu1 %v25140_v25 }
 0xd52   : > { %25143 = vmatpush3.bf16.msra.mxu1 %v25140_v25 }
 0xd53   : > { %25145 = vmatprep.subr.bf16.mxu1 %v25144_v48 }
 0xd56   : > { %25147 = vmatpush3.bf16.msra.mxu1 %v25144_v48  ;;  %v31535_v48 = vsub.f32 %v12311_v53, %v12340_v15 }
 0xd57   : > { %25149 = vmatprep.subr.bf16.mxu1 %v25148_v17 }
 0xd58   : > { %v12467_v20 = vand.u32 4294901760, %v31535_v48 }
 0xd5a   : > { %25151 = vmatpush3.bf16.msra.mxu1 %v25148_v17 }
 0xd5b   : > { %25153 = vmatprep.subr.bf16.mxu1 %v25152_v41 }
 0xd5e   : > { %25155 = vmatpush3.bf16.msra.mxu1 %v25152_v41  ;;  %v31544_v41 = vpack.c.bf16 %v12367_v11, %v12364_v50 }
 0xd5f   : > { %25157 = vmatprep.subr.bf16.mxu1 %v25156_v63 }
 0xd62   : > { %25159 = vmatpush3.bf16.msra.mxu1 %v25156_v63  ;;  %v12414_v63 = vand.u32 4294901760, %v31517_v29 }
 0xd63   : > { %25161 = vmatprep.subr.bf16.mxu1 %v31178_v5 }
 0xd64   : > { %v12415_v56 = vsub.f32 %v31517_v29, %v12414_v63 }
 0xd65   : > { %21051 = vmatmul.mubr.f32.vlgmr.msra.gmra.mrb[2].mxu1 %v31216_v6 }
 0xd66   : > { %25163 = vmatpush3.bf16.msra.mxu1 %v31178_v5  ;;  %21085 = vmatprep.mubr.f32.mxu1 %v31166_v54  ;;  %v12305_v54 = vld [vmem:[#allocation7 + $0x380] sm:$0xff]  ;;  %v12306_v5 = vld [vmem:[#allocation7 + $0x388] sm:$0xff] }
 0xd67   : > { %25165 = vmatprep.subr.bf16.mxu1 %v31185_v47  ;;  %v12325_v39 = vand.u32 4294901760, %v12306_v5 }
 0xd69   : > { %v31490_v36 = vsub.f32 %v12306_v5, %v12325_v39 }
 0xd6a   : > { %25167 = vmatpush3.bf16.msra.mxu1 %v31185_v47  ;;  %v31449_v47 = vsub.f32 %v12302_v10, %v31444_v52  ;;  %v12440_v10 = vsub.f32 %v31497_v45, %v12439_v9 }
 0xd6b   : > { %25169 = vmatprep.subr.bf16.mxu1 %v31190_v57  ;;  %v12432_v55 = vand.u32 4294901760, %v31490_v36 }
 0xd6d   : > { %v12433_v35 = vsub.f32 %v31490_v36, %v12432_v55 }
 0xd6e   : > { %25171 = vmatpush3.bf16.msra.mxu1 %v31190_v57  ;;  %v12322_v57 = vand.u32 4294901760, %v12305_v54 }
 0xd6f   : > { %25173 = vmatprep.subr.bf16.mxu1 %v31194_v8 }
 0xd70   : > { %v31488_v44 = vsub.f32 %v12305_v54, %v12322_v57  ;;  %v12447_v54 = vsub.f32 %v31499_v30, %v12446_v37 }
 0xd72   : > { %25175 = vmatpush3.bf16.msra.mxu1 %v31194_v8  ;;  %v12404_v8 = vand.u32 4294901760, %v31449_v47  ;;  %v12425_v24 = vand.u32 4294901760, %v31488_v44 }
 0xd73   : > { %25177 = vmatprep.subr.bf16.mxu1 %v31201_v16 }
 0xd74   : > { %v12426_v4 = vsub.f32 %v31488_v44, %v12425_v24 }
 0xd76   : > { %25179 = vmatpush3.bf16.msra.mxu1 %v31201_v16  ;;  %v31456_v16 = vpack.c.bf16 %v12325_v39, %v12322_v57  ;;  %v12427_v5 = vand.u32 4294901760, %v12426_v4  ;;  %v12434_v57 = vand.u32 4294901760, %v12433_v35  ;;  %v12453_v39 = vand.u32 4294901760, %v31531_v60 }
 0xd77   : > { %25181 = vmatprep.subr.bf16.mxu1 %v31224_v43 }
 0xd7a   : > { %25183 = vmatpush3.bf16.msra.mxu1 %v31224_v43  ;;  %v12405_v43 = vsub.f32 %v31449_v47, %v12404_v8 }
 0xd7b   : > { %25185 = vmatprep.subr.bf16.mxu1 %v31236_v58 }
 0xd7c   : > { %v12406_v49 = vand.u32 4294901760, %v12405_v43  ;;  %v12441_v43 = vand.u32 4294901760, %v12440_v10 }
 0xd7e   : > { %25187 = vmatpush3.bf16.msra.mxu1 %v31236_v58  ;;  %v12337_v58 = vand.u32 4294901760, %v12310_v1 }
 0xd7f   : > { %25189 = vmatprep.subr.bf16.mxu1 %v31266_v61 }
 0xd80   : > { %v31468_v3 = vpack.c.bf16 %v12337_v58, %v12334_v46  ;;  %v31533_v25 = vsub.f32 %v12310_v1, %v12337_v58  ;;  %v31564_v1 = vsub.f32 %v12314_v32, %v12349_v38  ;;  %v25224_v46 = vpack.c.bf16 %v12434_v57, %v12427_v5 }
 0xd81   : > { %v12448_v58 = vand.u32 4294901760, %v12447_v54  ;;  %v12416_v38 = vand.u32 4294901760, %v12415_v56  ;;  %v31600_v57 = vsub.f32 %v31481_v51, %v12358_v27  ;;  %v31605_v56 = vsub.f32 %v31483_v28, %v12361_v31 }
 0xd82   : > { %25191 = vmatpush3.bf16.msra.mxu1 %v31266_v61  ;;  %v12343_v61 = vand.u32 4294901760, %v12312_v2  ;;  %v12460_v23 = vand.u32 4294901760, %v31533_v25  ;;  %v12488_v21 = vand.u32 4294901760, %v31564_v1  ;;  %v31618_v28 = vsub.f32 %v31504_v7, %v12364_v50 }
 0xd83   : > { %25193 = vmatprep.subr.bf16.mxu1 %v31456_v16  ;;  %v25228_v26 = vpack.c.bf16 %v12448_v58, %v12441_v43  ;;  %v12509_v51 = vand.u32 4294901760, %v31600_v57  ;;  %v12516_v27 = vand.u32 4294901760, %v31605_v56  ;;  %v31623_v31 = vsub.f32 %v31506_v18, %v12367_v11 }
 0xd84   : > { %v31472_v34 = vpack.c.bf16 %v12343_v61, %v12340_v15  ;;  %v31537_v17 = vsub.f32 %v12312_v2, %v12343_v61  ;;  %v12461_v53 = vsub.f32 %v31533_v25, %v12460_v23  ;;  %v12468_v2 = vsub.f32 %v31535_v48, %v12467_v20 }
 0xd85   : > { %21086 = vmatmul.mubr.f32.vlgmr.msra.gmra.mrb[2].mxu1 %v31216_v6  ;;  %v31474_v6 = vld [vmem:[#allocation7 + $0x3d0] sm:$0xff]  ;;  %v12481_v61 = vand.u32 4294901760, %v31562_v12  ;;  %v12523_v7 = vand.u32 4294901760, %v31618_v28  ;;  %v12530_v50 = vand.u32 4294901760, %v31623_v31 }
 0xd86   : > { %25195 = vmatpush3.bf16.msra.mxu1 %v31456_v16  ;;  %21120 = vmatprep.mubr.f32.mxu1 %v12406_v49  ;;  %v12352_v0 = vand.u32 4294901760, %v31474_v6  ;;  %v12474_v33 = vand.u32 4294901760, %v31537_v17  ;;  %v12454_v49 = vsub.f32 %v31531_v60, %v12453_v39  ;;  %v12462_v35 = vand.u32 4294901760, %v12461_v53 }
 0xd87   : > { %25197 = vmatprep.subr.bf16.mxu1 %v31463_v22  ;;  %v12469_v10 = vand.u32 4294901760, %v12468_v2  ;;  %v12482_v5 = vsub.f32 %v31562_v12, %v12481_v61 }
 0xd88   : > { %v31502_v59 = vpack.c.bf16 %v12355_v14, %v12352_v0  ;;  %v12475_v15 = vsub.f32 %v31537_v17, %v12474_v33  ;;  %v31583_v32 = vsub.f32 %v31474_v6, %v12352_v0  ;;  %v12455_v4 = vand.u32 4294901760, %v12454_v49 }
 0xd89   : > { %v12489_v6 = vsub.f32 %v31564_v1, %v12488_v21  ;;  %v12502_v0 = vand.u32 4294901760, %v31586_v62 }
 0xd8a   : > { %25199 = vmatpush3.bf16.msra.mxu1 %v31463_v22  ;;  %v12476_v54 = vand.u32 4294901760, %v12475_v15  ;;  %v12495_v40 = vand.u32 4294901760, %v31583_v32  ;;  %v25232_v14 = vpack.c.bf16 %v12462_v35, %v12455_v4  ;;  %v12517_v4 = vsub.f32 %v31605_v56, %v12516_v27 }
 0xd8b   : > { %25201 = vmatprep.subr.bf16.mxu1 %v31468_v3  ;;  %v12490_v58 = vand.u32 4294901760, %v12489_v6  ;;  %v12503_v53 = vsub.f32 %v31586_v62, %v12502_v0 }
 0xd8c   : > { %v25236_v43 = vpack.c.bf16 %v12476_v54, %v12469_v10  ;;  %v12496_v49 = vsub.f32 %v31583_v32, %v12495_v40  ;;  %v12518_v35 = vand.u32 4294901760, %v12517_v4  ;;  %v12524_v10 = vsub.f32 %v31618_v28, %v12523_v7 }
 0xd8d   : > { %v12531_v54 = vsub.f32 %v31623_v31, %v12530_v50 }
 0xd8e   : > { %25203 = vmatpush3.bf16.msra.mxu1 %v31468_v3  ;;  %v12497_v15 = vand.u32 4294901760, %v12496_v49  ;;  %v12525_v6 = vand.u32 4294901760, %v12524_v10  ;;  %v25264_v49 = vpack.c.bf16 %v31533_v25, %v31531_v60  ;;  %v13012_v60 = vld [vmem:[#allocation7 + $0x410] sm:$0xff]  ;;  %v13013_v25 = vld [vmem:[#allocation7 + $0x418] sm:$0xff] }
 0xd8f   : > { %25205 = vmatprep.subr.bf16.mxu1 %v31472_v34 }
 0xd92   : > { %25207 = vmatpush3.bf16.msra.mxu1 %v31472_v34 }
 0xd93   : > { %25209 = vmatprep.subr.bf16.mxu1 %v31479_v13 }
 0xd96   : > { %25211 = vmatpush3.bf16.msra.mxu1 %v31479_v13 }
 0xd97   : > { %25213 = vmatprep.subr.bf16.mxu1 %v31502_v59 }
 0xd9a   : > { %25215 = vmatpush3.bf16.msra.mxu1 %v31502_v59 }
 0xd9b   : > { %25217 = vmatprep.subr.bf16.mxu1 %v31514_v42 }
 0xd9e   : > { %25219 = vmatpush3.bf16.msra.mxu1 %v31514_v42 }
 0xd9f   : > { %25221 = vmatprep.subr.bf16.mxu1 %v31544_v41 }
 0xda2   : > { %25223 = vmatpush3.bf16.msra.mxu1 %v31544_v41 }
 0xda3   : > { %25225 = vmatprep.subr.bf16.mxu1 %v25224_v46 }
 0xda5   : > { %21121 = vmatmul.mubr.f32.vlgmr.msra.gmra.mrb[2].mxu1 %v12416_v38  ;;  %v12504_v38 = vand.u32 4294901760, %v12503_v53  ;;  %v25268_v53 = vpack.c.bf16 %v31537_v17, %v31535_v48  ;;  %v13033_v48 = vand.u32 4294901760, %v13012_v60  ;;  %v13036_v17 = vand.u32 4294901760, %v13013_v25 }
 0xda6   : > { %25227 = vmatpush3.bf16.msra.mxu1 %v25224_v46  ;;  %21155 = vmatprep.mubr.f32.mxu1 %v31444_v52  ;;  %v12483_v46 = vand.u32 4294901760, %v12482_v5 }
 0xda7   : > { %25229 = vmatprep.subr.bf16.mxu1 %v25228_v26  ;;  %v25244_v18 = vpack.c.bf16 %v12504_v38, %v12497_v15  ;;  %v25276_v15 = vpack.c.bf16 %v31586_v62, %v31583_v32  ;;  %v25280_v38 = vpack.c.bf16 %v31605_v56, %v31600_v57  ;;  %v13018_v32 = vld [vmem:[#allocation7 + $0x440] sm:$0xff]  ;;  %v13019_v62 = vld [vmem:[#allocation7 + $0x448] sm:$0xff]  ;;  %v31754_v56 = vld [vmem:[#allocation7 + $0x458] sm:$0xff] }
 0xda8   : > { %v25240_v2 = vpack.c.bf16 %v12490_v58, %v12483_v46  ;;  %v25256_v46 = vpack.c.bf16 %v31490_v36, %v31488_v44  ;;  %v25260_v58 = vpack.c.bf16 %v31499_v30, %v31497_v45  ;;  %v25328_v44 = vpack.c.bf16 %v12460_v23, %v12453_v39  ;;  %v13015_v39 = vld [vmem:[#allocation7 + $0x428] sm:$0xff] }
 0xda9   : > { %v25332_v36 = vpack.c.bf16 %v12474_v33, %v12467_v20  ;;  %v25336_v45 = vpack.c.bf16 %v12488_v21, %v12481_v61  ;;  %v25340_v30 = vpack.c.bf16 %v12502_v0, %v12495_v40  ;;  %v31741_v23 = vpack.c.bf16 %v13036_v17, %v13033_v48 }
 0xdaa   : > { %25231 = vmatpush3.bf16.msra.mxu1 %v25228_v26  ;;  %v12510_v26 = vsub.f32 %v31600_v57, %v12509_v51  ;;  %v13051_v40 = vand.u32 4294901760, %v13018_v32  ;;  %v13054_v0 = vand.u32 4294901760, %v13019_v62 }
 0xdab   : > { %25233 = vmatprep.subr.bf16.mxu1 %v25232_v14 }
 0xdac   : > { %v12511_v11 = vand.u32 4294901760, %v12510_v26  ;;  %v25284_v26 = vpack.c.bf16 %v31623_v31, %v31618_v28  ;;  %v31761_v28 = vld [vmem:[#allocation7 + $0x468] sm:$0xff]  ;;  %v13008_v31 = vld [vmem:[#allocation2 + $0x10] sm:$0xff] }
 0xdad   : > { %v31772_v10 = vand.u32 4294901760, %v13008_v31 }
 0xdae   : > { %25235 = vmatpush3.bf16.msra.mxu1 %v25232_v14  ;;  %v25248_v5 = vpack.c.bf16 %v12518_v35, %v12511_v11  ;;  %v12532_v14 = vand.u32 4294901760, %v12531_v54  ;;  %v13066_v35 = vand.u32 4294901760, %v31761_v28  ;;  %v31775_v54 = vsub.f32 %v13012_v60, %v13033_v48 }
 0xdaf   : > { %25237 = vmatprep.subr.bf16.mxu1 %v25236_v43 }
 0xdb2   : > { %25239 = vmatpush3.bf16.msra.mxu1 %v25236_v43  ;;  %v25252_v43 = vpack.c.bf16 %v12532_v14, %v12525_v6  ;;  %v31782_v14 = vld [vmem:[#allocation7 + $0x470] sm:$0xff] }
 0xdb3   : > { %25241 = vmatprep.subr.bf16.mxu1 %v25240_v2 }
 0xdb6   : > { %25243 = vmatpush3.bf16.msra.mxu1 %v25240_v2  ;;  %v25272_v2 = vpack.c.bf16 %v31564_v1, %v31562_v12  ;;  %v13016_v12 = vld [vmem:[#allocation7 + $0x430] sm:$0xff]  ;;  %v13017_v1 = vld [vmem:[#allocation7 + $0x438] sm:$0xff] }
 0xdb7   : > { %25245 = vmatprep.subr.bf16.mxu1 %v25244_v18  ;;  %v13045_v21 = vand.u32 4294901760, %v13016_v12 }
 0xdba   : > { %25247 = vmatpush3.bf16.msra.mxu1 %v25244_v18 }
 0xdbb   : > { %25249 = vmatprep.subr.bf16.mxu1 %v25248_v5 }
 0xdbe   : > { %25251 = vmatpush3.bf16.msra.mxu1 %v25248_v5  ;;  %v31777_v5 = vsub.f32 %v13013_v25, %v13036_v17 }
 0xdbf   : > { %25253 = vmatprep.subr.bf16.mxu1 %v25252_v43 }
 0xdc2   : > { %25255 = vmatpush3.bf16.msra.mxu1 %v25252_v43  ;;  %v31784_v43 = vld [vmem:[#allocation7 + $0x478] sm:$0xff] }
 0xdc3   : > { %25257 = vmatprep.subr.bf16.mxu1 %v25256_v46 }
 0xdc5   : > { %21156 = vmatmul.mubr.f32.vlgmr.msra.gmra.mrb[2].mxu1 %v31494_v19 }
 0xdc6   : > { %25259 = vmatpush3.bf16.msra.mxu1 %v25256_v46  ;;  %21190 = vmatprep.mubr.f32.mxu1 %v31449_v47  ;;  %v25320_v47 = vpack.c.bf16 %v12432_v55, %v12425_v24  ;;  %v25344_v24 = vpack.c.bf16 %v12516_v27, %v12509_v51  ;;  %v25348_v55 = vpack.c.bf16 %v12530_v50, %v12523_v7  ;;  %v31759_v27 = vld [vmem:[#allocation7 + $0x460] sm:$0xff]  ;;  %v13060_v7 = vand.u32 4294901760, %v31754_v56 }
 0xdc7   : > { %25261 = vmatprep.subr.bf16.mxu1 %v25260_v58  ;;  %v31757_v51 = vpack.c.bf16 %v13054_v0, %v13051_v40  ;;  %v13063_v11 = vand.u32 4294901760, %v31759_v27 }
 0xdca   : > { %25263 = vmatpush3.bf16.msra.mxu1 %v25260_v58 }
 0xdcb   : > { %25265 = vmatprep.subr.bf16.mxu1 %v25264_v49 }
 0xdce   : > { %25267 = vmatpush3.bf16.msra.mxu1 %v25264_v49  ;;  %v31792_v49 = vpack.c.bf16 %v13066_v35, %v13063_v11 }
 0xdcf   : > { %25269 = vmatprep.subr.bf16.mxu1 %v25268_v53 }
 0xdd2   : > { %25271 = vmatpush3.bf16.msra.mxu1 %v25268_v53  ;;  %v31795_v53 = vsub.f32 %v13008_v31, %v31772_v10 }
 0xdd3   : > { %25273 = vmatprep.subr.bf16.mxu1 %v25272_v2 }
 0xdd6   : > { %25275 = vmatpush3.bf16.msra.mxu1 %v25272_v2  ;;  %v13069_v2 = vand.u32 4294901760, %v31782_v14 }
 0xdd7   : > { %25277 = vmatprep.subr.bf16.mxu1 %v25276_v15 }
 0xdda   : > { %25279 = vmatpush3.bf16.msra.mxu1 %v25276_v15  ;;  %v13072_v15 = vand.u32 4294901760, %v31784_v43 }
 0xddb   : > { %25281 = vmatprep.subr.bf16.mxu1 %v25280_v38 }
 0xdde   : > { %25283 = vmatpush3.bf16.msra.mxu1 %v25280_v38  ;;  %v13144_v38 = vand.u32 4294901760, %v31775_v54 }
 0xddf   : > { %25285 = vmatprep.subr.bf16.mxu1 %v25284_v26 }
 0xde2   : > { %25287 = vmatpush3.bf16.msra.mxu1 %v25284_v26  ;;  %v13151_v26 = vand.u32 4294901760, %v31777_v5 }
 0xde3   : > { %25289 = vmatprep.subr.bf16.mxu1 %v31456_v16 }
 0xde5   : > { %21191 = vmatmul.mubr.f32.vlgmr.msra.gmra.mrb[2].mxu1 %v31517_v29  ;;  %v13007_v29 = vld [vmem:[#allocation2 + $0x8] sm:$0xff] }
 0xde6   : > { %25291 = vmatpush3.bf16.msra.mxu1 %v31456_v16  ;;  %21225 = vmatprep.mubr.f32.mxu1 %v12404_v8  ;;  %v25324_v8 = vpack.c.bf16 %v12446_v37, %v12439_v9  ;;  %v31722_v9 = vand.u32 4294901760, %v13007_v29 }
 0xde7   : > { %25293 = vmatprep.subr.bf16.mxu1 %v31463_v22 }
 0xdea   : > { %25295 = vmatpush3.bf16.msra.mxu1 %v31463_v22 }
 0xdeb   : > { %25297 = vmatprep.subr.bf16.mxu1 %v31468_v3 }
 0xdee   : > { %25299 = vmatpush3.bf16.msra.mxu1 %v31468_v3 }
 0xdef   : > { %25301 = vmatprep.subr.bf16.mxu1 %v31472_v34 }
 0xdf2   : > { %25303 = vmatpush3.bf16.msra.mxu1 %v31472_v34 }
 0xdf3   : > { %25305 = vmatprep.subr.bf16.mxu1 %v31479_v13 }
 0xdf6   : > { %25307 = vmatpush3.bf16.msra.mxu1 %v31479_v13 }
 0xdf7   : > { %25309 = vmatprep.subr.bf16.mxu1 %v31502_v59 }
 0xdfa   : > { %25311 = vmatpush3.bf16.msra.mxu1 %v31502_v59 }
 0xdfb   : > { %25313 = vmatprep.subr.bf16.mxu1 %v31514_v42 }
 0xdfe   : > { %25315 = vmatpush3.bf16.msra.mxu1 %v31514_v42 }
 0xdff   : > { %25317 = vmatprep.subr.bf16.mxu1 %v31544_v41 }
 0xe02   : > { %25319 = vmatpush3.bf16.msra.mxu1 %v31544_v41 }
 0xe03   : > { %25321 = vmatprep.subr.bf16.mxu1 %v25320_v47 }
 0xe05   : > { %21226 = vmatmul.mubr.f32.vlgmr.msra.gmra.mrb[2].mxu1 %v12414_v63  ;;  %v13014_v63 = vld [vmem:[#allocation7 + $0x420] sm:$0xff] }
 0xe06   : > { %25323 = vmatpush3.bf16.msra.mxu1 %v25320_v47  ;;  %21260 = vmatprep.mubr.f32.mxu1 %v31444_v52  ;;  %v13039_v20 = vand.u32 4294901760, %v13014_v63 }
 0xe07   : > { %25325 = vmatprep.subr.bf16.mxu1 %v25324_v8 }
 0xe0a   : > { %25327 = vmatpush3.bf16.msra.mxu1 %v25324_v8 }
 0xe0b   : > { %25329 = vmatprep.subr.bf16.mxu1 %v25328_v44 }
 0xe0e   : > { %25331 = vmatpush3.bf16.msra.mxu1 %v25328_v44  ;;  %v31809_v44 = vsub.f32 %v13014_v63, %v13039_v20  ;;  %v31840_v63 = vsub.f32 %v13018_v32, %v13051_v40  ;;  %v31864_v40 = vsub.f32 %v31754_v56, %v13060_v7 }
 0xe0f   : > { %25333 = vmatprep.subr.bf16.mxu1 %v25332_v36 }
 0xe12   : > { %25335 = vmatpush3.bf16.msra.mxu1 %v25332_v36 }
 0xe13   : > { %25337 = vmatprep.subr.bf16.mxu1 %v25336_v45 }
 0xe16   : > { %25339 = vmatpush3.bf16.msra.mxu1 %v25336_v45  ;;  %v31813_v45 = vsub.f32 %v13016_v12, %v13045_v21 }
 0xe17   : > { %25341 = vmatprep.subr.bf16.mxu1 %v25340_v30 }
 0xe18   : > { %v13172_v25 = vand.u32 4294901760, %v31813_v45 }
 0xe1a   : > { %25343 = vmatpush3.bf16.msra.mxu1 %v25340_v30 }
 0xe1b   : > { %25345 = vmatprep.subr.bf16.mxu1 %v25344_v24 }
 0xe1e   : > { %25347 = vmatpush3.bf16.msra.mxu1 %v25344_v24  ;;  %v31822_v24 = vpack.c.bf16 %v13072_v15, %v13069_v2 }
 0xe1f   : > { %25349 = vmatprep.subr.bf16.mxu1 %v25348_v55 }
 0xe22   : > { %25351 = vmatpush3.bf16.msra.mxu1 %v25348_v55  ;;  %v13119_v55 = vand.u32 4294901760, %v31795_v53 }
 0xe23   : > { %25353 = vmatprep.subr.bf16.mxu1 %v31456_v16 }
 0xe24   : > { %v13120_v17 = vsub.f32 %v31795_v53, %v13119_v55 }
 0xe25   : > { %21261 = vmatmul.mubr.f32.vlgmr.msra.gmra.mrb[2].mxu1 %v31494_v19 }
 0xe26   : > { %25355 = vmatpush3.bf16.msra.mxu1 %v31456_v16  ;;  %21295 = vmatprep.mubr.f32.mxu1 %v31444_v52  ;;  %v13010_v52 = vld [vmem:[#allocation7 + $0x400] sm:$0xff]  ;;  %v13011_v16 = vld [vmem:[#allocation7 + $0x408] sm:$0xff] }
 0xe27   : > { %25357 = vmatprep.subr.bf16.mxu1 %v31463_v22  ;;  %v13030_v37 = vand.u32 4294901760, %v13011_v16 }
 0xe29   : > { %v31768_v18 = vsub.f32 %v13011_v16, %v13030_v37 }
 0xe2a   : > { %25359 = vmatpush3.bf16.msra.mxu1 %v31463_v22  ;;  %v31727_v22 = vsub.f32 %v13007_v29, %v31722_v9  ;;  %v13145_v29 = vsub.f32 %v31775_v54, %v13144_v38 }
 0xe2b   : > { %25361 = vmatprep.subr.bf16.mxu1 %v31468_v3  ;;  %v13137_v58 = vand.u32 4294901760, %v31768_v18 }
 0xe2d   : > { %v13138_v8 = vsub.f32 %v31768_v18, %v13137_v58 }
 0xe2e   : > { %25363 = vmatpush3.bf16.msra.mxu1 %v31468_v3  ;;  %v13027_v3 = vand.u32 4294901760, %v13010_v52 }
 0xe2f   : > { %25365 = vmatprep.subr.bf16.mxu1 %v31472_v34 }
 0xe30   : > { %v31766_v50 = vsub.f32 %v13010_v52, %v13027_v3  ;;  %v13152_v52 = vsub.f32 %v31777_v5, %v13151_v26 }
 0xe32   : > { %25367 = vmatpush3.bf16.msra.mxu1 %v31472_v34  ;;  %v13109_v34 = vand.u32 4294901760, %v31727_v22  ;;  %v13130_v46 = vand.u32 4294901760, %v31766_v50 }
 0xe33   : > { %25369 = vmatprep.subr.bf16.mxu1 %v31479_v13 }
 0xe34   : > { %v13131_v47 = vsub.f32 %v31766_v50, %v13130_v46 }
 0xe36   : > { %25371 = vmatpush3.bf16.msra.mxu1 %v31479_v13  ;;  %v31734_v13 = vpack.c.bf16 %v13030_v37, %v13027_v3  ;;  %v13132_v16 = vand.u32 4294901760, %v13131_v47  ;;  %v13139_v3 = vand.u32 4294901760, %v13138_v8  ;;  %v13158_v37 = vand.u32 4294901760, %v31809_v44 }
 0xe37   : > { %25373 = vmatprep.subr.bf16.mxu1 %v31502_v59 }
 0xe3a   : > { %25375 = vmatpush3.bf16.msra.mxu1 %v31502_v59  ;;  %v13110_v59 = vsub.f32 %v31727_v22, %v13109_v34 }
 0xe3b   : > { %25377 = vmatprep.subr.bf16.mxu1 %v31514_v42 }
 0xe3c   : > { %v13111_v33 = vand.u32 4294901760, %v13110_v59  ;;  %v13146_v59 = vand.u32 4294901760, %v13145_v29 }
 0xe3e   : > { %25379 = vmatpush3.bf16.msra.mxu1 %v31514_v42  ;;  %v13042_v42 = vand.u32 4294901760, %v13015_v39 }
 0xe3f   : > { %25381 = vmatprep.subr.bf16.mxu1 %v31544_v41 }
 0xe40   : > { %v31746_v61 = vpack.c.bf16 %v13042_v42, %v13039_v20  ;;  %v31811_v36 = vsub.f32 %v13015_v39, %v13042_v42  ;;  %v31842_v39 = vsub.f32 %v13019_v62, %v13054_v0  ;;  %v25416_v20 = vpack.c.bf16 %v13139_v3, %v13132_v16 }
 0xe41   : > { %v13153_v42 = vand.u32 4294901760, %v13152_v52  ;;  %v13121_v0 = vand.u32 4294901760, %v13120_v17  ;;  %v31878_v3 = vsub.f32 %v31759_v27, %v13063_v11  ;;  %v31883_v17 = vsub.f32 %v31761_v28, %v13066_v35 }
 0xe42   : > { %25383 = vmatpush3.bf16.msra.mxu1 %v31544_v41  ;;  %v13048_v41 = vand.u32 4294901760, %v13017_v1  ;;  %v13165_v60 = vand.u32 4294901760, %v31811_v36  ;;  %v13193_v32 = vand.u32 4294901760, %v31842_v39  ;;  %v31896_v28 = vsub.f32 %v31782_v14, %v13069_v2 }
 0xe43   : > { %25385 = vmatprep.subr.bf16.mxu1 %v31734_v13  ;;  %v25420_v31 = vpack.c.bf16 %v13153_v42, %v13146_v59  ;;  %v13214_v27 = vand.u32 4294901760, %v31878_v3  ;;  %v13221_v11 = vand.u32 4294901760, %v31883_v17  ;;  %v31901_v35 = vsub.f32 %v31784_v43, %v13072_v15 }
 0xe44   : > { %v31750_v57 = vpack.c.bf16 %v13048_v41, %v13045_v21  ;;  %v31815_v30 = vsub.f32 %v13017_v1, %v13048_v41  ;;  %v13166_v12 = vsub.f32 %v31811_v36, %v13165_v60  ;;  %v13173_v1 = vsub.f32 %v31813_v45, %v13172_v25 }
 0xe45   : > { %21296 = vmatmul.mubr.f32.vlgmr.msra.gmra.mrb[2].mxu1 %v31494_v19  ;;  %v31752_v19 = vld [vmem:[#allocation7 + $0x450] sm:$0xff]  ;;  %v13186_v41 = vand.u32 4294901760, %v31840_v63  ;;  %v13228_v14 = vand.u32 4294901760, %v31896_v28  ;;  %v13235_v2 = vand.u32 4294901760, %v31901_v35 }
 0xe46   : > { %25387 = vmatpush3.bf16.msra.mxu1 %v31734_v13  ;;  %21330 = vmatprep.mubr.f32.mxu1 %v13111_v33  ;;  %v13057_v4 = vand.u32 4294901760, %v31752_v19  ;;  %v13179_v48 = vand.u32 4294901760, %v31815_v30  ;;  %v13159_v33 = vsub.f32 %v31809_v44, %v13158_v37  ;;  %v13167_v8 = vand.u32 4294901760, %v13166_v12 }
 0xe47   : > { %25389 = vmatprep.subr.bf16.mxu1 %v31741_v23  ;;  %v13174_v29 = vand.u32 4294901760, %v13173_v1  ;;  %v13187_v16 = vsub.f32 %v31840_v63, %v13186_v41 }
 0xe48   : > { %v31780_v6 = vpack.c.bf16 %v13060_v7, %v13057_v4  ;;  %v13180_v21 = vsub.f32 %v31815_v30, %v13179_v48  ;;  %v31861_v62 = vsub.f32 %v31752_v19, %v13057_v4  ;;  %v13160_v47 = vand.u32 4294901760, %v13159_v33 }
 0xe49   : > { %v13194_v19 = vsub.f32 %v31842_v39, %v13193_v32  ;;  %v13207_v4 = vand.u32 4294901760, %v31864_v40 }
 0xe4a   : > { %25391 = vmatpush3.bf16.msra.mxu1 %v31741_v23  ;;  %v13181_v52 = vand.u32 4294901760, %v13180_v21  ;;  %v13200_v56 = vand.u32 4294901760, %v31861_v62  ;;  %v25424_v7 = vpack.c.bf16 %v13167_v8, %v13160_v47  ;;  %v13222_v47 = vsub.f32 %v31883_v17, %v13221_v11 }
 0xe4b   : > { %25393 = vmatprep.subr.bf16.mxu1 %v31746_v61  ;;  %v13195_v42 = vand.u32 4294901760, %v13194_v19  ;;  %v13208_v12 = vsub.f32 %v31864_v40, %v13207_v4 }
 0xe4c   : > { %v25428_v59 = vpack.c.bf16 %v13181_v52, %v13174_v29  ;;  %v13201_v33 = vsub.f32 %v31861_v62, %v13200_v56  ;;  %v13223_v8 = vand.u32 4294901760, %v13222_v47  ;;  %v13229_v29 = vsub.f32 %v31896_v28, %v13228_v14 }
 0xe4d   : > { %v13236_v52 = vsub.f32 %v31901_v35, %v13235_v2 }
 0xe4e   : > { %25395 = vmatpush3.bf16.msra.mxu1 %v31746_v61  ;;  %v13202_v21 = vand.u32 4294901760, %v13201_v33  ;;  %v13230_v19 = vand.u32 4294901760, %v13229_v29  ;;  %v25456_v33 = vpack.c.bf16 %v31811_v36, %v31809_v44  ;;  %v13717_v44 = vld [vmem:[#allocation7 + $0x490] sm:$0xff]  ;;  %v13718_v36 = vld [vmem:[#allocation7 + $0x498] sm:$0xff] }
 0xe4f   : > { %25397 = vmatprep.subr.bf16.mxu1 %v31750_v57 }
 0xe52   : > { %25399 = vmatpush3.bf16.msra.mxu1 %v31750_v57 }
 0xe53   : > { %25401 = vmatprep.subr.bf16.mxu1 %v31757_v51 }
 0xe56   : > { %25403 = vmatpush3.bf16.msra.mxu1 %v31757_v51 }
 0xe57   : > { %25405 = vmatprep.subr.bf16.mxu1 %v31780_v6 }
 0xe5a   : > { %25407 = vmatpush3.bf16.msra.mxu1 %v31780_v6 }
 0xe5b   : > { %25409 = vmatprep.subr.bf16.mxu1 %v31792_v49 }
 0xe5e   : > { %25411 = vmatpush3.bf16.msra.mxu1 %v31792_v49 }
 0xe5f   : > { %25413 = vmatprep.subr.bf16.mxu1 %v31822_v24 }
 0xe62   : > { %25415 = vmatpush3.bf16.msra.mxu1 %v31822_v24 }
 0xe63   : > { %25417 = vmatprep.subr.bf16.mxu1 %v25416_v20 }
 0xe65   : > { %21331 = vmatmul.mubr.f32.vlgmr.msra.gmra.mrb[2].mxu1 %v13121_v0  ;;  %v13209_v0 = vand.u32 4294901760, %v13208_v12  ;;  %v25460_v12 = vpack.c.bf16 %v31815_v30, %v31813_v45  ;;  %v13738_v45 = vand.u32 4294901760, %v13717_v44  ;;  %v13741_v30 = vand.u32 4294901760, %v13718_v36 }
 0xe66   : > { %25419 = vmatpush3.bf16.msra.mxu1 %v25416_v20  ;;  %21365 = vmatprep.mubr.f32.mxu1 %v31722_v9  ;;  %v13188_v20 = vand.u32 4294901760, %v13187_v16 }
 0xe67   : > { %25421 = vmatprep.subr.bf16.mxu1 %v25420_v31  ;;  %v25436_v43 = vpack.c.bf16 %v13209_v0, %v13202_v21  ;;  %v25468_v21 = vpack.c.bf16 %v31864_v40, %v31861_v62  ;;  %v25472_v0 = vpack.c.bf16 %v31883_v17, %v31878_v3  ;;  %v13723_v62 = vld [vmem:[#allocation7 + $0x4c0] sm:$0xff]  ;;  %v13724_v40 = vld [vmem:[#allocation7 + $0x4c8] sm:$0xff]  ;;  %v32032_v17 = vld [vmem:[#allocation7 + $0x4d8] sm:$0xff] }
 0xe68   : > { %v25432_v1 = vpack.c.bf16 %v13195_v42, %v13188_v20  ;;  %v25448_v20 = vpack.c.bf16 %v31768_v18, %v31766_v50  ;;  %v25452_v42 = vpack.c.bf16 %v31777_v5, %v31775_v54  ;;  %v25520_v50 = vpack.c.bf16 %v13165_v60, %v13158_v37  ;;  %v13720_v37 = vld [vmem:[#allocation7 + $0x4a8] sm:$0xff] }
 0xe69   : > { %v25524_v18 = vpack.c.bf16 %v13179_v48, %v13172_v25  ;;  %v25528_v54 = vpack.c.bf16 %v13193_v32, %v13186_v41  ;;  %v25532_v5 = vpack.c.bf16 %v13207_v4, %v13200_v56  ;;  %v32019_v60 = vpack.c.bf16 %v13741_v30, %v13738_v45 }
 0xe6a   : > { %25423 = vmatpush3.bf16.msra.mxu1 %v25420_v31  ;;  %v13215_v31 = vsub.f32 %v31878_v3, %v13214_v27  ;;  %v13756_v56 = vand.u32 4294901760, %v13723_v62  ;;  %v13759_v4 = vand.u32 4294901760, %v13724_v40 }
 0xe6b   : > { %25425 = vmatprep.subr.bf16.mxu1 %v25424_v7 }
 0xe6c   : > { %v13216_v15 = vand.u32 4294901760, %v13215_v31  ;;  %v25476_v31 = vpack.c.bf16 %v31901_v35, %v31896_v28  ;;  %v32039_v28 = vld [vmem:[#allocation7 + $0x4e8] sm:$0xff]  ;;  %v13713_v35 = vld [vmem:[#allocation2 + $0x11] sm:$0xff] }
 0xe6d   : > { %v32050_v29 = vand.u32 4294901760, %v13713_v35 }
 0xe6e   : > { %25427 = vmatpush3.bf16.msra.mxu1 %v25424_v7  ;;  %v25440_v16 = vpack.c.bf16 %v13223_v8, %v13216_v15  ;;  %v13237_v7 = vand.u32 4294901760, %v13236_v52  ;;  %v13771_v8 = vand.u32 4294901760, %v32039_v28  ;;  %v32053_v52 = vsub.f32 %v13717_v44, %v13738_v45 }
 0xe6f   : > { %25429 = vmatprep.subr.bf16.mxu1 %v25428_v59 }
 0xe72   : > { %25431 = vmatpush3.bf16.msra.mxu1 %v25428_v59  ;;  %v25444_v59 = vpack.c.bf16 %v13237_v7, %v13230_v19  ;;  %v32060_v7 = vld [vmem:[#allocation7 + $0x4f0] sm:$0xff] }
 0xe73   : > { %25433 = vmatprep.subr.bf16.mxu1 %v25432_v1 }
 0xe76   : > { %25435 = vmatpush3.bf16.msra.mxu1 %v25432_v1  ;;  %v25464_v1 = vpack.c.bf16 %v31842_v39, %v31840_v63  ;;  %v13721_v63 = vld [vmem:[#allocation7 + $0x4b0] sm:$0xff]  ;;  %v13722_v39 = vld [vmem:[#allocation7 + $0x4b8] sm:$0xff] }
 0xe77   : > { %25437 = vmatprep.subr.bf16.mxu1 %v25436_v43  ;;  %v13750_v32 = vand.u32 4294901760, %v13721_v63 }
 0xe7a   : > { %25439 = vmatpush3.bf16.msra.mxu1 %v25436_v43 }
 0xe7b   : > { %25441 = vmatprep.subr.bf16.mxu1 %v25440_v16 }
 0xe7e   : > { %25443 = vmatpush3.bf16.msra.mxu1 %v25440_v16  ;;  %v32055_v16 = vsub.f32 %v13718_v36, %v13741_v30 }
 0xe7f   : > { %25445 = vmatprep.subr.bf16.mxu1 %v25444_v59 }
 0xe82   : > { %25447 = vmatpush3.bf16.msra.mxu1 %v25444_v59  ;;  %v32062_v59 = vld [vmem:[#allocation7 + $0x4f8] sm:$0xff] }
 0xe83   : > { %25449 = vmatprep.subr.bf16.mxu1 %v25448_v20 }
 0xe85   : > { %21366 = vmatmul.mubr.f32.vlgmr.msra.gmra.mrb[2].mxu1 %v31772_v10 }
 0xe86   : > { %25451 = vmatpush3.bf16.msra.mxu1 %v25448_v20  ;;  %21400 = vmatprep.mubr.f32.mxu1 %v31727_v22  ;;  %v25512_v22 = vpack.c.bf16 %v13137_v58, %v13130_v46  ;;  %v25536_v46 = vpack.c.bf16 %v13221_v11, %v13214_v27  ;;  %v25540_v58 = vpack.c.bf16 %v13235_v2, %v13228_v14  ;;  %v32037_v11 = vld [vmem:[#allocation7 + $0x4e0] sm:$0xff]  ;;  %v13765_v14 = vand.u32 4294901760, %v32032_v17 }
 0xe87   : > { %25453 = vmatprep.subr.bf16.mxu1 %v25452_v42  ;;  %v32035_v27 = vpack.c.bf16 %v13759_v4, %v13756_v56  ;;  %v13768_v15 = vand.u32 4294901760, %v32037_v11 }
 0xe8a   : > { %25455 = vmatpush3.bf16.msra.mxu1 %v25452_v42 }
 0xe8b   : > { %25457 = vmatprep.subr.bf16.mxu1 %v25456_v33 }
 0xe8e   : > { %25459 = vmatpush3.bf16.msra.mxu1 %v25456_v33  ;;  %v32070_v33 = vpack.c.bf16 %v13771_v8, %v13768_v15 }
 0xe8f   : > { %25461 = vmatprep.subr.bf16.mxu1 %v25460_v12 }
 0xe92   : > { %25463 = vmatpush3.bf16.msra.mxu1 %v25460_v12  ;;  %v32073_v12 = vsub.f32 %v13713_v35, %v32050_v29 }
 0xe93   : > { %25465 = vmatprep.subr.bf16.mxu1 %v25464_v1 }
 0xe96   : > { %25467 = vmatpush3.bf16.msra.mxu1 %v25464_v1  ;;  %v13774_v1 = vand.u32 4294901760, %v32060_v7 }
 0xe97   : > { %25469 = vmatprep.subr.bf16.mxu1 %v25468_v21 }
 0xe9a   : > { %25471 = vmatpush3.bf16.msra.mxu1 %v25468_v21  ;;  %v13777_v21 = vand.u32 4294901760, %v32062_v59 }
 0xe9b   : > { %25473 = vmatprep.subr.bf16.mxu1 %v25472_v0 }
 0xe9e   : > { %25475 = vmatpush3.bf16.msra.mxu1 %v25472_v0  ;;  %v13849_v0 = vand.u32 4294901760, %v32053_v52 }
 0xe9f   : > { %25477 = vmatprep.subr.bf16.mxu1 %v25476_v31 }
 0xea2   : > { %25479 = vmatpush3.bf16.msra.mxu1 %v25476_v31  ;;  %v13856_v31 = vand.u32 4294901760, %v32055_v16 }
 0xea3   : > { %25481 = vmatprep.subr.bf16.mxu1 %v31734_v13 }
 0xea5   : > { %21401 = vmatmul.mubr.f32.vlgmr.msra.gmra.mrb[2].mxu1 %v31795_v53  ;;  %v13712_v53 = vld [vmem:[#allocation2 + $0x9] sm:$0xff] }
 0xea6   : > { %25483 = vmatpush3.bf16.msra.mxu1 %v31734_v13  ;;  %21435 = vmatprep.mubr.f32.mxu1 %v13109_v34  ;;  %v25516_v34 = vpack.c.bf16 %v13151_v26, %v13144_v38  ;;  %v32000_v38 = vand.u32 4294901760, %v13712_v53 }
 0xea7   : > { %25485 = vmatprep.subr.bf16.mxu1 %v31741_v23 }
 0xeaa   : > { %25487 = vmatpush3.bf16.msra.mxu1 %v31741_v23 }
 0xeab   : > { %25489 = vmatprep.subr.bf16.mxu1 %v31746_v61 }
 0xeae   : > { %25491 = vmatpush3.bf16.msra.mxu1 %v31746_v61 }
 0xeaf   : > { %25493 = vmatprep.subr.bf16.mxu1 %v31750_v57 }
 0xeb2   : > { %25495 = vmatpush3.bf16.msra.mxu1 %v31750_v57 }
 0xeb3   : > { %25497 = vmatprep.subr.bf16.mxu1 %v31757_v51 }
 0xeb6   : > { %25499 = vmatpush3.bf16.msra.mxu1 %v31757_v51 }
 0xeb7   : > { %25501 = vmatprep.subr.bf16.mxu1 %v31780_v6 }
 0xeba   : > { %25503 = vmatpush3.bf16.msra.mxu1 %v31780_v6 }
 0xebb   : > { %25505 = vmatprep.subr.bf16.mxu1 %v31792_v49 }
 0xebe   : > { %25507 = vmatpush3.bf16.msra.mxu1 %v31792_v49 }
 0xebf   : > { %25509 = vmatprep.subr.bf16.mxu1 %v31822_v24 }
 0xec2   : > { %25511 = vmatpush3.bf16.msra.mxu1 %v31822_v24 }
 0xec3   : > { %25513 = vmatprep.subr.bf16.mxu1 %v25512_v22 }
 0xec5   : > { %21436 = vmatmul.mubr.f32.vlgmr.msra.gmra.mrb[2].mxu1 %v13119_v55  ;;  %v13719_v55 = vld [vmem:[#allocation7 + $0x4a0] sm:$0xff] }
 0xec6   : > { %25515 = vmatpush3.bf16.msra.mxu1 %v25512_v22  ;;  %21470 = vmatprep.mubr.f32.mxu1 %v31722_v9  ;;  %v13744_v25 = vand.u32 4294901760, %v13719_v55 }
 0xec7   : > { %25517 = vmatprep.subr.bf16.mxu1 %v25516_v34 }
 0xeca   : > { %25519 = vmatpush3.bf16.msra.mxu1 %v25516_v34 }
 0xecb   : > { %25521 = vmatprep.subr.bf16.mxu1 %v25520_v50 }
 0xece   : > { %25523 = vmatpush3.bf16.msra.mxu1 %v25520_v50  ;;  %v32087_v50 = vsub.f32 %v13719_v55, %v13744_v25  ;;  %v32118_v55 = vsub.f32 %v13723_v62, %v13756_v56  ;;  %v32142_v56 = vsub.f32 %v32032_v17, %v13765_v14 }
 0xecf   : > { %25525 = vmatprep.subr.bf16.mxu1 %v25524_v18 }
 0xed2   : > { %25527 = vmatpush3.bf16.msra.mxu1 %v25524_v18 }
 0xed3   : > { %25529 = vmatprep.subr.bf16.mxu1 %v25528_v54 }
 0xed6   : > { %25531 = vmatpush3.bf16.msra.mxu1 %v25528_v54  ;;  %v32091_v54 = vsub.f32 %v13721_v63, %v13750_v32 }
 0xed7   : > { %25533 = vmatprep.subr.bf16.mxu1 %v25532_v5 }
 0xed8   : > { %v13877_v36 = vand.u32 4294901760, %v32091_v54 }
 0xeda   : > { %25535 = vmatpush3.bf16.msra.mxu1 %v25532_v5 }
 0xedb   : > { %25537 = vmatprep.subr.bf16.mxu1 %v25536_v46 }
 0xede   : > { %25539 = vmatpush3.bf16.msra.mxu1 %v25536_v46  ;;  %v32100_v46 = vpack.c.bf16 %v13777_v21, %v13774_v1 }
 0xedf   : > { %25541 = vmatprep.subr.bf16.mxu1 %v25540_v58 }
 0xee2   : > { %25543 = vmatpush3.bf16.msra.mxu1 %v25540_v58  ;;  %v13824_v58 = vand.u32 4294901760, %v32073_v12 }
 0xee3   : > { %25545 = vmatprep.subr.bf16.mxu1 %v31734_v13 }
 0xee4   : > { %v13825_v30 = vsub.f32 %v32073_v12, %v13824_v58 }
 0xee5   : > { %21471 = vmatmul.mubr.f32.vlgmr.msra.gmra.mrb[2].mxu1 %v31772_v10 }
 0xee6   : > { %25547 = vmatpush3.bf16.msra.mxu1 %v31734_v13  ;;  %21505 = vmatprep.mubr.f32.mxu1 %v31722_v9  ;;  %v13715_v9 = vld [vmem:[#allocation7 + $0x480] sm:$0xff]  ;;  %v13716_v13 = vld [vmem:[#allocation7 + $0x488] sm:$0xff] }
 0xee7   : > { %25549 = vmatprep.subr.bf16.mxu1 %v31741_v23  ;;  %v13735_v26 = vand.u32 4294901760, %v13716_v13 }
 0xee9   : > { %v32046_v43 = vsub.f32 %v13716_v13, %v13735_v26 }
 0xeea   : > { %25551 = vmatpush3.bf16.msra.mxu1 %v31741_v23  ;;  %v32005_v23 = vsub.f32 %v13712_v53, %v32000_v38  ;;  %v13850_v53 = vsub.f32 %v32053_v52, %v13849_v0 }
 0xeeb   : > { %25553 = vmatprep.subr.bf16.mxu1 %v31746_v61  ;;  %v13842_v42 = vand.u32 4294901760, %v32046_v43 }
 0xeed   : > { %v13843_v34 = vsub.f32 %v32046_v43, %v13842_v42 }
 0xeee   : > { %25555 = vmatpush3.bf16.msra.mxu1 %v31746_v61  ;;  %v13732_v61 = vand.u32 4294901760, %v13715_v9 }
 0xeef   : > { %25557 = vmatprep.subr.bf16.mxu1 %v31750_v57 }
 0xef0   : > { %v32044_v2 = vsub.f32 %v13715_v9, %v13732_v61  ;;  %v13857_v9 = vsub.f32 %v32055_v16, %v13856_v31 }
 0xef2   : > { %25559 = vmatpush3.bf16.msra.mxu1 %v31750_v57  ;;  %v13814_v57 = vand.u32 4294901760, %v32005_v23  ;;  %v13835_v20 = vand.u32 4294901760, %v32044_v2 }
 0xef3   : > { %25561 = vmatprep.subr.bf16.mxu1 %v31757_v51 }
 0xef4   : > { %v13836_v22 = vsub.f32 %v32044_v2, %v13835_v20 }
 0xef6   : > { %25563 = vmatpush3.bf16.msra.mxu1 %v31757_v51  ;;  %v32012_v51 = vpack.c.bf16 %v13735_v26, %v13732_v61  ;;  %v13837_v13 = vand.u32 4294901760, %v13836_v22  ;;  %v13844_v61 = vand.u32 4294901760, %v13843_v34  ;;  %v13863_v26 = vand.u32 4294901760, %v32087_v50 }
 0xef7   : > { %25565 = vmatprep.subr.bf16.mxu1 %v31780_v6 }
 0xefa   : > { %25567 = vmatpush3.bf16.msra.mxu1 %v31780_v6  ;;  %v13815_v6 = vsub.f32 %v32005_v23, %v13814_v57 }
 0xefb   : > { %25569 = vmatprep.subr.bf16.mxu1 %v31792_v49 }
 0xefc   : > { %v13816_v48 = vand.u32 4294901760, %v13815_v6  ;;  %v13851_v6 = vand.u32 4294901760, %v13850_v53 }
 0xefe   : > { %25571 = vmatpush3.bf16.msra.mxu1 %v31792_v49  ;;  %v13747_v49 = vand.u32 4294901760, %v13720_v37 }
 0xeff   : > { %25573 = vmatprep.subr.bf16.mxu1 %v31822_v24 }
 0xf00   : > { %v32024_v41 = vpack.c.bf16 %v13747_v49, %v13744_v25  ;;  %v32089_v18 = vsub.f32 %v13720_v37, %v13747_v49  ;;  %v32120_v37 = vsub.f32 %v13724_v40, %v13759_v4  ;;  %v25608_v25 = vpack.c.bf16 %v13844_v61, %v13837_v13 }
 0xf01   : > { %v13858_v49 = vand.u32 4294901760, %v13857_v9  ;;  %v13826_v4 = vand.u32 4294901760, %v13825_v30  ;;  %v32156_v61 = vsub.f32 %v32037_v11, %v13768_v15  ;;  %v32161_v30 = vsub.f32 %v32039_v28, %v13771_v8 }
 0xf02   : > { %25575 = vmatpush3.bf16.msra.mxu1 %v31822_v24  ;;  %v13753_v24 = vand.u32 4294901760, %v13722_v39  ;;  %v13870_v44 = vand.u32 4294901760, %v32089_v18  ;;  %v13898_v62 = vand.u32 4294901760, %v32120_v37  ;;  %v32174_v28 = vsub.f32 %v32060_v7, %v13774_v1 }
 0xf03   : > { %25577 = vmatprep.subr.bf16.mxu1 %v32012_v51  ;;  %v25612_v35 = vpack.c.bf16 %v13858_v49, %v13851_v6  ;;  %v13919_v11 = vand.u32 4294901760, %v32156_v61  ;;  %v13926_v15 = vand.u32 4294901760, %v32161_v30  ;;  %v32179_v8 = vsub.f32 %v32062_v59, %v13777_v21 }
 0xf04   : > { %v32028_v3 = vpack.c.bf16 %v13753_v24, %v13750_v32  ;;  %v32093_v5 = vsub.f32 %v13722_v39, %v13753_v24  ;;  %v13871_v63 = vsub.f32 %v32089_v18, %v13870_v44  ;;  %v13878_v39 = vsub.f32 %v32091_v54, %v13877_v36 }
 0xf05   : > { %21506 = vmatmul.mubr.f32.vlgmr.msra.gmra.mrb[2].mxu1 %v31772_v10  ;;  %v32030_v10 = vld [vmem:[#allocation7 + $0x4d0] sm:$0xff]  ;;  %v13891_v24 = vand.u32 4294901760, %v32118_v55  ;;  %v13933_v7 = vand.u32 4294901760, %v32174_v28  ;;  %v32859_v1 = vand.u32 4294901760, %v32179_v8 }
 0xf06   : > { %25579 = vmatpush3.bf16.msra.mxu1 %v32012_v51  ;;  %21540 = vmatprep.mubr.f32.mxu1 %v13816_v48  ;;  %v13762_v47 = vand.u32 4294901760, %v32030_v10  ;;  %v13884_v45 = vand.u32 4294901760, %v32093_v5  ;;  %v13864_v48 = vsub.f32 %v32087_v50, %v13863_v26  ;;  %v13872_v34 = vand.u32 4294901760, %v13871_v63 }
 0xf07   : > { %25581 = vmatprep.subr.bf16.mxu1 %v32019_v60  ;;  %v13879_v53 = vand.u32 4294901760, %v13878_v39  ;;  %v13892_v13 = vsub.f32 %v32118_v55, %v13891_v24 }
 0xf08   : > { %v32058_v19 = vpack.c.bf16 %v13765_v14, %v13762_v47  ;;  %v13885_v32 = vsub.f32 %v32093_v5, %v13884_v45  ;;  %v32139_v40 = vsub.f32 %v32030_v10, %v13762_v47  ;;  %v13865_v22 = vand.u32 4294901760, %v13864_v48 }
 0xf09   : > { %v13899_v10 = vsub.f32 %v32120_v37, %v13898_v62  ;;  %v13912_v47 = vand.u32 4294901760, %v32142_v56 }
 0xf0a   : > { %25583 = vmatpush3.bf16.msra.mxu1 %v32019_v60  ;;  %v13886_v9 = vand.u32 4294901760, %v13885_v32  ;;  %v13905_v17 = vand.u32 4294901760, %v32139_v40  ;;  %v25616_v14 = vpack.c.bf16 %v13872_v34, %v13865_v22  ;;  %v13927_v22 = vsub.f32 %v32161_v30, %v13926_v15 }
 0xf0b   : > { %25585 = vmatprep.subr.bf16.mxu1 %v32024_v41  ;;  %v13900_v49 = vand.u32 4294901760, %v13899_v10  ;;  %v13913_v63 = vsub.f32 %v32142_v56, %v13912_v47 }
 0xf0c   : > { %v25620_v6 = vpack.c.bf16 %v13886_v9, %v13879_v53  ;;  %v13906_v48 = vsub.f32 %v32139_v40, %v13905_v17  ;;  %v13928_v34 = vand.u32 4294901760, %v13927_v22  ;;  %v13934_v53 = vsub.f32 %v32174_v28, %v13933_v7 }
 0xf0d   : > { %v13941_v9 = vsub.f32 %v32179_v8, %v32859_v1 }
 0xf0e   : > { %25587 = vmatpush3.bf16.msra.mxu1 %v32024_v41  ;;  %v13907_v32 = vand.u32 4294901760, %v13906_v48  ;;  %v13935_v10 = vand.u32 4294901760, %v13934_v53  ;;  %v32203_v48 = vld [vmem:[%s32730_s5] sm:$0xff] }
 0xf0f   : > { %25589 = vmatprep.subr.bf16.mxu1 %v32028_v3 }
 0xf12   : > { %25591 = vmatpush3.bf16.msra.mxu1 %v32028_v3 }
 0xf13   : > { %25593 = vmatprep.subr.bf16.mxu1 %v32035_v27 }
 0xf16   : > { %25595 = vmatpush3.bf16.msra.mxu1 %v32035_v27 }
 0xf17   : > { %25597 = vmatprep.subr.bf16.mxu1 %v32058_v19 }
 0xf1a   : > { %25599 = vmatpush3.bf16.msra.mxu1 %v32058_v19 }
 0xf1b   : > { %25601 = vmatprep.subr.bf16.mxu1 %v32070_v33 }
 0xf1e   : > { %25603 = vmatpush3.bf16.msra.mxu1 %v32070_v33 }
 0xf1f   : > { %25605 = vmatprep.subr.bf16.mxu1 %v32100_v46 }
 0xf22   : > { %25607 = vmatpush3.bf16.msra.mxu1 %v32100_v46 }
 0xf23   : > { %25609 = vmatprep.subr.bf16.mxu1 %v25608_v25 }
 0xf25   : > { %21541 = vmatmul.mubr.f32.vlgmr.msra.gmra.mrb[2].mxu1 %v13826_v4  ;;  %v13914_v4 = vand.u32 4294901760, %v13913_v63  ;;  %v32208_v63 = vld [vmem:[%s32730_s5 + $0x8] sm:$0xff] }
 0xf26   : > { %25611 = vmatpush3.bf16.msra.mxu1 %v25608_v25  ;;  %21575 = vmatprep.mubr.f32.mxu1 %v32000_v38  ;;  %v13893_v25 = vand.u32 4294901760, %v13892_v13 }
 0xf27   : > { %25613 = vmatprep.subr.bf16.mxu1 %v25612_v35  ;;  %v25628_v59 = vpack.c.bf16 %v13914_v4, %v13907_v32  ;;  %v32858_v32 = vand.u32 4294901760, %v32203_v48  ;;  %v32855_v4 = vand.u32 4294901760, %v32208_v63 }
 0xf28   : > { %v25624_v39 = vpack.c.bf16 %v13900_v49, %v13893_v25  ;;  %v25640_v25 = vpack.c.bf16 %v32046_v43, %v32044_v2  ;;  %v25644_v49 = vpack.c.bf16 %v32055_v16, %v32053_v52  ;;  %v25712_v2 = vpack.c.bf16 %v13870_v44, %v13863_v26 }
 0xf29   : > { %v25716_v43 = vpack.c.bf16 %v13884_v45, %v13877_v36  ;;  %v25720_v52 = vpack.c.bf16 %v13898_v62, %v13891_v24  ;;  %v25724_v16 = vpack.c.bf16 %v13912_v47, %v13905_v17  ;;  %v33011_v44 = vand.u32 4294901760, %v32208_v63 }
 0xf2a   : > { %25615 = vmatpush3.bf16.msra.mxu1 %v25612_v35  ;;  %v13920_v35 = vsub.f32 %v32156_v61, %v13919_v11 }
 0xf2b   : > { %25617 = vmatprep.subr.bf16.mxu1 %v25616_v14  ;;  %v32403_v36 = vsub.f32 %v32208_v63, %v33011_v44 }
 0xf2c   : > { %v13921_v21 = vand.u32 4294901760, %v13920_v35  ;;  %v32221_v35 = vld [vmem:[%s32730_s5 + $0x18] sm:$0xff] }
 0xf2d   : > { %v32856_v53 = vand.u32 4294901760, %v32221_v35  ;;  %v14557_v62 = vand.u32 4294901760, %v32403_v36 }
 0xf2e   : > { %25619 = vmatpush3.bf16.msra.mxu1 %v25616_v14  ;;  %v25632_v13 = vpack.c.bf16 %v13928_v34, %v13921_v21  ;;  %v13942_v14 = vand.u32 4294901760, %v13941_v9  ;;  %v32232_v21 = vld [vmem:[%s32730_s5 + $0x28] sm:$0xff]  ;;  %v25648_v34 = vpack.c.bf16 %v32089_v18, %v32087_v50  ;;  %v32241_v9 = vpack.c.bf16 %v32855_v4, %v32858_v32 }
 0xf2f   : > { %25621 = vmatprep.subr.bf16.mxu1 %v25620_v6  ;;  %v25652_v4 = vpack.c.bf16 %v32093_v5, %v32091_v54  ;;  %v25656_v32 = vpack.c.bf16 %v32120_v37, %v32118_v55  ;;  %v14442_v54 = vld [vmem:[%s32730_s5 + $0x70] sm:$0xff] }
 0xf30   : > { %25769 = vmatprep.subr.bf16.mxu0 %v32241_v9  ;;  %v14489_v45 = vand.u32 4294901760, %v14442_v54 }
 0xf31   : > { %25771 = vmatpush3.bf16.msra.mxu0 %v32241_v9 }
 0xf32   : > { %25623 = vmatpush3.bf16.msra.mxu1 %v25620_v6  ;;  %v25636_v6 = vpack.c.bf16 %v13942_v14, %v13935_v10  ;;  %v32860_v10 = vand.u32 4294901760, %v32232_v21 }
 0xf33   : > { %25625 = vmatprep.subr.bf16.mxu1 %v25624_v39 }
 0xf36   : > { %25627 = vmatpush3.bf16.msra.mxu1 %v25624_v39  ;;  %v32213_v39 = vld [vmem:[%s32730_s5 + $0x10] sm:$0xff] }
 0xf37   : > { %25629 = vmatprep.subr.bf16.mxu1 %v25628_v59  ;;  %v32857_v22 = vand.u32 4294901760, %v32213_v39 }
 0xf39   : > { %v32249_v14 = vpack.c.bf16 %v32856_v53, %v32857_v22 }
 0xf3a   : > { %25631 = vmatpush3.bf16.msra.mxu1 %v25628_v59  ;;  %v32227_v59 = vld [vmem:[%s32730_s5 + $0x20] sm:$0xff] }
 0xf3b   : > { %25633 = vmatprep.subr.bf16.mxu1 %v25632_v13  ;;  %25773 = vmatprep.subr.bf16.mxu0 %v32249_v14 }
 0xf3c   : > { %25775 = vmatpush3.bf16.msra.mxu0 %v32249_v14 }
 0xf3e   : > { %25635 = vmatpush3.bf16.msra.mxu1 %v25632_v13  ;;  %v14459_v13 = vand.u32 4294901760, %v32227_v59 }
 0xf3f   : > { %25637 = vmatprep.subr.bf16.mxu1 %v25636_v6 }
 0xf40   : > { %v32270_v53 = vpack.c.bf16 %v32860_v10, %v14459_v13  ;;  %v25660_v10 = vpack.c.bf16 %v32142_v56, %v32139_v40  ;;  %v14558_v56 = vsub.f32 %v32403_v36, %v14557_v62 }
 0xf42   : > { %25639 = vmatpush3.bf16.msra.mxu1 %v25636_v6  ;;  %v32254_v6 = vld [vmem:[%s32730_s5 + $0x30] sm:$0xff]  ;;  %25777 = vmatprep.subr.bf16.mxu0 %v32270_v53 }
 0xf43   : > { %25641 = vmatprep.subr.bf16.mxu1 %v25640_v25  ;;  %v14465_v22 = vand.u32 4294901760, %v32254_v6  ;;  %25779 = vmatpush3.bf16.msra.mxu0 %v32270_v53 }
 0xf45   : > { %21576 = vmatmul.mubr.f32.vlgmr.msra.gmra.mrb[2].mxu1 %v32050_v29 }
 0xf46   : > { %25643 = vmatpush3.bf16.msra.mxu1 %v25640_v25  ;;  %21610 = vmatprep.mubr.f32.mxu1 %v32005_v23  ;;  %v32259_v25 = vld [vmem:[%s32730_s5 + $0x38] sm:$0xff]  ;;  %v25704_v23 = vpack.c.bf16 %v13842_v42, %v13835_v20  ;;  %v25728_v20 = vpack.c.bf16 %v13926_v15, %v13919_v11  ;;  %v33009_v42 = vand.u32 4294901760, %v32179_v8 }
 0xf47   : > { %25645 = vmatprep.subr.bf16.mxu1 %v25644_v49 }
 0xf4a   : > { %25647 = vmatpush3.bf16.msra.mxu1 %v25644_v49  ;;  %v14468_v49 = vand.u32 4294901760, %v32259_v25 }
 0xf4b   : > { %25649 = vmatprep.subr.bf16.mxu1 %v25648_v34 }
 0xf4c   : > { %v32282_v1 = vpack.c.bf16 %v14468_v49, %v14465_v22 }
 0xf4e   : > { %25651 = vmatpush3.bf16.msra.mxu1 %v25648_v34  ;;  %25781 = vmatprep.subr.bf16.mxu0 %v32282_v1  ;;  %v25664_v34 = vpack.c.bf16 %v32161_v30, %v32156_v61  ;;  %v14559_v61 = vand.u32 4294901760, %v14558_v56 }
 0xf4f   : > { %25653 = vmatprep.subr.bf16.mxu1 %v25652_v4  ;;  %25783 = vmatpush3.bf16.msra.mxu0 %v32282_v1 }
 0xf52   : > { %25655 = vmatpush3.bf16.msra.mxu1 %v25652_v4  ;;  %v25668_v4 = vpack.c.bf16 %v32179_v8, %v32174_v28 }
 0xf53   : > { %25657 = vmatprep.subr.bf16.mxu1 %v25656_v32 }
 0xf56   : > { %25659 = vmatpush3.bf16.msra.mxu1 %v25656_v32 }
 0xf57   : > { %25661 = vmatprep.subr.bf16.mxu1 %v25660_v10 }
 0xf5a   : > { %25663 = vmatpush3.bf16.msra.mxu1 %v25660_v10 }
 0xf5b   : > { %25665 = vmatprep.subr.bf16.mxu1 %v25664_v34 }
 0xf5e   : > { %25667 = vmatpush3.bf16.msra.mxu1 %v25664_v34 }
 0xf5f   : > { %25669 = vmatprep.subr.bf16.mxu1 %v25668_v4 }
 0xf62   : > { %25671 = vmatpush3.bf16.msra.mxu1 %v25668_v4 }
 0xf63   : > { %25673 = vmatprep.subr.bf16.mxu1 %v32012_v51 }
 0xf65   : > { %21611 = vmatmul.mubr.f32.vlgmr.msra.gmra.mrb[2].mxu1 %v32073_v12  ;;  %v25732_v12 = vpack.c.bf16 %v33009_v42, %v13933_v7 }
 0xf66   : > { %25675 = vmatpush3.bf16.msra.mxu1 %v32012_v51  ;;  %21645 = vmatprep.mubr.f32.mxu1 %v13814_v57  ;;  %v25708_v57 = vpack.c.bf16 %v13856_v31, %v13849_v0 }
 0xf67   : > { %25677 = vmatprep.subr.bf16.mxu1 %v32019_v60 }
 0xf6a   : > { %25679 = vmatpush3.bf16.msra.mxu1 %v32019_v60 }
 0xf6b   : > { %25681 = vmatprep.subr.bf16.mxu1 %v32024_v41 }
 0xf6e   : > { %25683 = vmatpush3.bf16.msra.mxu1 %v32024_v41 }
 0xf6f   : > { %25685 = vmatprep.subr.bf16.mxu1 %v32028_v3 }
 0xf72   : > { %25687 = vmatpush3.bf16.msra.mxu1 %v32028_v3 }
 0xf73   : > { %25689 = vmatprep.subr.bf16.mxu1 %v32035_v27 }
 0xf76   : > { %25691 = vmatpush3.bf16.msra.mxu1 %v32035_v27 }
 0xf77   : > { %25693 = vmatprep.subr.bf16.mxu1 %v32058_v19 }
 0xf7a   : > { %25695 = vmatpush3.bf16.msra.mxu1 %v32058_v19 }
 0xf7b   : > { %25697 = vmatprep.subr.bf16.mxu1 %v32070_v33 }
 0xf7e   : > { %25699 = vmatpush3.bf16.msra.mxu1 %v32070_v33 }
 0xf7f   : > { %25701 = vmatprep.subr.bf16.mxu1 %v32100_v46 }
 0xf82   : > { %25703 = vmatpush3.bf16.msra.mxu1 %v32100_v46 }
 0xf83   : > { %25705 = vmatprep.subr.bf16.mxu1 %v25704_v23 }
 0xf85   : > { %21646 = vmatmul.mubr.f32.vlgmr.msra.gmra.mrb[2].mxu1 %v13824_v58  ;;  %v33010_v58 = vand.u32 4294901760, %v32203_v48 }
 0xf86   : > { %25707 = vmatpush3.bf16.msra.mxu1 %v25704_v23  ;;  %21680 = vmatprep.mubr.f32.mxu1 %v32000_v38 }
 0xf87   : > { %25709 = vmatprep.subr.bf16.mxu1 %v25708_v57  ;;  %v32398_v26 = vsub.f32 %v32203_v48, %v33010_v58 }
 0xf89   : > { %v14550_v24 = vand.u32 4294901760, %v32398_v26  ;;  %v32483_v44 = vpack.c.bf16 %v32403_v36, %v32398_v26 }
 0xf8a   : > { %25711 = vmatpush3.bf16.msra.mxu1 %v25708_v57 }
 0xf8b   : > { %25713 = vmatprep.subr.bf16.mxu1 %v25712_v2  ;;  %v14551_v40 = vsub.f32 %v32398_v26, %v14550_v24 }
 0xf8d   : > { %v14552_v47 = vand.u32 4294901760, %v14551_v40 }
 0xf8e   : > { %25715 = vmatpush3.bf16.msra.mxu1 %v25712_v2 }
 0xf8f   : > { %25717 = vmatprep.subr.bf16.mxu1 %v25716_v43  ;;  %v32423_v30 = vpack.c.bf16 %v14559_v61, %v14552_v47  ;;  %v15243_v61 = vld [vmem:[%s32729_s4] ss:$0 sm:$0xff] }
 0xf92   : > { %25719 = vmatpush3.bf16.msra.mxu1 %v25716_v43 }
 0xf93   : > { %25721 = vmatprep.subr.bf16.mxu1 %v25720_v52 }
 0xf96   : > { %25723 = vmatpush3.bf16.msra.mxu1 %v25720_v52 }
 0xf97   : > { %25725 = vmatprep.subr.bf16.mxu1 %v25724_v16 }
 0xf9a   : > { %25727 = vmatpush3.bf16.msra.mxu1 %v25724_v16 }
 0xf9b   : > { %25729 = vmatprep.subr.bf16.mxu1 %v25728_v20 }
 0xf9e   : > { %25731 = vmatpush3.bf16.msra.mxu1 %v25728_v20 }
 0xf9f   : > { %25733 = vmatprep.subr.bf16.mxu1 %v25732_v12 }
 0xfa2   : > { %25735 = vmatpush3.bf16.msra.mxu1 %v25732_v12 }
 0xfa3   : > { %25737 = vmatprep.subr.bf16.mxu1 %v32012_v51 }
 0xfa5   : > { %21681 = vmatmul.mubr.f32.vlgmr.msra.gmra.mrb[2].mxu1 %v32050_v29 }
 0xfa6   : > { %25739 = vmatpush3.bf16.msra.mxu1 %v32012_v51  ;;  %21715 = vmatprep.mubr.f32.mxu1 %v32000_v38  ;;  %v14436_v38 = vld [vmem:[%s32730_s5 + $0x40] sm:$0xff]  ;;  %v14437_v51 = vld [vmem:[%s32730_s5 + $0x48] sm:$0xff] }
 0xfa7   : > { %25741 = vmatprep.subr.bf16.mxu1 %v32019_v60 }
 0xfaa   : > { %25743 = vmatpush3.bf16.msra.mxu1 %v32019_v60  ;;  %v14438_v60 = vld [vmem:[%s32730_s5 + $0x50] sm:$0xff] }
 0xfab   : > { %25745 = vmatprep.subr.bf16.mxu1 %v32024_v41 }
 0xfae   : > { %25747 = vmatpush3.bf16.msra.mxu1 %v32024_v41  ;;  %v14471_v41 = vand.u32 4294901760, %v14436_v38 }
 0xfaf   : > { %25749 = vmatprep.subr.bf16.mxu1 %v32028_v3 }
 0xfb0   : > { %v32427_v11 = vsub.f32 %v14436_v38, %v14471_v41 }
 0xfb2   : > { %25751 = vmatpush3.bf16.msra.mxu1 %v32028_v3  ;;  %v14474_v3 = vand.u32 4294901760, %v14437_v51  ;;  %v14606_v28 = vand.u32 4294901760, %v32427_v11 }
 0xfb3   : > { %25753 = vmatprep.subr.bf16.mxu1 %v32035_v27 }
 0xfb4   : > { %v32384_v31 = vpack.c.bf16 %v14474_v3, %v14471_v41  ;;  %v32429_v15 = vsub.f32 %v14437_v51, %v14474_v3  ;;  %v14607_v7 = vsub.f32 %v32427_v11, %v14606_v28  ;;  %v32465_v41 = vsub.f32 %v14442_v54, %v14489_v45 }
 0xfb6   : > { %25755 = vmatpush3.bf16.msra.mxu1 %v32035_v27  ;;  %v14439_v27 = vld [vmem:[%s32730_s5 + $0x58] sm:$0xff]  ;;  %25785 = vmatprep.subr.bf16.mxu0 %v32384_v31  ;;  %v14613_v8 = vand.u32 4294901760, %v32429_v15  ;;  %v14608_v10 = vand.u32 4294901760, %v14607_v7  ;;  %v33012_v7 = vand.u32 4294901760, %v32213_v39 }
 0xfb7   : > { %25757 = vmatprep.subr.bf16.mxu1 %v32058_v19  ;;  %v14480_v0 = vand.u32 4294901760, %v14439_v27  ;;  %25787 = vmatpush3.bf16.msra.mxu0 %v32384_v31 }
 0xfb8   : > { %v14614_v48 = vsub.f32 %v32429_v15, %v14613_v8 }
 0xfb9   : > { %v32441_v32 = vsub.f32 %v14439_v27, %v14480_v0 }
 0xfba   : > { %25759 = vmatpush3.bf16.msra.mxu1 %v32058_v19  ;;  %v14477_v19 = vand.u32 4294901760, %v14438_v60  ;;  %v14615_v34 = vand.u32 4294901760, %v14614_v48  ;;  %v32509_v48 = vsub.f32 %v32213_v39, %v33012_v7  ;;  %v32546_v7 = vsub.f32 %v32254_v6, %v14465_v22 }
 0xfbb   : > { %25761 = vmatprep.subr.bf16.mxu1 %v32070_v33  ;;  %v32865_v23 = vand.u32 4294901760, %v32441_v32 }
 0xfbc   : > { %v32389_v5 = vpack.c.bf16 %v14480_v0, %v14477_v19  ;;  %v32439_v63 = vsub.f32 %v14438_v60, %v14477_v19  ;;  %v32445_v57 = vpack.c.bf16 %v14615_v34, %v14608_v10  ;;  %v33013_v10 = vand.u32 4294901760, %v32221_v35 }
 0xfbd   : > { %v14628_v16 = vsub.f32 %v32441_v32, %v32865_v23 }
 0xfbe   : > { %25763 = vmatpush3.bf16.msra.mxu1 %v32070_v33  ;;  %v14441_v33 = vld [vmem:[%s32730_s5 + $0x68] sm:$0xff]  ;;  %25789 = vmatprep.subr.bf16.mxu0 %v32389_v5  ;;  %v14620_v4 = vand.u32 4294901760, %v32439_v63  ;;  %v32493_v40 = vpack.c.bf16 %v32441_v32, %v32439_v63  ;;  %v32514_v34 = vsub.f32 %v32221_v35, %v33013_v10  ;;  %v32551_v10 = vsub.f32 %v32259_v25, %v14468_v49 }
 0xfbf   : > { %25765 = vmatprep.subr.bf16.mxu1 %v32100_v46  ;;  %v14486_v18 = vand.u32 4294901760, %v14441_v33  ;;  %25791 = vmatpush3.bf16.msra.mxu0 %v32389_v5  ;;  %v14629_v38 = vand.u32 4294901760, %v14628_v16  ;;  %v14592_v25 = vand.u32 4294901760, %v32546_v7 }
 0xfc0   : > { %v14621_v2 = vsub.f32 %v32439_v63, %v14620_v4  ;;  %v14599_v49 = vand.u32 4294901760, %v32551_v10 }
 0xfc1   : > { %v32452_v52 = vsub.f32 %v14441_v33, %v14486_v18  ;;  %v32862_v33 = vand.u32 4294901760, %v32465_v41 }
 0xfc2   : > { %25767 = vmatpush3.bf16.msra.mxu1 %v32100_v46  ;;  %v14443_v46 = vld [vmem:[%s32730_s5 + $0x78] sm:$0xff]  ;;  %v14622_v20 = vand.u32 4294901760, %v14621_v2  ;;  %v14600_v23 = vsub.f32 %v32551_v10, %v14599_v49  ;;  %v25908_v36 = vpack.c.bf16 %v14599_v49, %v14592_v25 }
 0xfc3   : > { %v14492_v37 = vand.u32 4294901760, %v14443_v46  ;;  %v32863_v12 = vand.u32 4294901760, %v32452_v52 }
 0xfc4   : > { %v32469_v27 = vpack.c.bf16 %v14629_v38, %v14622_v20 }
 0xfc5   : > { %21716 = vmatmul.mubr.f32.vlgmr.msra.gmra.mrb[2].mxu1 %v32050_v29  ;;  %v14440_v29 = vld [vmem:[%s32730_s5 + $0x60] sm:$0xff]  ;;  %v32419_v17 = vpack.c.bf16 %v14492_v37, %v14489_v45  ;;  %v14642_v60 = vsub.f32 %v32452_v52, %v32863_v12  ;;  %v32467_v3 = vsub.f32 %v14443_v46, %v14492_v37  ;;  %v32489_v37 = vpack.c.bf16 %v32429_v15, %v32427_v11 }
 0xfc6   : > { %v14483_v50 = vand.u32 4294901760, %v14440_v29  ;;  %v33018_v11 = vand.u32 4294901760, %v32465_v41 }
 0xfc7   : > { %v32861_v0 = vand.u32 4294901760, %v32467_v3  ;;  %v32501_v47 = vpack.c.bf16 %v32467_v3, %v32465_v41  ;;  %v33019_v15 = vand.u32 4294901760, %v32467_v3 }
 0xfc8   : > { %v32407_v55 = vpack.c.bf16 %v14486_v18, %v14483_v50  ;;  %v32450_v43 = vsub.f32 %v14440_v29, %v14483_v50  ;;  %v14643_v29 = vand.u32 4294901760, %v14642_v60  ;;  %v14649_v18 = vsub.f32 %v32465_v41, %v32862_v33 }
 0xfc9   : > { %v14656_v54 = vsub.f32 %v32467_v3, %v32861_v0  ;;  %v14571_v60 = vand.u32 4294901760, %v32514_v34 }
 0xfca   : > { %25793 = vmatprep.subr.bf16.mxu0 %v32407_v55  ;;  %v32864_v42 = vand.u32 4294901760, %v32450_v43  ;;  %v14650_v46 = vand.u32 4294901760, %v14649_v18  ;;  %v32497_v56 = vpack.c.bf16 %v32452_v52, %v32450_v43 }
 0xfcb   : > { %25795 = vmatpush3.bf16.msra.mxu0 %v32407_v55  ;;  %v14657_v58 = vand.u32 4294901760, %v14656_v54 }
 0xfcc   : > { %25797 = vmatprep.subr.bf16.mxu0 %v32419_v17  ;;  %v14635_v51 = vsub.f32 %v32450_v43, %v32864_v42  ;;  %v14593_v42 = vsub.f32 %v32546_v7, %v14592_v25 }
 0xfcd   : > { %v32485_v45 = vpack.c.bf16 %v14657_v58, %v14650_v46 }
 0xfce   : > { %v14636_v19 = vand.u32 4294901760, %v14635_v51  ;;  %v14564_v51 = vand.u32 4294901760, %v32509_v48 }
 0xfcf   : > { %25799 = vmatpush3.bf16.msra.mxu0 %v32419_v17 }
 0xfd0   : > { %25801 = vmatprep.subr.bf16.mxu0 %v32423_v30  ;;  %v32473_v50 = vpack.c.bf16 %v14643_v29, %v14636_v19  ;;  %v32521_v19 = vsub.f32 %v32227_v59, %v14459_v13  ;;  %v33014_v29 = vand.u32 4294901760, %v32232_v21  ;;  %v14565_v58 = vsub.f32 %v32509_v48, %v14564_v51 }
 0xfd1   : > { %v14572_v59 = vsub.f32 %v32514_v34, %v14571_v60 }
 0xfd2   : > { %v32526_v18 = vsub.f32 %v32232_v21, %v33014_v29  ;;  %v14578_v13 = vand.u32 4294901760, %v32521_v19 }
 0xfd4   : > { %v14585_v21 = vand.u32 4294901760, %v32526_v18  ;;  %v14579_v29 = vsub.f32 %v32521_v19, %v14578_v13 }
 0xfd6   : > { %v14586_v6 = vsub.f32 %v32526_v18, %v14585_v21  ;;  %v14580_v0 = vand.u32 4294901760, %v14579_v29  ;;  %v25904_v26 = vpack.c.bf16 %v14585_v21, %v14578_v13 }
 0xfd8   : > { %v14587_v12 = vand.u32 4294901760, %v14586_v6 }
0x1098   : > { %v21717_v2 = vpop.f32.mrb[2].mxu1 }
0x1099   : > { %v14425_v16 = vadd.f32 %v21717_v2, %v15243_v61  ;;  %v14405_v20 = vpop.f32.mrb[3].mxu1 }
0x109a   : > { %v14424_v38 = vadd.f32 %v15243_v61, %v14405_v20 }
0x109b   : > { %v14427_v39 = vmax.f32 %v14425_v16, 0.0 }
0x109c   : > { %v14426_v35 = vmax.f32 %v14424_v38, 0.0  ;;  %v14566_v38 = vand.u32 4294901760, %v14565_v58 }
0x109d   : > { %v32528_v54 = vand.u32 4294901760, %v14427_v39 }
0x109e   : > { %v32530_v46 = vand.u32 4294901760, %v14426_v35 }
0x109f   : > { %v32540_v61 = vsub.f32 %v14427_v39, %v32528_v54  ;;  %v14573_v39 = vand.u32 4294901760, %v14572_v59 }
0x10a0   : > { %v32554_v2 = vsub.f32 %v14426_v35, %v32530_v46 }
0x10a1   : > { %v14539_v16 = vand.u32 4294901760, %v32540_v61  ;;  %v25804_v59 = vpack.c.bf16 %v14573_v39, %v14566_v38  ;;  %v14594_v38 = vand.u32 4294901760, %v14593_v42  ;;  %v14601_v39 = vand.u32 4294901760, %v14600_v23 }
0x10a2   : > { %v14529_v20 = vand.u32 4294901760, %v32554_v2  ;;  %v25840_v23 = vpack.c.bf16 %v32526_v18, %v32521_v19  ;;  %v25896_v42 = vpack.c.bf16 %v14557_v62, %v14550_v24  ;;  %v25912_v24 = vpack.c.bf16 %v14613_v8, %v14606_v28 }
0x10a3   : > { %v14540_v22 = vsub.f32 %v32540_v61, %v14539_v16  ;;  %v25812_v29 = vpack.c.bf16 %v14601_v39, %v14594_v38  ;;  %v33015_v62 = vand.u32 4294901760, %v32441_v32  ;;  %v25924_v28 = vpack.c.bf16 %v33019_v15, %v33018_v11 }
0x10a4   : > { %v14530_v35 = vsub.f32 %v32554_v2, %v14529_v20 }
0x10a5   : > { %v14541_v33 = vand.u32 4294901760, %v14540_v22 }
0x10a6   : > { %v14531_v58 = vand.u32 4294901760, %v14530_v35  ;;  %v25808_v35 = vpack.c.bf16 %v14587_v12, %v14580_v0  ;;  %v25900_v12 = vpack.c.bf16 %v14571_v60, %v14564_v51  ;;  %v33017_v0 = vand.u32 4294901760, %v32452_v52 }
0x10a8   : > { %21750 = vmatprep.mubr.f32.mxu0 %v14531_v58 }
0x10a9   : > { %21751 = vmatmul.mubr.f32.vlgmr.msra.gmra.mrb[2].mxu0 %v14541_v33  ;;  %v33016_v33 = vand.u32 4294901760, %v32450_v43 }
0x10aa   : > { %25803 = vmatpush3.bf16.msra.mxu0 %v32423_v30  ;;  %21785 = vmatprep.mubr.f32.mxu0 %v32530_v46  ;;  %v25836_v30 = vpack.c.bf16 %v32514_v34, %v32509_v48 }
0x10ab   : > { %25805 = vmatprep.subr.bf16.mxu0 %v25804_v59 }
0x10ae   : > { %25807 = vmatpush3.bf16.msra.mxu0 %v25804_v59 }
0x10af   : > { %25809 = vmatprep.subr.bf16.mxu0 %v25808_v35 }
0x10b2   : > { %25811 = vmatpush3.bf16.msra.mxu0 %v25808_v35 }
0x10b3   : > { %25813 = vmatprep.subr.bf16.mxu0 %v25812_v29 }
0x10b6   : > { %25815 = vmatpush3.bf16.msra.mxu0 %v25812_v29 }
0x10b7   : > { %25817 = vmatprep.subr.bf16.mxu0 %v32445_v57 }
0x10ba   : > { %25819 = vmatpush3.bf16.msra.mxu0 %v32445_v57  ;;  %v25844_v57 = vpack.c.bf16 %v32551_v10, %v32546_v7 }
0x10bb   : > { %25821 = vmatprep.subr.bf16.mxu0 %v32469_v27 }
0x10be   : > { %25823 = vmatpush3.bf16.msra.mxu0 %v32469_v27  ;;  %v25916_v27 = vpack.c.bf16 %v33015_v62, %v14620_v4 }
0x10bf   : > { %25825 = vmatprep.subr.bf16.mxu0 %v32473_v50 }
0x10c2   : > { %25827 = vmatpush3.bf16.msra.mxu0 %v32473_v50  ;;  %v25920_v50 = vpack.c.bf16 %v33017_v0, %v33016_v33 }
0x10c3   : > { %25829 = vmatprep.subr.bf16.mxu0 %v32485_v45 }
0x10c6   : > { %25831 = vmatpush3.bf16.msra.mxu0 %v32485_v45 }
0x10c7   : > { %25833 = vmatprep.subr.bf16.mxu0 %v32483_v44 }
0x10c9   : > { %21786 = vmatmul.mubr.f32.vlgmr.msra.gmra.mrb[2].mxu0 %v32528_v54 }
0x10ca   : > { %25835 = vmatpush3.bf16.msra.mxu0 %v32483_v44  ;;  %21820 = vmatprep.mubr.f32.mxu0 %v32554_v2 }
0x10cb   : > { %25837 = vmatprep.subr.bf16.mxu0 %v25836_v30 }
0x10ce   : > { %25839 = vmatpush3.bf16.msra.mxu0 %v25836_v30 }
0x10cf   : > { %25841 = vmatprep.subr.bf16.mxu0 %v25840_v23 }
0x10d2   : > { %25843 = vmatpush3.bf16.msra.mxu0 %v25840_v23 }
0x10d3   : > { %25845 = vmatprep.subr.bf16.mxu0 %v25844_v57 }
0x10d6   : > { %25847 = vmatpush3.bf16.msra.mxu0 %v25844_v57 }
0x10d7   : > { %25849 = vmatprep.subr.bf16.mxu0 %v32489_v37 }
0x10da   : > { %25851 = vmatpush3.bf16.msra.mxu0 %v32489_v37 }
0x10db   : > { %25853 = vmatprep.subr.bf16.mxu0 %v32493_v40 }
0x10de   : > { %25855 = vmatpush3.bf16.msra.mxu0 %v32493_v40 }
0x10df   : > { %25857 = vmatprep.subr.bf16.mxu0 %v32497_v56 }
0x10e2   : > { %25859 = vmatpush3.bf16.msra.mxu0 %v32497_v56 }
0x10e3   : > { %25861 = vmatprep.subr.bf16.mxu0 %v32501_v47 }
0x10e6   : > { %25863 = vmatpush3.bf16.msra.mxu0 %v32501_v47 }
0x10e7   : > { %25865 = vmatprep.subr.bf16.mxu0 %v32241_v9 }
0x10e9   : > { %21821 = vmatmul.mubr.f32.vlgmr.msra.gmra.mrb[2].mxu0 %v32540_v61 }
0x10ea   : > { %25867 = vmatpush3.bf16.msra.mxu0 %v32241_v9  ;;  %21855 = vmatprep.mubr.f32.mxu0 %v14529_v20 }
0x10eb   : > { %25869 = vmatprep.subr.bf16.mxu0 %v32249_v14 }
0x10ee   : > { %25871 = vmatpush3.bf16.msra.mxu0 %v32249_v14 }
0x10ef   : > { %25873 = vmatprep.subr.bf16.mxu0 %v32270_v53 }
0x10f2   : > { %25875 = vmatpush3.bf16.msra.mxu0 %v32270_v53 }
0x10f3   : > { %25877 = vmatprep.subr.bf16.mxu0 %v32282_v1 }
0x10f6   : > { %25879 = vmatpush3.bf16.msra.mxu0 %v32282_v1 }
0x10f7   : > { %25881 = vmatprep.subr.bf16.mxu0 %v32384_v31 }
0x10fa   : > { %25883 = vmatpush3.bf16.msra.mxu0 %v32384_v31 }
0x10fb   : > { %25885 = vmatprep.subr.bf16.mxu0 %v32389_v5 }
0x10fe   : > { %25887 = vmatpush3.bf16.msra.mxu0 %v32389_v5 }
0x10ff   : > { %25889 = vmatprep.subr.bf16.mxu0 %v32407_v55 }
0x1102   : > { %25891 = vmatpush3.bf16.msra.mxu0 %v32407_v55 }
0x1103   : > { %25893 = vmatprep.subr.bf16.mxu0 %v32419_v17 }
0x1106   : > { %25895 = vmatpush3.bf16.msra.mxu0 %v32419_v17 }
0x1107   : > { %25897 = vmatprep.subr.bf16.mxu0 %v25896_v42 }
0x1109   : > { %21856 = vmatmul.mubr.f32.vlgmr.msra.gmra.mrb[2].mxu0 %v14539_v16 }
0x110a   : > { %25899 = vmatpush3.bf16.msra.mxu0 %v25896_v42  ;;  %21890 = vmatprep.mubr.f32.mxu0 %v32530_v46 }
0x110b   : > { %25901 = vmatprep.subr.bf16.mxu0 %v25900_v12 }
0x110e   : > { %25903 = vmatpush3.bf16.msra.mxu0 %v25900_v12 }
0x110f   : > { %25905 = vmatprep.subr.bf16.mxu0 %v25904_v26 }
0x1112   : > { %25907 = vmatpush3.bf16.msra.mxu0 %v25904_v26 }
0x1113   : > { %25909 = vmatprep.subr.bf16.mxu0 %v25908_v36 }
0x1116   : > { %25911 = vmatpush3.bf16.msra.mxu0 %v25908_v36 }
0x1117   : > { %25913 = vmatprep.subr.bf16.mxu0 %v25912_v24 }
0x111a   : > { %25915 = vmatpush3.bf16.msra.mxu0 %v25912_v24 }
0x111b   : > { %25917 = vmatprep.subr.bf16.mxu0 %v25916_v27 }
0x111e   : > { %25919 = vmatpush3.bf16.msra.mxu0 %v25916_v27 }
0x111f   : > { %25921 = vmatprep.subr.bf16.mxu0 %v25920_v50 }
0x1122   : > { %25923 = vmatpush3.bf16.msra.mxu0 %v25920_v50 }
0x1123   : > { %25925 = vmatprep.subr.bf16.mxu0 %v25924_v28 }
0x1126   : > { %25927 = vmatpush3.bf16.msra.mxu0 %v25924_v28 }
0x1127   : > { %25929 = vmatprep.subr.bf16.mxu0 %v32241_v9 }
0x1129   : > { %21891 = vmatmul.mubr.f32.vlgmr.msra.gmra.mrb[2].mxu0 %v32528_v54 }
0x112a   : > { %25931 = vmatpush3.bf16.msra.mxu0 %v32241_v9  ;;  %21925 = vmatprep.mubr.f32.mxu0 %v32530_v46 }
0x112b   : > { %25933 = vmatprep.subr.bf16.mxu0 %v32249_v14 }
0x112e   : > { %25935 = vmatpush3.bf16.msra.mxu0 %v32249_v14 }
0x112f   : > { %25937 = vmatprep.subr.bf16.mxu0 %v32270_v53 }
0x1132   : > { %25939 = vmatpush3.bf16.msra.mxu0 %v32270_v53 }
0x1133   : > { %25941 = vmatprep.subr.bf16.mxu0 %v32282_v1 }
0x1136   : > { %25943 = vmatpush3.bf16.msra.mxu0 %v32282_v1  ;;  %v14445_v1 = vstv %s14444_s16 }
0x1137   : > { %25945 = vmatprep.subr.bf16.mxu0 %v32384_v31 }
0x113a   : > { %25947 = vmatpush3.bf16.msra.mxu0 %v32384_v31 }
0x113b   : > { %25949 = vmatprep.subr.bf16.mxu0 %v32389_v5 }
0x113e   : > { %25951 = vmatpush3.bf16.msra.mxu0 %v32389_v5 }
0x113f   : > { %25953 = vmatprep.subr.bf16.mxu0 %v32407_v55 }
0x1142   : > { %25955 = vmatpush3.bf16.msra.mxu0 %v32407_v55 }
0x1143   : > { %25957 = vmatprep.subr.bf16.mxu0 %v32419_v17 }
0x1146   : > { %25959 = vmatpush3.bf16.msra.mxu0 %v32419_v17 }
0x1149   : > { %21926 = vmatmul.mubr.f32.vlgmr.msra.gmra.mrb[2].mxu0 %v32528_v54 }
0x121c   : > { %v21927_v53 = vpop.f32.mrb[2].mxu0 }
0x121d   : > { %v25962_v9 = vadd.f32 %v21927_v53, %v14445_v1  ;;  %v15120_v14 = vpop.f32.mrb[3].mxu0 }
0x121e   : > { %v25963_v31 = vadd.f32 %v15120_v14, %v14445_v1 }
0x121f   : > { %15132 = vst.msk [vmem:[%s303_s20 + $0x8] sm:$0xff] %vm15130_vm0, %v25962_v9 }
0x1220   : > { %15131 = vst.msk [vmem:[%s303_s20] sm:$0xff] %vm15130_vm0, %v25963_v31 }
0x1221   : > { %26342 = shalt.err (!%p26339_p11)
}
0x1222   : > { %s26343_s25 = scalar_lea.hbm %s32682_s15, 256  ;;  %s26347_s16 = scalar_lea.hbm %s32732_s7, 512 }
0x1223   : > { %p26344_p13 = scmp.ne.s32.totalorder %s32682_s15, %s26343_s25  ;;  %p26348_p6 = scmp.lt.u32.totalorder %s32682_s15, %s32732_s7 }
0x1224   : > { %p26349_p9 = scmp.lt.u32.totalorder %s26347_s16, %s26343_s25  ;;  %p26351_p12 = scmp.lt.u32.totalorder %s26343_s25, %s32682_s15 }
0x1225   : > { %p26345_p5 = pnand %p26344_p13, %p33020_p1 }
0x1226   : > { %p26350_p10 = por %p26349_p9, %p26348_p6 }
0x1227   : > { %p26346_p0 = pneg %p26345_p5 }
0x1228   : > { %p26352_p2 = por %p26351_p12, %p26350_p10 }
0x122a   : > { %p26353_p3 = pnand %p26352_p2, %p26346_p0 }
0x122c   : > { %26356 = shalt.err (!%p26353_p3)
}
0x122d   : > { %s26407_s19 = smov 128   ;;  %s26408_s14 = smov 8  }
0x122e   : > { %26216 = dma.vmem_to_hbm [thread:$0]  (%p33020_p1), %s32677_s17, 256, %s32682_s15, %s32684_s21, %s26407_s19, %s26407_s19, %s26408_s14  }
0x122f PF: > { %p26233_p4 = scmp.ge.s32.totalorder %s26399_s29, 2  ;;  %s15162_s10 = sand.u32 1, %s26387_s26  }
0x1230   : > { %p33021_p7 = scmp.ne.s32.totalorder %s32867_s13, 0  ;;  %s15163_s6 = scalar_lea.sflag [#allocation6], %s15162_s10 }
0x1232   : > { %p26226_p8 = pnand %p26233_p4, %p33021_p7 }
0x1234   : > { %26382 = dma.done.wait (!%p26226_p8), %s15163_s6, 256  }
0x1235   : > { %26384 = vsyncadd (!%p26226_p8), %s15163_s6, 4294967040  ;;  %p20_p11 = scmp.ge.s32.totalorder %s26477_s8, 4   ;;  %s33022_s26 = smov %s26391_s27 }
0x1236   : > { %s33023_s27 = smov %s26395_s28  ;;  %s33024_s28 = smov %s26488_s11 }
0x1237   : > { %s33025_s29 = smov %s26477_s8  ;;  %22 = sbr.rel (!%p20_p11) target bundleno = 7 (0x7), region = 110 }
0x123e   :  { %15168 = vsyncpa [#allocation5], 1 }
0x123f   :  { %15170 = vsyncpa [#allocation5 + $0x1], 1 }
0x1240   :  { %15171 = vsyncpa [#allocation8], 1 }
0x1241   :  { %15172 = vsyncpa [#allocation6], 1 }
0x1242   :  { %15174 = vsyncpa [#allocation6 + $0x1], 1 }

</bundles_post_ra>
